<compile_context>
chip_gen: v6e
topology: v6e:2x2x1
jax: 0.10.0
libtpu: 0.0.40
codegen_flags: <defaults>
</compile_context>

<pallas_src>
import jax
import jax.numpy as jnp
from jax.experimental import pallas as pl
from jax.experimental.pallas import tpu as pltpu

_VMEM_LIMIT = 48 * 1024 * 1024  # explicit scoped-VMEM raise; safe on v5e/v6e/v7x


# ------------------------------- activations --------------------------------

def _mish(y):
    # mish(y) = y * tanh(softplus(y)).  With e = exp(y), p = (1+e)^2:
    #   tanh(log(1+e)) = (p - 1) / (p + 1)
    # -> one exp + one approx reciprocal instead of exp + log + tanh.
    # Clamp the exp argument: for y >= 20, tanh(softplus(y)) == 1 to f32 precision.
    e = jnp.exp(jnp.minimum(y, 20.0))
    p = (1.0 + e) * (1.0 + e)
    return y * (p - 1.0) * pl.reciprocal(p + 1.0, approx=True)


# ------------------ fused conv3x3 + BN + Mish + avgpool2x2 ------------------

def _conv3x3_bn_mish_pool_kernel(x_ref, w_ref, shift_ref, o_ref, row_ref):
    # x_ref    : (1, H+2, W+2, Cin)     padded NHWC input (bf16), resident per batch item
    # w_ref    : (9, Cin, Cout)         conv taps, BN scale pre-folded (bf16), resident
    # shift_ref: (1, Cout)              folded BN shift (f32), resident
    # o_ref    : (1, TH//2, W//2, Cout) pooled output tile (bf16)
    # row_ref  : (TH//2, W, Cout)       f32 row-pooled buffer (for strided column-pool reads)
    r = pl.program_id(1)
    th2, tw, cout = row_ref.shape
    th = 2 * th2
    cin = x_ref.shape[3]
    row0 = r * th  # first output row of this tile (== first padded input row of tap dy=0)

    # Stream the 9 conv taps directly from the resident padded input (no im2col).
    # Accumulate in vregs (traced value) — no VMEM RMW per tap.
    acc = None
    for t in range(9):
        dy, dx = divmod(t, 3)
        xs = x_ref[0, pl.ds(row0 + dy, th), pl.ds(dx, tw), :]          # (th, tw, cin)
        if cin == 1:
            # conv1: K=1 would starve the MXU -> broadcast FMA on the VPU (f32).
            contrib = (xs.reshape(th2, 2, tw, 1).astype(jnp.float32)
                       * w_ref[t].astype(jnp.float32).reshape(1, 1, 1, cout))
        else:
            contrib = jnp.dot(
                xs.reshape(th * tw, cin), w_ref[t],
                preferred_element_type=jnp.float32).reshape(th2, 2, tw, cout)
        acc = contrib if acc is None else acc + contrib

    # Epilogue: folded-BN shift + Mish, then fused 2x2 average pool.
    acc = _mish(acc + shift_ref[...].reshape(1, 1, 1, cout))
    row_ref[...] = acc[:, 0, :, :] + acc[:, 1, :, :]                    # 2x1 (row) pool
    pooled = 0.25 * (row_ref[:, pl.ds(0, tw // 2, stride=2), :]
                     + row_ref[:, pl.ds(1, tw // 2, stride=2), :])      # 1x2 (col) pool
    o_ref[...] = pooled.reshape(1, th2, tw // 2, cout).astype(o_ref.dtype)


def _pick_row_tile(h):
    if h <= 32:
        return h
    for t in (32, 28, 24, 20, 16, 12, 8, 4, 2):
        if h % t == 0:
            return t
    return 2


def conv3x3_bn_mish_pool(x, w, shift):
    """3x3 conv (padding=1) + folded BatchNorm + Mish + AvgPool2d(2,2), fused."""
    B, H, W, Cin = x.shape
    Cout = w.shape[2]
    # TODO(synk): nn.AvgPool2d(2,2) floors odd spatial dims; only even H/W supported here.
    assert H % 2 == 0 and W % 2 == 0
    th = _pick_row_tile(H)
    assert H % th == 0 and th % 2 == 0

    xp = jnp.pad(x.astype(jnp.bfloat16), ((0, 0), (1, 1), (1, 1), (0, 0)))

    flops = 2 * B * H * W * 9 * Cin * Cout
    bytes_accessed = (xp.size * 2 + w.size * 2 + shift.size * 4
                      + B * (H // 2) * (W // 2) * Cout * 2)

    return pl.pallas_call(
        _conv3x3_bn_mish_pool_kernel,
        out_shape=jax.ShapeDtypeStruct((B, H // 2, W // 2, Cout), jnp.bfloat16),
        grid=(B, H // th),
        in_specs=[
            # whole padded image resident across the row-block axis (same block index)
            pl.BlockSpec((1, H + 2, W + 2, Cin), lambda b, r: (b, 0, 0, 0)),
            pl.BlockSpec((9, Cin, Cout), lambda b, r: (0, 0, 0)),
            pl.BlockSpec((1, Cout), lambda b, r: (0, 0)),
        ],
        out_specs=pl.BlockSpec((1, th // 2, W // 2, Cout), lambda b, r: (b, r, 0, 0)),
        scratch_shapes=[
            pltpu.VMEM((th // 2, W, Cout), jnp.float32),
        ],
        compiler_params=pltpu.CompilerParams(
            dimension_semantics=("parallel", "parallel"),
            vmem_limit_bytes=_VMEM_LIMIT),
        cost_estimate=pl.CostEstimate(
            flops=int(flops),
            transcendentals=int(B * H * W * Cout),
            bytes_accessed=int(bytes_accessed)),
    )(xp, w, shift)


# ----------------------- fused fc1 + BN + Mish + fc2 ------------------------

def _fc_fused_kernel(x_ref, w1_ref, s1_ref, w2_ref, s2_ref, o_ref, acc_ref):
    # x_ref: (TM, TK) bf16, w1_ref: (TK, 256) bf16, s1_ref: (1, 256) f32,
    # w2_ref: (256, 128) bf16 (N padded 4->128), s2_ref: (1, 128) f32,
    # o_ref: (TM, 128) f32, acc_ref: (TM, 256) f32.
    k = pl.program_id(1)

    @pl.when(k == 0)
    def _init():
        acc_ref[...] = jnp.zeros_like(acc_ref)

    acc_ref[...] += jnp.dot(x_ref[...], w1_ref[...],
                            preferred_element_type=jnp.float32)

    @pl.when(k == pl.num_programs(1) - 1)
    def _finalize():
        h = _mish(acc_ref[...] + s1_ref[...])                  # fc1 + BN + Mish (f32)
        # Dropout(0.5) between fc1 and fc2: identity in eval mode.
        y = jnp.dot(h.astype(jnp.bfloat16), w2_ref[...],
                    preferred_element_type=jnp.float32)        # fc2 (lane-padded N)
        o_ref[...] = _mish(y + s2_ref[...]).astype(o_ref.dtype)


def _pick_m_tile(m):
    if m <= 8:
        return m
    for t in (256, 128, 64, 32, 16, 8):
        if m % t == 0:
            return t
    return m


def _pick_k_tile(k):
    # Biggest tile that divides K (a (2048, 256) bf16 weight tile is 1 MiB,
    # double-buffered 2 MiB -> well within VMEM).
    for t in (2048, 1024, 512, 256, 128):
        if k % t == 0:
            return t
    return k


def fc_fused(x, w1, s1, w2, s2):
    M, K = x.shape
    N1 = w1.shape[1]
    N2 = w2.shape[1]
    tm = _pick_m_tile(M)
    tk = _pick_k_tile(K)
    grid = (M // tm, K // tk)

    flops = 2 * M * K * N1 + 2 * M * N1 * N2
    bytes_accessed = M * K * 2 + K * N1 * 2 + N1 * N2 * 2 + M * N2 * 4

    return pl.pallas_call(
        _fc_fused_kernel,
        out_shape=jax.ShapeDtypeStruct((M, N2), jnp.float32),
        grid=grid,
        in_specs=[
            pl.BlockSpec((tm, tk), lambda m, k: (m, k)),
            pl.BlockSpec((tk, N1), lambda m, k: (k, 0)),
            pl.BlockSpec((1, N1), lambda m, k: (0, 0)),
            pl.BlockSpec((N1, N2), lambda m, k: (0, 0)),
            pl.BlockSpec((1, N2), lambda m, k: (0, 0)),
        ],
        out_specs=pl.BlockSpec((tm, N2), lambda m, k: (m, 0)),
        scratch_shapes=[pltpu.VMEM((tm, N1), jnp.float32)],
        compiler_params=pltpu.CompilerParams(
            dimension_semantics=("parallel", "arbitrary"),
            vmem_limit_bytes=_VMEM_LIMIT),
        cost_estimate=pl.CostEstimate(
            flops=int(flops),
            transcendentals=int(M * (N1 + N2)),
            bytes_accessed=int(bytes_accessed)),
    )(x, w1, s1, w2, s2)


# ------------------------- parameter construction ---------------------------

def fold_bn(gamma, beta, mean, var, bias, eps=1e-5):
    # BatchNorm(eval)(z + bias) = z * scale + shift
    scale = gamma / jnp.sqrt(var + eps)
    shift = beta - mean * scale + bias * scale
    return scale.reshape(1, -1), shift.reshape(1, -1)


def _bn_stats(key, c):
    k1, k2, k3, k4 = jax.random.split(key, 4)
    gamma = 1.0 + 0.1 * jax.random.normal(k1, (c,), jnp.float32)
    beta = 0.1 * jax.random.normal(k2, (c,), jnp.float32)
    mean = 0.1 * jax.random.normal(k3, (c,), jnp.float32)
    var = 0.5 + jax.random.uniform(k4, (c,), jnp.float32)
    return gamma, beta, mean, var


def _conv_block(key, cin, cout):
    kw, kb, kbn = jax.random.split(key, 3)
    fan_in = cin * 9
    bound = 1.0 / (fan_in ** 0.5)
    # torch layout (Cout, Cin, kh, kw)
    w = jax.random.uniform(kw, (cout, cin, 3, 3), jnp.float32, -bound, bound)
    b = jax.random.uniform(kb, (cout,), jnp.float32, -bound, bound)
    scale, shift = fold_bn(*_bn_stats(kbn, cout), b)
    w = w * scale.reshape(cout, 1, 1, 1)                 # fold BN scale into weights
    w = jnp.transpose(w, (2, 3, 1, 0)).reshape(9, cin, cout).astype(jnp.bfloat16)
    return w, shift                                      # shift stays f32 (1, cout)


def _fc_block(key, din, dout):
    kw, kb, kbn = jax.random.split(key, 3)
    bound = 1.0 / (din ** 0.5)
    w = jax.random.uniform(kw, (din, dout), jnp.float32, -bound, bound)
    b = jax.random.uniform(kb, (dout,), jnp.float32, -bound, bound)
    scale, shift = fold_bn(*_bn_stats(kbn, dout), b)
    w = w * scale                                        # fold BN scale into weights
    return w, shift                                      # f32; caller permutes/pads + casts


# ------------------------------ forward pass --------------------------------

def tuned_cnn_forward(x_nchw, params):
    # conv1 -> bn1 -> mish -> pool -> conv2 -> bn2 -> mish -> pool
    # -> flatten -> fc1 -> bn -> mish -> (dropout=id) -> fc2 -> bn -> mish -> (dropout=id)
    x = jnp.transpose(x_nchw, (0, 2, 3, 1)).astype(jnp.bfloat16)   # NCHW -> NHWC
    x = conv3x3_bn_mish_pool(x, params["w1"], params["b1"])        # (B, H/2, W/2, 64)
    x = conv3x3_bn_mish_pool(x, params["w2"], params["b2"])        # (B, H/4, W/4, 128)
    bsz = x.shape[0]
    # NHWC flatten; wf1 rows are pre-permuted to match PyTorch's NCHW flatten order.
    x = x.reshape(bsz, -1)
    out = fc_fused(x, params["wf1"], params["bf1"], params["wf2"], params["bf2"])
    return out[:, :4]                                              # drop fc2 lane padding


# ----------------------------------- main ------------------------------------

if __name__ == "__main__":
    # Small shapes consistent with the module structure (module hardcodes
    # 128*56*56 for 224x224 inputs; here spatial=16 so fc1 in-dim = 128*4*4).
    B, H, W = 2, 16, 16

    key = jax.random.PRNGKey(0)
    kx, k1, k2, k3, k4 = jax.random.split(key, 5)
    x = jax.random.normal(kx, (B, 1, H, W), jnp.float32)           # NCHW like PyTorch

    w1, b1 = _conv_block(k1, 1, 64)
    w2, b2 = _conv_block(k2, 64, 128)

    h4, w4 = H // 4, W // 4
    c2 = w2.shape[2]                                               # 128
    fc1_in = c2 * h4 * w4
    wf1_t, bf1 = _fc_block(k3, fc1_in, 256)
    wf2_t, bf2 = _fc_block(k4, 256, 4)

    # Permute fc1 rows from NCHW-flatten (torch) order to NHWC-flatten order
    # (one-time weight transform; removes the runtime layout transpose).
    nchw = jnp.arange(c2 * h4 * w4).reshape(c2, h4, w4)
    perm = jnp.transpose(nchw, (1, 2, 0)).reshape(-1)
    wf1 = wf1_t[perm].astype(jnp.bfloat16)

    # Pad fc2 output lanes 4 -> 128 for lane-dense stores; padded lanes get zero
    # weights AND zero shift so they stay exactly zero (mish(0) == 0).
    wf2 = jnp.pad(wf2_t, ((0, 0), (0, 128 - 4))).astype(jnp.bfloat16)
    bf2p = jnp.pad(bf2, ((0, 0), (0, 128 - 4)))

    params = dict(w1=w1, b1=b1, w2=w2, b2=b2,
                  wf1=wf1, bf1=bf1, wf2=wf2, bf2=bf2p)

    out = jax.jit(tuned_cnn_forward)(x, params)
    jax.block_until_ready(out)
    assert out.shape == (B, 4) and out.dtype == jnp.float32
    print("KERNEL_OK")
</pallas_src>

<mosaic_0001>
module attributes {stable_mosaic.version = 11 : i64} {
  func.func @_conv3x3_bn_mish_pool_kernel(%arg0: i32, %arg1: i32, %arg2: memref<1x10x10x64xbf16, #tpu.memory_space<vmem>>, %arg3: memref<9x64x128xbf16, #tpu.memory_space<vmem>>, %arg4: memref<1x128xf32, #tpu.memory_space<vmem>>, %arg5: memref<1x4x4x128xbf16, #tpu.memory_space<vmem>>, %arg6: memref<4x8x128xf32, #tpu.memory_space<vmem>>) attributes {dimension_semantics = [#tpu.dimension_semantics<parallel>, #tpu.dimension_semantics<parallel>], iteration_bounds = array<i64: 2, 1>, scalar_prefetch = 0 : i64, scratch_operands = 1 : i64, tpu.core_type = #tpu.core_type<tc>, window_params = [{transform_indices = @transform_0, window_bounds = array<i64: 1, 10, 10, 64>}, {pipeline_mode = #tpu.pipeline_mode<synchronous>, transform_indices = @transform_1, window_bounds = array<i64: 9, 64, 128>}, {pipeline_mode = #tpu.pipeline_mode<synchronous>, transform_indices = @transform_2, window_bounds = array<i64: 1, 128>}, {transform_indices = @transform_3, window_bounds = array<i64: 1, 4, 4, 128>}]} {
    %c8_i32 = arith.constant 8 : i32
    %0 = arith.muli %arg1, %c8_i32 : i32
    %c0_i32 = arith.constant 0 : i32
    %1 = arith.addi %0, %c0_i32 : i32
    %c0 = arith.constant 0 : index
    %2 = arith.index_cast %1 : i32 to index
    %c0_0 = arith.constant 0 : index
    %c0_1 = arith.constant 0 : index
    %3 = vector.load %arg2[%c0, %2, %c0_0, %c0_1] : memref<1x10x10x64xbf16, #tpu.memory_space<vmem>>, vector<1x8x8x64xbf16>
    %4 = vector.shape_cast %3 : vector<1x8x8x64xbf16> to vector<8x8x64xbf16>
    %5 = vector.shape_cast %4 : vector<8x8x64xbf16> to vector<64x64xbf16>
    %c0_2 = arith.constant 0 : index
    %c0_3 = arith.constant 0 : index
    %c0_4 = arith.constant 0 : index
    %6 = vector.load %arg3[%c0_2, %c0_3, %c0_4] : memref<9x64x128xbf16, #tpu.memory_space<vmem>>, vector<1x64x128xbf16>
    %7 = vector.shape_cast %6 : vector<1x64x128xbf16> to vector<64x128xbf16>
    %cst = arith.constant dense<0.000000e+00> : vector<64x128xf32>
    %8 = tpu.matmul %5, %7, %cst {dimension_numbers = #tpu.dot_dimension_numbers<[1], [0], [0], [1], [0, 0, 1, 1], [], []>} : vector<64x64xbf16>, vector<64x128xbf16>, vector<64x128xf32> -> vector<64x128xf32>
    %9 = vector.shape_cast %8 : vector<64x128xf32> to vector<4x2x8x128xf32>
    %c0_i32_5 = arith.constant 0 : i32
    %10 = arith.addi %0, %c0_i32_5 : i32
    %c0_6 = arith.constant 0 : index
    %11 = arith.index_cast %10 : i32 to index
    %c1 = arith.constant 1 : index
    %c0_7 = arith.constant 0 : index
    %12 = vector.load %arg2[%c0_6, %11, %c1, %c0_7] : memref<1x10x10x64xbf16, #tpu.memory_space<vmem>>, vector<1x8x8x64xbf16>
    %13 = vector.shape_cast %12 : vector<1x8x8x64xbf16> to vector<8x8x64xbf16>
    %14 = vector.shape_cast %13 : vector<8x8x64xbf16> to vector<64x64xbf16>
    %c1_8 = arith.constant 1 : index
    %c0_9 = arith.constant 0 : index
    %c0_10 = arith.constant 0 : index
    %15 = vector.load %arg3[%c1_8, %c0_9, %c0_10] : memref<9x64x128xbf16, #tpu.memory_space<vmem>>, vector<1x64x128xbf16>
    %16 = vector.shape_cast %15 : vector<1x64x128xbf16> to vector<64x128xbf16>
    %cst_11 = arith.constant dense<0.000000e+00> : vector<64x128xf32>
    %17 = tpu.matmul %14, %16, %cst_11 {dimension_numbers = #tpu.dot_dimension_numbers<[1], [0], [0], [1], [0, 0, 1, 1], [], []>} : vector<64x64xbf16>, vector<64x128xbf16>, vector<64x128xf32> -> vector<64x128xf32>
    %18 = vector.shape_cast %17 : vector<64x128xf32> to vector<4x2x8x128xf32>
    %19 = arith.addf %9, %18 : vector<4x2x8x128xf32>
    %c0_i32_12 = arith.constant 0 : i32
    %20 = arith.addi %0, %c0_i32_12 : i32
    %c0_13 = arith.constant 0 : index
    %21 = arith.index_cast %20 : i32 to index
    %c2 = arith.constant 2 : index
    %c0_14 = arith.constant 0 : index
    %22 = vector.load %arg2[%c0_13, %21, %c2, %c0_14] : memref<1x10x10x64xbf16, #tpu.memory_space<vmem>>, vector<1x8x8x64xbf16>
    %23 = vector.shape_cast %22 : vector<1x8x8x64xbf16> to vector<8x8x64xbf16>
    %24 = vector.shape_cast %23 : vector<8x8x64xbf16> to vector<64x64xbf16>
    %c2_15 = arith.constant 2 : index
    %c0_16 = arith.constant 0 : index
    %c0_17 = arith.constant 0 : index
    %25 = vector.load %arg3[%c2_15, %c0_16, %c0_17] : memref<9x64x128xbf16, #tpu.memory_space<vmem>>, vector<1x64x128xbf16>
    %26 = vector.shape_cast %25 : vector<1x64x128xbf16> to vector<64x128xbf16>
    %cst_18 = arith.constant dense<0.000000e+00> : vector<64x128xf32>
    %27 = tpu.matmul %24, %26, %cst_18 {dimension_numbers = #tpu.dot_dimension_numbers<[1], [0], [0], [1], [0, 0, 1, 1], [], []>} : vector<64x64xbf16>, vector<64x128xbf16>, vector<64x128xf32> -> vector<64x128xf32>
    %28 = vector.shape_cast %27 : vector<64x128xf32> to vector<4x2x8x128xf32>
    %29 = arith.addf %19, %28 : vector<4x2x8x128xf32>
    %c1_i32 = arith.constant 1 : i32
    %30 = arith.addi %0, %c1_i32 : i32
    %c0_19 = arith.constant 0 : index
    %31 = arith.index_cast %30 : i32 to index
    %c0_20 = arith.constant 0 : index
    %c0_21 = arith.constant 0 : index
    %32 = vector.load %arg2[%c0_19, %31, %c0_20, %c0_21] : memref<1x10x10x64xbf16, #tpu.memory_space<vmem>>, vector<1x8x8x64xbf16>
    %33 = vector.shape_cast %32 : vector<1x8x8x64xbf16> to vector<8x8x64xbf16>
    %34 = vector.shape_cast %33 : vector<8x8x64xbf16> to vector<64x64xbf16>
    %c3 = arith.constant 3 : index
    %c0_22 = arith.constant 0 : index
    %c0_23 = arith.constant 0 : index
    %35 = vector.load %arg3[%c3, %c0_22, %c0_23] : memref<9x64x128xbf16, #tpu.memory_space<vmem>>, vector<1x64x128xbf16>
    %36 = vector.shape_cast %35 : vector<1x64x128xbf16> to vector<64x128xbf16>
    %cst_24 = arith.constant dense<0.000000e+00> : vector<64x128xf32>
    %37 = tpu.matmul %34, %36, %cst_24 {dimension_numbers = #tpu.dot_dimension_numbers<[1], [0], [0], [1], [0, 0, 1, 1], [], []>} : vector<64x64xbf16>, vector<64x128xbf16>, vector<64x128xf32> -> vector<64x128xf32>
    %38 = vector.shape_cast %37 : vector<64x128xf32> to vector<4x2x8x128xf32>
    %39 = arith.addf %29, %38 : vector<4x2x8x128xf32>
    %c1_i32_25 = arith.constant 1 : i32
    %40 = arith.addi %0, %c1_i32_25 : i32
    %c0_26 = arith.constant 0 : index
    %41 = arith.index_cast %40 : i32 to index
    %c1_27 = arith.constant 1 : index
    %c0_28 = arith.constant 0 : index
    %42 = vector.load %arg2[%c0_26, %41, %c1_27, %c0_28] : memref<1x10x10x64xbf16, #tpu.memory_space<vmem>>, vector<1x8x8x64xbf16>
    %43 = vector.shape_cast %42 : vector<1x8x8x64xbf16> to vector<8x8x64xbf16>
    %44 = vector.shape_cast %43 : vector<8x8x64xbf16> to vector<64x64xbf16>
    %c4 = arith.constant 4 : index
    %c0_29 = arith.constant 0 : index
    %c0_30 = arith.constant 0 : index
    %45 = vector.load %arg3[%c4, %c0_29, %c0_30] : memref<9x64x128xbf16, #tpu.memory_space<vmem>>, vector<1x64x128xbf16>
    %46 = vector.shape_cast %45 : vector<1x64x128xbf16> to vector<64x128xbf16>
    %cst_31 = arith.constant dense<0.000000e+00> : vector<64x128xf32>
    %47 = tpu.matmul %44, %46, %cst_31 {dimension_numbers = #tpu.dot_dimension_numbers<[1], [0], [0], [1], [0, 0, 1, 1], [], []>} : vector<64x64xbf16>, vector<64x128xbf16>, vector<64x128xf32> -> vector<64x128xf32>
    %48 = vector.shape_cast %47 : vector<64x128xf32> to vector<4x2x8x128xf32>
    %49 = arith.addf %39, %48 : vector<4x2x8x128xf32>
    %c1_i32_32 = arith.constant 1 : i32
    %50 = arith.addi %0, %c1_i32_32 : i32
    %c0_33 = arith.constant 0 : index
    %51 = arith.index_cast %50 : i32 to index
    %c2_34 = arith.constant 2 : index
    %c0_35 = arith.constant 0 : index
    %52 = vector.load %arg2[%c0_33, %51, %c2_34, %c0_35] : memref<1x10x10x64xbf16, #tpu.memory_space<vmem>>, vector<1x8x8x64xbf16>
    %53 = vector.shape_cast %52 : vector<1x8x8x64xbf16> to vector<8x8x64xbf16>
    %54 = vector.shape_cast %53 : vector<8x8x64xbf16> to vector<64x64xbf16>
    %c5 = arith.constant 5 : index
    %c0_36 = arith.constant 0 : index
    %c0_37 = arith.constant 0 : index
    %55 = vector.load %arg3[%c5, %c0_36, %c0_37] : memref<9x64x128xbf16, #tpu.memory_space<vmem>>, vector<1x64x128xbf16>
    %56 = vector.shape_cast %55 : vector<1x64x128xbf16> to vector<64x128xbf16>
    %cst_38 = arith.constant dense<0.000000e+00> : vector<64x128xf32>
    %57 = tpu.matmul %54, %56, %cst_38 {dimension_numbers = #tpu.dot_dimension_numbers<[1], [0], [0], [1], [0, 0, 1, 1], [], []>} : vector<64x64xbf16>, vector<64x128xbf16>, vector<64x128xf32> -> vector<64x128xf32>
    %58 = vector.shape_cast %57 : vector<64x128xf32> to vector<4x2x8x128xf32>
    %59 = arith.addf %49, %58 : vector<4x2x8x128xf32>
    %c2_i32 = arith.constant 2 : i32
    %60 = arith.addi %0, %c2_i32 : i32
    %c0_39 = arith.constant 0 : index
    %61 = arith.index_cast %60 : i32 to index
    %c0_40 = arith.constant 0 : index
    %c0_41 = arith.constant 0 : index
    %62 = vector.load %arg2[%c0_39, %61, %c0_40, %c0_41] : memref<1x10x10x64xbf16, #tpu.memory_space<vmem>>, vector<1x8x8x64xbf16>
    %63 = vector.shape_cast %62 : vector<1x8x8x64xbf16> to vector<8x8x64xbf16>
    %64 = vector.shape_cast %63 : vector<8x8x64xbf16> to vector<64x64xbf16>
    %c6 = arith.constant 6 : index
    %c0_42 = arith.constant 0 : index
    %c0_43 = arith.constant 0 : index
    %65 = vector.load %arg3[%c6, %c0_42, %c0_43] : memref<9x64x128xbf16, #tpu.memory_space<vmem>>, vector<1x64x128xbf16>
    %66 = vector.shape_cast %65 : vector<1x64x128xbf16> to vector<64x128xbf16>
    %cst_44 = arith.constant dense<0.000000e+00> : vector<64x128xf32>
    %67 = tpu.matmul %64, %66, %cst_44 {dimension_numbers = #tpu.dot_dimension_numbers<[1], [0], [0], [1], [0, 0, 1, 1], [], []>} : vector<64x64xbf16>, vector<64x128xbf16>, vector<64x128xf32> -> vector<64x128xf32>
    %68 = vector.shape_cast %67 : vector<64x128xf32> to vector<4x2x8x128xf32>
    %69 = arith.addf %59, %68 : vector<4x2x8x128xf32>
    %c2_i32_45 = arith.constant 2 : i32
    %70 = arith.addi %0, %c2_i32_45 : i32
    %c0_46 = arith.constant 0 : index
    %71 = arith.index_cast %70 : i32 to index
    %c1_47 = arith.constant 1 : index
    %c0_48 = arith.constant 0 : index
    %72 = vector.load %arg2[%c0_46, %71, %c1_47, %c0_48] : memref<1x10x10x64xbf16, #tpu.memory_space<vmem>>, vector<1x8x8x64xbf16>
    %73 = vector.shape_cast %72 : vector<1x8x8x64xbf16> to vector<8x8x64xbf16>
    %74 = vector.shape_cast %73 : vector<8x8x64xbf16> to vector<64x64xbf16>
    %c7 = arith.constant 7 : index
    %c0_49 = arith.constant 0 : index
    %c0_50 = arith.constant 0 : index
    %75 = vector.load %arg3[%c7, %c0_49, %c0_50] : memref<9x64x128xbf16, #tpu.memory_space<vmem>>, vector<1x64x128xbf16>
    %76 = vector.shape_cast %75 : vector<1x64x128xbf16> to vector<64x128xbf16>
    %cst_51 = arith.constant dense<0.000000e+00> : vector<64x128xf32>
    %77 = tpu.matmul %74, %76, %cst_51 {dimension_numbers = #tpu.dot_dimension_numbers<[1], [0], [0], [1], [0, 0, 1, 1], [], []>} : vector<64x64xbf16>, vector<64x128xbf16>, vector<64x128xf32> -> vector<64x128xf32>
    %78 = vector.shape_cast %77 : vector<64x128xf32> to vector<4x2x8x128xf32>
    %79 = arith.addf %69, %78 : vector<4x2x8x128xf32>
    %c2_i32_52 = arith.constant 2 : i32
    %80 = arith.addi %0, %c2_i32_52 : i32
    %c0_53 = arith.constant 0 : index
    %81 = arith.index_cast %80 : i32 to index
    %c2_54 = arith.constant 2 : index
    %c0_55 = arith.constant 0 : index
    %82 = vector.load %arg2[%c0_53, %81, %c2_54, %c0_55] : memref<1x10x10x64xbf16, #tpu.memory_space<vmem>>, vector<1x8x8x64xbf16>
    %83 = vector.shape_cast %82 : vector<1x8x8x64xbf16> to vector<8x8x64xbf16>
    %84 = vector.shape_cast %83 : vector<8x8x64xbf16> to vector<64x64xbf16>
    %c8 = arith.constant 8 : index
    %c0_56 = arith.constant 0 : index
    %c0_57 = arith.constant 0 : index
    %85 = vector.load %arg3[%c8, %c0_56, %c0_57] : memref<9x64x128xbf16, #tpu.memory_space<vmem>>, vector<1x64x128xbf16>
    %86 = vector.shape_cast %85 : vector<1x64x128xbf16> to vector<64x128xbf16>
    %cst_58 = arith.constant dense<0.000000e+00> : vector<64x128xf32>
    %87 = tpu.matmul %84, %86, %cst_58 {dimension_numbers = #tpu.dot_dimension_numbers<[1], [0], [0], [1], [0, 0, 1, 1], [], []>} : vector<64x64xbf16>, vector<64x128xbf16>, vector<64x128xf32> -> vector<64x128xf32>
    %88 = vector.shape_cast %87 : vector<64x128xf32> to vector<4x2x8x128xf32>
    %89 = arith.addf %79, %88 : vector<4x2x8x128xf32>
    %c0_59 = arith.constant 0 : index
    %c0_60 = arith.constant 0 : index
    %90 = vector.load %arg4[%c0_59, %c0_60] : memref<1x128xf32, #tpu.memory_space<vmem>>, vector<1x128xf32>
    %91 = vector.shape_cast %90 : vector<1x128xf32> to vector<1x1x1x128xf32>
    %92 = vector.broadcast %91 : vector<1x1x1x128xf32> to vector<4x2x8x128xf32>
    %93 = arith.addf %89, %92 : vector<4x2x8x128xf32>
    %cst_61 = arith.constant 2.000000e+01 : f32
    %94 = vector.broadcast %cst_61 : f32 to vector<4x2x8x128xf32>
    %95 = arith.minimumf %93, %94 : vector<4x2x8x128xf32>
    %96 = math.exp %95 : vector<4x2x8x128xf32>
    %cst_62 = arith.constant 1.000000e+00 : f32
    %97 = vector.broadcast %cst_62 : f32 to vector<4x2x8x128xf32>
    %98 = arith.addf %97, %96 : vector<4x2x8x128xf32>
    %cst_63 = arith.constant 1.000000e+00 : f32
    %99 = vector.broadcast %cst_63 : f32 to vector<4x2x8x128xf32>
    %100 = arith.addf %99, %96 : vector<4x2x8x128xf32>
    %101 = arith.mulf %98, %100 : vector<4x2x8x128xf32>
    %cst_64 = arith.constant 1.000000e+00 : f32
    %102 = vector.broadcast %cst_64 : f32 to vector<4x2x8x128xf32>
    %103 = arith.subf %101, %102 : vector<4x2x8x128xf32>
    %104 = arith.mulf %93, %103 : vector<4x2x8x128xf32>
    %cst_65 = arith.constant 1.000000e+00 : f32
    %105 = vector.broadcast %cst_65 : f32 to vector<4x2x8x128xf32>
    %106 = arith.addf %101, %105 : vector<4x2x8x128xf32>
    %107 = tpu.reciprocal %106 {approx = true} : vector<4x2x8x128xf32> -> vector<4x2x8x128xf32>
    %108 = arith.mulf %104, %107 : vector<4x2x8x128xf32>
    %109 = vector.extract_strided_slice %108 {offsets = [0, 0, 0, 0], sizes = [4, 1, 8, 128], strides = [1, 1, 1, 1]} : vector<4x2x8x128xf32> to vector<4x1x8x128xf32>
    %110 = vector.shape_cast %109 : vector<4x1x8x128xf32> to vector<4x8x128xf32>
    %111 = vector.extract_strided_slice %108 {offsets = [0, 1, 0, 0], sizes = [4, 1, 8, 128], strides = [1, 1, 1, 1]} : vector<4x2x8x128xf32> to vector<4x1x8x128xf32>
    %112 = vector.shape_cast %111 : vector<4x1x8x128xf32> to vector<4x8x128xf32>
    %113 = arith.addf %110, %112 : vector<4x8x128xf32>
    %c0_66 = arith.constant 0 : index
    %c0_67 = arith.constant 0 : index
    %c0_68 = arith.constant 0 : index
    %114 = vector.load %arg6[%c0_66, %c0_67, %c0_68] : memref<4x8x128xf32, #tpu.memory_space<vmem>>, vector<4x8x128xf32>
    tpu.vector_store %arg6[%c0_66, %c0_67, %c0_68], %113 {strides = array<i32>} : memref<4x8x128xf32, #tpu.memory_space<vmem>>, vector<4x8x128xf32>,
    %c0_69 = arith.constant 0 : index
    %c0_70 = arith.constant 0 : index
    %c0_71 = arith.constant 0 : index
    %115 = tpu.strided_load %arg6[%c0_69, %c0_70, %c0_71] {strides = array<i32: 1, 2, 1>} : memref<4x8x128xf32, #tpu.memory_space<vmem>>, vector<4x4x128xf32>
    %c0_72 = arith.constant 0 : index
    %c1_73 = arith.constant 1 : index
    %c0_74 = arith.constant 0 : index
    %116 = tpu.strided_load %arg6[%c0_72, %c1_73, %c0_74] {strides = array<i32: 1, 2, 1>} : memref<4x8x128xf32, #tpu.memory_space<vmem>>, vector<4x4x128xf32>
    %117 = arith.addf %115, %116 : vector<4x4x128xf32>
    %cst_75 = arith.constant 2.500000e-01 : f32
    %118 = vector.broadcast %cst_75 : f32 to vector<4x4x128xf32>
    %119 = arith.mulf %118, %117 : vector<4x4x128xf32>
    %120 = vector.shape_cast %119 : vector<4x4x128xf32> to vector<1x4x4x128xf32>
    %121 = arith.truncf %120 : vector<1x4x4x128xf32> to vector<1x4x4x128xbf16>
    %c0_76 = arith.constant 0 : index
    %c0_77 = arith.constant 0 : index
    %c0_78 = arith.constant 0 : index
    %c0_79 = arith.constant 0 : index
    %122 = vector.load %arg5[%c0_76, %c0_77, %c0_78, %c0_79] : memref<1x4x4x128xbf16, #tpu.memory_space<vmem>>, vector<1x4x4x128xbf16>
    tpu.vector_store %arg5[%c0_76, %c0_77, %c0_78, %c0_79], %121 {strides = array<i32>} : memref<1x4x4x128xbf16, #tpu.memory_space<vmem>>, vector<1x4x4x128xbf16>,
    return
  }
  func.func @transform_0(%arg0: i32, %arg1: i32) -> (i32, i32, i32, i32) {
    %c0_i32 = arith.constant 0 : i32
    %c0_i32_0 = arith.constant 0 : i32
    %c0_i32_1 = arith.constant 0 : i32
    %c0_i32_2 = arith.constant 0 : i32
    return %arg0, %c0_i32, %c0_i32_0, %c0_i32_1 : i32, i32, i32, i32
  }
  func.func @transform_1(%arg0: i32, %arg1: i32) -> (i32, i32, i32) {
    %c0_i32 = arith.constant 0 : i32
    %c0_i32_0 = arith.constant 0 : i32
    %c0_i32_1 = arith.constant 0 : i32
    %c0_i32_2 = arith.constant 0 : i32
    return %c0_i32, %c0_i32_0, %c0_i32_1 : i32, i32, i32
  }
  func.func @transform_2(%arg0: i32, %arg1: i32) -> (i32, i32) {
    %c0_i32 = arith.constant 0 : i32
    %c0_i32_0 = arith.constant 0 : i32
    %c0_i32_1 = arith.constant 0 : i32
    return %c0_i32, %c0_i32_0 : i32, i32
  }
  func.func @transform_3(%arg0: i32, %arg1: i32) -> (i32, i32, i32, i32) {
    %c0_i32 = arith.constant 0 : i32
    %c0_i32_0 = arith.constant 0 : i32
    %c0_i32_1 = arith.constant 0 : i32
    return %arg0, %arg1, %c0_i32, %c0_i32_0 : i32, i32, i32, i32
  }
}

module attributes {stable_mosaic.version = 11 : i64} {
  func.func @_conv3x3_bn_mish_pool_kernel(%arg0: i32, %arg1: i32, %arg2: memref<1x18x18x1xbf16, #tpu.memory_space<vmem>>, %arg3: memref<9x1x64xbf16, #tpu.memory_space<vmem>>, %arg4: memref<1x64xf32, #tpu.memory_space<vmem>>, %arg5: memref<1x8x8x64xbf16, #tpu.memory_space<vmem>>, %arg6: memref<8x16x64xf32, #tpu.memory_space<vmem>>) attributes {dimension_semantics = [#tpu.dimension_semantics<parallel>, #tpu.dimension_semantics<parallel>], iteration_bounds = array<i64: 2, 1>, scalar_prefetch = 0 : i64, scratch_operands = 1 : i64, tpu.core_type = #tpu.core_type<tc>, window_params = [{transform_indices = @transform_0, window_bounds = array<i64: 1, 18, 18, 1>}, {pipeline_mode = #tpu.pipeline_mode<synchronous>, transform_indices = @transform_1, window_bounds = array<i64: 9, 1, 64>}, {pipeline_mode = #tpu.pipeline_mode<synchronous>, transform_indices = @transform_2, window_bounds = array<i64: 1, 64>}, {transform_indices = @transform_3, window_bounds = array<i64: 1, 8, 8, 64>}]} {
    %c16_i32 = arith.constant 16 : i32
    %0 = arith.muli %arg1, %c16_i32 : i32
    %c0_i32 = arith.constant 0 : i32
    %1 = arith.addi %0, %c0_i32 : i32
    %c0 = arith.constant 0 : index
    %2 = arith.index_cast %1 : i32 to index
    %c0_0 = arith.constant 0 : index
    %c0_1 = arith.constant 0 : index
    %3 = vector.load %arg2[%c0, %2, %c0_0, %c0_1] : memref<1x18x18x1xbf16, #tpu.memory_space<vmem>>, vector<1x16x16x1xbf16>
    %4 = vector.shape_cast %3 : vector<1x16x16x1xbf16> to vector<16x16x1xbf16>
    %5 = vector.shape_cast %4 : vector<16x16x1xbf16> to vector<8x2x16x1xbf16>
    %6 = arith.extf %5 : vector<8x2x16x1xbf16> to vector<8x2x16x1xf32>
    %c0_2 = arith.constant 0 : index
    %c0_3 = arith.constant 0 : index
    %c0_4 = arith.constant 0 : index
    %7 = vector.load %arg3[%c0_2, %c0_3, %c0_4] : memref<9x1x64xbf16, #tpu.memory_space<vmem>>, vector<1x1x64xbf16>
    %8 = vector.shape_cast %7 : vector<1x1x64xbf16> to vector<1x64xbf16>
    %9 = arith.extf %8 : vector<1x64xbf16> to vector<1x64xf32>
    %10 = vector.shape_cast %9 : vector<1x64xf32> to vector<1x1x1x64xf32>
    %11 = vector.broadcast %6 : vector<8x2x16x1xf32> to vector<8x2x16x64xf32>
    %12 = vector.broadcast %10 : vector<1x1x1x64xf32> to vector<8x2x16x64xf32>
    %13 = arith.mulf %11, %12 : vector<8x2x16x64xf32>
    %c0_i32_5 = arith.constant 0 : i32
    %14 = arith.addi %0, %c0_i32_5 : i32
    %c0_6 = arith.constant 0 : index
    %15 = arith.index_cast %14 : i32 to index
    %c1 = arith.constant 1 : index
    %c0_7 = arith.constant 0 : index
    %16 = vector.load %arg2[%c0_6, %15, %c1, %c0_7] : memref<1x18x18x1xbf16, #tpu.memory_space<vmem>>, vector<1x16x16x1xbf16>
    %17 = vector.shape_cast %16 : vector<1x16x16x1xbf16> to vector<16x16x1xbf16>
    %18 = vector.shape_cast %17 : vector<16x16x1xbf16> to vector<8x2x16x1xbf16>
    %19 = arith.extf %18 : vector<8x2x16x1xbf16> to vector<8x2x16x1xf32>
    %c1_8 = arith.constant 1 : index
    %c0_9 = arith.constant 0 : index
    %c0_10 = arith.constant 0 : index
    %20 = vector.load %arg3[%c1_8, %c0_9, %c0_10] : memref<9x1x64xbf16, #tpu.memory_space<vmem>>, vector<1x1x64xbf16>
    %21 = vector.shape_cast %20 : vector<1x1x64xbf16> to vector<1x64xbf16>
    %22 = arith.extf %21 : vector<1x64xbf16> to vector<1x64xf32>
    %23 = vector.shape_cast %22 : vector<1x64xf32> to vector<1x1x1x64xf32>
    %24 = vector.broadcast %19 : vector<8x2x16x1xf32> to vector<8x2x16x64xf32>
    %25 = vector.broadcast %23 : vector<1x1x1x64xf32> to vector<8x2x16x64xf32>
    %26 = arith.mulf %24, %25 : vector<8x2x16x64xf32>
    %27 = arith.addf %13, %26 : vector<8x2x16x64xf32>
    %c0_i32_11 = arith.constant 0 : i32
    %28 = arith.addi %0, %c0_i32_11 : i32
    %c0_12 = arith.constant 0 : index
    %29 = arith.index_cast %28 : i32 to index
    %c2 = arith.constant 2 : index
    %c0_13 = arith.constant 0 : index
    %30 = vector.load %arg2[%c0_12, %29, %c2, %c0_13] : memref<1x18x18x1xbf16, #tpu.memory_space<vmem>>, vector<1x16x16x1xbf16>
    %31 = vector.shape_cast %30 : vector<1x16x16x1xbf16> to vector<16x16x1xbf16>
    %32 = vector.shape_cast %31 : vector<16x16x1xbf16> to vector<8x2x16x1xbf16>
    %33 = arith.extf %32 : vector<8x2x16x1xbf16> to vector<8x2x16x1xf32>
    %c2_14 = arith.constant 2 : index
    %c0_15 = arith.constant 0 : index
    %c0_16 = arith.constant 0 : index
    %34 = vector.load %arg3[%c2_14, %c0_15, %c0_16] : memref<9x1x64xbf16, #tpu.memory_space<vmem>>, vector<1x1x64xbf16>
    %35 = vector.shape_cast %34 : vector<1x1x64xbf16> to vector<1x64xbf16>
    %36 = arith.extf %35 : vector<1x64xbf16> to vector<1x64xf32>
    %37 = vector.shape_cast %36 : vector<1x64xf32> to vector<1x1x1x64xf32>
    %38 = vector.broadcast %33 : vector<8x2x16x1xf32> to vector<8x2x16x64xf32>
    %39 = vector.broadcast %37 : vector<1x1x1x64xf32> to vector<8x2x16x64xf32>
    %40 = arith.mulf %38, %39 : vector<8x2x16x64xf32>
    %41 = arith.addf %27, %40 : vector<8x2x16x64xf32>
    %c1_i32 = arith.constant 1 : i32
    %42 = arith.addi %0, %c1_i32 : i32
    %c0_17 = arith.constant 0 : index
    %43 = arith.index_cast %42 : i32 to index
    %c0_18 = arith.constant 0 : index
    %c0_19 = arith.constant 0 : index
    %44 = vector.load %arg2[%c0_17, %43, %c0_18, %c0_19] : memref<1x18x18x1xbf16, #tpu.memory_space<vmem>>, vector<1x16x16x1xbf16>
    %45 = vector.shape_cast %44 : vector<1x16x16x1xbf16> to vector<16x16x1xbf16>
    %46 = vector.shape_cast %45 : vector<16x16x1xbf16> to vector<8x2x16x1xbf16>
    %47 = arith.extf %46 : vector<8x2x16x1xbf16> to vector<8x2x16x1xf32>
    %c3 = arith.constant 3 : index
    %c0_20 = arith.constant 0 : index
    %c0_21 = arith.constant 0 : index
    %48 = vector.load %arg3[%c3, %c0_20, %c0_21] : memref<9x1x64xbf16, #tpu.memory_space<vmem>>, vector<1x1x64xbf16>
    %49 = vector.shape_cast %48 : vector<1x1x64xbf16> to vector<1x64xbf16>
    %50 = arith.extf %49 : vector<1x64xbf16> to vector<1x64xf32>
    %51 = vector.shape_cast %50 : vector<1x64xf32> to vector<1x1x1x64xf32>
    %52 = vector.broadcast %47 : vector<8x2x16x1xf32> to vector<8x2x16x64xf32>
    %53 = vector.broadcast %51 : vector<1x1x1x64xf32> to vector<8x2x16x64xf32>
    %54 = arith.mulf %52, %53 : vector<8x2x16x64xf32>
    %55 = arith.addf %41, %54 : vector<8x2x16x64xf32>
    %c1_i32_22 = arith.constant 1 : i32
    %56 = arith.addi %0, %c1_i32_22 : i32
    %c0_23 = arith.constant 0 : index
    %57 = arith.index_cast %56 : i32 to index
    %c1_24 = arith.constant 1 : index
    %c0_25 = arith.constant 0 : index
    %58 = vector.load %arg2[%c0_23, %57, %c1_24, %c0_25] : memref<1x18x18x1xbf16, #tpu.memory_space<vmem>>, vector<1x16x16x1xbf16>
    %59 = vector.shape_cast %58 : vector<1x16x16x1xbf16> to vector<16x16x1xbf16>
    %60 = vector.shape_cast %59 : vector<16x16x1xbf16> to vector<8x2x16x1xbf16>
    %61 = arith.extf %60 : vector<8x2x16x1xbf16> to vector<8x2x16x1xf32>
    %c4 = arith.constant 4 : index
    %c0_26 = arith.constant 0 : index
    %c0_27 = arith.constant 0 : index
    %62 = vector.load %arg3[%c4, %c0_26, %c0_27] : memref<9x1x64xbf16, #tpu.memory_space<vmem>>, vector<1x1x64xbf16>
    %63 = vector.shape_cast %62 : vector<1x1x64xbf16> to vector<1x64xbf16>
    %64 = arith.extf %63 : vector<1x64xbf16> to vector<1x64xf32>
    %65 = vector.shape_cast %64 : vector<1x64xf32> to vector<1x1x1x64xf32>
    %66 = vector.broadcast %61 : vector<8x2x16x1xf32> to vector<8x2x16x64xf32>
    %67 = vector.broadcast %65 : vector<1x1x1x64xf32> to vector<8x2x16x64xf32>
    %68 = arith.mulf %66, %67 : vector<8x2x16x64xf32>
    %69 = arith.addf %55, %68 : vector<8x2x16x64xf32>
    %c1_i32_28 = arith.constant 1 : i32
    %70 = arith.addi %0, %c1_i32_28 : i32
    %c0_29 = arith.constant 0 : index
    %71 = arith.index_cast %70 : i32 to index
    %c2_30 = arith.constant 2 : index
    %c0_31 = arith.constant 0 : index
    %72 = vector.load %arg2[%c0_29, %71, %c2_30, %c0_31] : memref<1x18x18x1xbf16, #tpu.memory_space<vmem>>, vector<1x16x16x1xbf16>
    %73 = vector.shape_cast %72 : vector<1x16x16x1xbf16> to vector<16x16x1xbf16>
    %74 = vector.shape_cast %73 : vector<16x16x1xbf16> to vector<8x2x16x1xbf16>
    %75 = arith.extf %74 : vector<8x2x16x1xbf16> to vector<8x2x16x1xf32>
    %c5 = arith.constant 5 : index
    %c0_32 = arith.constant 0 : index
    %c0_33 = arith.constant 0 : index
    %76 = vector.load %arg3[%c5, %c0_32, %c0_33] : memref<9x1x64xbf16, #tpu.memory_space<vmem>>, vector<1x1x64xbf16>
    %77 = vector.shape_cast %76 : vector<1x1x64xbf16> to vector<1x64xbf16>
    %78 = arith.extf %77 : vector<1x64xbf16> to vector<1x64xf32>
    %79 = vector.shape_cast %78 : vector<1x64xf32> to vector<1x1x1x64xf32>
    %80 = vector.broadcast %75 : vector<8x2x16x1xf32> to vector<8x2x16x64xf32>
    %81 = vector.broadcast %79 : vector<1x1x1x64xf32> to vector<8x2x16x64xf32>
    %82 = arith.mulf %80, %81 : vector<8x2x16x64xf32>
    %83 = arith.addf %69, %82 : vector<8x2x16x64xf32>
    %c2_i32 = arith.constant 2 : i32
    %84 = arith.addi %0, %c2_i32 : i32
    %c0_34 = arith.constant 0 : index
    %85 = arith.index_cast %84 : i32 to index
    %c0_35 = arith.constant 0 : index
    %c0_36 = arith.constant 0 : index
    %86 = vector.load %arg2[%c0_34, %85, %c0_35, %c0_36] : memref<1x18x18x1xbf16, #tpu.memory_space<vmem>>, vector<1x16x16x1xbf16>
    %87 = vector.shape_cast %86 : vector<1x16x16x1xbf16> to vector<16x16x1xbf16>
    %88 = vector.shape_cast %87 : vector<16x16x1xbf16> to vector<8x2x16x1xbf16>
    %89 = arith.extf %88 : vector<8x2x16x1xbf16> to vector<8x2x16x1xf32>
    %c6 = arith.constant 6 : index
    %c0_37 = arith.constant 0 : index
    %c0_38 = arith.constant 0 : index
    %90 = vector.load %arg3[%c6, %c0_37, %c0_38] : memref<9x1x64xbf16, #tpu.memory_space<vmem>>, vector<1x1x64xbf16>
    %91 = vector.shape_cast %90 : vector<1x1x64xbf16> to vector<1x64xbf16>
    %92 = arith.extf %91 : vector<1x64xbf16> to vector<1x64xf32>
    %93 = vector.shape_cast %92 : vector<1x64xf32> to vector<1x1x1x64xf32>
    %94 = vector.broadcast %89 : vector<8x2x16x1xf32> to vector<8x2x16x64xf32>
    %95 = vector.broadcast %93 : vector<1x1x1x64xf32> to vector<8x2x16x64xf32>
    %96 = arith.mulf %94, %95 : vector<8x2x16x64xf32>
    %97 = arith.addf %83, %96 : vector<8x2x16x64xf32>
    %c2_i32_39 = arith.constant 2 : i32
    %98 = arith.addi %0, %c2_i32_39 : i32
    %c0_40 = arith.constant 0 : index
    %99 = arith.index_cast %98 : i32 to index
    %c1_41 = arith.constant 1 : index
    %c0_42 = arith.constant 0 : index
    %100 = vector.load %arg2[%c0_40, %99, %c1_41, %c0_42] : memref<1x18x18x1xbf16, #tpu.memory_space<vmem>>, vector<1x16x16x1xbf16>
    %101 = vector.shape_cast %100 : vector<1x16x16x1xbf16> to vector<16x16x1xbf16>
    %102 = vector.shape_cast %101 : vector<16x16x1xbf16> to vector<8x2x16x1xbf16>
    %103 = arith.extf %102 : vector<8x2x16x1xbf16> to vector<8x2x16x1xf32>
    %c7 = arith.constant 7 : index
    %c0_43 = arith.constant 0 : index
    %c0_44 = arith.constant 0 : index
    %104 = vector.load %arg3[%c7, %c0_43, %c0_44] : memref<9x1x64xbf16, #tpu.memory_space<vmem>>, vector<1x1x64xbf16>
    %105 = vector.shape_cast %104 : vector<1x1x64xbf16> to vector<1x64xbf16>
    %106 = arith.extf %105 : vector<1x64xbf16> to vector<1x64xf32>
    %107 = vector.shape_cast %106 : vector<1x64xf32> to vector<1x1x1x64xf32>
    %108 = vector.broadcast %103 : vector<8x2x16x1xf32> to vector<8x2x16x64xf32>
    %109 = vector.broadcast %107 : vector<1x1x1x64xf32> to vector<8x2x16x64xf32>
    %110 = arith.mulf %108, %109 : vector<8x2x16x64xf32>
    %111 = arith.addf %97, %110 : vector<8x2x16x64xf32>
    %c2_i32_45 = arith.constant 2 : i32
    %112 = arith.addi %0, %c2_i32_45 : i32
    %c0_46 = arith.constant 0 : index
    %113 = arith.index_cast %112 : i32 to index
    %c2_47 = arith.constant 2 : index
    %c0_48 = arith.constant 0 : index
    %114 = vector.load %arg2[%c0_46, %113, %c2_47, %c0_48] : memref<1x18x18x1xbf16, #tpu.memory_space<vmem>>, vector<1x16x16x1xbf16>
    %115 = vector.shape_cast %114 : vector<1x16x16x1xbf16> to vector<16x16x1xbf16>
    %116 = vector.shape_cast %115 : vector<16x16x1xbf16> to vector<8x2x16x1xbf16>
    %117 = arith.extf %116 : vector<8x2x16x1xbf16> to vector<8x2x16x1xf32>
    %c8 = arith.constant 8 : index
    %c0_49 = arith.constant 0 : index
    %c0_50 = arith.constant 0 : index
    %118 = vector.load %arg3[%c8, %c0_49, %c0_50] : memref<9x1x64xbf16, #tpu.memory_space<vmem>>, vector<1x1x64xbf16>
    %119 = vector.shape_cast %118 : vector<1x1x64xbf16> to vector<1x64xbf16>
    %120 = arith.extf %119 : vector<1x64xbf16> to vector<1x64xf32>
    %121 = vector.shape_cast %120 : vector<1x64xf32> to vector<1x1x1x64xf32>
    %122 = vector.broadcast %117 : vector<8x2x16x1xf32> to vector<8x2x16x64xf32>
    %123 = vector.broadcast %121 : vector<1x1x1x64xf32> to vector<8x2x16x64xf32>
    %124 = arith.mulf %122, %123 : vector<8x2x16x64xf32>
    %125 = arith.addf %111, %124 : vector<8x2x16x64xf32>
    %c0_51 = arith.constant 0 : index
    %c0_52 = arith.constant 0 : index
    %126 = vector.load %arg4[%c0_51, %c0_52] : memref<1x64xf32, #tpu.memory_space<vmem>>, vector<1x64xf32>
    %127 = vector.shape_cast %126 : vector<1x64xf32> to vector<1x1x1x64xf32>
    %128 = vector.broadcast %127 : vector<1x1x1x64xf32> to vector<8x2x16x64xf32>
    %129 = arith.addf %125, %128 : vector<8x2x16x64xf32>
    %cst = arith.constant 2.000000e+01 : f32
    %130 = vector.broadcast %cst : f32 to vector<8x2x16x64xf32>
    %131 = arith.minimumf %129, %130 : vector<8x2x16x64xf32>
    %132 = math.exp %131 : vector<8x2x16x64xf32>
    %cst_53 = arith.constant 1.000000e+00 : f32
    %133 = vector.broadcast %cst_53 : f32 to vector<8x2x16x64xf32>
    %134 = arith.addf %133, %132 : vector<8x2x16x64xf32>
    %cst_54 = arith.constant 1.000000e+00 : f32
    %135 = vector.broadcast %cst_54 : f32 to vector<8x2x16x64xf32>
    %136 = arith.addf %135, %132 : vector<8x2x16x64xf32>
    %137 = arith.mulf %134, %136 : vector<8x2x16x64xf32>
    %cst_55 = arith.constant 1.000000e+00 : f32
    %138 = vector.broadcast %cst_55 : f32 to vector<8x2x16x64xf32>
    %139 = arith.subf %137, %138 : vector<8x2x16x64xf32>
    %140 = arith.mulf %129, %139 : vector<8x2x16x64xf32>
    %cst_56 = arith.constant 1.000000e+00 : f32
    %141 = vector.broadcast %cst_56 : f32 to vector<8x2x16x64xf32>
    %142 = arith.addf %137, %141 : vector<8x2x16x64xf32>
    %143 = tpu.reciprocal %142 {approx = true} : vector<8x2x16x64xf32> -> vector<8x2x16x64xf32>
    %144 = arith.mulf %140, %143 : vector<8x2x16x64xf32>
    %145 = vector.extract_strided_slice %144 {offsets = [0, 0, 0, 0], sizes = [8, 1, 16, 64], strides = [1, 1, 1, 1]} : vector<8x2x16x64xf32> to vector<8x1x16x64xf32>
    %146 = vector.shape_cast %145 : vector<8x1x16x64xf32> to vector<8x16x64xf32>
    %147 = vector.extract_strided_slice %144 {offsets = [0, 1, 0, 0], sizes = [8, 1, 16, 64], strides = [1, 1, 1, 1]} : vector<8x2x16x64xf32> to vector<8x1x16x64xf32>
    %148 = vector.shape_cast %147 : vector<8x1x16x64xf32> to vector<8x16x64xf32>
    %149 = arith.addf %146, %148 : vector<8x16x64xf32>
    %c0_57 = arith.constant 0 : index
    %c0_58 = arith.constant 0 : index
    %c0_59 = arith.constant 0 : index
    %150 = vector.load %arg6[%c0_57, %c0_58, %c0_59] : memref<8x16x64xf32, #tpu.memory_space<vmem>>, vector<8x16x64xf32>
    tpu.vector_store %arg6[%c0_57, %c0_58, %c0_59], %149 {strides = array<i32>} : memref<8x16x64xf32, #tpu.memory_space<vmem>>, vector<8x16x64xf32>,
    %c0_60 = arith.constant 0 : index
    %c0_61 = arith.constant 0 : index
    %c0_62 = arith.constant 0 : index
    %151 = tpu.strided_load %arg6[%c0_60, %c0_61, %c0_62] {strides = array<i32: 1, 2, 1>} : memref<8x16x64xf32, #tpu.memory_space<vmem>>, vector<8x8x64xf32>
    %c0_63 = arith.constant 0 : index
    %c1_64 = arith.constant 1 : index
    %c0_65 = arith.constant 0 : index
    %152 = tpu.strided_load %arg6[%c0_63, %c1_64, %c0_65] {strides = array<i32: 1, 2, 1>} : memref<8x16x64xf32, #tpu.memory_space<vmem>>, vector<8x8x64xf32>
    %153 = arith.addf %151, %152 : vector<8x8x64xf32>
    %cst_66 = arith.constant 2.500000e-01 : f32
    %154 = vector.broadcast %cst_66 : f32 to vector<8x8x64xf32>
    %155 = arith.mulf %154, %153 : vector<8x8x64xf32>
    %156 = vector.shape_cast %155 : vector<8x8x64xf32> to vector<1x8x8x64xf32>
    %157 = arith.truncf %156 : vector<1x8x8x64xf32> to vector<1x8x8x64xbf16>
    %c0_67 = arith.constant 0 : index
    %c0_68 = arith.constant 0 : index
    %c0_69 = arith.constant 0 : index
    %c0_70 = arith.constant 0 : index
    %158 = vector.load %arg5[%c0_67, %c0_68, %c0_69, %c0_70] : memref<1x8x8x64xbf16, #tpu.memory_space<vmem>>, vector<1x8x8x64xbf16>
    tpu.vector_store %arg5[%c0_67, %c0_68, %c0_69, %c0_70], %157 {strides = array<i32>} : memref<1x8x8x64xbf16, #tpu.memory_space<vmem>>, vector<1x8x8x64xbf16>,
    return
  }
  func.func @transform_0(%arg0: i32, %arg1: i32) -> (i32, i32, i32, i32) {
    %c0_i32 = arith.constant 0 : i32
    %c0_i32_0 = arith.constant 0 : i32
    %c0_i32_1 = arith.constant 0 : i32
    %c0_i32_2 = arith.constant 0 : i32
    return %arg0, %c0_i32, %c0_i32_0, %c0_i32_1 : i32, i32, i32, i32
  }
  func.func @transform_1(%arg0: i32, %arg1: i32) -> (i32, i32, i32) {
    %c0_i32 = arith.constant 0 : i32
    %c0_i32_0 = arith.constant 0 : i32
    %c0_i32_1 = arith.constant 0 : i32
    %c0_i32_2 = arith.constant 0 : i32
    return %c0_i32, %c0_i32_0, %c0_i32_1 : i32, i32, i32
  }
  func.func @transform_2(%arg0: i32, %arg1: i32) -> (i32, i32) {
    %c0_i32 = arith.constant 0 : i32
    %c0_i32_0 = arith.constant 0 : i32
    %c0_i32_1 = arith.constant 0 : i32
    return %c0_i32, %c0_i32_0 : i32, i32
  }
  func.func @transform_3(%arg0: i32, %arg1: i32) -> (i32, i32, i32, i32) {
    %c0_i32 = arith.constant 0 : i32
    %c0_i32_0 = arith.constant 0 : i32
    %c0_i32_1 = arith.constant 0 : i32
    return %arg0, %arg1, %c0_i32, %c0_i32_0 : i32, i32, i32, i32
  }
}

module attributes {stable_mosaic.version = 11 : i64} {
  func.func @_fc_fused_kernel(%arg0: i32, %arg1: i32, %arg2: memref<2x2048xbf16, #tpu.memory_space<vmem>>, %arg3: memref<2048x256xbf16, #tpu.memory_space<vmem>>, %arg4: memref<1x256xf32, #tpu.memory_space<vmem>>, %arg5: memref<256x128xbf16, #tpu.memory_space<vmem>>, %arg6: memref<1x128xf32, #tpu.memory_space<vmem>>, %arg7: memref<2x128xf32, #tpu.memory_space<vmem>>, %arg8: memref<2x256xf32, #tpu.memory_space<vmem>>) attributes {dimension_semantics = [#tpu.dimension_semantics<parallel>, #tpu.dimension_semantics<arbitrary>], iteration_bounds = array<i64: 1, 1>, scalar_prefetch = 0 : i64, scratch_operands = 1 : i64, tpu.core_type = #tpu.core_type<tc>, window_params = [{transform_indices = @transform_0, window_bounds = array<i64: 2, 2048>}, {transform_indices = @transform_1, window_bounds = array<i64: 2048, 256>}, {pipeline_mode = #tpu.pipeline_mode<synchronous>, transform_indices = @transform_2, window_bounds = array<i64: 1, 256>}, {pipeline_mode = #tpu.pipeline_mode<synchronous>, transform_indices = @transform_3, window_bounds = array<i64: 256, 128>}, {pipeline_mode = #tpu.pipeline_mode<synchronous>, transform_indices = @transform_4, window_bounds = array<i64: 1, 128>}, {transform_indices = @transform_5, window_bounds = array<i64: 2, 128>}]} {
    %c0_i32 = arith.constant 0 : i32
    %0 = arith.cmpi eq, %arg1, %c0_i32 : i32
    %1 = arith.extui %0 : i1 to i32
    %c0_i32_0 = arith.constant 0 : i32
    %2 = arith.cmpi ne, %1, %c0_i32_0 : i32
    scf.if %2 {
      %cst_10 = arith.constant 0.000000e+00 : f32
      %12 = vector.broadcast %cst_10 : f32 to vector<2x256xf32>
      %c0_11 = arith.constant 0 : index
      %c0_12 = arith.constant 0 : index
      %13 = vector.load %arg8[%c0_11, %c0_12] : memref<2x256xf32, #tpu.memory_space<vmem>>, vector<2x256xf32>
      tpu.vector_store %arg8[%c0_11, %c0_12], %12 {strides = array<i32>} : memref<2x256xf32, #tpu.memory_space<vmem>>, vector<2x256xf32>,
    } else {
    }
    %c0 = arith.constant 0 : index
    %c0_1 = arith.constant 0 : index
    %3 = vector.load %arg8[%c0, %c0_1] : memref<2x256xf32, #tpu.memory_space<vmem>>, vector<2x256xf32>
    %c0_2 = arith.constant 0 : index
    %c0_3 = arith.constant 0 : index
    %4 = vector.load %arg2[%c0_2, %c0_3] : memref<2x2048xbf16, #tpu.memory_space<vmem>>, vector<2x2048xbf16>
    %c0_4 = arith.constant 0 : index
    %c0_5 = arith.constant 0 : index
    %5 = vector.load %arg3[%c0_4, %c0_5] : memref<2048x256xbf16, #tpu.memory_space<vmem>>, vector<2048x256xbf16>
    %cst = arith.constant dense<0.000000e+00> : vector<2x256xf32>
    %6 = tpu.matmul %4, %5, %cst {dimension_numbers = #tpu.dot_dimension_numbers<[1], [0], [0], [1], [0, 0, 1, 1], [], []>} : vector<2x2048xbf16>, vector<2048x256xbf16>, vector<2x256xf32> -> vector<2x256xf32>
    %7 = arith.addf %3, %6 : vector<2x256xf32>
    %c0_6 = arith.constant 0 : index
    %c0_7 = arith.constant 0 : index
    %8 = vector.load %arg8[%c0_6, %c0_7] : memref<2x256xf32, #tpu.memory_space<vmem>>, vector<2x256xf32>
    tpu.vector_store %arg8[%c0_6, %c0_7], %7 {strides = array<i32>} : memref<2x256xf32, #tpu.memory_space<vmem>>, vector<2x256xf32>,
    %c0_i32_8 = arith.constant 0 : i32
    %9 = arith.cmpi eq, %arg1, %c0_i32_8 : i32
    %10 = arith.extui %9 : i1 to i32
    %c0_i32_9 = arith.constant 0 : i32
    %11 = arith.cmpi ne, %10, %c0_i32_9 : i32
    scf.if %11 {
      %c0_10 = arith.constant 0 : index
      %c0_11 = arith.constant 0 : index
      %12 = vector.load %arg8[%c0_10, %c0_11] : memref<2x256xf32, #tpu.memory_space<vmem>>, vector<2x256xf32>
      %c0_12 = arith.constant 0 : index
      %c0_13 = arith.constant 0 : index
      %13 = vector.load %arg4[%c0_12, %c0_13] : memref<1x256xf32, #tpu.memory_space<vmem>>, vector<1x256xf32>
      %14 = vector.broadcast %13 : vector<1x256xf32> to vector<2x256xf32>
      %15 = arith.addf %12, %14 : vector<2x256xf32>
      %cst_14 = arith.constant 2.000000e+01 : f32
      %16 = vector.broadcast %cst_14 : f32 to vector<2x256xf32>
      %17 = arith.minimumf %15, %16 : vector<2x256xf32>
      %18 = math.exp %17 : vector<2x256xf32>
      %cst_15 = arith.constant 1.000000e+00 : f32
      %19 = vector.broadcast %cst_15 : f32 to vector<2x256xf32>
      %20 = arith.addf %19, %18 : vector<2x256xf32>
      %cst_16 = arith.constant 1.000000e+00 : f32
      %21 = vector.broadcast %cst_16 : f32 to vector<2x256xf32>
      %22 = arith.addf %21, %18 : vector<2x256xf32>
      %23 = arith.mulf %20, %22 : vector<2x256xf32>
      %cst_17 = arith.constant 1.000000e+00 : f32
      %24 = vector.broadcast %cst_17 : f32 to vector<2x256xf32>
      %25 = arith.subf %23, %24 : vector<2x256xf32>
      %26 = arith.mulf %15, %25 : vector<2x256xf32>
      %cst_18 = arith.constant 1.000000e+00 : f32
      %27 = vector.broadcast %cst_18 : f32 to vector<2x256xf32>
      %28 = arith.addf %23, %27 : vector<2x256xf32>
      %29 = tpu.reciprocal %28 {approx = true} : vector<2x256xf32> -> vector<2x256xf32>
      %30 = arith.mulf %26, %29 : vector<2x256xf32>
      %31 = arith.truncf %30 : vector<2x256xf32> to vector<2x256xbf16>
      %c0_19 = arith.constant 0 : index
      %c0_20 = arith.constant 0 : index
      %32 = vector.load %arg5[%c0_19, %c0_20] : memref<256x128xbf16, #tpu.memory_space<vmem>>, vector<256x128xbf16>
      %cst_21 = arith.constant dense<0.000000e+00> : vector<2x128xf32>
      %33 = tpu.matmul %31, %32, %cst_21 {dimension_numbers = #tpu.dot_dimension_numbers<[1], [0], [0], [1], [0, 0, 1, 1], [], []>} : vector<2x256xbf16>, vector<256x128xbf16>, vector<2x128xf32> -> vector<2x128xf32>
      %c0_22 = arith.constant 0 : index
      %c0_23 = arith.constant 0 : index
      %34 = vector.load %arg6[%c0_22, %c0_23] : memref<1x128xf32, #tpu.memory_space<vmem>>, vector<1x128xf32>
      %35 = vector.broadcast %34 : vector<1x128xf32> to vector<2x128xf32>
      %36 = arith.addf %33, %35 : vector<2x128xf32>
      %cst_24 = arith.constant 2.000000e+01 : f32
      %37 = vector.broadcast %cst_24 : f32 to vector<2x128xf32>
      %38 = arith.minimumf %36, %37 : vector<2x128xf32>
      %39 = math.exp %38 : vector<2x128xf32>
      %cst_25 = arith.constant 1.000000e+00 : f32
      %40 = vector.broadcast %cst_25 : f32 to vector<2x128xf32>
      %41 = arith.addf %40, %39 : vector<2x128xf32>
      %cst_26 = arith.constant 1.000000e+00 : f32
      %42 = vector.broadcast %cst_26 : f32 to vector<2x128xf32>
      %43 = arith.addf %42, %39 : vector<2x128xf32>
      %44 = arith.mulf %41, %43 : vector<2x128xf32>
      %cst_27 = arith.constant 1.000000e+00 : f32
      %45 = vector.broadcast %cst_27 : f32 to vector<2x128xf32>
      %46 = arith.subf %44, %45 : vector<2x128xf32>
      %47 = arith.mulf %36, %46 : vector<2x128xf32>
      %cst_28 = arith.constant 1.000000e+00 : f32
      %48 = vector.broadcast %cst_28 : f32 to vector<2x128xf32>
      %49 = arith.addf %44, %48 : vector<2x128xf32>
      %50 = tpu.reciprocal %49 {approx = true} : vector<2x128xf32> -> vector<2x128xf32>
      %51 = arith.mulf %47, %50 : vector<2x128xf32>
      %c0_29 = arith.constant 0 : index
      %c0_30 = arith.constant 0 : index
      %52 = vector.load %arg7[%c0_29, %c0_30] : memref<2x128xf32, #tpu.memory_space<vmem>>, vector<2x128xf32>
      tpu.vector_store %arg7[%c0_29, %c0_30], %51 {strides = array<i32>} : memref<2x128xf32, #tpu.memory_space<vmem>>, vector<2x128xf32>,
    } else {
    }
    return
  }
  func.func @transform_0(%arg0: i32, %arg1: i32) -> (i32, i32) {
    %c0_i32 = arith.constant 0 : i32
    return %arg0, %arg1 : i32, i32
  }
  func.func @transform_1(%arg0: i32, %arg1: i32) -> (i32, i32) {
    %c0_i32 = arith.constant 0 : i32
    %c0_i32_0 = arith.constant 0 : i32
    return %arg1, %c0_i32 : i32, i32
  }
  func.func @transform_2(%arg0: i32, %arg1: i32) -> (i32, i32) {
    %c0_i32 = arith.constant 0 : i32
    %c0_i32_0 = arith.constant 0 : i32
    %c0_i32_1 = arith.constant 0 : i32
    return %c0_i32, %c0_i32_0 : i32, i32
  }
  func.func @transform_3(%arg0: i32, %arg1: i32) -> (i32, i32) {
    %c0_i32 = arith.constant 0 : i32
    %c0_i32_0 = arith.constant 0 : i32
    %c0_i32_1 = arith.constant 0 : i32
    return %c0_i32, %c0_i32_0 : i32, i32
  }
  func.func @transform_4(%arg0: i32, %arg1: i32) -> (i32, i32) {
    %c0_i32 = arith.constant 0 : i32
    %c0_i32_0 = arith.constant 0 : i32
    %c0_i32_1 = arith.constant 0 : i32
    return %c0_i32, %c0_i32_0 : i32, i32
  }
  func.func @transform_5(%arg0: i32, %arg1: i32) -> (i32, i32) {
    %c0_i32 = arith.constant 0 : i32
    %c0_i32_0 = arith.constant 0 : i32
    return %arg0, %c0_i32 : i32, i32
  }
}

</mosaic_0001>

<bundles_post_ra>
// kernel: tuned_cnn_forward.4
= control target key start
LH: loop header
LB: loop body
LE: loop exit
PB: predicated region body
PF: predicated region fallthrough
CT: control target
= control target key end

     0   :  { %8 = vsyncpa [#allocation4], 0  ;;  %s3384_s0 = inlined_call_operand.vmem [shape: bf16[2,10,10,64], index: 0, kind: input, shape index: {}]   ;;  %s3385_s1 = inlined_call_operand.hbm [shape: bf16[9,64,128], index: 1, kind: input, shape index: {}]   ;;  %s3386_s2 = inlined_call_operand.hbm [shape: f32[1,128], index: 2, kind: input, shape index: {}]   ;;  %s3387_s3 = inlined_call_operand.vmem [shape: bf16[2,4,4,128], index: 3, kind: output, shape index: {}]  }
   0x1   :  { %9 = vsyncpa [#allocation6], 0  ;;  %s2930_s12 = smov 0   ;;  %s2932_s13 = smov 0  }
   0x2   :  { %s2934_s14 = smov 0  }
   0x3 LB: > { %s2250_s15 = sadd.s32 4294967295, %s2904_s14   ;;  %s27_s16 = sadd.s32 1, %s2900_s13  ;;  %s2904_s14 = sphi %s2934_s14, %s15_s14   ;;  %s2900_s13 = sphi %s2932_s13, %s3404_s13   ;;  %s2896_s12 = sphi %s2930_s12, %s3403_s12  }
   0x4   : > { %p29_p0 = scmp.ge.s32.totalorder %s27_s16, 2  ;;  %p2252_p1 = scmp.ge.s32.totalorder %s2904_s14, 1 }
   0x5   : > { %p128_p2 = scmp.lt.s32.totalorder %s2904_s14, 3  ;;  %p2955_p4 = scmp.eq.s32.totalorder %s2250_s15, 0 }
   0x6   : > { %s3406_s16 = smov (%p29_p0, %s27_s16), 0  ;;  %s2906_s19 = smov [#allocation3]  }
   0x7   : > { %p2951_p3 = pnand %p2252_p1, %p128_p2  ;;  %s140_s20 = sshll.u32 %s2906_s19, 4  ;;  %s141_s20 = int_to_ptr.vmem [resolvable:$true] %s140_s20 }
   0x8   : > { %s2907_s22 = smov [#allocation5]   ;;  %s2833_s24 = scalar_lea.vmem %s141_s20, 4608 }
   0x9   : > { %p2703_p5 = pneg %p2951_p3  ;;  %s154_s23 = sshll.u32 %s2907_s22, 4  ;;  %s155_s23 = int_to_ptr.vmem [resolvable:$true] %s154_s23 }
   0xa   : > { %p2834_p8 = scmp.ne.s32.totalorder %s141_s20, %s2833_s24  ;;  %p2841_p11 = scmp.lt.s32.totalorder %s141_s20, %s141_s20 }
   0xb   : > { %p2963_p6 = pnand %p2955_p4, %p2703_p5  ;;  %p2842_p12 = scmp.lt.s32.totalorder %s2833_s24, %s2833_s24 }
   0xd   : > { %p2824_p7 = pneg %p2963_p6  ;;  %p2843_p13 = por %p2842_p12, %p2841_p11 }
   0xf   : > { %p2836_p9 = pnand %p2834_p8, %p2824_p7 }
  0x11   : > { %p2837_p10 = pneg %p2836_p9 }
  0x13   : > { %p2844_p0 = pnand %p2843_p13, %p2837_p10 }
  0x15   : > { %2847 = shalt.err (!%p2844_p0)
}
  0x16   : > { %s2908_s25 = smov 64   ;;  %s2909_s26 = smov 4  }
  0x17   : > { %2706 = dma.hbm_to_vmem [thread:$0]  (!%p2963_p6), %s3385_s1, 4608, %s141_s20, [#allocation4], %s2908_s25, %s2908_s25, %s2909_s26  }
  0x18   : > { %s2859_s29 = scalar_lea.vmem %s155_s23, 16  ;;  %s2866_s30 = scalar_lea.vmem %s155_s23, 32 }
  0x19   : > { %p2860_p1 = scmp.ne.s32.totalorder %s155_s23, %s2859_s29  ;;  %p2867_p8 = scmp.lt.s32.totalorder %s155_s23, %s155_s23 }
  0x1a   : > { %p2868_p9 = scmp.lt.s32.totalorder %s2866_s30, %s2859_s29 }
  0x1b   : > { %p2862_p2 = pnand %p2860_p1, %p2824_p7 }
  0x1c   : > { %p2869_p10 = por %p2868_p9, %p2867_p8 }
  0x1d   : > { %p2863_p5 = pneg %p2862_p2 }
  0x1f   : > { %p2870_p11 = pnand %p2869_p10, %p2863_p5 }
  0x21   : > { %2873 = shalt.err (!%p2870_p11)
}
  0x22   : > { %2709 = dma.hbm_to_vmem [thread:$0]  (!%p2963_p6), %s3386_s2, 16, %s155_s23, [#allocation6]  }
  0x23   : > { %175 = sbr.rel (%p2951_p3) target bundleno = 399 (0x18f), region = 32 }
  0x28   : > { %2887 = dma.done.wait (%p2955_p4), [#allocation4], 4608  }
  0x29   : > { %2889 = vsyncadd (%p2955_p4), [#allocation4], 4294962688 }
  0x2a   : > { %2891 = dma.done.wait (%p2955_p4), [#allocation6], 16  }
  0x2b   : > { %2893 = vsyncadd (%p2955_p4), [#allocation6], 4294967280  ;;  %p207_p7 = scmp.lt.s32.totalorder %s2896_s12, 1  ;;  %v2742_v0 = vld [vmem:[#allocation3 + $0x18] sm:$0xff]   ;;  %v2744_v2 = vld [vmem:[#allocation3 + $0x10] sm:$0xff]   ;;  %vm287_vm1 = vcmask 523264  }
  0x2c   : > { %v2743_v1 = vld [vmem:[#allocation3 + $0x38] sm:$0xff]   ;;  %2542 = vmatprep.subr.bf16.mxu0 %v2742_v0  ;;  %v2745_v3 = vld [vmem:[#allocation3 + $0x30] sm:$0xff]   ;;  %v2746_v4 = vld [vmem:[#allocation3 + $0x8] sm:$0xff]   ;;  %vm381_vm0 = vsmask.f32 3328  ;;  %vm650_vm4 = vcmask 1042432  }
  0x2d   : > { %s3408_s12 = smov (!%p207_p7, %s2896_s12), 1  ;;  %2558 = vmatprep.subr.bf16.mxu1 %v2743_v1  ;;  %2543 = vmatpush3.bf16.msra.mxu0 %v2742_v0  ;;  %v2747_v5 = vld [vmem:[#allocation3 + $0x28] sm:$0xff]   ;;  %v2748_v6 = vld [vmem:[#allocation3] sm:$0xff]   ;;  %vm382_vm2 = vsmask.f32 7440  ;;  %v2752_v36 = vld [vmem:[#allocation3 + $0x58] sm:$0xff]  }
  0x2e   : > { %s2694_s6 = smul.u32 80, %s3408_s12  ;;  %2559 = vmatpush3.bf16.msra.mxu1 %v2743_v1  ;;  %2544 = vmatprep.subr.bf16.mxu0 %v2744_v2  ;;  %v2749_v7 = vld [vmem:[#allocation3 + $0x20] sm:$0xff]   ;;  %vm3028_vm3 = vmor %vm381_vm0, %vm382_vm2  ;;  %v2753_v47 = vld [vmem:[#allocation3 + $0x78] sm:$0xff]   ;;  %vm651_vm5 = vcmask 1046532   ;;  %s2469_s10 = sshll.u32 %s3408_s12, 3 }
  0x2f   : > { %2560 = vmatprep.subr.bf16.mxu1 %v2745_v3  ;;  %v2754_v54 = vld [vmem:[#allocation3 + $0x50] sm:$0xff]   ;;  %v2758_v60 = vld [vmem:[#allocation3 + $0x48] sm:$0xff]   ;;  %vm3077_vm6 = vmor %vm650_vm4, %vm651_vm5  ;;  %s220_s17 = scalar_lea.vmem %s3387_s3, %s2469_s10 }
  0x30   : > { %s3003_s9 = scalar_lea.vmem %s3384_s0, %s2694_s6 }
  0x31   : > { %2545 = vmatpush3.bf16.msra.mxu0 %v2744_v2  ;;  %v2750_v8 = vld [vmem:[%s3003_s9] ss:$8 sps:$4 sm:$0xff]   ;;  %v3008_v10 = vld [vmem:[%s3003_s9 + $0x4] sm:$0x1]  ;;  %v3013_v12 = vld [vmem:[%s3003_s9 + $0xc] sm:$0x1] }
  0x32   : > { %2561 = vmatpush3.bf16.msra.mxu1 %v2745_v3  ;;  %2546 = vmatprep.subr.bf16.mxu0 %v2746_v4  ;;  %v365_v9 = vld [vmem:[%s3003_s9] sm:$0xf]  ;;  %v367_v11 = vld [vmem:[%s3003_s9 + $0x8] sm:$0xf]  ;;  %v394_v15 = vshll.u32 %v3008_v10, 16  ;;  %v408_v18 = vshll.u32 %v3013_v12, 16 }
  0x33   : > { %2562 = vmatprep.subr.bf16.mxu1 %v2747_v5  ;;  %2550 = vmatprep.mubr.msk.bf16.mxu0 %vm287_vm1, %v2750_v8  ;;  %v385_v13 = vshrl.u32 %v365_v9, 16  ;;  %v388_v14 = vshll.u32 %v365_v9, 16  ;;  %v399_v16 = vshrl.u32 %v367_v11, 16  ;;  %v402_v17 = vshll.u32 %v367_v11, 16  ;;  %v2751_v25 = vld [vmem:[%s3003_s9 + $0x10] ss:$8 sps:$4 sm:$0xff]  }
  0x34   : > { %v396_v21 = vrot.slane %v394_v15, 5  ;;  %v410_v24 = vrot.slane %v408_v18, 5  ;;  %v369_v26 = vld [vmem:[%s3003_s9 + $0x10] sm:$0xf]  ;;  %v3020_v28 = vld [vmem:[%s3003_s9 + $0x14] sm:$0x1] }
  0x35   : > { %2547 = vmatpush3.bf16.msra.mxu0 %v2746_v4  ;;  %v387_v19 = vrot.slane %v385_v13, 4  ;;  %v390_v20 = vrot.slane %v388_v14, 5  ;;  %v401_v22 = vrot.slane %v399_v16, 4  ;;  %v404_v23 = vrot.slane %v402_v17, 5  ;;  %v371_v29 = vld [vmem:[%s3003_s9 + $0x18] sm:$0xf] }
  0x36   : > { %2563 = vmatpush3.bf16.msra.mxu1 %v2747_v5  ;;  %2548 = vmatprep.subr.bf16.mxu0 %v2748_v6  ;;  %v3024_v30 = vld [vmem:[%s3003_s9 + $0x1c] sm:$0x1]  ;;  %v413_v33 = vshrl.u32 %v369_v26, 16  ;;  %v416_v34 = vshll.u32 %v369_v26, 16  ;;  %v422_v35 = vshll.u32 %v3020_v28, 16  ;;  %v427_v38 = vshrl.u32 %v371_v29, 16 }
  0x37   : > { %2564 = vmatprep.subr.bf16.mxu1 %v2749_v7  ;;  %v391_v27 = vor.u32 %v390_v20, %v387_v19  ;;  %v405_v32 = vor.u32 %v404_v23, %v401_v22  ;;  %v430_v39 = vshll.u32 %v371_v29, 16  ;;  %v436_v40 = vshll.u32 %v3024_v30, 16  ;;  %v2756_v58 = vld [vmem:[%s3003_s9 + $0x20] ss:$8 sps:$4 sm:$0xff]   ;;  %v3046_v62 = vld [vmem:[%s3003_s9 + $0x24] sm:$0x1] }
  0x38   : > { %v415_v42 = vrot.slane %v413_v33, 4  ;;  %v418_v43 = vrot.slane %v416_v34, 5  ;;  %v429_v45 = vrot.slane %v427_v38, 4  ;;  %v424_v50 = vrot.slane %v422_v35, 5  ;;  %v373_v59 = vld [vmem:[%s3003_s9 + $0x20] sm:$0xf] }
  0x39   : > { %2549 = vmatpush3.bf16.msra.mxu0 %v2748_v6  ;;  %v392_v37 = vrot.slane %v391_v27, 4  ;;  %v406_v41 = vrot.slane %v405_v32, 4  ;;  %v432_v46 = vrot.slane %v430_v39, 5  ;;  %v438_v53 = vrot.slane %v436_v40, 5  ;;  %v375_v63 = vld [vmem:[%s3003_s9 + $0x28] sm:$0xf] }
  0x3a   : > { %2565 = vmatpush3.bf16.msra.mxu1 %v2749_v7  ;;  %2574 = vmatprep.subr.bf16.mxu0 %v2752_v36  ;;  %v419_v49 = vor.u32 %v418_v43, %v415_v42  ;;  %v655_v55 = vrot.slane %v3008_v10, 5  ;;  %v3050_v0 = vld [vmem:[%s3003_s9 + $0x2c] sm:$0x1]  ;;  %v2755_v2 = vld [vmem:[#allocation3 + $0x70] sm:$0xff]   ;;  %v441_v3 = vshrl.u32 %v373_v59, 16  ;;  %v444_v4 = vshll.u32 %v373_v59, 16 }
  0x3b   : > { %v397_v44 = vsel %vm3028_vm3, %v392_v37, %v396_v21  ;;  %v411_v48 = vsel %vm3028_vm3, %v406_v41, %v410_v24  ;;  %v433_v52 = vor.u32 %v432_v46, %v429_v45  ;;  %2590 = vmatprep.subr.bf16.mxu1 %v2753_v47  ;;  %v450_v5 = vshll.u32 %v3046_v62, 16  ;;  %v2760_v11 = vld [vmem:[#allocation3 + $0x40] sm:$0xff]   ;;  %v2757_v17 = vld [vmem:[%s3003_s9 + $0x30] ss:$8 sps:$4 sm:$0xff]   ;;  %v3065_v24 = vld [vmem:[%s3003_s9 + $0x34] sm:$0x1] }
  0x3c   : > { %2551 = vmatmul.mubr.msk.bf16.vlgmr.msra.gmra.mxu0 %vm287_vm1, %v2751_v25  ;;  %v2274_v51 = vcombine.low %v397_v44, %v411_v48  ;;  %v420_v56 = vrot.slane %v419_v49, 4  ;;  %v455_v7 = vshrl.u32 %v375_v63, 16  ;;  %v458_v8 = vshll.u32 %v375_v63, 16  ;;  %v377_v21 = vld [vmem:[%s3003_s9 + $0x30] sm:$0xf]  ;;  %v3061_v22 = vld [vmem:[#allocation3 + $0x98] sm:$0xff]  }
  0x3d   : > { %2575 = vmatpush3.bf16.msra.mxu0 %v2752_v36  ;;  %v434_v57 = vrot.slane %v433_v52, 4  ;;  %2554 = vmatprep.mubr.msk.bf16.mxu0 %vm287_vm1, %v2756_v58  ;;  %v464_v9 = vshll.u32 %v3050_v0, 16  ;;  %v659_v13 = vrot.slane %v3013_v12, 5  ;;  %v443_v14 = vrot.slane %v441_v3, 4  ;;  %v379_v25 = vld [vmem:[%s3003_s9 + $0x38] sm:$0xf] }
  0x3e   : > { %2566 = vmatprep.mubr.msk.bf16.mxu1 %vm287_vm1, %v2274_v51  ;;  %2576 = vmatprep.subr.bf16.mxu0 %v2754_v54  ;;  %v425_v61 = vsel %vm3028_vm3, %v420_v56, %v424_v50  ;;  %v446_v15 = vrot.slane %v444_v4, 5  ;;  %v452_v16 = vrot.slane %v450_v5, 5  ;;  %v457_v18 = vrot.slane %v455_v7, 4  ;;  %v3069_v26 = vld [vmem:[%s3003_s9 + $0x3c] sm:$0x1]  ;;  %v2759_v34 = vld [vmem:[#allocation3 + $0x68] sm:$0xff]  }
  0x3f   : > { %v439_v1 = vsel %vm3028_vm3, %v434_v57, %v438_v53  ;;  %v460_v19 = vrot.slane %v458_v8, 5  ;;  %v466_v20 = vrot.slane %v464_v9, 5  ;;  %v469_v29 = vshrl.u32 %v377_v21, 16  ;;  %v626_v53 = vld [vmem:[%s3003_s9] sm:$0xe]  ;;  %v2765_v63 = vld [vmem:[#allocation3 + $0xb8] sm:$0xff]  }
  0x40   : > { %v2275_v6 = vcombine.low %v425_v61, %v439_v1  ;;  %v447_v23 = vor.u32 %v446_v15, %v443_v14  ;;  %v472_v32 = vshll.u32 %v377_v21, 16  ;;  %v478_v33 = vshll.u32 %v3065_v24, 16  ;;  %v628_v3 = vld [vmem:[%s3003_s9 + $0x10] sm:$0xe]  ;;  %v629_v4 = vld [vmem:[%s3003_s9 + $0x18] sm:$0xe] }
  0x41   : > { %2577 = vmatpush3.bf16.msra.mxu0 %v2754_v54  ;;  %v461_v27 = vor.u32 %v460_v19, %v457_v18  ;;  %v483_v36 = vshrl.u32 %v379_v25, 16  ;;  %v486_v37 = vshll.u32 %v379_v25, 16  ;;  %v492_v38 = vshll.u32 %v3069_v26, 16  ;;  %v627_v54 = vld [vmem:[%s3003_s9 + $0x8] sm:$0xe]  ;;  %v2766_v9 = vld [vmem:[#allocation3 + $0x90] sm:$0xff]  }
  0x42   : > { %2578 = vmatprep.subr.bf16.mxu0 %v2758_v60  ;;  %2567 = vmatmul.mubr.msk.bf16.vlgmr.msra.gmra.mxu1 %vm287_vm1, %v2275_v6  ;;  %v448_v35 = vrot.slane %v447_v23, 4  ;;  %v471_v40 = vrot.slane %v469_v29, 4  ;;  %v474_v41 = vrot.slane %v472_v32, 5  ;;  %v480_v42 = vrot.slane %v478_v33, 5  ;;  %v2762_v6 = vld [vmem:[%s3003_s9 + $0x8] ss:$8 sps:$4 sm:$0xff]  }
  0x43   : > { %2591 = vmatpush3.bf16.msra.mxu1 %v2753_v47  ;;  %v462_v39 = vrot.slane %v461_v27, 4  ;;  %v485_v44 = vrot.slane %v483_v36, 4  ;;  %v488_v45 = vrot.slane %v486_v37, 5  ;;  %v494_v46 = vrot.slane %v492_v38, 5  ;;  %v2761_v47 = vld [vmem:[#allocation3 + $0x60] sm:$0xff]   ;;  %v2770_v27 = vld [vmem:[#allocation3 + $0x88] sm:$0xff]  }
  0x44   : > { %2555 = vmatmul.mubr.msk.bf16.gmra.mxu0 %vm287_vm1, %v2757_v17  ;;  %2592 = vmatprep.subr.bf16.mxu1 %v2755_v2  ;;  %v453_v43 = vsel %vm3028_vm3, %v448_v35, %v452_v16  ;;  %v475_v50 = vor.u32 %v474_v41, %v471_v40  ;;  %v663_v56 = vrot.slane %v3020_v28, 5  ;;  %v2286_v58 = vrot.slane %v626_v53, 9  ;;  %v631_v14 = vld [vmem:[%s3003_s9 + $0x28] sm:$0xe]  ;;  %v2763_v17 = vld [vmem:[%s3003_s9 + $0x18] ss:$8 sps:$4 sm:$0xff]  }
  0x45   : > { %2579 = vmatpush3.bf16.msra.mxu0 %v2758_v60  ;;  %v467_v49 = vsel %vm3028_vm3, %v462_v39, %v466_v20  ;;  %v489_v52 = vor.u32 %v488_v45, %v485_v44  ;;  %v2287_v59 = vrot.slane %v627_v54, 9  ;;  %v667_v60 = vrot.slane %v3024_v30, 5  ;;  %v632_v21 = vld [vmem:[%s3003_s9 + $0x30] sm:$0xe]  ;;  %v633_v23 = vld [vmem:[%s3003_s9 + $0x38] sm:$0xe] }
  0x46   : > { %2580 = vmatprep.subr.bf16.mxu0 %v2760_v11  ;;  %v2276_v51 = vcombine.low %v453_v43, %v467_v49  ;;  %v476_v57 = vrot.slane %v475_v50, 4  ;;  %v671_v1 = vrot.slane %v3046_v62, 5  ;;  %v656_v28 = vsel %vm3077_vm6, %v2286_v58, %v655_v55  ;;  %v2771_v36 = vld [vmem:[#allocation3 + $0xa8] sm:$0xff]   ;;  %v2772_v37 = vld [vmem:[#allocation3 + $0x80] sm:$0xff]   ;;  %v2328_v40 = vld [vmem:[%s3003_s9 + $0x10] sm:$0xf] }
  0x47   : > { %2593 = vmatpush3.bf16.msra.mxu1 %v2755_v2  ;;  %v490_v61 = vrot.slane %v489_v52, 4  ;;  %v660_v30 = vsel %vm3077_vm6, %v2287_v59, %v659_v13  ;;  %v2288_v7 = vrot.slane %v628_v3, 9  ;;  %v2289_v8 = vrot.slane %v629_v4, 9  ;;  %v630_v13 = vld [vmem:[%s3003_s9 + $0x20] sm:$0xe] }
  0x48   : > { %2594 = vmatprep.subr.bf16.mxu1 %v2759_v34  ;;  %2570 = vmatprep.mubr.msk.bf16.mxu1 %vm287_vm1, %v2276_v51  ;;  %v481_v2 = vsel %vm3028_vm3, %v476_v57, %v480_v42  ;;  %v2294_v5 = vcombine.low %v656_v28, %v660_v30  ;;  %v2290_v15 = vrot.slane %v630_v13, 9  ;;  %v675_v16 = vrot.slane %v3050_v0, 5  ;;  %v2326_v38 = vld [vmem:[%s3003_s9 + $0x8] sm:$0xf]  ;;  %v2327_v39 = vld [vmem:[%s3003_s9 + $0xc] sm:$0x1] }
  0x49   : > { %2581 = vmatpush3.bf16.msra.mxu0 %v2760_v11  ;;  %v495_v62 = vsel %vm3028_vm3, %v490_v61, %v494_v46  ;;  %v664_v12 = vsel %vm3077_vm6, %v2288_v7, %v663_v56  ;;  %v668_v55 = vsel %vm3077_vm6, %v2289_v8, %v667_v60  ;;  %v2291_v18 = vrot.slane %v631_v14, 9  ;;  %v2769_v41 = vld [vmem:[%s3003_s9 + $0x38] ss:$8 sps:$4 sm:$0xff]   ;;  %v2329_v42 = vld [vmem:[%s3003_s9 + $0x14] sm:$0x1] }
  0x4a   : > { %2606 = vmatprep.subr.bf16.mxu0 %v3061_v22  ;;  %v2277_v10 = vcombine.low %v481_v2, %v495_v62  ;;  %2582 = vmatprep.mubr.msk.bf16.mxu0 %vm287_vm1, %v2294_v5  ;;  %v2295_v11 = vcombine.low %v664_v12, %v668_v55  ;;  %v679_v19 = vrot.slane %v3065_v24, 5  ;;  %v672_v20 = vsel %vm3077_vm6, %v2290_v15, %v671_v1  ;;  %v2768_v24 = vld [vmem:[%s3003_s9 + $0x28] ss:$8 sps:$4 sm:$0xff]   ;;  %v2773_v52 = vld [vmem:[#allocation3 + $0xa0] sm:$0xff]   ;;  %v2330_v58 = vld [vmem:[%s3003_s9 + $0x18] sm:$0xf] }
  0x4b   : > { %2595 = vmatpush3.bf16.msra.mxu1 %v2759_v34  ;;  %v683_v25 = vrot.slane %v3069_v26, 5  ;;  %v676_v0 = vsel %vm3077_vm6, %v2291_v18, %v675_v16  ;;  %v2292_v29 = vrot.slane %v632_v21, 9  ;;  %v2293_v32 = vrot.slane %v633_v23, 9  ;;  %v2354_v50 = vld [vmem:[%s3003_s9 + $0x8] sm:$0xe]  ;;  %v3153_v13 = vld [vmem:[#allocation3 + $0xd8] sm:$0xff]  }
  0x4c   : > { %2596 = vmatprep.subr.bf16.mxu1 %v2761_v47  ;;  %2571 = vmatmul.mubr.msk.bf16.gmra.mxu1 %vm287_vm1, %v2277_v10  ;;  %v2296_v33 = vcombine.low %v672_v20, %v676_v0  ;;  %v982_v43 = vshrl.u32 %v2326_v38, 16  ;;  %v985_v44 = vshll.u32 %v2326_v38, 16  ;;  %v991_v45 = vshll.u32 %v2327_v39, 16  ;;  %v2355_v51 = vld [vmem:[%s3003_s9 + $0x10] sm:$0xe]  ;;  %v2775_v23 = vld [vmem:[#allocation3 + $0xf8] sm:$0xff]  }
  0x4d   : > { %2598 = vmatprep.mubr.msk.bf16.mxu1 %vm287_vm1, %v2762_v6  ;;  %2583 = vmatmul.mubr.msk.bf16.vlgmr.msra.gmra.mxu0 %vm287_vm1, %v2295_v11  ;;  %v680_v34 = vsel %vm3077_vm6, %v2292_v29, %v679_v19  ;;  %v684_v26 = vsel %vm3077_vm6, %v2293_v32, %v683_v25  ;;  %v996_v46 = vshrl.u32 %v2328_v40, 16  ;;  %v1005_v49 = vshll.u32 %v2329_v42, 16  ;;  %v2331_v1 = vld [vmem:[%s3003_s9 + $0x1c] sm:$0x1]  ;;  %v2332_v3 = vld [vmem:[%s3003_s9 + $0x20] sm:$0xf] }
  0x4e   : > { %2607 = vmatpush3.bf16.msra.mxu0 %v3061_v22  ;;  %v2767_v22 = vld [vmem:[#allocation3 + $0xb0] sm:$0xff]   ;;  %2586 = vmatprep.mubr.msk.bf16.mxu0 %vm287_vm1, %v2296_v33  ;;  %v2297_v35 = vcombine.low %v680_v34, %v684_v26  ;;  %v984_v53 = vrot.slane %v982_v43, 4  ;;  %v987_v54 = vrot.slane %v985_v44, 5  ;;  %v993_v56 = vrot.slane %v991_v45, 5  ;;  %v2333_v4 = vld [vmem:[%s3003_s9 + $0x24] sm:$0x1] }
  0x4f   : > { %2597 = vmatpush3.bf16.msra.mxu1 %v2761_v47  ;;  %2608 = vmatprep.subr.bf16.mxu0 %v2766_v9  ;;  %v999_v47 = vshll.u32 %v2328_v40, 16  ;;  %v998_v57 = vrot.slane %v996_v46, 4  ;;  %v1007_v60 = vrot.slane %v1005_v49, 5  ;;  %v2362_v61 = vrot.slane %v2354_v50, 9  ;;  %v2356_v8 = vld [vmem:[%s3003_s9 + $0x18] sm:$0xe] }
  0x50   : > { %2622 = vmatprep.subr.bf16.mxu1 %v2765_v63  ;;  %v988_v2 = vor.u32 %v987_v54, %v984_v53  ;;  %v2363_v28 = vrot.slane %v2355_v51, 9  ;;  %v1253_v30 = vrot.slane %v2329_v42, 5  ;;  %v1010_v6 = vshrl.u32 %v2330_v58, 16  ;;  %v2357_v10 = vld [vmem:[%s3003_s9 + $0x20] sm:$0xe]  ;;  %v2777_v49 = vld [vmem:[#allocation3 + $0xf0] sm:$0xff]  }
  0x51   : > { %v1001_v59 = vrot.slane %v999_v47, 5  ;;  %v1013_v7 = vshll.u32 %v2330_v58, 16  ;;  %v1019_v55 = vshll.u32 %v2331_v1, 16  ;;  %v1024_v11 = vshrl.u32 %v2332_v3, 16  ;;  %v2334_v38 = vld [vmem:[%s3003_s9 + $0x28] sm:$0xf] }
  0x52   : > { %2609 = vmatpush3.bf16.msra.mxu0 %v2766_v9  ;;  %v989_v9 = vrot.slane %v988_v2, 4  ;;  %v1254_v12 = vsel %vm3077_vm6, %v2363_v28, %v1253_v30  ;;  %v1012_v16 = vrot.slane %v1010_v6, 4  ;;  %v1027_v21 = vshll.u32 %v2332_v3, 16  ;;  %v2336_v42 = vld [vmem:[%s3003_s9 + $0x30] sm:$0xf]  ;;  %v2779_v28 = vld [vmem:[#allocation3 + $0xe8] sm:$0xff]  }
  0x53   : > { %2610 = vmatprep.subr.bf16.mxu0 %v2770_v27  ;;  %v1002_v62 = vor.u32 %v1001_v59, %v998_v57  ;;  %v1021_v19 = vrot.slane %v1019_v55, 5  ;;  %v1026_v20 = vrot.slane %v1024_v11, 4  ;;  %v1033_v0 = vshll.u32 %v2333_v4, 16  ;;  %v2337_v43 = vld [vmem:[%s3003_s9 + $0x34] sm:$0x1] }
  0x54   : > { %2599 = vmatmul.mubr.msk.bf16.vlgmr.msra.gmra.mxu1 %vm287_vm1, %v2763_v17  ;;  %v1015_v17 = vrot.slane %v1013_v7, 5  ;;  %v994_v18 = vsel %vm3028_vm3, %v989_v9, %v993_v56  ;;  %v2364_v29 = vrot.slane %v2356_v8, 9  ;;  %v1029_v33 = vrot.slane %v1027_v21, 5  ;;  %v2776_v53 = vld [vmem:[#allocation3 + $0xd0] sm:$0xff]   ;;  %v2338_v2 = vld [vmem:[%s3003_s9 + $0x38] sm:$0xf] }
  0x55   : > { %2623 = vmatpush3.bf16.msra.mxu1 %v2765_v63  ;;  %2602 = vmatprep.mubr.msk.bf16.mxu1 %vm287_vm1, %v2768_v24  ;;  %v1249_v63 = vrot.slane %v2327_v39, 5  ;;  %v1003_v14 = vrot.slane %v1002_v62, 4  ;;  %v1257_v24 = vrot.slane %v2331_v1, 5  ;;  %v1035_v26 = vrot.slane %v1033_v0, 5  ;;  %v2335_v39 = vld [vmem:[%s3003_s9 + $0x2c] sm:$0x1] }
  0x56   : > { %2624 = vmatprep.subr.bf16.mxu1 %v2767_v22  ;;  %2587 = vmatmul.mubr.msk.bf16.gmra.mxu0 %vm287_vm1, %v2297_v35  ;;  %v1261_v35 = vrot.slane %v2333_v4, 5  ;;  %v1038_v44 = vshrl.u32 %v2334_v38, 16  ;;  %v1041_v45 = vshll.u32 %v2334_v38, 16  ;;  %v1047_v50 = vshll.u32 %v2335_v39, 16  ;;  %v2359_v59 = vld [vmem:[%s3003_s9 + $0x30] sm:$0xe] }
  0x57   : > { %2611 = vmatpush3.bf16.msra.mxu0 %v2770_v27  ;;  %v1250_v5 = vsel %vm3077_vm6, %v2362_v61, %v1249_v63  ;;  %v1008_v25 = vsel %vm3028_vm3, %v1003_v14, %v1007_v60  ;;  %v1016_v27 = vor.u32 %v1015_v17, %v1012_v16  ;;  %v1052_v51 = vshrl.u32 %v2336_v42, 16  ;;  %v2340_v6 = vld [vmem:[%s3003_s9 + $0x40] sm:$0xf]  ;;  %v2341_v9 = vld [vmem:[%s3003_s9 + $0x44] sm:$0x1]  ;;  %v2778_v17 = vld [vmem:[#allocation3 + $0xc8] sm:$0xff]  }
  0x58   : > { %2612 = vmatprep.subr.bf16.mxu0 %v2772_v37  ;;  %v2370_v15 = vcombine.low %v1250_v5, %v1254_v12  ;;  %v2342_v32 = vcombine.low %v994_v18, %v1008_v25  ;;  %v1040_v54 = vrot.slane %v1038_v44, 4  ;;  %v1043_v56 = vrot.slane %v1041_v45, 5  ;;  %v2339_v5 = vld [vmem:[%s3003_s9 + $0x3c] sm:$0x1]  ;;  %v2360_v16 = vld [vmem:[%s3003_s9 + $0x38] sm:$0xe] }
  0x59   : > { %2625 = vmatpush3.bf16.msra.mxu1 %v2767_v22  ;;  %v2365_v22 = vrot.slane %v2357_v10, 9  ;;  %v1017_v34 = vrot.slane %v1016_v27, 4  ;;  %v1055_v57 = vshll.u32 %v2336_v42, 16  ;;  %v1061_v58 = vshll.u32 %v2337_v43, 16  ;;  %v2781_v25 = vld [vmem:[#allocation3 + $0xe0] sm:$0xff]  }
  0x5a   : > { %2626 = vmatprep.subr.bf16.mxu1 %v2771_v36  ;;  %2614 = vmatprep.mubr.msk.bf16.mxu0 %vm287_vm1, %v2342_v32  ;;  %v1049_v61 = vrot.slane %v1047_v50, 5  ;;  %v1054_v63 = vrot.slane %v1052_v51, 4  ;;  %v1044_v3 = vor.u32 %v1043_v56, %v1040_v54  ;;  %v1265_v7 = vrot.slane %v2335_v39, 5  ;;  %v3205_v51 = vld [vmem:[%s3003_s9 + $0x14] sm:$0x1] }
  0x5b   : > { %2613 = vmatpush3.bf16.msra.mxu0 %v2772_v37  ;;  %v1258_v37 = vsel %vm3077_vm6, %v2364_v29, %v1257_v24  ;;  %v1022_v40 = vsel %vm3028_vm3, %v1017_v34, %v1021_v19  ;;  %v1057_v4 = vrot.slane %v1055_v57, 5  ;;  %v1063_v62 = vrot.slane %v1061_v58, 5 }
  0x5c   : > { %2603 = vmatmul.mubr.msk.bf16.gmra.mxu1 %vm287_vm1, %v2769_v41  ;;  %2638 = vmatprep.subr.bf16.mxu0 %v3153_v13  ;;  %v1262_v41 = vsel %vm3077_vm6, %v2365_v22, %v1261_v35  ;;  %v2367_v8 = vrot.slane %v2359_v59, 9  ;;  %v1269_v10 = vrot.slane %v2337_v43, 5  ;;  %v1066_v12 = vshrl.u32 %v2338_v2, 16 }
  0x5d   : > { %2627 = vmatpush3.bf16.msra.mxu1 %v2771_v36  ;;  %2630 = vmatprep.mubr.msk.bf16.mxu1 %vm287_vm1, %v2370_v15  ;;  %v1030_v36 = vor.u32 %v1029_v33, %v1026_v20  ;;  %v2371_v47 = vcombine.low %v1258_v37, %v1262_v41  ;;  %v1045_v55 = vrot.slane %v1044_v3, 4  ;;  %v1058_v11 = vor.u32 %v1057_v4, %v1054_v63  ;;  %v2406_v3 = vld [vmem:[%s3003_s9 + $0x20] sm:$0xf] }
  0x5e   : > { %2628 = vmatprep.subr.bf16.mxu1 %v2773_v52  ;;  %v1069_v14 = vshll.u32 %v2338_v2, 16  ;;  %v1075_v15 = vshll.u32 %v2339_v5, 16  ;;  %v1270_v19 = vsel %vm3077_vm6, %v2367_v8, %v1269_v10  ;;  %v1068_v20 = vrot.slane %v1066_v12, 4  ;;  %v2782_v2 = vld [vmem:[%s3003_s9 + $0x10] ss:$8 sps:$4 sm:$0xff]  }
  0x5f   : > { %v1031_v46 = vrot.slane %v1030_v36, 4  ;;  %v1080_v21 = vshrl.u32 %v2340_v6, 16  ;;  %v1050_v27 = vsel %vm3028_vm3, %v1045_v55, %v1049_v61  ;;  %v1059_v0 = vrot.slane %v1058_v11, 4  ;;  %v3224_v12 = vld [vmem:[%s3003_s9 + $0x2c] sm:$0x1] }
  0x60   : > { %v1071_v32 = vrot.slane %v1069_v14, 5  ;;  %v1077_v33 = vrot.slane %v1075_v15, 5  ;;  %v1083_v24 = vshll.u32 %v2340_v6, 16  ;;  %v1089_v22 = vshll.u32 %v2341_v9, 16 }
  0x61   : > { %2629 = vmatpush3.bf16.msra.mxu1 %v2773_v52  ;;  %v2358_v52 = vld [vmem:[%s3003_s9 + $0x28] sm:$0xe]  ;;  %v1036_v60 = vsel %vm3028_vm3, %v1031_v46, %v1035_v26  ;;  %v1064_v34 = vsel %vm3028_vm3, %v1059_v0, %v1063_v62  ;;  %v2368_v35 = vrot.slane %v2360_v16, 9  ;;  %v1273_v36 = vrot.slane %v2339_v5, 5  ;;  %v2402_v46 = vld [vmem:[%s3003_s9 + $0x10] sm:$0xf] }
  0x62   : > { %2654 = vmatprep.subr.bf16.mxu1 %v2775_v23  ;;  %v2366_v1 = vrot.slane %v2358_v52, 9  ;;  %v2343_v30 = vcombine.low %v1022_v40, %v1036_v60  ;;  %v1072_v26 = vor.u32 %v1071_v32, %v1068_v20  ;;  %v2344_v37 = vcombine.low %v1050_v27, %v1064_v34  ;;  %v2780_v40 = vld [vmem:[#allocation3 + $0xc0] sm:$0xff]   ;;  %v2404_v52 = vld [vmem:[%s3003_s9 + $0x18] sm:$0xf] }
  0x63   : > { %v1085_v38 = vrot.slane %v1083_v24, 5  ;;  %v1274_v42 = vsel %vm3077_vm6, %v2368_v35, %v1273_v36  ;;  %v1277_v43 = vrot.slane %v2341_v9, 5  ;;  %v1091_v45 = vrot.slane %v1089_v22, 5  ;;  %v2408_v9 = vld [vmem:[%s3003_s9 + $0x28] sm:$0xf]  ;;  %v3236_v22 = vld [vmem:[#allocation3 + $0x110] sm:$0xff]  }
  0x64   : > { %2631 = vmatmul.mubr.msk.bf16.vlgmr.msra.gmra.mxu1 %vm287_vm1, %v2371_v47  ;;  %2615 = vmatmul.mubr.msk.bf16.vlgmr.msra.gmra.mxu0 %vm287_vm1, %v2343_v30  ;;  %v1266_v18 = vsel %vm3077_vm6, %v2366_v1, %v1265_v7  ;;  %v1073_v41 = vrot.slane %v1072_v26, 4  ;;  %v3198_v47 = vld [vmem:[#allocation3 + $0x118] sm:$0xff]   ;;  %v1576_v57 = vshrl.u32 %v2402_v46, 16  ;;  %v1579_v58 = vshll.u32 %v2402_v46, 16  ;;  %v3220_v7 = vld [vmem:[%s3003_s9 + $0x24] sm:$0x1] }
  0x65   : > { %2655 = vmatpush3.bf16.msra.mxu1 %v2775_v23  ;;  %2639 = vmatpush3.bf16.msra.mxu0 %v3153_v13  ;;  %v2361_v23 = vld [vmem:[%s3003_s9 + $0x40] sm:$0xe]  ;;  %v2372_v29 = vcombine.low %v1266_v18, %v1270_v19  ;;  %v1082_v13 = vrot.slane %v1080_v21, 4  ;;  %v1585_v59 = vshll.u32 %v3205_v51, 16  ;;  %v1590_v60 = vshrl.u32 %v2404_v52, 16 }
  0x66   : > { %2656 = vmatprep.subr.bf16.mxu1 %v2777_v49  ;;  %2640 = vmatprep.subr.bf16.mxu0 %v2776_v53  ;;  %v2369_v39 = vrot.slane %v2361_v23, 9  ;;  %v1593_v61 = vshll.u32 %v2404_v52, 16  ;;  %v1581_v30 = vrot.slane %v1579_v58, 5  ;;  %v1604_v55 = vshrl.u32 %v2406_v3, 16  ;;  %v2783_v23 = vld [vmem:[%s3003_s9 + $0x20] ss:$8 sps:$4 sm:$0xff]  }
  0x67   : > { %2634 = vmatprep.mubr.msk.bf16.mxu1 %vm287_vm1, %v2372_v29  ;;  %2618 = vmatprep.mubr.msk.bf16.mxu0 %vm287_vm1, %v2344_v37  ;;  %v1086_v44 = vor.u32 %v1085_v38, %v1082_v13  ;;  %v1587_v62 = vrot.slane %v1585_v59, 5  ;;  %v1592_v5 = vrot.slane %v1590_v60, 4  ;;  %v1607_v14 = vshll.u32 %v2406_v3, 16  ;;  %v2786_v34 = vld [vmem:[%s3003_s9 + $0x30] ss:$8 sps:$4 sm:$0xff]  }
  0x68   : > { %v1278_v50 = vsel %vm3077_vm6, %v2369_v39, %v1277_v43  ;;  %v1595_v6 = vrot.slane %v1593_v61, 5  ;;  %v1613_v15 = vshll.u32 %v3220_v7, 16  ;;  %v1618_v16 = vshrl.u32 %v2408_v9, 16  ;;  %v2410_v26 = vld [vmem:[%s3003_s9 + $0x30] sm:$0xf] }
  0x69   : > { %2657 = vmatpush3.bf16.msra.mxu1 %v2777_v49  ;;  %2641 = vmatpush3.bf16.msra.mxu0 %v2776_v53  ;;  %v1078_v49 = vsel %vm3028_vm3, %v1073_v41, %v1077_v33  ;;  %v3209_v53 = vld [vmem:[%s3003_s9 + $0x1c] sm:$0x1]  ;;  %v1087_v54 = vrot.slane %v1086_v44, 4  ;;  %v2373_v56 = vcombine.low %v1274_v42, %v1278_v50  ;;  %v1606_v18 = vrot.slane %v1604_v55, 4  ;;  %v3241_v37 = vld [vmem:[%s3003_s9 + $0x34] sm:$0x1] }
  0x6a   : > { %2658 = vmatprep.subr.bf16.mxu1 %v2779_v28  ;;  %2642 = vmatprep.subr.bf16.mxu0 %v2778_v17  ;;  %v1599_v63 = vshll.u32 %v3209_v53, 16  ;;  %v1596_v11 = vor.u32 %v1595_v6, %v1592_v5  ;;  %v1621_v19 = vshll.u32 %v2408_v9, 16  ;;  %v1627_v20 = vshll.u32 %v3224_v12, 16  ;;  %v2412_v38 = vld [vmem:[%s3003_s9 + $0x38] sm:$0xf] }
  0x6b   : > { %v1092_v1 = vsel %vm3028_vm3, %v1087_v54, %v1091_v45  ;;  %v1615_v27 = vrot.slane %v1613_v15, 5  ;;  %v1620_v0 = vrot.slane %v1618_v16, 4  ;;  %v3245_v39 = vld [vmem:[%s3003_s9 + $0x3c] sm:$0x1]  ;;  %v1632_v41 = vshrl.u32 %v2410_v26, 16 }
  0x6c   : > { %2635 = vmatmul.mubr.msk.bf16.gmra.mxu1 %vm287_vm1, %v2373_v56  ;;  %v2345_v4 = vcombine.low %v1078_v49, %v1092_v1  ;;  %v1601_v10 = vrot.slane %v1599_v63, 5  ;;  %v1597_v21 = vrot.slane %v1596_v11, 4  ;;  %v1623_v32 = vrot.slane %v1621_v19, 5  ;;  %v2414_v61 = vld [vmem:[%s3003_s9 + $0x40] sm:$0xf]  ;;  %v3258_v63 = vld [vmem:[#allocation3 + $0x108] sm:$0xff]  }
  0x6d   : > { %2659 = vmatpush3.bf16.msra.mxu1 %v2779_v28  ;;  %2643 = vmatpush3.bf16.msra.mxu0 %v2778_v17  ;;  %v1578_v28 = vrot.slane %v1576_v57, 4  ;;  %v1629_v33 = vrot.slane %v1627_v20, 5  ;;  %v1635_v42 = vshll.u32 %v2410_v26, 16  ;;  %v1641_v43 = vshll.u32 %v3241_v37, 16  ;;  %v2416_v3 = vld [vmem:[%s3003_s9 + $0x48] sm:$0xf] }
  0x6e   : > { %2660 = vmatprep.subr.bf16.mxu1 %v2781_v25  ;;  %2644 = vmatprep.subr.bf16.mxu0 %v2780_v40  ;;  %v1602_v13 = vsel %vm3028_vm3, %v1597_v21, %v1601_v10  ;;  %v1624_v36 = vor.u32 %v1623_v32, %v1620_v0  ;;  %v1646_v45 = vshrl.u32 %v2412_v38, 16  ;;  %v1649_v46 = vshll.u32 %v2412_v38, 16  ;;  %v2431_v32 = vld [vmem:[%s3003_s9 + $0x18] sm:$0xe]  ;;  %v2434_v26 = vld [vmem:[%s3003_s9 + $0x30] sm:$0xe] }
  0x6f   : > { %v1582_v8 = vor.u32 %v1581_v30, %v1578_v28  ;;  %2619 = vmatmul.mubr.msk.bf16.gmra.mxu0 %vm287_vm1, %v2345_v4  ;;  %v1655_v49 = vshll.u32 %v3245_v39, 16  ;;  %v1634_v52 = vrot.slane %v1632_v41, 4  ;;  %v1637_v54 = vrot.slane %v1635_v42, 5  ;;  %v2787_v28 = vld [vmem:[%s3003_s9 + $0x40] ss:$8 sps:$4 sm:$0xff]  }
  0x70   : > { %2646 = vmatprep.mubr.msk.bf16.mxu0 %vm287_vm1, %v2782_v2  ;;  %v1625_v44 = vrot.slane %v1624_v36, 4  ;;  %v1643_v56 = vrot.slane %v1641_v43, 5  ;;  %v1648_v58 = vrot.slane %v1646_v45, 4  ;;  %v1651_v59 = vrot.slane %v1649_v46, 5  ;;  %v3263_v30 = vld [vmem:[%s3003_s9 + $0x44] sm:$0x1] }
  0x71   : > { %2661 = vmatpush3.bf16.msra.mxu1 %v2781_v25  ;;  %2645 = vmatpush3.bf16.msra.mxu0 %v2780_v40  ;;  %v1583_v17 = vrot.slane %v1582_v8, 4  ;;  %v1609_v25 = vrot.slane %v1607_v14, 5  ;;  %v1657_v60 = vrot.slane %v1655_v49, 5  ;;  %v1638_v2 = vor.u32 %v1637_v54, %v1634_v52  ;;  %v3267_v4 = vld [vmem:[%s3003_s9 + $0x4c] sm:$0x1] }
  0x72   : > { %2686 = vmatprep.subr.bf16.mxu1 %v3198_v47  ;;  %2670 = vmatprep.subr.bf16.mxu0 %v3198_v47  ;;  %v1630_v57 = vsel %vm3028_vm3, %v1625_v44, %v1629_v33  ;;  %v1660_v5 = vshrl.u32 %v2414_v61, 16  ;;  %v1663_v6 = vshll.u32 %v2414_v61, 16  ;;  %v1669_v8 = vshll.u32 %v3263_v30, 16  ;;  %v2432_v42 = vld [vmem:[%s3003_s9 + $0x20] sm:$0xe] }
  0x73   : > { %v1588_v29 = vsel %vm3028_vm3, %v1583_v17, %v1587_v62  ;;  %v1610_v24 = vor.u32 %v1609_v25, %v1606_v18  ;;  %v1652_v62 = vor.u32 %v1651_v59, %v1648_v58  ;;  %v1639_v10 = vrot.slane %v1638_v2, 4  ;;  %v2433_v45 = vld [vmem:[%s3003_s9 + $0x28] sm:$0xe]  ;;  %v2436_v52 = vld [vmem:[%s3003_s9 + $0x40] sm:$0xe] }
  0x74   : > { %v2418_v35 = vcombine.low %v1588_v29, %v1602_v13  ;;  %v1674_v9 = vshrl.u32 %v2416_v3, 16  ;;  %v1677_v55 = vshll.u32 %v2416_v3, 16  ;;  %v1683_v11 = vshll.u32 %v3267_v4, 16  ;;  %v2430_v29 = vld [vmem:[%s3003_s9 + $0x10] sm:$0xe] }
  0x75   : > { %v1611_v40 = vrot.slane %v1610_v24, 4  ;;  %v1653_v14 = vrot.slane %v1652_v62, 4  ;;  %v1662_v15 = vrot.slane %v1660_v5, 4  ;;  %v1665_v16 = vrot.slane %v1663_v6, 5  ;;  %v2437_v54 = vld [vmem:[%s3003_s9 + $0x48] sm:$0xe] }
  0x76   : > { %2662 = vmatprep.mubr.msk.bf16.mxu1 %vm287_vm1, %v2418_v35  ;;  %v1671_v17 = vrot.slane %v1669_v8, 5  ;;  %v1644_v18 = vsel %vm3028_vm3, %v1639_v10, %v1643_v56  ;;  %v1676_v19 = vrot.slane %v1674_v9, 4  ;;  %v1679_v20 = vrot.slane %v1677_v55, 5  ;;  %v2435_v35 = vld [vmem:[%s3003_s9 + $0x38] sm:$0xe] }
  0x77   : > { %2647 = vmatmul.mubr.msk.bf16.vlgmr.msra.gmra.mxu0 %vm287_vm1, %v2783_v23  ;;  %v1616_v50 = vsel %vm3028_vm3, %v1611_v40, %v1615_v27  ;;  %v1685_v21 = vrot.slane %v1683_v11, 5  ;;  %v1658_v23 = vsel %vm3028_vm3, %v1653_v14, %v1657_v60  ;;  %v1666_v25 = vor.u32 %v1665_v16, %v1662_v15 }
  0x78   : > { %2671 = vmatpush3.bf16.msra.mxu0 %v3198_v47  ;;  %2650 = vmatprep.mubr.msk.bf16.mxu0 %vm287_vm1, %v2786_v34  ;;  %v2419_v1 = vcombine.low %v1616_v50, %v1630_v57  ;;  %v1867_v27 = vrot.slane %v3263_v30, 5  ;;  %v1871_v0 = vrot.slane %v3267_v4, 5  ;;  %v2420_v33 = vcombine.low %v1644_v18, %v1658_v23 }
  0x79   : > { %2672 = vmatprep.subr.bf16.mxu0 %v3236_v22  ;;  %v1680_v13 = vor.u32 %v1679_v20, %v1676_v19  ;;  %v2438_v24 = vrot.slane %v2430_v29, 9  ;;  %v1843_v34 = vrot.slane %v3205_v51, 5  ;;  %v1667_v36 = vrot.slane %v1666_v25, 4 }
  0x7a   : > { %2663 = vmatmul.mubr.msk.bf16.vlgmr.msra.gmra.mxu1 %vm287_vm1, %v2419_v1  ;;  %v2439_v38 = vrot.slane %v2431_v32, 9  ;;  %v1847_v40 = vrot.slane %v3209_v53, 5  ;;  %v2442_v41 = vrot.slane %v2434_v26, 9  ;;  %v2443_v44 = vrot.slane %v2435_v35, 9 }
  0x7b   : > { %2690 = vmatpush3.bf16.msra.mxu1 %v3198_v47  ;;  %v2789_v47 = vld [vmem:[#allocation3 + $0x100] sm:$0xff]   ;;  %2666 = vmatprep.mubr.msk.bf16.mxu1 %vm287_vm1, %v2420_v33  ;;  %v1681_v43 = vrot.slane %v1680_v13, 4  ;;  %v1844_v51 = vsel %vm3077_vm6, %v2438_v24, %v1843_v34  ;;  %v1672_v46 = vsel %vm3028_vm3, %v1667_v36, %v1671_v17  ;;  %v1863_v49 = vrot.slane %v3245_v39, 5 }
  0x7c   : > { %2673 = vmatpush3.bf16.msra.mxu0 %v3236_v22  ;;  %2687 = vmatprep.subr.bf16.mxu1 %v3236_v22  ;;  %v1848_v53 = vsel %vm3077_vm6, %v2439_v38, %v1847_v40  ;;  %v2440_v50 = vrot.slane %v2432_v42, 9  ;;  %v1851_v58 = vrot.slane %v3220_v7, 5  ;;  %v2441_v39 = vrot.slane %v2433_v45, 9 }
  0x7d   : > { %2674 = vmatprep.subr.bf16.mxu0 %v3258_v63  ;;  %v1686_v56 = vsel %vm3028_vm3, %v1681_v43, %v1685_v21  ;;  %v2446_v57 = vcombine.low %v1844_v51, %v1848_v53  ;;  %v1864_v60 = vsel %vm3077_vm6, %v2443_v44, %v1863_v49  ;;  %v1855_v61 = vrot.slane %v3224_v12, 5 }
  0x7e   : > { %v2421_v59 = vcombine.low %v1672_v46, %v1686_v56  ;;  %v1852_v1 = vsel %vm3077_vm6, %v2440_v50, %v1851_v58  ;;  %v2444_v2 = vrot.slane %v2436_v52, 9 }
  0x7f   : > { %2651 = vmatmul.mubr.msk.bf16.gmra.mxu0 %vm287_vm1, %v2787_v28  ;;  %2691 = vmatpush3.bf16.msra.mxu1 %v3236_v22  ;;  %v1859_v22 = vrot.slane %v3241_v37, 5  ;;  %v2445_v28 = vrot.slane %v2437_v54, 9  ;;  %v1856_v7 = vsel %vm3077_vm6, %v2441_v39, %v1855_v61 }
  0x80   : > { %2675 = vmatpush3.bf16.msra.mxu0 %v3258_v63  ;;  %2688 = vmatprep.subr.bf16.mxu1 %v3258_v63  ;;  %v1868_v12 = vsel %vm3077_vm6, %v2444_v2, %v1867_v27 }
  0x81   : > { %2676 = vmatprep.subr.bf16.mxu0 %v2789_v47  ;;  %v1860_v37 = vsel %vm3077_vm6, %v2442_v41, %v1859_v22  ;;  %2678 = vmatprep.mubr.msk.bf16.mxu0 %vm287_vm1, %v2446_v57  ;;  %v1872_v30 = vsel %vm3077_vm6, %v2445_v28, %v1871_v0 }
  0x82   : > { %v2448_v31 = vcombine.low %v1860_v37, %v1864_v60  ;;  %2667 = vmatmul.mubr.msk.bf16.gmra.mxu1 %vm287_vm1, %v2421_v59  ;;  %v2449_v3 = vcombine.low %v1868_v12, %v1872_v30 }
  0x83   : > { %2692 = vmatpush3.bf16.msra.mxu1 %v3258_v63  ;;  %v2447_v63 = vcombine.low %v1852_v1, %v1856_v7 }
  0x84   : > { %2677 = vmatpush3.bf16.msra.mxu0 %v2789_v47  ;;  %2689 = vmatprep.subr.bf16.mxu1 %v2789_v47 }
  0x85   : > { %2682 = vmatprep.mubr.msk.bf16.mxu1 %vm287_vm1, %v2448_v31 }
  0x87   : > { %2693 = vmatpush3.bf16.msra.mxu1 %v2789_v47  ;;  %2679 = vmatmul.mubr.msk.bf16.vlgmr.msra.gmra.mxu0 %vm287_vm1, %v2447_v63 }
  0x8a   : > { %2683 = vmatmul.mubr.msk.bf16.vlgmr.msra.gmra.mxu1 %vm287_vm1, %v2449_v3 }
  0xfc   : > { %v2552_v4 = vpop.f32.mrf.mxu0 }
  0xfe   : > { %v334_v62 = vpop.f32.mrf.mxu0 }
 0x100   : > { %v2553_v5 = vpop.f32.mrf.mxu0 }
 0x102   : > { %v337_v6 = vpop.f32.mrf.mxu0  ;;  %v2568_v8 = vpop.f32.mrf.mxu1 }
 0x103   : > { %v620_v56 = vadd.f32 %v2568_v8, %v2552_v4 }
 0x104   : > { %v2556_v10 = vpop.f32.mrf.mxu0  ;;  %v587_v9 = vpop.f32.mrf.mxu1 }
 0x105   : > { %v618_v58 = vadd.f32 %v587_v9, %v334_v62 }
 0x106   : > { %v350_v55 = vpop.f32.mrf.mxu0  ;;  %v2569_v11 = vpop.f32.mrf.mxu1 }
 0x107   : > { %v621_v39 = vadd.f32 %v2569_v11, %v2553_v5 }
 0x108   : > { %v2557_v14 = vpop.f32.mrf.mxu0  ;;  %v590_v15 = vpop.f32.mrf.mxu1 }
 0x109   : > { %v619_v28 = vadd.f32 %v590_v15, %v337_v6 }
 0x10a   : > { %v3327_v16 = vpop.f32.mrf.mxu0 }
 0x10b   : > { %3395 = vst [vmem:[#allocation9_spill] sm:$0xff] %v3327_v16 }
 0x10c   : > { %v2572_v48 = vpop.f32.mrf.mxu1 }
 0x10d   : > { %v2584_v18 = vpop.f32.mrf.mxu0  ;;  %v624_v31 = vadd.f32 %v2572_v48, %v2556_v10 }
 0x10e   : > { %v603_v17 = vpop.f32.mrf.mxu1  ;;  %v809_v59 = vadd.f32 %v2584_v18, %v620_v56 }
 0x10f   : > { %v776_v20 = vpop.f32.mrf.mxu0  ;;  %v622_v12 = vadd.f32 %v603_v17, %v350_v55 }
 0x110   : > { %v2573_v19 = vpop.f32.mrf.mxu1  ;;  %v807_v61 = vadd.f32 %v776_v20, %v618_v58 }
 0x111   : > { %v2585_v47 = vpop.f32.mrf.mxu0 }
 0x112   : > { %v606_v21 = vpop.f32.mrf.mxu1  ;;  %v810_v63 = vadd.f32 %v2585_v47, %v621_v39  ;;  %v3399_v11 = vld [vmem:[#allocation9_spill] sm:$0xff] }
 0x113   : > { %v779_v25 = vpop.f32.mrf.mxu0  ;;  %v623_v10 = vadd.f32 %v606_v21, %v3399_v11 }
 0x114   : > { %v2600_v23 = vpop.f32.mrf.mxu1  ;;  %v808_v4 = vadd.f32 %v779_v25, %v619_v28 }
 0x115   : > { %v959_v7 = vadd.f32 %v2600_v23, %v809_v59 }
 0x116   : > { %v926_v27 = vpop.f32.mrf.mxu1  ;;  %v2588_v29 = vpop.f32.mrf.mxu0 }
 0x117   : > { %v813_v30 = vadd.f32 %v2588_v29, %v624_v31 }
 0x118   : > { %v2601_v0 = vpop.f32.mrf.mxu1  ;;  %v792_v13 = vpop.f32.mrf.mxu0 }
 0x119   : > { %v811_v16 = vadd.f32 %v792_v13, %v622_v12  ;;  %v960_v18 = vadd.f32 %v2601_v0, %v810_v63 }
 0x11a   : > { %v929_v32 = vpop.f32.mrf.mxu1  ;;  %v2589_v26 = vpop.f32.mrf.mxu0 }
 0x11b   : > { %v958_v15 = vadd.f32 %v929_v32, %v808_v4 }
 0x11c   : > { %v2604_v33 = vpop.f32.mrf.mxu1  ;;  %v795_v36 = vpop.f32.mrf.mxu0 }
 0x11d   : > { %v963_v48 = vadd.f32 %v2604_v33, %v813_v30  ;;  %v812_v29 = vadd.f32 %v795_v36, %v623_v10 }
 0x11e   : > { %v942_v24 = vpop.f32.mrf.mxu1 }
 0x11f   : > { %v961_v23 = vadd.f32 %v942_v24, %v811_v16 }
 0x120   : > { %v2605_v34 = vpop.f32.mrf.mxu1 }
 0x122   : > { %v3329_v35 = vpop.f32.mrf.mxu1 }
 0x123   : > { %3396 = vst [vmem:[#allocation10_spill] sm:$0xff] %v3329_v35  ;;  %v957_v35 = vadd.f32 %v926_v27, %v807_v61 }
 0x124   : > { %v2632_v38 = vpop.f32.mrf.mxu1  ;;  %v2616_v41 = vpop.f32.mrf.mxu0 }
 0x125   : > { %v1217_v8 = vadd.f32 %v2616_v41, %v959_v7 }
 0x126   : > { %v1370_v40 = vpop.f32.mrf.mxu1  ;;  %v1184_v42 = vpop.f32.mrf.mxu0 }
 0x127   : > { %v1215_v5 = vadd.f32 %v1184_v42, %v957_v35  ;;  %v1403_v47 = vadd.f32 %v2632_v38, %v1217_v8 }
 0x128   : > { %v2633_v43 = vpop.f32.mrf.mxu1  ;;  %v2617_v51 = vpop.f32.mrf.mxu0 }
 0x129   : > { %v1218_v55 = vadd.f32 %v2617_v51, %v960_v18  ;;  %v1401_v41 = vadd.f32 %v1370_v40, %v1215_v5 }
 0x12a   : > { %v1373_v22 = vpop.f32.mrf.mxu1  ;;  %v1187_v44 = vpop.f32.mrf.mxu0  ;;  %v3400_v33 = vld [vmem:[#allocation10_spill] sm:$0xff] }
 0x12b   : > { %v1404_v35 = vadd.f32 %v2633_v43, %v1218_v55 }
 0x12c   : > { %v2636_v45 = vpop.f32.mrf.mxu1 }
 0x12e   : > { %v1386_v53 = vpop.f32.mrf.mxu1 }
 0x12f   : > { %v2620_v46 = vpop.f32.mrf.mxu0 }
 0x130   : > { %v3331_v52 = vpop.f32.mrf.mxu1  ;;  %v1221_v27 = vadd.f32 %v2620_v46, %v963_v48 }
 0x131   : > { %v1200_v49 = vpop.f32.mrf.mxu0  ;;  %3397 = vst [vmem:[#allocation11_spill] sm:$0xff] %v3331_v52 }
 0x132   : > { %v3333_v57 = vpop.f32.mrf.mxu1  ;;  %v1219_v56 = vadd.f32 %v1200_v49, %v961_v23 }
 0x133   : > { %v2621_v50 = vpop.f32.mrf.mxu0  ;;  %3398 = vst [vmem:[#allocation12_spill] sm:$0xff] %v3333_v57  ;;  %v625_v57 = vadd.f32 %v2573_v19, %v2557_v14  ;;  %v1216_v14 = vadd.f32 %v1187_v44, %v958_v15  ;;  %v2458_v44 = vld [vmem:[#allocation5] ss:$0 sm:$0xff] }
 0x134   : > { %v1405_v24 = vadd.f32 %v1386_v53, %v1219_v56 }
 0x135   : > { %v1203_v54 = vpop.f32.mrf.mxu0  ;;  %v814_v20 = vadd.f32 %v2589_v26, %v625_v57  ;;  %v962_v26 = vadd.f32 %v3400_v33, %v812_v29  ;;  %v1407_v57 = vadd.f32 %v2636_v45, %v1221_v27  ;;  %v1402_v38 = vadd.f32 %v1373_v22, %v1216_v14 }
 0x137   : > { %v2648_v37 = vpop.f32.mrf.mxu0  ;;  %v964_v13 = vadd.f32 %v2605_v34, %v814_v20  ;;  %v1220_v36 = vadd.f32 %v1203_v54, %v962_v26 }
 0x138   : > { %v1553_v19 = vadd.f32 %v2648_v37, %v1403_v47  ;;  %v3401_v43 = vld [vmem:[#allocation11_spill] sm:$0xff] }
 0x139   : > { %v1520_v60 = vpop.f32.mrf.mxu0  ;;  %v1222_v32 = vadd.f32 %v2621_v50, %v964_v13 }
 0x13a   : > { %v2664_v1 = vpop.f32.mrf.mxu1  ;;  %v1551_v42 = vadd.f32 %v1520_v60, %v1401_v41 }
 0x13b   : > { %v2649_v2 = vpop.f32.mrf.mxu0  ;;  %v1811_v51 = vadd.f32 %v2664_v1, %v1553_v19  ;;  %v1408_v60 = vadd.f32 %v3401_v43, %v1222_v32  ;;  %v3402_v1 = vld [vmem:[#allocation12_spill] sm:$0xff] }
 0x13c   : > { %v1778_v3 = vpop.f32.mrf.mxu1  ;;  %v1554_v58 = vadd.f32 %v2649_v2, %v1404_v35  ;;  %v1406_v2 = vadd.f32 %v3402_v1, %v1220_v36 }
 0x13d   : > { %v1523_v52 = vpop.f32.mrf.mxu0  ;;  %v1809_v37 = vadd.f32 %v1778_v3, %v1551_v42 }
 0x13e   : > { %v2665_v62 = vpop.f32.mrf.mxu1  ;;  %v1552_v34 = vadd.f32 %v1523_v52, %v1402_v38 }
 0x13f   : > { %v2652_v9 = vpop.f32.mrf.mxu0  ;;  %v1812_v31 = vadd.f32 %v2665_v62, %v1554_v58 }
 0x140   : > { %v1781_v17 = vpop.f32.mrf.mxu1  ;;  %v1557_v46 = vadd.f32 %v2652_v9, %v1407_v57 }
 0x141   : > { %v1536_v6 = vpop.f32.mrf.mxu0  ;;  %v1810_v7 = vadd.f32 %v1781_v17, %v1552_v34 }
 0x142   : > { %v2668_v21 = vpop.f32.mrf.mxu1  ;;  %v1555_v39 = vadd.f32 %v1536_v6, %v1405_v24 }
 0x143   : > { %v2653_v25 = vpop.f32.mrf.mxu0  ;;  %v1815_v53 = vadd.f32 %v2668_v21, %v1557_v46 }
 0x144   : > { %v1794_v16 = vpop.f32.mrf.mxu1  ;;  %v1558_v54 = vadd.f32 %v2653_v25, %v1408_v60 }
 0x145   : > { %v1539_v0 = vpop.f32.mrf.mxu0  ;;  %v1813_v3 = vadd.f32 %v1794_v16, %v1555_v39 }
 0x146   : > { %v2669_v49 = vpop.f32.mrf.mxu1  ;;  %v1556_v4 = vadd.f32 %v1539_v0, %v1406_v2 }
 0x147   : > { %v2680_v40 = vpop.f32.mrf.mxu0  ;;  %v1816_v48 = vadd.f32 %v2669_v49, %v1558_v54 }
 0x148   : > { %v1997_v59 = vadd.f32 %v2680_v40, %v1811_v51  ;;  %v1797_v45 = vpop.f32.mrf.mxu1 }
 0x149   : > { %v1964_v61 = vpop.f32.mrf.mxu0  ;;  %v1814_v23 = vadd.f32 %v1797_v45, %v1556_v4 }
 0x14a   : > { %v3338_v50 = vadd.f32 %v2458_v44, %v1997_v59  ;;  %v1995_v22 = vadd.f32 %v1964_v61, %v1809_v37  ;;  %v2684_v52 = vpop.f32.mrf.mxu1 }
 0x14b   : > { %v2681_v28 = vpop.f32.mrf.mxu0  ;;  %v2001_v8 = vadd.f32 %v2684_v52, %v1815_v53 }
 0x14c   : > { %v2020_v63 = vmin.f32 %v3338_v50, 20.0  ;;  %v3342_v12 = vadd.f32 %v2458_v44, %v1995_v22  ;;  %v1998_v30 = vadd.f32 %v2681_v28, %v1812_v31  ;;  %v1980_v5 = vpop.f32.mrf.mxu1 }
 0x14d   : > { %v1967_v62 = vpop.f32.mrf.mxu0  ;;  %v3347_v20 = vadd.f32 %v2458_v44, %v2001_v8  ;;  %v1999_v6 = vadd.f32 %v1980_v5, %v1813_v3 }
 0x14e   : > { %v2030_v9 = vmul.f32 1.442695, %v2020_v63  ;;  %v2018_v18 = vmin.f32 %v3342_v12, 20.0  ;;  %v3345_v11 = vadd.f32 %v2458_v44, %v1998_v30  ;;  %v1996_v10 = vadd.f32 %v1967_v62, %v1810_v7  ;;  %v2685_v55 = vpop.f32.mrf.mxu1 }
 0x14f   : > { %v2024_v29 = vmin.f32 %v3347_v20, 20.0  ;;  %v3353_v27 = vadd.f32 %v2458_v44, %v1999_v6  ;;  %v2002_v25 = vadd.f32 %v2685_v55, %v1816_v48 }
 0x150   : > { %2790 = vpow2.f32 %v2030_v9  ;;  %v2026_v15 = vmul.f32 1.442695, %v2018_v18  ;;  %v2021_v47 = vmin.f32 %v3345_v11, 20.0  ;;  %v3350_v17 = vadd.f32 %v2458_v44, %v1996_v10  ;;  %v1983_v19 = vpop.f32.mrf.mxu1 }
 0x151   : > { %v2038_v13 = vmul.f32 1.442695, %v2024_v29  ;;  %v2022_v56 = vmin.f32 %v3353_v27, 20.0  ;;  %v3357_v0 = vadd.f32 %v2458_v44, %v2002_v25  ;;  %v2000_v35 = vadd.f32 %v1983_v19, %v1814_v23 }
 0x152   : > { %2792 = vpow2.f32 %v2026_v15  ;;  %v2032_v41 = vmul.f32 1.442695, %v2021_v47  ;;  %v2019_v14 = vmin.f32 %v3350_v17, 20.0 }
 0x153   : > { %v2034_v21 = vmul.f32 1.442695, %v2022_v56  ;;  %v2025_v33 = vmin.f32 %v3357_v0, 20.0  ;;  %v3360_v26 = vadd.f32 %v2458_v44, %v2000_v35 }
 0x154   : > { %2794 = vpow2.f32 %v2032_v41  ;;  %v2028_v42 = vmul.f32 1.442695, %v2019_v14 }
 0x155   : > { %2796 = vpow2.f32 %v2038_v13  ;;  %v2040_v57 = vmul.f32 1.442695, %v2025_v33  ;;  %v2023_v32 = vmin.f32 %v3360_v26, 20.0 }
 0x156   : > { %2798 = vpow2.f32 %v2028_v42 }
 0x157   : > { %2800 = vpow2.f32 %v2034_v21  ;;  %v2036_v38 = vmul.f32 1.442695, %v2023_v32 }
 0x158   : > { %2802 = vpow2.f32 %v2040_v57 }
 0x159   : > { %2804 = vpow2.f32 %v2036_v38 }
 0x15d   : > { %v2791_v51 = vpop.eup %2790 }
 0x15e   : > { %v2044_v58 = vadd.f32 1.0, %v2791_v51 }
 0x15f   : > { %v2793_v16 = vpop.eup %2792 }
 0x160   : > { %v2052_v24 = vmul.f32 %v2044_v58, %v2044_v58  ;;  %v2042_v36 = vadd.f32 1.0, %v2793_v16 }
 0x161   : > { %v2795_v46 = vpop.eup %2794 }
 0x162   : > { %v2797_v40 = vpop.eup %2796  ;;  %v2045_v37 = vadd.f32 1.0, %v2795_v46  ;;  %v2076_v49 = vadd.f32 1.0, %v2052_v24  ;;  %v2050_v59 = vmul.f32 %v2042_v36, %v2042_v36  ;;  %v2461_v9 = vadd.f32 -1.0, %v2052_v24 }
 0x163   : > { %v2799_v34 = vpop.eup %2798  ;;  %v2048_v44 = vadd.f32 1.0, %v2797_v40 }
 0x164   : > { %v2801_v43 = vpop.eup %2800  ;;  %v2053_v61 = vmul.f32 %v2045_v37, %v2045_v37  ;;  %v2043_v31 = vadd.f32 1.0, %v2799_v34  ;;  %2806 = vrcp.f32 %v2076_v49  ;;  %v2074_v22 = vadd.f32 1.0, %v2050_v59 }
 0x165   : > { %v2056_v60 = vmul.f32 %v2048_v44, %v2048_v44  ;;  %v2046_v39 = vadd.f32 1.0, %v2801_v43  ;;  %v2803_v45 = vpop.eup %2802  ;;  %v2459_v10 = vadd.f32 -1.0, %v2050_v59  ;;  %v2068_v6 = vmul.f32 %v2461_v9, %v3338_v50 }
 0x166   : > { %v2805_v2 = vpop.eup %2804  ;;  %v2077_v54 = vadd.f32 1.0, %v2053_v61  ;;  %v2049_v28 = vadd.f32 1.0, %v2803_v45  ;;  %v2051_v7 = vmul.f32 %v2043_v31, %v2043_v31  ;;  %v2462_v18 = vadd.f32 -1.0, %v2053_v61 }
 0x167   : > { %v2054_v1 = vmul.f32 %v2046_v39, %v2046_v39  ;;  %v2080_v53 = vadd.f32 1.0, %v2056_v60  ;;  %v2047_v3 = vadd.f32 1.0, %v2805_v2  ;;  %v2465_v15 = vadd.f32 -1.0, %v2056_v60 }
 0x168   : > { %2808 = vrcp.f32 %v2077_v54  ;;  %v2057_v63 = vmul.f32 %v2049_v28, %v2049_v28  ;;  %v2075_v30 = vadd.f32 1.0, %v2051_v7  ;;  %v2460_v48 = vadd.f32 -1.0, %v2051_v7 }
 0x169   : > { %2810 = vrcp.f32 %v2074_v22  ;;  %v2078_v52 = vadd.f32 1.0, %v2054_v1  ;;  %v2055_v8 = vmul.f32 %v2047_v3, %v2047_v3  ;;  %v2069_v47 = vmul.f32 %v2462_v18, %v3345_v11 }
 0x16a   : > { %2812 = vrcp.f32 %v2080_v53  ;;  %v2081_v4 = vadd.f32 1.0, %v2057_v63  ;;  %v2466_v55 = vadd.f32 -1.0, %v2057_v63  ;;  %v2066_v19 = vmul.f32 %v2459_v10, %v3342_v12 }
 0x16b   : > { %2814 = vrcp.f32 %v2075_v30  ;;  %v2079_v62 = vadd.f32 1.0, %v2055_v8  ;;  %v2463_v13 = vadd.f32 -1.0, %v2054_v1  ;;  %v2067_v56 = vmul.f32 %v2460_v48, %v3350_v17 }
 0x16c   : > { %2816 = vrcp.f32 %v2081_v4  ;;  %v2464_v35 = vadd.f32 -1.0, %v2055_v8  ;;  %v2072_v21 = vmul.f32 %v2465_v15, %v3347_v20  ;;  %v2073_v50 = vmul.f32 %v2466_v55, %v3357_v0 }
 0x16d   : > { %2818 = vrcp.f32 %v2078_v52  ;;  %v2070_v12 = vmul.f32 %v2463_v13, %v3353_v27 }
 0x16e   : > { %2820 = vrcp.f32 %v2079_v62  ;;  %v2071_v17 = vmul.f32 %v2464_v35, %v3360_v26 }
 0x171   : > { %v2807_v5 = vpop.eup %2806 }
 0x172   : > { %v2092_v25 = vmul.f32 %v2807_v5, %v2068_v6 }
 0x175   : > { %v2809_v23 = vpop.eup %2808 }
 0x176   : > { %v2811_v29 = vpop.eup %2810  ;;  %v2093_v41 = vmul.f32 %v2809_v23, %v2069_v47 }
 0x177   : > { %v2813_v14 = vpop.eup %2812  ;;  %v2090_v11 = vmul.f32 %v2811_v29, %v2066_v19 }
 0x178   : > { %v2815_v42 = vpop.eup %2814  ;;  %v2099_v33 = vadd.f32 %v2093_v41, %v2092_v25  ;;  %v2096_v51 = vmul.f32 %v2813_v14, %v2072_v21 }
 0x179   : > { %v2817_v57 = vpop.eup %2816  ;;  %v2091_v32 = vmul.f32 %v2815_v42, %v2067_v56 }
 0x17a   : > { %v2819_v38 = vpop.eup %2818  ;;  %2103 = vst [vmem:[#allocation2 + $0x8] sm:$0xff] %v2099_v33  ;;  %v2097_v58 = vmul.f32 %v2817_v57, %v2073_v50 }
 0x17b   : > { %v2098_v16 = vadd.f32 %v2091_v32, %v2090_v11  ;;  %v2821_v24 = vpop.eup %2820  ;;  %v2094_v46 = vmul.f32 %v2819_v38, %v2070_v12 }
 0x17c   : > { %v2101_v36 = vadd.f32 %v2097_v58, %v2096_v51  ;;  %v2095_v20 = vmul.f32 %v2821_v24, %v2071_v17 }
 0x17d   : > { %2102 = vst [vmem:[#allocation2] sm:$0xff] %v2098_v16 }
 0x17e   : > { %2105 = vst [vmem:[#allocation2 + $0x18] sm:$0xff] %v2101_v36  ;;  %v2100_v0 = vadd.f32 %v2095_v20, %v2094_v46 }
 0x180   : > { %2104 = vst [vmem:[#allocation2 + $0x10] sm:$0xff] %v2100_v0 }
 0x181   : > { %v2108_v40 = vld [vmem:[#allocation2 + $0x8] ss:$2 sm:$0xf]  ;;  %v2116_v37 = vld [vmem:[#allocation2 + $0x9] ss:$2 sm:$0xf] }
 0x182   : > { %v2122_v34 = vadd.f32 %v2116_v37, %v2108_v40 }
 0x184   : > { %v2126_v49 = vmul.f32 0.25, %v2122_v34  ;;  %v2106_v44 = vld [vmem:[#allocation2] ss:$2 sm:$0xf] }
 0x185   : > { %v2112_v27 = vld [vmem:[#allocation2 + $0x18] ss:$2 sm:$0xf]  ;;  %v2120_v26 = vld [vmem:[#allocation2 + $0x19] ss:$2 sm:$0xf] }
 0x186   : > { %v2130_v59 = vpack.c.bf16 %v2126_v49, %v2126_v49  ;;  %v2124_v43 = vadd.f32 %v2120_v26, %v2112_v27  ;;  %v2114_v60 = vld [vmem:[#allocation2 + $0x1] ss:$2 sm:$0xf] }
 0x187   : > { %v2121_v39 = vadd.f32 %v2114_v60, %v2106_v44  ;;  %v2110_v31 = vld [vmem:[#allocation2 + $0x10] ss:$2 sm:$0xf]  ;;  %v2118_v22 = vld [vmem:[#allocation2 + $0x11] ss:$2 sm:$0xf] }
 0x188   : > { %2134 = vst [vmem:[%s220_s17 + $0x2] sm:$0x3] %v2130_v59  ;;  %v2128_v61 = vmul.f32 0.25, %v2124_v43  ;;  %v2123_v2 = vadd.f32 %v2118_v22, %v2110_v31 }
 0x189   : > { %v2125_v45 = vmul.f32 0.25, %v2121_v39 }
 0x18a   : > { %v2132_v1 = vpack.c.bf16 %v2128_v61, %v2128_v61  ;;  %v2127_v54 = vmul.f32 0.25, %v2123_v2 }
 0x18b   : > { %v2129_v53 = vpack.c.bf16 %v2125_v45, %v2125_v45 }
 0x18c   : > { %2136 = vst [vmem:[%s220_s17 + $0x6] sm:$0x3] %v2132_v1  ;;  %v2131_v28 = vpack.c.bf16 %v2127_v54, %v2127_v54 }
 0x18d   : > { %2133 = vst [vmem:[%s220_s17] sm:$0x3] %v2129_v53 }
 0x18e   : > { %2135 = vst [vmem:[%s220_s17 + $0x4] sm:$0x3] %v2131_v28 }
 0x18f PF: > { %s15_s14 = sadd.s32 1, %s2904_s14   ;;  %s3403_s12 = smov %s2900_s13 }
 0x190   : > { %p12_p3 = scmp.ge.s32.totalorder %s15_s14, 4   ;;  %s3404_s13 = smov %s3406_s16 }
 0x192   :  { %14 = sbr.rel (!%p12_p3) target bundleno = 3 (0x3), region = 89 }
 0x197   :  { %2167 = vsyncpa [#allocation4], 1 }
 0x198   :  { %2169 = vsyncpa [#allocation4 + $0x1], 1 }
 0x199   :  { %2170 = vsyncpa [#allocation6], 1 }

// kernel: tuned_cnn_forward.5
= control target key start
LH: loop header
LB: loop body
LE: loop exit
PB: predicated region body
PF: predicated region fallthrough
CT: control target
= control target key end

     0   :  { %v3003_v36 = vmov 1966171168   ;;  %v292_v38 = vlaneseq  ;;  %s3908_s0 = inlined_call_operand.vmem [shape: bf16[2,2048], index: 0, kind: input, shape index: {}]   ;;  %s3909_s1 = inlined_call_operand.vmem [shape: bf16[2048,256], index: 1, kind: input, shape index: {}]   ;;  %s3910_s2 = inlined_call_operand.vmem [shape: f32[1,256], index: 2, kind: input, shape index: {}]   ;;  %s3911_s3 = inlined_call_operand.vmem [shape: bf16[256,128], index: 3, kind: input, shape index: {}]   ;;  %s3912_s4 = inlined_call_operand.vmem [shape: f32[1,128], index: 4, kind: input, shape index: {}]   ;;  %s3913_s5 = inlined_call_operand.hbm [shape: f32[2,128], index: 5, kind: output, shape index: {}]  }
   0x1   :  { %v2571_v0 = vld [vmem:[%s3909_s1 + $0x74] ss:$8 sps:$4 sm:$0xff]   ;;  %v2575_v2 = vld [vmem:[%s3909_s1 + $0x70] ss:$8 sps:$4 sm:$0xff]   ;;  %v2577_v4 = vld [vmem:[%s3909_s1 + $0x64] ss:$8 sps:$4 sm:$0xff]   ;;  %v290_v37 = vunpack.c.l.s4 %v3003_v36 }
   0x2   :  { %v2573_v1 = vld [vmem:[%s3909_s1 + $0x174] ss:$8 sps:$4 sm:$0xff]   ;;  %1682 = vmatprep.subr.bf16.mxu0 %v2571_v0  ;;  %v2576_v3 = vld [vmem:[%s3909_s1 + $0x170] ss:$8 sps:$4 sm:$0xff]   ;;  %v2579_v5 = vld [vmem:[%s3909_s1 + $0x164] ss:$8 sps:$4 sm:$0xff]  }
   0x3   :  { %1723 = vmatprep.subr.bf16.mxu1 %v2573_v1  ;;  %1683 = vmatpush1.bf16.msra.mxu0 %v2575_v2  ;;  %v2581_v6 = vld [vmem:[%s3909_s1 + $0x60] ss:$8 sps:$4 sm:$0xff]   ;;  %v2583_v8 = vld [vmem:[%s3909_s1 + $0x54] ss:$8 sps:$4 sm:$0xff]   ;;  %v2587_v10 = vld [vmem:[%s3909_s1 + $0x50] ss:$8 sps:$4 sm:$0xff]   ;;  %v291_v42 = vunpack.c.0.s8 %v290_v37 }
   0x4   :  { %1724 = vmatpush1.bf16.msra.mxu1 %v2576_v3  ;;  %1684 = vmatprep.subr.bf16.mxu0 %v2577_v4  ;;  %v2582_v7 = vld [vmem:[%s3909_s1 + $0x160] ss:$8 sps:$4 sm:$0xff]   ;;  %v2585_v9 = vld [vmem:[%s3909_s1 + $0x154] ss:$8 sps:$4 sm:$0xff]   ;;  %v2588_v11 = vld [vmem:[%s3909_s1 + $0x150] ss:$8 sps:$4 sm:$0xff]  }
   0x5   :  { %1725 = vmatprep.subr.bf16.mxu1 %v2579_v5  ;;  %v2589_v12 = vld [vmem:[%s3909_s1 + $0x44] ss:$8 sps:$4 sm:$0xff]   ;;  %v2593_v14 = vld [vmem:[%s3909_s1 + $0x40] ss:$8 sps:$4 sm:$0xff]   ;;  %v2595_v16 = vld [vmem:[%s3909_s1 + $0x34] ss:$8 sps:$4 sm:$0xff]  }
   0x6   :  { %v2591_v13 = vld [vmem:[%s3909_s1 + $0x144] ss:$8 sps:$4 sm:$0xff]   ;;  %v2594_v15 = vld [vmem:[%s3909_s1 + $0x140] ss:$8 sps:$4 sm:$0xff]   ;;  %v2597_v17 = vld [vmem:[%s3909_s1 + $0x134] ss:$8 sps:$4 sm:$0xff]  }
   0x7   :  { %1685 = vmatpush1.bf16.msra.mxu0 %v2581_v6  ;;  %v2599_v18 = vld [vmem:[%s3909_s1 + $0x30] ss:$8 sps:$4 sm:$0xff]   ;;  %v2601_v20 = vld [vmem:[%s3909_s1 + $0x24] ss:$8 sps:$4 sm:$0xff]   ;;  %v2605_v22 = vld [vmem:[%s3909_s1 + $0x20] ss:$8 sps:$4 sm:$0xff]  }
   0x8   :  { %1726 = vmatpush1.bf16.msra.mxu1 %v2582_v7  ;;  %1686 = vmatprep.subr.bf16.mxu0 %v2583_v8  ;;  %v2600_v19 = vld [vmem:[%s3909_s1 + $0x130] ss:$8 sps:$4 sm:$0xff]   ;;  %v2603_v21 = vld [vmem:[%s3909_s1 + $0x124] ss:$8 sps:$4 sm:$0xff]   ;;  %v2606_v23 = vld [vmem:[%s3909_s1 + $0x120] ss:$8 sps:$4 sm:$0xff]  }
   0x9   :  { %1727 = vmatprep.subr.bf16.mxu1 %v2585_v9  ;;  %v2607_v24 = vld [vmem:[%s3909_s1 + $0x14] ss:$8 sps:$4 sm:$0xff]   ;;  %v2611_v26 = vld [vmem:[%s3909_s1 + $0x10] ss:$8 sps:$4 sm:$0xff]   ;;  %v2613_v28 = vld [vmem:[%s3909_s1 + $0x4] ss:$8 sps:$4 sm:$0xff]  }
   0xa   :  { %v2609_v25 = vld [vmem:[%s3909_s1 + $0x114] ss:$8 sps:$4 sm:$0xff]   ;;  %v2612_v27 = vld [vmem:[%s3909_s1 + $0x110] ss:$8 sps:$4 sm:$0xff]   ;;  %v2615_v29 = vld [vmem:[%s3909_s1 + $0x104] ss:$8 sps:$4 sm:$0xff]  }
   0xb   :  { %1687 = vmatpush1.bf16.msra.mxu0 %v2587_v10  ;;  %v2617_v30 = vld [vmem:[%s3909_s1] ss:$8 sps:$4 sm:$0xff]   ;;  %v2619_v32 = vld [vmem:[%s3909_s1 + $0xf4] ss:$8 sps:$4 sm:$0xff]   ;;  %v2623_v34 = vld [vmem:[%s3909_s1 + $0xf0] ss:$8 sps:$4 sm:$0xff]  }
   0xc   :  { %1728 = vmatpush1.bf16.msra.mxu1 %v2588_v11  ;;  %1688 = vmatprep.subr.bf16.mxu0 %v2589_v12  ;;  %v2618_v31 = vld [vmem:[%s3909_s1 + $0x100] ss:$8 sps:$4 sm:$0xff]   ;;  %v2621_v33 = vld [vmem:[%s3909_s1 + $0x1f4] ss:$8 sps:$4 sm:$0xff]   ;;  %v2624_v35 = vld [vmem:[%s3909_s1 + $0x1f0] ss:$8 sps:$4 sm:$0xff]  }
   0xd   :  { %1729 = vmatprep.subr.bf16.mxu1 %v2591_v13  ;;  %v2625_v39 = vld [vmem:[%s3909_s1 + $0xe4] ss:$8 sps:$4 sm:$0xff]   ;;  %v2629_v41 = vld [vmem:[%s3909_s1 + $0xe0] ss:$8 sps:$4 sm:$0xff]   ;;  %v3154_v43 = vshrl.u32 %v292_v38, 7 }
   0xe   :  { %v2627_v40 = vld [vmem:[%s3909_s1 + $0x1e4] ss:$8 sps:$4 sm:$0xff]   ;;  %v2630_v44 = vld [vmem:[%s3909_s1 + $0x1e0] ss:$8 sps:$4 sm:$0xff]   ;;  %v2631_v45 = vld [vmem:[%s3909_s1 + $0xd4] ss:$8 sps:$4 sm:$0xff]  }
   0xf   :  { %1689 = vmatpush1.bf16.msra.mxu0 %v2593_v14  ;;  %v2633_v46 = vld [vmem:[%s3909_s1 + $0x1d4] ss:$8 sps:$4 sm:$0xff]   ;;  %v2635_v47 = vld [vmem:[%s3909_s1 + $0xd0] ss:$8 sps:$4 sm:$0xff]   ;;  %v3172_v49 = vsub.s32 %v291_v42, %v3154_v43  ;;  %v2637_v50 = vld [vmem:[%s3909_s1 + $0xc4] ss:$8 sps:$4 sm:$0xff]  }
  0x10   :  { %1730 = vmatpush1.bf16.msra.mxu1 %v2594_v15  ;;  %1690 = vmatprep.subr.bf16.mxu0 %v2595_v16  ;;  %v2636_v48 = vld [vmem:[%s3909_s1 + $0x1d0] ss:$8 sps:$4 sm:$0xff]   ;;  %v2639_v51 = vld [vmem:[%s3909_s1 + $0x1c4] ss:$8 sps:$4 sm:$0xff]   ;;  %v2641_v53 = vld [vmem:[%s3909_s1 + $0xc0] ss:$8 sps:$4 sm:$0xff]  }
  0x11   :  { %1731 = vmatprep.subr.bf16.mxu1 %v2597_v17  ;;  %v28_v52 = vld [vmem:[%s3908_s0] sm:$0xff]  ;;  %v2643_v56 = vld [vmem:[%s3909_s1 + $0xb4] ss:$8 sps:$4 sm:$0xff]   ;;  %v2647_v59 = vld [vmem:[%s3909_s1 + $0xb0] ss:$8 sps:$4 sm:$0xff]  }
  0x12   :  { %v295_v54 = vrot.slane %v28_v52, %v3172_v49  ;;  %v2642_v55 = vld [vmem:[%s3909_s1 + $0x1c0] ss:$8 sps:$4 sm:$0xff]   ;;  %v2645_v57 = vld [vmem:[%s3909_s1 + $0x1b4] ss:$8 sps:$4 sm:$0xff]   ;;  %v2648_v61 = vld [vmem:[%s3909_s1 + $0x1b0] ss:$8 sps:$4 sm:$0xff]   ;;  %v288_v1 = vcombine.high %v28_v52, %v28_v52 }
  0x13   :  { %1691 = vmatpush1.bf16.msra.mxu0 %v2599_v18  ;;  %v2649_v62 = vld [vmem:[%s3909_s1 + $0xa4] ss:$8 sps:$4 sm:$0xff]   ;;  %v2653_v2 = vld [vmem:[%s3909_s1 + $0xa0] ss:$8 sps:$4 sm:$0xff]   ;;  %v2655_v4 = vld [vmem:[%s3909_s1 + $0x94] ss:$8 sps:$4 sm:$0xff]  }
  0x14   :  { %1732 = vmatpush1.bf16.msra.mxu1 %v2600_v19  ;;  %1692 = vmatprep.subr.bf16.mxu0 %v2601_v20  ;;  %v303_v58 = vcombine.high %v295_v54, %v295_v54  ;;  %v2651_v63 = vld [vmem:[%s3909_s1 + $0x1a4] ss:$8 sps:$4 sm:$0xff]   ;;  %v2654_v3 = vld [vmem:[%s3909_s1 + $0x1a0] ss:$8 sps:$4 sm:$0xff]   ;;  %v2657_v5 = vld [vmem:[%s3909_s1 + $0x194] ss:$8 sps:$4 sm:$0xff]   ;;  %v3222_v6 = vrot.slane %v288_v1, %v3172_v49  ;;  %v311_v13 = vrot.slane %v295_v54, %v3172_v49 }
  0x15   :  { %1733 = vmatprep.subr.bf16.mxu1 %v2603_v21  ;;  %v2659_v7 = vld [vmem:[%s3909_s1 + $0x90] ss:$8 sps:$4 sm:$0xff]   ;;  %v2661_v9 = vld [vmem:[%s3909_s1 + $0x84] ss:$8 sps:$4 sm:$0xff]   ;;  %v2665_v12 = vld [vmem:[%s3909_s1 + $0x80] ss:$8 sps:$4 sm:$0xff]  }
  0x16   :  { %v325_v60 = vrot.slane %v303_v58, %v3172_v49  ;;  %v2660_v8 = vld [vmem:[%s3909_s1 + $0x190] ss:$8 sps:$4 sm:$0xff]   ;;  %v2663_v10 = vld [vmem:[%s3909_s1 + $0x184] ss:$8 sps:$4 sm:$0xff]   ;;  %v304_v11 = vcombine.high %v3222_v6, %v3222_v6  ;;  %v2666_v14 = vld [vmem:[%s3909_s1 + $0x180] ss:$8 sps:$4 sm:$0xff]   ;;  %v333_v18 = vcombine.high %v311_v13, %v311_v13 }
  0x17   :  { %1693 = vmatpush1.bf16.msra.mxu0 %v2605_v22  ;;  %v2670_v15 = vld [vmem:[%s3909_s1 + $0x274] ss:$8 sps:$4 sm:$0xff]   ;;  %v2668_v19 = vld [vmem:[%s3909_s1 + $0x270] ss:$8 sps:$4 sm:$0xff]   ;;  %v2676_v21 = vld [vmem:[%s3909_s1 + $0x264] ss:$8 sps:$4 sm:$0xff]  }
  0x18   :  { %1734 = vmatpush1.bf16.msra.mxu1 %v2606_v23  ;;  %1694 = vmatprep.subr.bf16.mxu0 %v2607_v24  ;;  %v335_v0 = vcombine.high %v325_v60, %v325_v60  ;;  %v2673_v16 = vld [vmem:[%s3909_s1 + $0x374] ss:$8 sps:$4 sm:$0xff]   ;;  %v332_v17 = vrot.slane %v304_v11, %v3172_v49  ;;  %v2671_v20 = vld [vmem:[%s3909_s1 + $0x370] ss:$8 sps:$4 sm:$0xff]   ;;  %v2679_v22 = vld [vmem:[%s3909_s1 + $0x364] ss:$8 sps:$4 sm:$0xff]  }
  0x19   :  { %1735 = vmatprep.subr.bf16.mxu1 %v2609_v25  ;;  %1714 = vmatprep.mubr.bf16.mxu0 %v325_v60  ;;  %v2674_v24 = vld [vmem:[%s3909_s1 + $0x260] ss:$8 sps:$4 sm:$0xff]   ;;  %v2692_v36 = vld [vmem:[%s3909_s1 + $0x230] ss:$8 sps:$4 sm:$0xff]   ;;  %v2700_v38 = vld [vmem:[%s3909_s1 + $0x224] ss:$8 sps:$4 sm:$0xff]  }
  0x1a   :  { %1755 = vmatprep.mubr.bf16.mxu1 %v335_v0  ;;  %v336_v23 = vcombine.high %v332_v17, %v332_v17  ;;  %v2677_v25 = vld [vmem:[%s3909_s1 + $0x360] ss:$8 sps:$4 sm:$0xff]   ;;  %v2695_v37 = vld [vmem:[%s3909_s1 + $0x330] ss:$8 sps:$4 sm:$0xff]   ;;  %v2706_v42 = vld [vmem:[%s3909_s1 + $0x214] ss:$8 sps:$4 sm:$0xff]  }
  0x1b   :  { %1695 = vmatpush1.bf16.msra.mxu0 %v2611_v26  ;;  %v2682_v26 = vld [vmem:[%s3909_s1 + $0x254] ss:$8 sps:$4 sm:$0xff]   ;;  %v2716_v54 = vld [vmem:[%s3909_s1 + $0x2f0] ss:$8 sps:$4 sm:$0xff]   ;;  %v2722_v58 = vld [vmem:[%s3909_s1 + $0x2e0] ss:$8 sps:$4 sm:$0xff]  }
  0x1c   :  { %1736 = vmatpush1.bf16.msra.mxu1 %v2612_v27  ;;  %1696 = vmatprep.subr.bf16.mxu0 %v2613_v28  ;;  %v2685_v27 = vld [vmem:[%s3909_s1 + $0x354] ss:$8 sps:$4 sm:$0xff]   ;;  %v2680_v28 = vld [vmem:[%s3909_s1 + $0x250] ss:$8 sps:$4 sm:$0xff]   ;;  %v2736_v0 = vld [vmem:[%s3909_s1 + $0x2c4] ss:$8 sps:$4 sm:$0xff]  }
  0x1d   :  { %1737 = vmatprep.subr.bf16.mxu1 %v2615_v29  ;;  %v2683_v29 = vld [vmem:[%s3909_s1 + $0x350] ss:$8 sps:$4 sm:$0xff]   ;;  %v2718_v52 = vld [vmem:[%s3909_s1 + $0x2f4] ss:$8 sps:$4 sm:$0xff]   ;;  %v2739_v1 = vld [vmem:[%s3909_s1 + $0x3c4] ss:$8 sps:$4 sm:$0xff]  }
  0x1e   :  { %v2730_v60 = vld [vmem:[%s3909_s1 + $0x2d4] ss:$8 sps:$4 sm:$0xff]   ;;  %v2746_v11 = vld [vmem:[%s3909_s1 + $0x2a0] ss:$8 sps:$4 sm:$0xff]  }
  0x1f   :  { %1697 = vmatpush1.bf16.msra.mxu0 %v2617_v30  ;;  %v2688_v30 = vld [vmem:[%s3909_s1 + $0x244] ss:$8 sps:$4 sm:$0xff]  }
  0x20   :  { %1738 = vmatpush1.bf16.msra.mxu1 %v2618_v31  ;;  %1698 = vmatprep.subr.bf16.mxu0 %v2619_v32  ;;  %v2691_v31 = vld [vmem:[%s3909_s1 + $0x344] ss:$8 sps:$4 sm:$0xff]   ;;  %v2686_v32 = vld [vmem:[%s3909_s1 + $0x240] ss:$8 sps:$4 sm:$0xff]  }
  0x21   :  { %1739 = vmatprep.subr.bf16.mxu1 %v2621_v33  ;;  %v2689_v33 = vld [vmem:[%s3909_s1 + $0x340] ss:$8 sps:$4 sm:$0xff]  }
  0x23   :  { %1699 = vmatpush2.bf16.msra.mxu0 %v2623_v34  ;;  %v2694_v34 = vld [vmem:[%s3909_s1 + $0x234] ss:$8 sps:$4 sm:$0xff]  }
  0x24   :  { %1740 = vmatpush2.bf16.msra.mxu1 %v2624_v35  ;;  %1700 = vmatprep.subr.bf16.mxu0 %v2625_v39  ;;  %v2697_v35 = vld [vmem:[%s3909_s1 + $0x334] ss:$8 sps:$4 sm:$0xff]   ;;  %v2703_v39 = vld [vmem:[%s3909_s1 + $0x324] ss:$8 sps:$4 sm:$0xff]  }
  0x25   :  { %1741 = vmatprep.subr.bf16.mxu1 %v2627_v40  ;;  %v2698_v40 = vld [vmem:[%s3909_s1 + $0x220] ss:$8 sps:$4 sm:$0xff]  }
  0x27   :  { %1701 = vmatpush2.bf16.msra.mxu0 %v2629_v41  ;;  %v2701_v41 = vld [vmem:[%s3909_s1 + $0x320] ss:$8 sps:$4 sm:$0xff]  }
  0x28   :  { %1742 = vmatpush2.bf16.msra.mxu1 %v2630_v44  ;;  %1702 = vmatprep.subr.bf16.mxu0 %v2631_v45  ;;  %v2709_v44 = vld [vmem:[%s3909_s1 + $0x314] ss:$8 sps:$4 sm:$0xff]   ;;  %v2704_v45 = vld [vmem:[%s3909_s1 + $0x210] ss:$8 sps:$4 sm:$0xff]  }
  0x29   :  { %1743 = vmatprep.subr.bf16.mxu1 %v2633_v46  ;;  %v2707_v46 = vld [vmem:[%s3909_s1 + $0x310] ss:$8 sps:$4 sm:$0xff]  }
  0x2b   :  { %1703 = vmatpush2.bf16.msra.mxu0 %v2635_v47  ;;  %v2712_v47 = vld [vmem:[%s3909_s1 + $0x204] ss:$8 sps:$4 sm:$0xff]  }
  0x2c   :  { %1744 = vmatpush2.bf16.msra.mxu1 %v2636_v48  ;;  %1704 = vmatprep.subr.bf16.mxu0 %v2637_v50  ;;  %v2715_v48 = vld [vmem:[%s3909_s1 + $0x304] ss:$8 sps:$4 sm:$0xff]   ;;  %v2710_v50 = vld [vmem:[%s3909_s1 + $0x200] ss:$8 sps:$4 sm:$0xff]  }
  0x2d   :  { %1745 = vmatprep.subr.bf16.mxu1 %v2639_v51  ;;  %v2713_v51 = vld [vmem:[%s3909_s1 + $0x300] ss:$8 sps:$4 sm:$0xff]  }
  0x2f   :  { %1705 = vmatpush2.bf16.msra.mxu0 %v2641_v53  ;;  %v2721_v53 = vld [vmem:[%s3909_s1 + $0x3f4] ss:$8 sps:$4 sm:$0xff]  }
  0x30   :  { %1746 = vmatpush2.bf16.msra.mxu1 %v2642_v55  ;;  %1706 = vmatprep.subr.bf16.mxu0 %v2643_v56  ;;  %v2719_v55 = vld [vmem:[%s3909_s1 + $0x3f0] ss:$8 sps:$4 sm:$0xff]   ;;  %v2724_v56 = vld [vmem:[%s3909_s1 + $0x2e4] ss:$8 sps:$4 sm:$0xff]  }
  0x31   :  { %1747 = vmatprep.subr.bf16.mxu1 %v2645_v57  ;;  %v2727_v57 = vld [vmem:[%s3909_s1 + $0x3e4] ss:$8 sps:$4 sm:$0xff]  }
  0x33   :  { %1707 = vmatpush2.bf16.msra.mxu0 %v2647_v59  ;;  %v2725_v59 = vld [vmem:[%s3909_s1 + $0x3e0] ss:$8 sps:$4 sm:$0xff]  }
  0x34   :  { %1748 = vmatpush2.bf16.msra.mxu1 %v2648_v61  ;;  %1708 = vmatprep.subr.bf16.mxu0 %v2649_v62  ;;  %v2733_v61 = vld [vmem:[%s3909_s1 + $0x3d4] ss:$8 sps:$4 sm:$0xff]   ;;  %v2728_v62 = vld [vmem:[%s3909_s1 + $0x2d0] ss:$8 sps:$4 sm:$0xff]  }
  0x35   :  { %1749 = vmatprep.subr.bf16.mxu1 %v2651_v63  ;;  %v2731_v63 = vld [vmem:[%s3909_s1 + $0x3d0] ss:$8 sps:$4 sm:$0xff]  }
  0x37   :  { %1709 = vmatpush2.bf16.msra.mxu0 %v2653_v2  ;;  %v2734_v2 = vld [vmem:[%s3909_s1 + $0x2c0] ss:$8 sps:$4 sm:$0xff]  }
  0x38   :  { %1750 = vmatpush2.bf16.msra.mxu1 %v2654_v3  ;;  %1710 = vmatprep.subr.bf16.mxu0 %v2655_v4  ;;  %v2737_v3 = vld [vmem:[%s3909_s1 + $0x3c0] ss:$8 sps:$4 sm:$0xff]   ;;  %v2742_v4 = vld [vmem:[%s3909_s1 + $0x2b4] ss:$8 sps:$4 sm:$0xff]  }
  0x39   :  { %1751 = vmatprep.subr.bf16.mxu1 %v2657_v5  ;;  %v2745_v5 = vld [vmem:[%s3909_s1 + $0x3b4] ss:$8 sps:$4 sm:$0xff]  }
  0x3b   :  { %1711 = vmatpush2.bf16.msra.mxu0 %v2659_v7  ;;  %v2740_v7 = vld [vmem:[%s3909_s1 + $0x2b0] ss:$8 sps:$4 sm:$0xff]  }
  0x3c   :  { %1752 = vmatpush2.bf16.msra.mxu1 %v2660_v8  ;;  %1712 = vmatprep.subr.bf16.mxu0 %v2661_v9  ;;  %v2743_v8 = vld [vmem:[%s3909_s1 + $0x3b0] ss:$8 sps:$4 sm:$0xff]   ;;  %v2748_v9 = vld [vmem:[%s3909_s1 + $0x2a4] ss:$8 sps:$4 sm:$0xff]  }
  0x3d   :  { %1753 = vmatprep.subr.bf16.mxu1 %v2663_v10  ;;  %v2751_v10 = vld [vmem:[%s3909_s1 + $0x3a4] ss:$8 sps:$4 sm:$0xff]  }
  0x3f   :  { %1713 = vmatpush2.bf16.msra.mxu0 %v2665_v12  ;;  %v2749_v12 = vld [vmem:[%s3909_s1 + $0x3a0] ss:$8 sps:$4 sm:$0xff]  }
  0x40   :  { %1754 = vmatpush2.bf16.msra.mxu1 %v2666_v14  ;;  %1764 = vmatprep.subr.bf16.mxu0 %v2670_v15  ;;  %v2757_v14 = vld [vmem:[%s3909_s1 + $0x394] ss:$8 sps:$4 sm:$0xff]   ;;  %v2752_v15 = vld [vmem:[%s3909_s1 + $0x290] ss:$8 sps:$4 sm:$0xff]  }
  0x41   :  { %1805 = vmatprep.subr.bf16.mxu1 %v2673_v16  ;;  %v2755_v16 = vld [vmem:[%s3909_s1 + $0x390] ss:$8 sps:$4 sm:$0xff]  }
  0x42   :  { %1715 = vmatmul.mubr.bf16.vlgmr.msra.gmra.mxu0 %v311_v13  ;;  %v2754_v13 = vld [vmem:[%s3909_s1 + $0x294] ss:$8 sps:$4 sm:$0xff]  }
  0x43   :  { %1756 = vmatmul.mubr.bf16.vlgmr.msra.gmra.mxu1 %v333_v18  ;;  %1765 = vmatpush1.bf16.msra.mxu0 %v2668_v19  ;;  %v2763_v18 = vld [vmem:[%s3909_s1 + $0x384] ss:$8 sps:$4 sm:$0xff]   ;;  %v2758_v19 = vld [vmem:[%s3909_s1 + $0x280] ss:$8 sps:$4 sm:$0xff]  }
  0x44   :  { %1806 = vmatpush1.bf16.msra.mxu1 %v2671_v20  ;;  %1766 = vmatprep.subr.bf16.mxu0 %v2676_v21  ;;  %v318_v20 = vrot.slane %v3222_v6, %v3172_v49  ;;  %v2761_v21 = vld [vmem:[%s3909_s1 + $0x380] ss:$8 sps:$4 sm:$0xff]   ;;  %v2764_v6 = vld [vmem:[%s3909_s1 + $0x470] ss:$8 sps:$4 sm:$0xff]  }
  0x45   :  { %1807 = vmatprep.subr.bf16.mxu1 %v2679_v22  ;;  %1796 = vmatprep.mubr.bf16.mxu0 %v332_v17  ;;  %v2760_v17 = vld [vmem:[%s3909_s1 + $0x284] ss:$8 sps:$4 sm:$0xff]   ;;  %v2766_v22 = vld [vmem:[%s3909_s1 + $0x474] ss:$8 sps:$4 sm:$0xff]  }
  0x46   :  { %1837 = vmatprep.mubr.bf16.mxu1 %v336_v23  ;;  %v2769_v23 = vld [vmem:[%s3909_s1 + $0x574] ss:$8 sps:$4 sm:$0xff]  }
  0x47   :  { %1767 = vmatpush1.bf16.msra.mxu0 %v2674_v24  ;;  %v334_v24 = vcombine.high %v318_v20, %v318_v20 }
  0x48   :  { %1808 = vmatpush1.bf16.msra.mxu1 %v2677_v25  ;;  %1768 = vmatprep.subr.bf16.mxu0 %v2682_v26  ;;  %v2767_v25 = vld [vmem:[%s3909_s1 + $0x570] ss:$8 sps:$4 sm:$0xff]   ;;  %v3455_v26 = vld [vmem:[%s3908_s0 + $0x8] sm:$0xff] }
  0x49   :  { %1809 = vmatprep.subr.bf16.mxu1 %v2685_v27  ;;  %v2772_v27 = vld [vmem:[%s3909_s1 + $0x464] ss:$8 sps:$4 sm:$0xff]  }
  0x4b   :  { %1769 = vmatpush1.bf16.msra.mxu0 %v2680_v28  ;;  %v2775_v28 = vld [vmem:[%s3909_s1 + $0x564] ss:$8 sps:$4 sm:$0xff]  }
  0x4c   :  { %1810 = vmatpush1.bf16.msra.mxu1 %v2683_v29  ;;  %1770 = vmatprep.subr.bf16.mxu0 %v2688_v30  ;;  %v3465_v29 = vrot.slane %v3455_v26, %v3172_v49 }
  0x4d   :  { %1811 = vmatprep.subr.bf16.mxu1 %v2691_v31  ;;  %v2770_v31 = vld [vmem:[%s3909_s1 + $0x460] ss:$8 sps:$4 sm:$0xff]  }
  0x4e   :  { %v352_v30 = vcombine.high %v3465_v29, %v3465_v29 }
  0x4f   :  { %1771 = vmatpush1.bf16.msra.mxu0 %v2686_v32  ;;  %v2773_v32 = vld [vmem:[%s3909_s1 + $0x560] ss:$8 sps:$4 sm:$0xff]  }
  0x50   :  { %1812 = vmatpush1.bf16.msra.mxu1 %v2689_v33  ;;  %1772 = vmatprep.subr.bf16.mxu0 %v2694_v34  ;;  %v2778_v33 = vld [vmem:[%s3909_s1 + $0x454] ss:$8 sps:$4 sm:$0xff]  }
  0x51   :  { %1813 = vmatprep.subr.bf16.mxu1 %v2697_v35  ;;  %v2781_v34 = vld [vmem:[%s3909_s1 + $0x554] ss:$8 sps:$4 sm:$0xff]   ;;  %v374_v35 = vrot.slane %v352_v30, %v3172_v49 }
  0x53   :  { %1773 = vmatpush1.bf16.msra.mxu0 %v2692_v36  ;;  %v384_v36 = vcombine.high %v374_v35, %v374_v35 }
  0x54   :  { %1814 = vmatpush1.bf16.msra.mxu1 %v2695_v37  ;;  %1774 = vmatprep.subr.bf16.mxu0 %v2700_v38  ;;  %v2776_v37 = vld [vmem:[%s3909_s1 + $0x450] ss:$8 sps:$4 sm:$0xff]  }
  0x55   :  { %1815 = vmatprep.subr.bf16.mxu1 %v2703_v39  ;;  %v2779_v38 = vld [vmem:[%s3909_s1 + $0x550] ss:$8 sps:$4 sm:$0xff]   ;;  %v2784_v39 = vld [vmem:[%s3909_s1 + $0x444] ss:$8 sps:$4 sm:$0xff]  }
  0x57   :  { %1775 = vmatpush1.bf16.msra.mxu0 %v2698_v40  ;;  %v2787_v40 = vld [vmem:[%s3909_s1 + $0x544] ss:$8 sps:$4 sm:$0xff]  }
  0x58   :  { %1816 = vmatpush1.bf16.msra.mxu1 %v2701_v41  ;;  %1776 = vmatprep.subr.bf16.mxu0 %v2706_v42  ;;  %v2782_v41 = vld [vmem:[%s3909_s1 + $0x440] ss:$8 sps:$4 sm:$0xff]  }
  0x59   :  { %1817 = vmatprep.subr.bf16.mxu1 %v2709_v44  ;;  %v2785_v42 = vld [vmem:[%s3909_s1 + $0x540] ss:$8 sps:$4 sm:$0xff]   ;;  %v2790_v44 = vld [vmem:[%s3909_s1 + $0x434] ss:$8 sps:$4 sm:$0xff]  }
  0x5b   :  { %1777 = vmatpush1.bf16.msra.mxu0 %v2704_v45  ;;  %v2793_v45 = vld [vmem:[%s3909_s1 + $0x534] ss:$8 sps:$4 sm:$0xff]  }
  0x5c   :  { %1818 = vmatpush1.bf16.msra.mxu1 %v2707_v46  ;;  %1778 = vmatprep.subr.bf16.mxu0 %v2712_v47  ;;  %v2788_v46 = vld [vmem:[%s3909_s1 + $0x430] ss:$8 sps:$4 sm:$0xff]  }
  0x5d   :  { %1819 = vmatprep.subr.bf16.mxu1 %v2715_v48  ;;  %v2791_v47 = vld [vmem:[%s3909_s1 + $0x530] ss:$8 sps:$4 sm:$0xff]   ;;  %v2796_v48 = vld [vmem:[%s3909_s1 + $0x424] ss:$8 sps:$4 sm:$0xff]  }
  0x5f   :  { %1779 = vmatpush1.bf16.msra.mxu0 %v2710_v50  ;;  %v2799_v50 = vld [vmem:[%s3909_s1 + $0x524] ss:$8 sps:$4 sm:$0xff]  }
  0x60   :  { %1820 = vmatpush1.bf16.msra.mxu1 %v2713_v51  ;;  %1780 = vmatprep.subr.bf16.mxu0 %v2718_v52  ;;  %v2794_v51 = vld [vmem:[%s3909_s1 + $0x420] ss:$8 sps:$4 sm:$0xff]  }
  0x61   :  { %1821 = vmatprep.subr.bf16.mxu1 %v2721_v53  ;;  %v2797_v52 = vld [vmem:[%s3909_s1 + $0x520] ss:$8 sps:$4 sm:$0xff]   ;;  %v2802_v53 = vld [vmem:[%s3909_s1 + $0x414] ss:$8 sps:$4 sm:$0xff]  }
  0x63   :  { %1781 = vmatpush2.bf16.msra.mxu0 %v2716_v54  ;;  %v2805_v54 = vld [vmem:[%s3909_s1 + $0x514] ss:$8 sps:$4 sm:$0xff]  }
  0x64   :  { %1822 = vmatpush2.bf16.msra.mxu1 %v2719_v55  ;;  %1782 = vmatprep.subr.bf16.mxu0 %v2724_v56  ;;  %v2800_v55 = vld [vmem:[%s3909_s1 + $0x410] ss:$8 sps:$4 sm:$0xff]  }
  0x65   :  { %1823 = vmatprep.subr.bf16.mxu1 %v2727_v57  ;;  %v2803_v56 = vld [vmem:[%s3909_s1 + $0x510] ss:$8 sps:$4 sm:$0xff]   ;;  %v2808_v57 = vld [vmem:[%s3909_s1 + $0x404] ss:$8 sps:$4 sm:$0xff]  }
  0x67   :  { %1783 = vmatpush2.bf16.msra.mxu0 %v2722_v58  ;;  %v2811_v58 = vld [vmem:[%s3909_s1 + $0x504] ss:$8 sps:$4 sm:$0xff]  }
  0x68   :  { %1824 = vmatpush2.bf16.msra.mxu1 %v2725_v59  ;;  %1784 = vmatprep.subr.bf16.mxu0 %v2730_v60  ;;  %v2806_v59 = vld [vmem:[%s3909_s1 + $0x400] ss:$8 sps:$4 sm:$0xff]  }
  0x69   :  { %1825 = vmatprep.subr.bf16.mxu1 %v2733_v61  ;;  %v2809_v60 = vld [vmem:[%s3909_s1 + $0x500] ss:$8 sps:$4 sm:$0xff]   ;;  %v2814_v61 = vld [vmem:[%s3909_s1 + $0x4f4] ss:$8 sps:$4 sm:$0xff]  }
  0x6b   :  { %1785 = vmatpush2.bf16.msra.mxu0 %v2728_v62  ;;  %v2817_v62 = vld [vmem:[%s3909_s1 + $0x5f4] ss:$8 sps:$4 sm:$0xff]  }
  0x6c   :  { %1826 = vmatpush2.bf16.msra.mxu1 %v2731_v63  ;;  %1786 = vmatprep.subr.bf16.mxu0 %v2736_v0  ;;  %v2812_v63 = vld [vmem:[%s3909_s1 + $0x4f0] ss:$8 sps:$4 sm:$0xff]  }
  0x6d   :  { %1827 = vmatprep.subr.bf16.mxu1 %v2739_v1  ;;  %v2815_v0 = vld [vmem:[%s3909_s1 + $0x5f0] ss:$8 sps:$4 sm:$0xff]   ;;  %v2820_v1 = vld [vmem:[%s3909_s1 + $0x4e4] ss:$8 sps:$4 sm:$0xff]  }
  0x6f   :  { %1787 = vmatpush2.bf16.msra.mxu0 %v2734_v2  ;;  %v2823_v2 = vld [vmem:[%s3909_s1 + $0x5e4] ss:$8 sps:$4 sm:$0xff]  }
  0x70   :  { %1828 = vmatpush2.bf16.msra.mxu1 %v2737_v3  ;;  %1788 = vmatprep.subr.bf16.mxu0 %v2742_v4  ;;  %v2818_v3 = vld [vmem:[%s3909_s1 + $0x4e0] ss:$8 sps:$4 sm:$0xff]  }
  0x71   :  { %1829 = vmatprep.subr.bf16.mxu1 %v2745_v5  ;;  %v2821_v4 = vld [vmem:[%s3909_s1 + $0x5e0] ss:$8 sps:$4 sm:$0xff]   ;;  %v2826_v5 = vld [vmem:[%s3909_s1 + $0x4d4] ss:$8 sps:$4 sm:$0xff]  }
  0x73   :  { %1789 = vmatpush2.bf16.msra.mxu0 %v2740_v7  ;;  %v2829_v7 = vld [vmem:[%s3909_s1 + $0x5d4] ss:$8 sps:$4 sm:$0xff]  }
  0x74   :  { %1830 = vmatpush2.bf16.msra.mxu1 %v2743_v8  ;;  %1790 = vmatprep.subr.bf16.mxu0 %v2748_v9  ;;  %v2824_v8 = vld [vmem:[%s3909_s1 + $0x4d0] ss:$8 sps:$4 sm:$0xff]  }
  0x75   :  { %1831 = vmatprep.subr.bf16.mxu1 %v2751_v10  ;;  %v2827_v9 = vld [vmem:[%s3909_s1 + $0x5d0] ss:$8 sps:$4 sm:$0xff]   ;;  %v2832_v10 = vld [vmem:[%s3909_s1 + $0x4c4] ss:$8 sps:$4 sm:$0xff]  }
  0x77   :  { %1791 = vmatpush2.bf16.msra.mxu0 %v2746_v11  ;;  %v2835_v11 = vld [vmem:[%s3909_s1 + $0x5c4] ss:$8 sps:$4 sm:$0xff]  }
  0x78   :  { %1832 = vmatpush2.bf16.msra.mxu1 %v2749_v12  ;;  %1792 = vmatprep.subr.bf16.mxu0 %v2754_v13  ;;  %v2830_v12 = vld [vmem:[%s3909_s1 + $0x4c0] ss:$8 sps:$4 sm:$0xff]  }
  0x79   :  { %1833 = vmatprep.subr.bf16.mxu1 %v2757_v14  ;;  %v2833_v13 = vld [vmem:[%s3909_s1 + $0x5c0] ss:$8 sps:$4 sm:$0xff]   ;;  %v2838_v14 = vld [vmem:[%s3909_s1 + $0x4b4] ss:$8 sps:$4 sm:$0xff]  }
  0x7b   :  { %1793 = vmatpush2.bf16.msra.mxu0 %v2752_v15  ;;  %v2841_v15 = vld [vmem:[%s3909_s1 + $0x5b4] ss:$8 sps:$4 sm:$0xff]  }
  0x7c   :  { %1834 = vmatpush2.bf16.msra.mxu1 %v2755_v16  ;;  %1794 = vmatprep.subr.bf16.mxu0 %v2760_v17  ;;  %v2836_v16 = vld [vmem:[%s3909_s1 + $0x4b0] ss:$8 sps:$4 sm:$0xff]  }
  0x7d   :  { %1835 = vmatprep.subr.bf16.mxu1 %v2763_v18  ;;  %v2839_v17 = vld [vmem:[%s3909_s1 + $0x5b0] ss:$8 sps:$4 sm:$0xff]   ;;  %v2844_v18 = vld [vmem:[%s3909_s1 + $0x4a4] ss:$8 sps:$4 sm:$0xff]  }
  0x7f   :  { %1795 = vmatpush2.bf16.msra.mxu0 %v2758_v19  ;;  %v2847_v19 = vld [vmem:[%s3909_s1 + $0x5a4] ss:$8 sps:$4 sm:$0xff]  }
  0x80   :  { %1836 = vmatpush2.bf16.msra.mxu1 %v2761_v21  ;;  %1846 = vmatprep.subr.bf16.mxu0 %v2766_v22  ;;  %v2845_v21 = vld [vmem:[%s3909_s1 + $0x5a0] ss:$8 sps:$4 sm:$0xff]   ;;  %v337_v22 = vcombine.high %v3455_v26, %v3455_v26 }
  0x81   :  { %1887 = vmatprep.subr.bf16.mxu1 %v2769_v23  ;;  %v2850_v23 = vld [vmem:[%s3909_s1 + $0x494] ss:$8 sps:$4 sm:$0xff]  }
  0x82   :  { %1797 = vmatmul.mubr.bf16.vlgmr.msra.gmra.mxu0 %v318_v20  ;;  %v2842_v20 = vld [vmem:[%s3909_s1 + $0x4a0] ss:$8 sps:$4 sm:$0xff]  }
  0x83   :  { %1838 = vmatmul.mubr.bf16.vlgmr.msra.gmra.mxu1 %v334_v24  ;;  %1847 = vmatpush1.bf16.msra.mxu0 %v2764_v6  ;;  %v2853_v24 = vld [vmem:[%s3909_s1 + $0x594] ss:$8 sps:$4 sm:$0xff]   ;;  %v3629_v6 = vrot.slane %v337_v22, %v3172_v49 }
  0x84   :  { %1888 = vmatpush1.bf16.msra.mxu1 %v2767_v25  ;;  %1848 = vmatprep.subr.bf16.mxu0 %v2772_v27 }
  0x85   :  { %1889 = vmatprep.subr.bf16.mxu1 %v2775_v28  ;;  %1878 = vmatprep.mubr.bf16.mxu0 %v374_v35 }
  0x86   :  { %1919 = vmatprep.mubr.bf16.mxu1 %v384_v36 }
  0x87   :  { %1849 = vmatpush1.bf16.msra.mxu0 %v2770_v31 }
  0x88   :  { %1890 = vmatpush1.bf16.msra.mxu1 %v2773_v32  ;;  %1850 = vmatprep.subr.bf16.mxu0 %v2778_v33 }
  0x89   :  { %1891 = vmatprep.subr.bf16.mxu1 %v2781_v34 }
  0x8b   :  { %1851 = vmatpush1.bf16.msra.mxu0 %v2776_v37 }
  0x8c   :  { %1892 = vmatpush1.bf16.msra.mxu1 %v2779_v38  ;;  %1852 = vmatprep.subr.bf16.mxu0 %v2784_v39 }
  0x8d   :  { %1893 = vmatprep.subr.bf16.mxu1 %v2787_v40 }
  0x8f   :  { %1853 = vmatpush1.bf16.msra.mxu0 %v2782_v41 }
  0x90   :  { %1894 = vmatpush1.bf16.msra.mxu1 %v2785_v42  ;;  %1854 = vmatprep.subr.bf16.mxu0 %v2790_v44 }
  0x91   :  { %1895 = vmatprep.subr.bf16.mxu1 %v2793_v45 }
  0x93   :  { %1855 = vmatpush1.bf16.msra.mxu0 %v2788_v46 }
  0x94   :  { %1896 = vmatpush1.bf16.msra.mxu1 %v2791_v47  ;;  %1856 = vmatprep.subr.bf16.mxu0 %v2796_v48 }
  0x95   :  { %1897 = vmatprep.subr.bf16.mxu1 %v2799_v50 }
  0x97   :  { %1857 = vmatpush1.bf16.msra.mxu0 %v2794_v51 }
  0x98   :  { %1898 = vmatpush1.bf16.msra.mxu1 %v2797_v52  ;;  %1858 = vmatprep.subr.bf16.mxu0 %v2802_v53 }
  0x99   :  { %1899 = vmatprep.subr.bf16.mxu1 %v2805_v54 }
  0x9b   :  { %1859 = vmatpush1.bf16.msra.mxu0 %v2800_v55 }
  0x9c   :  { %1900 = vmatpush1.bf16.msra.mxu1 %v2803_v56  ;;  %1860 = vmatprep.subr.bf16.mxu0 %v2808_v57 }
  0x9d   :  { %1901 = vmatprep.subr.bf16.mxu1 %v2811_v58 }
  0x9f   :  { %1861 = vmatpush1.bf16.msra.mxu0 %v2806_v59 }
  0xa0   :  { %1902 = vmatpush1.bf16.msra.mxu1 %v2809_v60  ;;  %1862 = vmatprep.subr.bf16.mxu0 %v2814_v61 }
  0xa1   :  { %1903 = vmatprep.subr.bf16.mxu1 %v2817_v62 }
  0xa3   :  { %1863 = vmatpush2.bf16.msra.mxu0 %v2812_v63 }
  0xa4   :  { %1904 = vmatpush2.bf16.msra.mxu1 %v2815_v0  ;;  %1864 = vmatprep.subr.bf16.mxu0 %v2820_v1 }
  0xa5   :  { %1905 = vmatprep.subr.bf16.mxu1 %v2823_v2 }
  0xa7   :  { %1865 = vmatpush2.bf16.msra.mxu0 %v2818_v3 }
  0xa8   :  { %1906 = vmatpush2.bf16.msra.mxu1 %v2821_v4  ;;  %1866 = vmatprep.subr.bf16.mxu0 %v2826_v5 }
  0xa9   :  { %1907 = vmatprep.subr.bf16.mxu1 %v2829_v7 }
  0xab   :  { %1867 = vmatpush2.bf16.msra.mxu0 %v2824_v8 }
  0xac   :  { %1908 = vmatpush2.bf16.msra.mxu1 %v2827_v9  ;;  %1868 = vmatprep.subr.bf16.mxu0 %v2832_v10 }
  0xad   :  { %1909 = vmatprep.subr.bf16.mxu1 %v2835_v11 }
  0xaf   :  { %1869 = vmatpush2.bf16.msra.mxu0 %v2830_v12 }
  0xb0   :  { %1910 = vmatpush2.bf16.msra.mxu1 %v2833_v13  ;;  %1870 = vmatprep.subr.bf16.mxu0 %v2838_v14 }
  0xb1   :  { %1911 = vmatprep.subr.bf16.mxu1 %v2841_v15 }
  0xb3   :  { %1871 = vmatpush2.bf16.msra.mxu0 %v2836_v16 }
  0xb4   :  { %1912 = vmatpush2.bf16.msra.mxu1 %v2839_v17  ;;  %1872 = vmatprep.subr.bf16.mxu0 %v2844_v18 }
  0xb5   :  { %1913 = vmatprep.subr.bf16.mxu1 %v2847_v19 }
  0xb6   :  { %10 = vsyncpa [#allocation4], 0  ;;  %v2848_v25 = vld [vmem:[%s3909_s1 + $0x490] ss:$8 sps:$4 sm:$0xff]   ;;  %v2856_v27 = vld [vmem:[%s3909_s1 + $0x484] ss:$8 sps:$4 sm:$0xff]   ;;  %v353_v30 = vcombine.high %v3629_v6, %v3629_v6  ;;  %v360_v31 = vrot.slane %v3465_v29, %v3172_v49 }
  0xb7   :  { %1873 = vmatpush2.bf16.msra.mxu0 %v2842_v20  ;;  %v2851_v26 = vld [vmem:[%s3909_s1 + $0x590] ss:$8 sps:$4 sm:$0xff]   ;;  %v2859_v28 = vld [vmem:[%s3909_s1 + $0x584] ss:$8 sps:$4 sm:$0xff]   ;;  %v2854_v32 = vld [vmem:[%s3909_s1 + $0x480] ss:$8 sps:$4 sm:$0xff]  }
  0xb8   :  { %1914 = vmatpush2.bf16.msra.mxu1 %v2845_v21  ;;  %1874 = vmatprep.subr.bf16.mxu0 %v2850_v23  ;;  %v2857_v33 = vld [vmem:[%s3909_s1 + $0x580] ss:$8 sps:$4 sm:$0xff]   ;;  %v2862_v34 = vld [vmem:[%s3909_s1 + $0x674] ss:$8 sps:$4 sm:$0xff]   ;;  %v381_v35 = vrot.slane %v353_v30, %v3172_v49  ;;  %v382_v36 = vcombine.high %v360_v31, %v360_v31  ;;  %v2860_v37 = vld [vmem:[%s3909_s1 + $0x670] ss:$8 sps:$4 sm:$0xff]  }
  0xb9   :  { %1915 = vmatprep.subr.bf16.mxu1 %v2853_v24  ;;  %v2865_v29 = vld [vmem:[%s3909_s1 + $0x774] ss:$8 sps:$4 sm:$0xff]   ;;  %v2863_v38 = vld [vmem:[%s3909_s1 + $0x770] ss:$8 sps:$4 sm:$0xff]   ;;  %v2868_v39 = vld [vmem:[%s3909_s1 + $0x664] ss:$8 sps:$4 sm:$0xff]  }
  0xba   :  { %v2871_v40 = vld [vmem:[%s3909_s1 + $0x764] ss:$8 sps:$4 sm:$0xff]   ;;  %v385_v41 = vcombine.high %v381_v35, %v381_v35  ;;  %v2866_v42 = vld [vmem:[%s3909_s1 + $0x660] ss:$8 sps:$4 sm:$0xff]   ;;  %v2874_v45 = vld [vmem:[%s3909_s1 + $0x654] ss:$8 sps:$4 sm:$0xff]  }
  0xbb   :  { %1875 = vmatpush2.bf16.msra.mxu0 %v2848_v25  ;;  %v2869_v44 = vld [vmem:[%s3909_s1 + $0x760] ss:$8 sps:$4 sm:$0xff]   ;;  %v2877_v46 = vld [vmem:[%s3909_s1 + $0x754] ss:$8 sps:$4 sm:$0xff]   ;;  %v2872_v47 = vld [vmem:[%s3909_s1 + $0x650] ss:$8 sps:$4 sm:$0xff]  }
  0xbc   :  { %1916 = vmatpush2.bf16.msra.mxu1 %v2851_v26  ;;  %1876 = vmatprep.subr.bf16.mxu0 %v2856_v27  ;;  %v2875_v48 = vld [vmem:[%s3909_s1 + $0x750] ss:$8 sps:$4 sm:$0xff]   ;;  %v2880_v50 = vld [vmem:[%s3909_s1 + $0x644] ss:$8 sps:$4 sm:$0xff]   ;;  %v2878_v52 = vld [vmem:[%s3909_s1 + $0x640] ss:$8 sps:$4 sm:$0xff]  }
  0xbd   :  { %1917 = vmatprep.subr.bf16.mxu1 %v2859_v28  ;;  %v2883_v51 = vld [vmem:[%s3909_s1 + $0x744] ss:$8 sps:$4 sm:$0xff]   ;;  %v2881_v53 = vld [vmem:[%s3909_s1 + $0x740] ss:$8 sps:$4 sm:$0xff]   ;;  %v2886_v54 = vld [vmem:[%s3909_s1 + $0x634] ss:$8 sps:$4 sm:$0xff]  }
  0xbe   :  { %v2889_v55 = vld [vmem:[%s3909_s1 + $0x734] ss:$8 sps:$4 sm:$0xff]   ;;  %v2884_v56 = vld [vmem:[%s3909_s1 + $0x630] ss:$8 sps:$4 sm:$0xff]   ;;  %v2892_v58 = vld [vmem:[%s3909_s1 + $0x624] ss:$8 sps:$4 sm:$0xff]  }
  0xbf   :  { %1877 = vmatpush2.bf16.msra.mxu0 %v2854_v32  ;;  %v2887_v57 = vld [vmem:[%s3909_s1 + $0x730] ss:$8 sps:$4 sm:$0xff]   ;;  %v2895_v59 = vld [vmem:[%s3909_s1 + $0x724] ss:$8 sps:$4 sm:$0xff]   ;;  %v2890_v60 = vld [vmem:[%s3909_s1 + $0x620] ss:$8 sps:$4 sm:$0xff]  }
  0xc0   :  { %1918 = vmatpush2.bf16.msra.mxu1 %v2857_v33  ;;  %1928 = vmatprep.subr.bf16.mxu0 %v2862_v34  ;;  %v2893_v61 = vld [vmem:[%s3909_s1 + $0x720] ss:$8 sps:$4 sm:$0xff]   ;;  %v2898_v62 = vld [vmem:[%s3909_s1 + $0x614] ss:$8 sps:$4 sm:$0xff]   ;;  %v2896_v0 = vld [vmem:[%s3909_s1 + $0x610] ss:$8 sps:$4 sm:$0xff]  }
  0xc1   :  { %1969 = vmatprep.subr.bf16.mxu1 %v2865_v29  ;;  %v2901_v63 = vld [vmem:[%s3909_s1 + $0x714] ss:$8 sps:$4 sm:$0xff]   ;;  %v2899_v1 = vld [vmem:[%s3909_s1 + $0x710] ss:$8 sps:$4 sm:$0xff]   ;;  %v2904_v2 = vld [vmem:[%s3909_s1 + $0x604] ss:$8 sps:$4 sm:$0xff]  }
  0xc2   :  { %1879 = vmatmul.mubr.bf16.vlgmr.msra.gmra.mxu0 %v360_v31  ;;  %v2907_v3 = vld [vmem:[%s3909_s1 + $0x704] ss:$8 sps:$4 sm:$0xff]   ;;  %v2902_v4 = vld [vmem:[%s3909_s1 + $0x600] ss:$8 sps:$4 sm:$0xff]   ;;  %v2910_v7 = vld [vmem:[%s3909_s1 + $0x6f4] ss:$8 sps:$4 sm:$0xff]  }
  0xc3   :  { %1920 = vmatmul.mubr.bf16.vlgmr.msra.gmra.mxu1 %v382_v36  ;;  %1929 = vmatpush1.bf16.msra.mxu0 %v2860_v37  ;;  %v2905_v5 = vld [vmem:[%s3909_s1 + $0x700] ss:$8 sps:$4 sm:$0xff]   ;;  %v2913_v8 = vld [vmem:[%s3909_s1 + $0x7f4] ss:$8 sps:$4 sm:$0xff]   ;;  %v2908_v9 = vld [vmem:[%s3909_s1 + $0x6f0] ss:$8 sps:$4 sm:$0xff]   ;;  %v367_v37 = vrot.slane %v3629_v6, %v3172_v49 }
  0xc4   :  { %1970 = vmatpush1.bf16.msra.mxu1 %v2863_v38  ;;  %1930 = vmatprep.subr.bf16.mxu0 %v2868_v39  ;;  %v2911_v10 = vld [vmem:[%s3909_s1 + $0x7f0] ss:$8 sps:$4 sm:$0xff]   ;;  %v2916_v11 = vld [vmem:[%s3909_s1 + $0x6e4] ss:$8 sps:$4 sm:$0xff]   ;;  %v2914_v13 = vld [vmem:[%s3909_s1 + $0x6e0] ss:$8 sps:$4 sm:$0xff]  }
  0xc5   :  { %1971 = vmatprep.subr.bf16.mxu1 %v2871_v40  ;;  %1960 = vmatprep.mubr.bf16.mxu0 %v381_v35  ;;  %v2919_v12 = vld [vmem:[%s3909_s1 + $0x7e4] ss:$8 sps:$4 sm:$0xff]   ;;  %v2917_v14 = vld [vmem:[%s3909_s1 + $0x7e0] ss:$8 sps:$4 sm:$0xff]   ;;  %v2922_v15 = vld [vmem:[%s3909_s1 + $0x6d4] ss:$8 sps:$4 sm:$0xff]   ;;  %v383_v40 = vcombine.high %v367_v37, %v367_v37 }
  0xc6   :  { %2001 = vmatprep.mubr.bf16.mxu1 %v385_v41  ;;  %v2925_v16 = vld [vmem:[%s3909_s1 + $0x7d4] ss:$8 sps:$4 sm:$0xff]   ;;  %v2920_v17 = vld [vmem:[%s3909_s1 + $0x6d0] ss:$8 sps:$4 sm:$0xff]   ;;  %v2928_v19 = vld [vmem:[%s3909_s1 + $0x6c4] ss:$8 sps:$4 sm:$0xff]  }
  0xc7   :  { %1931 = vmatpush1.bf16.msra.mxu0 %v2866_v42  ;;  %v2923_v18 = vld [vmem:[%s3909_s1 + $0x7d0] ss:$8 sps:$4 sm:$0xff]   ;;  %v2931_v20 = vld [vmem:[%s3909_s1 + $0x7c4] ss:$8 sps:$4 sm:$0xff]   ;;  %v2926_v21 = vld [vmem:[%s3909_s1 + $0x6c0] ss:$8 sps:$4 sm:$0xff]  }
  0xc8   :  { %1972 = vmatpush1.bf16.msra.mxu1 %v2869_v44  ;;  %1932 = vmatprep.subr.bf16.mxu0 %v2874_v45  ;;  %v2929_v22 = vld [vmem:[%s3909_s1 + $0x7c0] ss:$8 sps:$4 sm:$0xff]   ;;  %v2934_v23 = vld [vmem:[%s3909_s1 + $0x6b4] ss:$8 sps:$4 sm:$0xff]   ;;  %v2932_v25 = vld [vmem:[%s3909_s1 + $0x6b0] ss:$8 sps:$4 sm:$0xff]  }
  0xc9   :  { %1973 = vmatprep.subr.bf16.mxu1 %v2877_v46  ;;  %v2937_v24 = vld [vmem:[%s3909_s1 + $0x7b4] ss:$8 sps:$4 sm:$0xff]   ;;  %v2935_v26 = vld [vmem:[%s3909_s1 + $0x7b0] ss:$8 sps:$4 sm:$0xff]   ;;  %v2940_v27 = vld [vmem:[%s3909_s1 + $0x6a4] ss:$8 sps:$4 sm:$0xff]  }
  0xca   :  { %v2943_v28 = vld [vmem:[%s3909_s1 + $0x7a4] ss:$8 sps:$4 sm:$0xff]   ;;  %v2938_v30 = vld [vmem:[%s3909_s1 + $0x6a0] ss:$8 sps:$4 sm:$0xff]   ;;  %v2946_v32 = vld [vmem:[%s3909_s1 + $0x694] ss:$8 sps:$4 sm:$0xff]  }
  0xcb   :  { %1933 = vmatpush1.bf16.msra.mxu0 %v2872_v47  ;;  %v2941_v31 = vld [vmem:[%s3909_s1 + $0x7a0] ss:$8 sps:$4 sm:$0xff]   ;;  %v2949_v33 = vld [vmem:[%s3909_s1 + $0x794] ss:$8 sps:$4 sm:$0xff]   ;;  %v2944_v34 = vld [vmem:[%s3909_s1 + $0x690] ss:$8 sps:$4 sm:$0xff]  }
  0xcc   :  { %1974 = vmatpush1.bf16.msra.mxu1 %v2875_v48  ;;  %1934 = vmatprep.subr.bf16.mxu0 %v2880_v50  ;;  %v2947_v29 = vld [vmem:[%s3909_s1 + $0x790] ss:$8 sps:$4 sm:$0xff]   ;;  %v2952_v35 = vld [vmem:[%s3909_s1 + $0x684] ss:$8 sps:$4 sm:$0xff]   ;;  %v2950_v38 = vld [vmem:[%s3909_s1 + $0x680] ss:$8 sps:$4 sm:$0xff]  }
  0xcd   :  { %1975 = vmatprep.subr.bf16.mxu1 %v2883_v51  ;;  %v2955_v36 = vld [vmem:[%s3909_s1 + $0x784] ss:$8 sps:$4 sm:$0xff]   ;;  %v2953_v39 = vld [vmem:[%s3909_s1 + $0x780] ss:$8 sps:$4 sm:$0xff]   ;;  %s3006_s30 = smov [#allocation3]  }
  0xce   :  { %s2262_s6 = sshll.u32 %s3006_s30, 4  ;;  %s2263_s6 = int_to_ptr.vmem [resolvable:$true] %s2262_s6 }
  0xcf   :  { %1935 = vmatpush1.bf16.msra.mxu0 %v2878_v52  ;;  %p2986_p1 = scmp.lt.s32.totalorder %s2263_s6, %s2263_s6 }
  0xd0   :  { %1976 = vmatpush1.bf16.msra.mxu1 %v2881_v53  ;;  %1936 = vmatprep.subr.bf16.mxu0 %v2886_v54 }
  0xd1   :  { %1977 = vmatprep.subr.bf16.mxu1 %v2889_v55 }
  0xd3   :  { %1937 = vmatpush1.bf16.msra.mxu0 %v2884_v56 }
  0xd4   :  { %1978 = vmatpush1.bf16.msra.mxu1 %v2887_v57  ;;  %1938 = vmatprep.subr.bf16.mxu0 %v2892_v58  ;;  %v3004_v58 = vmov 0.0  }
  0xd5   :  { %1979 = vmatprep.subr.bf16.mxu1 %v2895_v59  ;;  %26 = vst [vmem:[#allocation2] sm:$0xf] %v3004_v58 }
  0xd7   :  { %1939 = vmatpush1.bf16.msra.mxu0 %v2890_v60 }
  0xd8   :  { %1980 = vmatpush1.bf16.msra.mxu1 %v2893_v61  ;;  %1940 = vmatprep.subr.bf16.mxu0 %v2898_v62 }
  0xd9   :  { %1981 = vmatprep.subr.bf16.mxu1 %v2901_v63 }
  0xdb   :  { %1941 = vmatpush1.bf16.msra.mxu0 %v2896_v0  ;;  %v2957_v0 = vld [vmem:[%s3911_s3 + $0x78] sm:$0xff]  }
  0xdc   :  { %1982 = vmatpush1.bf16.msra.mxu1 %v2899_v1  ;;  %1942 = vmatprep.subr.bf16.mxu0 %v2904_v2  ;;  %v2958_v1 = vld [vmem:[%s3911_s3 + $0x38] sm:$0xff]   ;;  %v2959_v2 = vld [vmem:[%s3911_s3 + $0x70] sm:$0xff]  }
  0xdd   :  { %1983 = vmatprep.subr.bf16.mxu1 %v2907_v3  ;;  %v2960_v3 = vld [vmem:[%s3911_s3 + $0x30] sm:$0xff]  }
  0xdf   :  { %1943 = vmatpush1.bf16.msra.mxu0 %v2902_v4  ;;  %v2961_v4 = vld [vmem:[%s3911_s3 + $0x68] sm:$0xff]  }
  0xe0   :  { %1984 = vmatpush1.bf16.msra.mxu1 %v2905_v5  ;;  %1944 = vmatprep.subr.bf16.mxu0 %v2910_v7  ;;  %v2962_v5 = vld [vmem:[%s3911_s3 + $0x28] sm:$0xff]   ;;  %v2963_v7 = vld [vmem:[%s3911_s3 + $0x60] sm:$0xff]  }
  0xe1   :  { %1985 = vmatprep.subr.bf16.mxu1 %v2913_v8  ;;  %v2964_v8 = vld [vmem:[%s3911_s3 + $0x20] sm:$0xff]  }
  0xe3   :  { %1945 = vmatpush2.bf16.msra.mxu0 %v2908_v9  ;;  %v2965_v9 = vld [vmem:[%s3911_s3 + $0x58] sm:$0xff]  }
  0xe4   :  { %1986 = vmatpush2.bf16.msra.mxu1 %v2911_v10  ;;  %1946 = vmatprep.subr.bf16.mxu0 %v2916_v11  ;;  %v2966_v10 = vld [vmem:[%s3911_s3 + $0x18] sm:$0xff]   ;;  %v2967_v11 = vld [vmem:[%s3911_s3 + $0x50] sm:$0xff]  }
  0xe5   :  { %1987 = vmatprep.subr.bf16.mxu1 %v2919_v12  ;;  %v2968_v12 = vld [vmem:[%s3911_s3 + $0x10] sm:$0xff]  }
  0xe7   :  { %1947 = vmatpush2.bf16.msra.mxu0 %v2914_v13  ;;  %v2969_v13 = vld [vmem:[%s3911_s3 + $0x48] sm:$0xff]  }
  0xe8   :  { %1988 = vmatpush2.bf16.msra.mxu1 %v2917_v14  ;;  %1948 = vmatprep.subr.bf16.mxu0 %v2922_v15  ;;  %v2970_v14 = vld [vmem:[%s3911_s3 + $0x8] sm:$0xff]   ;;  %v2971_v15 = vld [vmem:[%s3911_s3 + $0x40] sm:$0xff]  }
  0xe9   :  { %1989 = vmatprep.subr.bf16.mxu1 %v2925_v16  ;;  %v2972_v16 = vld [vmem:[%s3911_s3] sm:$0xff]  }
  0xeb   :  { %1949 = vmatpush2.bf16.msra.mxu0 %v2920_v17 }
  0xec   :  { %1990 = vmatpush2.bf16.msra.mxu1 %v2923_v18  ;;  %1950 = vmatprep.subr.bf16.mxu0 %v2928_v19 }
  0xed   :  { %1991 = vmatprep.subr.bf16.mxu1 %v2931_v20 }
  0xef   :  { %1951 = vmatpush2.bf16.msra.mxu0 %v2926_v21 }
  0xf0   :  { %1992 = vmatpush2.bf16.msra.mxu1 %v2929_v22  ;;  %1952 = vmatprep.subr.bf16.mxu0 %v2934_v23 }
  0xf1   :  { %1993 = vmatprep.subr.bf16.mxu1 %v2937_v24 }
  0xf3   :  { %1953 = vmatpush2.bf16.msra.mxu0 %v2932_v25 }
  0xf4   :  { %1994 = vmatpush2.bf16.msra.mxu1 %v2935_v26  ;;  %1954 = vmatprep.subr.bf16.mxu0 %v2940_v27  ;;  %v3005_v27 = vmov 1983009808  }
  0xf5   :  { %1995 = vmatprep.subr.bf16.mxu1 %v2943_v28  ;;  %v2014_v28 = vunpack.c.l.s4 %v3005_v27 }
  0xf7   :  { %1955 = vmatpush2.bf16.msra.mxu0 %v2938_v30 }
  0xf8   :  { %1996 = vmatpush2.bf16.msra.mxu1 %v2941_v31  ;;  %1956 = vmatprep.subr.bf16.mxu0 %v2946_v32 }
  0xf9   :  { %1997 = vmatprep.subr.bf16.mxu1 %v2949_v33  ;;  %v2015_v33 = vunpack.c.0.s8 %v2014_v28 }
  0xfb   :  { %1957 = vmatpush2.bf16.msra.mxu0 %v2944_v34 }
  0xfc   :  { %1998 = vmatpush2.bf16.msra.mxu1 %v2947_v29  ;;  %1958 = vmatprep.subr.bf16.mxu0 %v2952_v35 }
  0xfd   :  { %1999 = vmatprep.subr.bf16.mxu1 %v2955_v36 }
  0xff   :  { %1959 = vmatpush2.bf16.msra.mxu0 %v2950_v38  ;;  %v2018_v38 = vsub.s32 %v2015_v33, %v3154_v43 }
 0x100   :  { %2000 = vmatpush2.bf16.msra.mxu1 %v2953_v39  ;;  %2545 = vmatprep.subr.bf16.mxu0 %v2957_v0 }
 0x102   :  { %v1716_v41 = vpop.f32.mrf.mxu0  ;;  %1961 = vmatmul.mubr.bf16.vlgmr.msra.gmra.mxu0 %v367_v37 }
 0x103   :  { %v1757_v42 = vpop.f32.mrf.mxu1  ;;  %2002 = vmatmul.mubr.bf16.vlgmr.msra.gmra.mxu1 %v383_v40  ;;  %2546 = vmatpush3.bf16.msra.mxu0 %v2958_v1 }
 0x104   :  { %v1758_v49 = vadd.f32 %v1757_v42, %v1716_v41  ;;  %v1718_v6 = vpop.f32.mrf.mxu0  ;;  %2547 = vmatprep.subr.bf16.mxu0 %v2959_v2 }
 0x105   :  { %v1759_v44 = vpop.f32.mrf.mxu1 }
 0x106   :  { %v1760_v45 = vadd.f32 %v1759_v44, %v1718_v6  ;;  %v1720_v46 = vpop.f32.mrf.mxu0  ;;  %v2035_v6 = vsub.s32 1, %v3154_v43  ;;  %v2027_v44 = vld [vmem:[%s3910_s2] sm:$0x3] }
 0x107   :  { %v1761_v47 = vpop.f32.mrf.mxu1  ;;  %2548 = vmatpush3.bf16.msra.mxu0 %v2960_v3 }
 0x108   :  { %v1721_v48 = vpop.f32.mrf.mxu0  ;;  %2549 = vmatprep.subr.bf16.mxu0 %v2961_v4 }
 0x109   :  { %v1762_v50 = vpop.f32.mrf.mxu1  ;;  %v27_v48 = vld [vmem:[#allocation2] sm:$0xf] }
 0x10b   :  { %2550 = vmatpush3.bf16.msra.mxu0 %v2962_v5 }
 0x10c   :  { %2551 = vmatprep.subr.bf16.mxu0 %v2963_v7 }
 0x10f   :  { %2552 = vmatpush3.bf16.msra.mxu0 %v2964_v8 }
 0x110   :  { %2553 = vmatprep.subr.bf16.mxu0 %v2965_v9  ;;  %v2527_v9 = vld [vmem:[%s3912_s4] ss:$0 sm:$0xff]  ;;  %s2981_s4 = scalar_lea.vmem %s2263_s6, 32 }
 0x111   :  { %p2982_p0 = scmp.ne.s32.totalorder %s2263_s6, %s2981_s4  ;;  %p2987_p2 = scmp.lt.s32.totalorder %s2981_s4, %s2981_s4 }
 0x113   :  { %2554 = vmatpush3.bf16.msra.mxu0 %v2966_v10  ;;  %p2988_p3 = por %p2987_p2, %p2986_p1 }
 0x114   :  { %2555 = vmatprep.subr.bf16.mxu0 %v2967_v11 }
 0x115   :  { %p2989_p4 = pnand %p2988_p3, %p2982_p0 }
 0x117   :  { %2556 = vmatpush3.bf16.msra.mxu0 %v2968_v12 }
 0x118   :  { %2557 = vmatprep.subr.bf16.mxu0 %v2969_v13 }
 0x11b   :  { %2558 = vmatpush3.bf16.msra.mxu0 %v2970_v14 }
 0x11c   :  { %2559 = vmatprep.subr.bf16.mxu0 %v2971_v15 }
 0x11f   :  { %2560 = vmatpush3.bf16.msra.mxu0 %v2972_v16 }
 0x142   :  { %v1798_v51 = vpop.f32.mrf.mxu0 }
 0x143   :  { %v1839_v52 = vpop.f32.mrf.mxu1  ;;  %v1799_v53 = vadd.f32 %v1798_v51, %v1758_v49  ;;  %v2031_v49 = vsub.s32 0, %v3154_v43 }
 0x144   :  { %v1800_v54 = vpop.f32.mrf.mxu0 }
 0x145   :  { %v1841_v55 = vpop.f32.mrf.mxu1  ;;  %v1840_v56 = vadd.f32 %v1839_v52, %v1799_v53  ;;  %v1801_v57 = vadd.f32 %v1800_v54, %v1760_v45  ;;  %v2032_v51 = vrot.slane %v2027_v44, %v2031_v49  ;;  %v2036_v52 = vrot.slane %v2027_v44, %v2035_v6 }
 0x146   :  { %v1802_v59 = vpop.f32.mrf.mxu0 }
 0x147   :  { %v1843_v60 = vpop.f32.mrf.mxu1  ;;  %v1842_v61 = vadd.f32 %v1841_v55, %v1801_v57  ;;  %v2037_v54 = vcombine.low %v2032_v51, %v2036_v52 }
 0x148   :  { %v1803_v62 = vpop.f32.mrf.mxu0 }
 0x149   :  { %v1844_v63 = vpop.f32.mrf.mxu1  ;;  %v2044_v55 = vrot.slane %v2037_v54, %v2018_v38 }
 0x182   :  { %v1880_v17 = vpop.f32.mrf.mxu0 }
 0x183   :  { %v1921_v18 = vpop.f32.mrf.mxu1  ;;  %v1881_v19 = vadd.f32 %v1880_v17, %v1840_v56 }
 0x184   :  { %v1882_v20 = vpop.f32.mrf.mxu0 }
 0x185   :  { %v1923_v21 = vpop.f32.mrf.mxu1  ;;  %v1922_v22 = vadd.f32 %v1921_v18, %v1881_v19  ;;  %v1883_v30 = vadd.f32 %v1882_v20, %v1842_v61 }
 0x186   :  { %v1884_v23 = vpop.f32.mrf.mxu0 }
 0x187   :  { %v1925_v24 = vpop.f32.mrf.mxu1  ;;  %v1924_v34 = vadd.f32 %v1923_v21, %v1883_v30 }
 0x188   :  { %v1885_v25 = vpop.f32.mrf.mxu0 }
 0x189   :  { %v1926_v26 = vpop.f32.mrf.mxu1 }
 0x1c2   :  { %v1962_v31 = vpop.f32.mrf.mxu0 }
 0x1c3   :  { %v2003_v32 = vpop.f32.mrf.mxu1  ;;  %v1963_v29 = vadd.f32 %v1962_v31, %v1922_v22 }
 0x1c4   :  { %v1964_v35 = vpop.f32.mrf.mxu0 }
 0x1c5   :  { %v2005_v36 = vpop.f32.mrf.mxu1  ;;  %v1965_v37 = vadd.f32 %v1964_v35, %v1924_v34  ;;  %v2004_v41 = vadd.f32 %v2003_v32, %v1963_v29 }
 0x1c6   :  { %v1966_v39 = vpop.f32.mrf.mxu0 }
 0x1c7   :  { %v2007_v40 = vpop.f32.mrf.mxu1  ;;  %v2006_v42 = vadd.f32 %v2005_v36, %v1965_v37 }
 0x1c8   :  { %v1967_v45 = vpop.f32.mrf.mxu0 }
 0x1c9   :  { %v2008_v46 = vpop.f32.mrf.mxu1  ;;  %v2012_v47 = vcombine.low %v2004_v41, %v2006_v42 }
 0x1cb   :  { %v2019_v50 = vrot.slane %v2012_v47, %v2018_v38 }
 0x1cd   :  { %v2021_v53 = vadd.f32 %v2019_v50, %v27_v48 }
 0x1cf   :  { %2022 = vst [vmem:[#allocation2] sm:$0xf] %v2021_v53 }
 0x1d6   :  { %v2026_v56 = vld [vmem:[#allocation2] sm:$0xf] }
 0x1d7   :  { %v2046_v57 = vadd.f32 %v2044_v55, %v2026_v56 }
 0x1d9   :  { %v2047_v58 = vmin.f32 %v2046_v57, 20.0 }
 0x1db   :  { %v2048_v59 = vmul.f32 1.442695, %v2047_v58 }
 0x1dd   :  { %2973 = vpow2.f32 %v2048_v59 }
 0x1ea   :  { %v2974_v43 = vpop.eup %2973 }
 0x1eb   :  { %v2050_v60 = vadd.f32 1.0, %v2974_v43 }
 0x1ed   :  { %v2051_v61 = vmul.f32 %v2050_v60, %v2050_v60 }
 0x1ef   :  { %v2054_v62 = vadd.f32 1.0, %v2051_v61  ;;  %v2526_v63 = vadd.f32 -1.0, %v2051_v61 }
 0x1f1   :  { %2975 = vrcp.f32 %v2054_v62  ;;  %v2053_v0 = vmul.f32 %v2526_v63, %v2046_v57 }
 0x1fe   :  { %v2976_v1 = vpop.eup %2975 }
 0x1ff   :  { %v2056_v2 = vmul.f32 %v2976_v1, %v2053_v0 }
 0x201   :  { %v2064_v3 = vrot.slane %v2056_v2, %v2018_v38 }
 0x203   :  { %v2065_v4 = vcombine.high %v2064_v3, %v2064_v3  ;;  %v2068_v7 = vpack.c.bf16 %v2064_v3, %v2064_v3 }
 0x205   :  { %v2069_v5 = vpack.c.bf16 %v2065_v4, %v2065_v4 }
 0x207   :  { %2237 = vmatprep.mubr.bf16.mxu0 %v2069_v5 }
 0x208   :  { %2238 = vmatmul.mubr.bf16.vlgmr.msra.gmra.mxu0 %v2068_v7 }
 0x2c8   :  { %v2561_v8 = vpop.f32.mrf.mxu0 }
 0x2ca   :  { %v2562_v10 = vpop.f32.mrf.mxu0 }
 0x2cb   :  { %v2563_v11 = vadd.f32 %v2562_v10, %v2561_v8 }
 0x2cc   :  { %v2564_v12 = vpop.f32.mrf.mxu0 }
 0x2cd   :  { %v2240_v13 = vadd.f32 %v2563_v11, %v2527_v9 }
 0x2ce   :  { %v2565_v14 = vpop.f32.mrf.mxu0 }
 0x2cf   :  { %v2245_v15 = vmin.f32 %v2240_v13, 20.0 }
 0x2d1   :  { %v2246_v16 = vmul.f32 1.442695, %v2245_v15 }
 0x2d3   :  { %2977 = vpow2.f32 %v2246_v16 }
 0x2e0   :  { %v2978_v17 = vpop.eup %2977 }
 0x2e1   :  { %v2248_v18 = vadd.f32 1.0, %v2978_v17 }
 0x2e3   :  { %v2249_v19 = vmul.f32 %v2248_v18, %v2248_v18 }
 0x2e5   :  { %v2252_v20 = vadd.f32 1.0, %v2249_v19  ;;  %v2544_v21 = vadd.f32 -1.0, %v2249_v19 }
 0x2e7   :  { %2979 = vrcp.f32 %v2252_v20  ;;  %v2251_v22 = vmul.f32 %v2544_v21, %v2240_v13 }
 0x2f4   :  { %v2980_v23 = vpop.eup %2979 }
 0x2f5   :  { %v2254_v24 = vmul.f32 %v2980_v23, %v2251_v22 }
 0x2f7   :  { %2255 = vst [vmem:[#allocation3] sm:$0x3] %v2254_v24 }
 0x2f8   :  { %2992 = shalt.err (!%p2989_p4)
}
 0x2f9   :  { %2265 = dma.vmem_to_hbm [thread:$0]  %s2263_s6, 32, %s3913_s5, [#allocation4]  }
 0x2fa   :  { %3001 = dma.done.wait [#allocation4], 32  }
 0x2fb   :  { %3002 = vsyncadd [#allocation4], 4294967264 }
 0x2fc   :  { %2269 = vsyncpa [#allocation4], 1 }

// kernel: tuned_cnn_forward.3
= control target key start
LH: loop header
LB: loop body
LE: loop exit
PB: predicated region body
PF: predicated region fallthrough
CT: control target
= control target key end

     0   :  { %s5838_s12 = smov 0   ;;  %s5840_s13 = smov 0   ;;  %s8798_s0 = inlined_call_operand.vmem [shape: bf16[2,18,18,1], index: 0, kind: input, shape index: {}]   ;;  %s8799_s1 = inlined_call_operand.vmem [shape: bf16[9,1,64], index: 1, kind: input, shape index: {}]   ;;  %s8800_s2 = inlined_call_operand.vmem [shape: f32[1,64], index: 2, kind: input, shape index: {}]   ;;  %s8801_s3 = inlined_call_operand.vmem [shape: bf16[2,8,8,64], index: 3, kind: output, shape index: {}]  }
   0x1   :  { %s5842_s14 = smov 0  }
   0x2 LB: > { %s25_s15 = sadd.s32 1, %s5811_s13  ;;  %p4437_p0 = scmp.ge.s32.totalorder %s5815_s14, 1  ;;  %s5815_s14 = sphi %s5842_s14, %s13_s14   ;;  %s5811_s13 = sphi %s5840_s13, %s9382_s13   ;;  %s5807_s12 = sphi %s5838_s12, %s9381_s12  }
   0x3   : > { %p27_p1 = scmp.ge.s32.totalorder %s25_s15, 2  ;;  %p151_p2 = scmp.lt.s32.totalorder %s5815_s14, 3 }
   0x5   : > { %s9384_s15 = smov (%p27_p1, %s25_s15), 0  ;;  %p152_p3 = pnand %p4437_p0, %p151_p2 }
   0x7   : > { %155 = sbr.rel (%p152_p3) target bundleno = 683 (0x2ab), region = 32 }
   0xc   : > { %p179_p4 = scmp.lt.s32.totalorder %s5807_s12, 1  ;;  %v5817_v0 = vmov 0   ;;  %vm899_vm0 = vcmask 1046528   ;;  %vm1259_vm1 = vcmask 1045504   ;;  %vm4261_vm2 = vcmask 523264  }
   0xd   : > { %4952 = vset.pattern.permute.xlu1 %v5817_v0  ;;  %4941 = vset.pattern.permute.xlu0 %v5817_v0  ;;  %vm4333_vm3 = vcmask 519168  }
   0xe   : > { %s9386_s12 = smov (!%p179_p4, %s5807_s12), 1 }
   0xf   : > { %s4915_s16 = smul.u32 216, %s9386_s12 }
  0x11   : > { %s5862_s19 = scalar_lea.vmem %s8798_s0, %s4915_s16 }
  0x12   : > { %v5865_v1 = vld [vmem:[%s5862_s19 + $0x18] sm:$0xff]   ;;  %v4678_v2 = vld [vmem:[%s5862_s19] sm:$0xff]   ;;  %v200_v8 = vld [vmem:[%s5862_s19 + $0xc] sm:$0xff]  }
  0x13   : > { %v204_v3 = vld [vmem:[%s5862_s19 + $0x24] sm:$0xff]   ;;  %v4683_v4 = vunpack.c.l.bf16 %v5865_v1  ;;  %v4684_v5 = vunpack.c.h.bf16 %v5865_v1  ;;  %v4679_v6 = vunpack.c.l.bf16 %v4678_v2  ;;  %v4680_v7 = vunpack.c.h.bf16 %v4678_v2  ;;  %v208_v9 = vld [vmem:[%s5862_s19 + $0x3c] sm:$0xff]   ;;  %v5874_v14 = vld [vmem:[%s5862_s19 + $0x30] sm:$0xff]  }
  0x14   : > { %v236_v10 = vunpack.c.l.bf16 %v204_v3  ;;  %v237_v11 = vunpack.c.h.bf16 %v204_v3  ;;  %v232_v12 = vunpack.c.l.bf16 %v200_v8  ;;  %v233_v13 = vunpack.c.h.bf16 %v200_v8  ;;  %v212_v23 = vld [vmem:[%s5862_s19 + $0x54] sm:$0xff]   ;;  %v5890_v24 = vld [vmem:[%s5862_s19 + $0x48] sm:$0xff]   ;;  %v5902_v32 = vld [vmem:[%s5862_s19 + $0x60] sm:$0xff]  }
  0x15   : > { %v5880_v15 = vpack.i.bf16 %v4684_v5, %v4683_v4  ;;  %v5882_v16 = vpack.i.bf16 %v4680_v7, %v4679_v6  ;;  %v240_v17 = vunpack.c.l.bf16 %v208_v9  ;;  %v241_v18 = vunpack.c.h.bf16 %v208_v9  ;;  %v216_v31 = vld [vmem:[%s5862_s19 + $0x6c] sm:$0xff]   ;;  %v220_v39 = vld [vmem:[%s5862_s19 + $0x84] sm:$0xff]   ;;  %v5915_v40 = vld [vmem:[%s5862_s19 + $0x78] sm:$0xff]  }
  0x16   : > { %v4958_v19 = vpack.i.bf16 %v237_v11, %v236_v10  ;;  %v4947_v20 = vpack.i.bf16 %v233_v13, %v232_v12  ;;  %v4687_v21 = vunpack.c.l.bf16 %v5874_v14  ;;  %v4688_v22 = vunpack.c.h.bf16 %v5874_v14  ;;  %v224_v47 = vld [vmem:[%s5862_s19 + $0x9c] sm:$0xff]   ;;  %v4874_v48 = vld [vmem:[%s5862_s19 + $0x90] sm:$0xff]   ;;  %v4875_v56 = vld [vmem:[%s5862_s19 + $0xa8] sm:$0xff]  }
  0x17   : > { %4954 = vperm.xlu1 %4952, %v5880_v15   ;;  %4943 = vperm.xlu0 %4941, %v5882_v16   ;;  %v4968_v25 = vpack.i.bf16 %v241_v18, %v240_v17  ;;  %v244_v26 = vunpack.c.l.bf16 %v212_v23  ;;  %v245_v28 = vunpack.c.h.bf16 %v212_v23  ;;  %v4691_v29 = vunpack.c.l.bf16 %v5890_v24  ;;  %v228_v55 = vld [vmem:[%s5862_s19 + $0xb4] sm:$0xff]   ;;  %v462_v63 = vld [vmem:[%s5862_s19 + $0x8] sm:$0x1]  ;;  %v463_v0 = vld [vmem:[%s5862_s19 + $0xc] sm:$0xff]  }
  0x18   : > { %v5896_v27 = vpack.i.bf16 %v4688_v22, %v4687_v21  ;;  %v4692_v30 = vunpack.c.h.bf16 %v5890_v24  ;;  %v248_v33 = vunpack.c.l.bf16 %v216_v31  ;;  %v249_v34 = vunpack.c.h.bf16 %v216_v31  ;;  %v465_v8 = vld [vmem:[%s5862_s19 + $0x14] sm:$0x1]  ;;  %v470_v12 = vld [vmem:[%s5862_s19 + $0x24] sm:$0xff]   ;;  %v471_v13 = vld [vmem:[%s5862_s19 + $0x2c] sm:$0x1] }
  0x19   : > { %v4978_v35 = vpack.i.bf16 %v245_v28, %v244_v26  ;;  %v4695_v37 = vunpack.c.l.bf16 %v5902_v32  ;;  %v4696_v38 = vunpack.c.h.bf16 %v5902_v32  ;;  %v252_v42 = vunpack.c.l.bf16 %v220_v39  ;;  %v468_v17 = vld [vmem:[%s5862_s19 + $0x20] sm:$0x1]  ;;  %v474_v26 = vld [vmem:[%s5862_s19 + $0x38] sm:$0x1]  ;;  %v4442_v1 = vld [vmem:[%s8799_s1 + $0x2] sm:$0x1] }
  0x1a   : > { %v5909_v36 = vpack.i.bf16 %v4692_v30, %v4691_v29  ;;  %v4988_v41 = vpack.i.bf16 %v249_v34, %v248_v33  ;;  %v253_v44 = vunpack.c.h.bf16 %v220_v39  ;;  %v4699_v45 = vunpack.c.l.bf16 %v5915_v40  ;;  %v475_v28 = vld [vmem:[%s5862_s19 + $0x3c] sm:$0xff]   ;;  %v477_v39 = vld [vmem:[%s5862_s19 + $0x44] sm:$0x1]  ;;  %v4518_v32 = vld [vmem:[%s5862_s19 + $0xb4] sm:$0xff]  }
  0x1b   : > { %4959 = vperm.xlu1 %4952, %v4958_v19   ;;  %4948 = vperm.xlu0 %4941, %v4947_v20   ;;  %v5922_v43 = vpack.i.bf16 %v4696_v38, %v4695_v37  ;;  %v4700_v46 = vunpack.c.h.bf16 %v5915_v40  ;;  %v256_v49 = vunpack.c.l.bf16 %v224_v47  ;;  %v257_v50 = vunpack.c.h.bf16 %v224_v47  ;;  %v483_v47 = vld [vmem:[%s5862_s19 + $0x5c] sm:$0x1]  ;;  %v4536_v40 = vld [vmem:[%s5862_s19 + $0x90] sm:$0xe] }
  0x1c   : > { %v4998_v51 = vpack.i.bf16 %v253_v44, %v252_v42  ;;  %v4703_v53 = vunpack.c.l.bf16 %v4874_v48  ;;  %v4704_v54 = vunpack.c.h.bf16 %v4874_v48  ;;  %v260_v58 = vunpack.c.l.bf16 %v228_v55  ;;  %v482_v44 = vld [vmem:[%s5862_s19 + $0x54] sm:$0xff]   ;;  %v480_v48 = vld [vmem:[%s5862_s19 + $0x50] sm:$0x1] }
  0x1d   : > { %v5933_v52 = vpack.i.bf16 %v4700_v46, %v4699_v45  ;;  %v5008_v57 = vpack.i.bf16 %v257_v50, %v256_v49  ;;  %v261_v60 = vunpack.c.h.bf16 %v228_v55  ;;  %v4707_v61 = vunpack.c.l.bf16 %v4875_v56  ;;  %v486_v55 = vld [vmem:[%s5862_s19 + $0x68] sm:$0x1] }
  0x1e   : > { %v5938_v59 = vpack.i.bf16 %v4704_v54, %v4703_v53  ;;  %v4708_v62 = vunpack.c.h.bf16 %v4875_v56  ;;  %v510_v6 = vunpack.c.l.bf16 %v462_v63  ;;  %v511_v7 = vunpack.c.l.bf16 %v463_v0  ;;  %v487_v56 = vld [vmem:[%s5862_s19 + $0x6c] sm:$0xff]  }
  0x1f   : > { %4969 = vperm.xlu1 %4952, %v4968_v25   ;;  %4964 = vperm.xlu0 %4941, %v5896_v27   ;;  %v5018_v2 = vpack.i.bf16 %v261_v60, %v260_v58  ;;  %v512_v10 = vunpack.c.h.bf16 %v463_v0  ;;  %v513_v11 = vunpack.c.l.bf16 %v465_v8  ;;  %v518_v18 = vunpack.c.h.bf16 %v470_v12  ;;  %v492_v8 = vld [vmem:[%s5862_s19 + $0x80] sm:$0x1] }
  0x20   : > { %v5943_v3 = vpack.i.bf16 %v4708_v62, %v4707_v61  ;;  %v5028_v9 = vpack.i.bf16 %v511_v7, %v510_v6  ;;  %v519_v20 = vunpack.c.l.bf16 %v471_v13  ;;  %v516_v23 = vunpack.c.l.bf16 %v468_v17  ;;  %v489_v62 = vld [vmem:[%s5862_s19 + $0x74] sm:$0x1]  ;;  %v494_v6 = vld [vmem:[%s5862_s19 + $0x84] sm:$0xff]   ;;  %v495_v7 = vld [vmem:[%s5862_s19 + $0x8c] sm:$0x1] }
  0x21   : > { %v5033_v19 = vpack.i.bf16 %v513_v11, %v512_v10  ;;  %v517_v25 = vunpack.c.l.bf16 %v470_v12  ;;  %v522_v34 = vunpack.c.l.bf16 %v474_v26  ;;  %v525_v42 = vunpack.c.l.bf16 %v477_v39  ;;  %v498_v17 = vld [vmem:[%s5862_s19 + $0x98] sm:$0x1]  ;;  %v501_v26 = vld [vmem:[%s5862_s19 + $0xa4] sm:$0x1]  ;;  %v504_v39 = vld [vmem:[%s5862_s19 + $0xb0] sm:$0x1] }
  0x22   : > { %v5048_v31 = vpack.i.bf16 %v519_v20, %v518_v18  ;;  %v530_v49 = vunpack.c.h.bf16 %v482_v44  ;;  %v528_v53 = vunpack.c.l.bf16 %v480_v48  ;;  %v529_v54 = vunpack.c.l.bf16 %v482_v44  ;;  %v499_v18 = vld [vmem:[%s5862_s19 + $0x9c] sm:$0xff]   ;;  %v1046_v48 = vld [vmem:[%s5862_s19 + $0x18] sm:$0xe] }
  0x23   : > { %4979 = vperm.xlu1 %4952, %v4978_v35   ;;  %4974 = vperm.xlu0 %4941, %v5909_v36   ;;  %v5043_v33 = vpack.i.bf16 %v517_v25, %v516_v23  ;;  %v523_v35 = vunpack.c.l.bf16 %v475_v28  ;;  %v534_v60 = vunpack.c.l.bf16 %v486_v55  ;;  %v535_v61 = vunpack.c.l.bf16 %v487_v56 }
  0x24   : > { %v5073_v58 = vpack.i.bf16 %v529_v54, %v528_v53  ;;  %v536_v0 = vunpack.c.h.bf16 %v487_v56  ;;  %v543_v11 = vunpack.c.l.bf16 %v495_v7  ;;  %v540_v12 = vunpack.c.l.bf16 %v492_v8 }
  0x25   : > { %v5088_v63 = vpack.i.bf16 %v535_v61, %v534_v60  ;;  %v541_v13 = vunpack.c.l.bf16 %v494_v6  ;;  %v546_v23 = vunpack.c.l.bf16 %v498_v17  ;;  %v547_v25 = vunpack.c.l.bf16 %v499_v18  ;;  %v1050_v60 = vld [vmem:[%s5862_s19 + $0x48] sm:$0xe]  ;;  %v1051_v61 = vld [vmem:[%s5862_s19 + $0x54] sm:$0xe] }
  0x26   : > { %v552_v44 = vunpack.c.l.bf16 %v504_v39  ;;  %v1062_v53 = vunpack.c.l.bf16 %v1046_v48  ;;  %v1067_v7 = vunpack.c.l.bf16 %v1051_v61  ;;  %v424_v39 = vlaneseq  ;;  %v262_v48 = vld [vmem:[%s8799_s1] sm:$0x1] }
  0x27   : > { %4989 = vperm.xlu1 %4952, %v4988_v41   ;;  %4984 = vperm.xlu0 %4941, %v5922_v43   ;;  %v524_v41 = vunpack.c.h.bf16 %v475_v28  ;;  %v5103_v20 = vpack.i.bf16 %v541_v13, %v540_v12  ;;  %v5118_v28 = vpack.i.bf16 %v547_v25, %v546_v23  ;;  %v1052_v12 = vld [vmem:[%s5862_s19 + $0x60] sm:$0xe]  ;;  %v1053_v13 = vld [vmem:[%s5862_s19 + $0x6c] sm:$0xe]  ;;  %v263_v61 = vunpack.c.l.bf16 %v262_v48  ;;  %v4484_v48 = vld [vmem:[%s5862_s19 + $0x2c] sm:$0x1] }
  0x28   : > { %v1068_v23 = vunpack.c.l.bf16 %v1052_v12  ;;  %v1069_v25 = vunpack.c.l.bf16 %v1053_v13 }
  0x29   : > { %v5063_v50 = vpack.i.bf16 %v525_v42, %v524_v41 }
  0x2b   : > { %4999 = vperm.xlu1 %4952, %v4998_v51   ;;  %4994 = vperm.xlu0 %4941, %v5933_v52   ;;  %v531_v51 = vunpack.c.l.bf16 %v483_v47 }
  0x2f   : > { %5009 = vperm.xlu1 %4952, %v5008_v57   ;;  %5004 = vperm.xlu0 %4941, %v5938_v59   ;;  %v5078_v57 = vpack.i.bf16 %v531_v51, %v530_v49  ;;  %v1047_v49 = vld [vmem:[%s5862_s19 + $0x24] sm:$0xe]  ;;  %v1045_v51 = vld [vmem:[%s5862_s19 + $0xc] sm:$0xe] }
  0x30   : > { %v1063_v54 = vunpack.c.l.bf16 %v1047_v49  ;;  %v425_v49 = vshrl.u32 %v424_v39, 7  ;;  %v4482_v39 = vld [vmem:[%s5862_s19 + $0x24] sm:$0xff]  }
  0x33   : > { %5019 = vperm.xlu1 %4952, %v5018_v2   ;;  %5014 = vperm.xlu0 %4941, %v5943_v3   ;;  %v537_v2 = vunpack.c.l.bf16 %v489_v62  ;;  %v1048_v62 = vld [vmem:[%s5862_s19 + $0x30] sm:$0xe] }
  0x34   : > { %v1064_v8 = vunpack.c.l.bf16 %v1048_v62 }
  0x35   : > { %v5093_v10 = vpack.i.bf16 %v537_v2, %v536_v0  ;;  %v5148_v0 = vpack.i.bf16 %v1063_v54, %v1062_v53  ;;  %v1066_v2 = vunpack.c.l.bf16 %v1050_v60  ;;  %v4463_v60 = vld [vmem:[%s5862_s19 + $0x84] sm:$0xff]  }
  0x37   : > { %5029 = vperm.xlu1 %4952, %v5028_v9   ;;  %5024 = vperm.xlu0 %4941, %v5882_v16   ;;  %v5058_v16 = vpack.i.bf16 %v523_v35, %v522_v34  ;;  %v542_v9 = vunpack.c.h.bf16 %v494_v6  ;;  %v506_v34 = vld [vmem:[%s5862_s19 + $0xb4] sm:$0xff]   ;;  %v507_v35 = vld [vmem:[%s5862_s19 + $0xbc] sm:$0x1] }
  0x38   : > { %v555_v42 = vunpack.c.l.bf16 %v507_v35  ;;  %v553_v47 = vunpack.c.l.bf16 %v506_v34 }
  0x3a   : > { %v5133_v56 = vpack.i.bf16 %v553_v47, %v552_v44  ;;  %v4443_v47 = vld [vmem:[%s5862_s19 + $0xc] sm:$0xff]  }
  0x3b   : > { %5039 = vperm.xlu1 %4952, %v5880_v15   ;;  %5034 = vperm.xlu0 %4941, %v5033_v19   ;;  %v5108_v19 = vpack.i.bf16 %v543_v11, %v542_v9  ;;  %v1055_v11 = vld [vmem:[%s5862_s19 + $0x84] sm:$0xe]  ;;  %v1440_v53 = vunpack.c.l.bf16 %v4443_v47  ;;  %v1441_v54 = vunpack.c.h.bf16 %v4443_v47 }
  0x3f   : > { %5049 = vperm.xlu1 %4952, %v5048_v31   ;;  %5044 = vperm.xlu0 %4941, %v5043_v33   ;;  %v548_v31 = vunpack.c.h.bf16 %v499_v18  ;;  %v549_v33 = vunpack.c.l.bf16 %v501_v26  ;;  %v1071_v18 = vunpack.c.l.bf16 %v1055_v11  ;;  %v1058_v26 = vld [vmem:[%s5862_s19 + $0xa8] sm:$0xe]  ;;  %v6005_v11 = vld [vmem:[%s5862_s19 + $0xc0] sm:$0xff]  }
  0x40   : > { %v1074_v35 = vunpack.c.l.bf16 %v1058_v26  ;;  %v4772_v26 = vunpack.c.h.bf16 %v6005_v11 }
  0x41   : > { %v5123_v41 = vpack.i.bf16 %v549_v33, %v548_v31  ;;  %v1056_v31 = vld [vmem:[%s5862_s19 + $0x90] sm:$0xe]  ;;  %v1057_v33 = vld [vmem:[%s5862_s19 + $0x9c] sm:$0xe] }
  0x42   : > { %v1073_v44 = vunpack.c.l.bf16 %v1057_v33 }
  0x43   : > { %5059 = vperm.xlu1 %4952, %v5058_v16   ;;  %5054 = vperm.xlu0 %4941, %v5896_v27   ;;  %v554_v16 = vunpack.c.h.bf16 %v506_v34 }
  0x45   : > { %v5138_v55 = vpack.i.bf16 %v555_v42, %v554_v16  ;;  %v5163_v16 = vpack.i.bf16 %v1069_v25, %v1068_v23  ;;  %v1072_v42 = vunpack.c.l.bf16 %v1056_v31  ;;  %v4471_v23 = vld [vmem:[%s5862_s19 + $0xb4] sm:$0xff]   ;;  %v4771_v25 = vunpack.c.l.bf16 %v6005_v11  ;;  %v4476_v31 = vld [vmem:[%s5862_s19 + $0xc] sm:$0xff]  }
  0x46   : > { %v1468_v47 = vunpack.c.l.bf16 %v4471_v23 }
  0x47   : > { %5069 = vperm.xlu1 %4952, %v5909_v36   ;;  %5064 = vperm.xlu0 %4941, %v5063_v50   ;;  %v1044_v50 = vld [vmem:[%s5862_s19] sm:$0xe] }
  0x4b   : > { %5079 = vperm.xlu1 %4952, %v5078_v57   ;;  %5074 = vperm.xlu0 %4941, %v5073_v58   ;;  %v1060_v57 = vunpack.c.l.bf16 %v1044_v50  ;;  %v1061_v58 = vunpack.c.l.bf16 %v1045_v51  ;;  %v5173_v51 = vpack.i.bf16 %v1073_v44, %v1072_v42 }
  0x4d   : > { %v5143_v6 = vpack.i.bf16 %v1061_v58, %v1060_v57  ;;  %v4455_v57 = vld [vmem:[%s5862_s19 + $0x54] sm:$0xff]   ;;  %v4459_v58 = vld [vmem:[%s5862_s19 + $0x6c] sm:$0xff]  }
  0x4e   : > { %v1456_v12 = vunpack.c.l.bf16 %v4459_v58  ;;  %v1457_v13 = vunpack.c.h.bf16 %v4459_v58  ;;  %v1752_v58 = vunpack.c.h.bf16 %v4476_v31 }
  0x4f   : > { %5089 = vperm.xlu1 %4952, %v5088_v63   ;;  %5084 = vperm.xlu0 %4941, %v5922_v43   ;;  %v1049_v63 = vld [vmem:[%s5862_s19 + $0x3c] sm:$0xe] }
  0x50   : > { %v1065_v9 = vunpack.c.l.bf16 %v1049_v63 }
  0x53   : > { %5099 = vperm.xlu1 %4952, %v5933_v52   ;;  %5094 = vperm.xlu0 %4941, %v5093_v10   ;;  %v1054_v10 = vld [vmem:[%s5862_s19 + $0x78] sm:$0xe] }
  0x54   : > { %v1070_v17 = vunpack.c.l.bf16 %v1054_v10  ;;  %v1453_v10 = vunpack.c.h.bf16 %v4455_v57 }
  0x56   : > { %v5168_v34 = vpack.i.bf16 %v1071_v18, %v1070_v17  ;;  %v1460_v17 = vunpack.c.l.bf16 %v4463_v60  ;;  %v1461_v18 = vunpack.c.h.bf16 %v4463_v60  ;;  %v1757_v60 = vunpack.c.l.bf16 %v4482_v39 }
  0x57   : > { %5109 = vperm.xlu1 %4952, %v5108_v19   ;;  %5104 = vperm.xlu0 %4941, %v5103_v20   ;;  %v5158_v19 = vpack.i.bf16 %v1067_v7, %v1066_v2  ;;  %v5153_v20 = vpack.i.bf16 %v1065_v9, %v1064_v8  ;;  %v4467_v2 = vld [vmem:[%s5862_s19 + $0x9c] sm:$0xff]   ;;  %v5183_v7 = vpack.i.bf16 %v1441_v54, %v1440_v53  ;;  %v1452_v9 = vunpack.c.l.bf16 %v4455_v57 }
  0x58   : > { %v6019_v42 = vpack.i.bf16 %v1461_v18, %v1460_v17  ;;  %v1751_v54 = vunpack.c.l.bf16 %v4476_v31  ;;  %v6035_v57 = vpack.i.bf16 %v4772_v26, %v4771_v25  ;;  %v6045_v31 = vld [vmem:[%s5862_s19 + $0x6c] sm:$0xff]  }
  0x5b   : > { %5119 = vperm.xlu1 %4952, %v5118_v28   ;;  %5114 = vperm.xlu0 %4941, %v5938_v59   ;;  %v1059_v28 = vld [vmem:[%s5862_s19 + $0xb4] sm:$0xe] }
  0x5f   : > { %5129 = vperm.xlu1 %4952, %v5943_v3   ;;  %5124 = vperm.xlu0 %4941, %v5123_v41   ;;  %v1075_v41 = vunpack.c.l.bf16 %v1059_v28  ;;  %v4478_v28 = vld [vmem:[%s5862_s19 + $0x14] sm:$0x1] }
  0x60   : > { %v1753_v53 = vunpack.c.l.bf16 %v4478_v28 }
  0x61   : > { %v5178_v50 = vpack.i.bf16 %v1075_v41, %v1074_v35  ;;  %v6013_v35 = vpack.i.bf16 %v1453_v10, %v1452_v9  ;;  %v6017_v41 = vpack.i.bf16 %v1457_v13, %v1456_v12  ;;  %v4502_v10 = vld [vmem:[%s5862_s19 + $0x74] sm:$0x1] }
  0x63   : > { %5139 = vperm.xlu1 %4952, %v5138_v55   ;;  %5134 = vperm.xlu0 %4941, %v5133_v56   ;;  %v4447_v55 = vld [vmem:[%s5862_s19 + $0x24] sm:$0xff]   ;;  %v4451_v56 = vld [vmem:[%s5862_s19 + $0x3c] sm:$0xff]  }
  0x64   : > { %v1444_v62 = vunpack.c.l.bf16 %v4447_v55  ;;  %v1445_v63 = vunpack.c.h.bf16 %v4447_v55  ;;  %v1449_v8 = vunpack.c.h.bf16 %v4451_v56  ;;  %v4488_v55 = vld [vmem:[%s5862_s19 + $0x3c] sm:$0xff]  }
  0x65   : > { %v1763_v12 = vunpack.c.l.bf16 %v4488_v55  ;;  %v1764_v13 = vunpack.c.h.bf16 %v4488_v55  ;;  %v1776_v55 = vunpack.c.h.bf16 %v6045_v31 }
  0x66   : > { %v5193_v33 = vpack.i.bf16 %v1445_v63, %v1444_v62  ;;  %v4493_v62 = vld [vmem:[%s5862_s19 + $0x50] sm:$0x1]  ;;  %v4499_v63 = vld [vmem:[%s5862_s19 + $0x68] sm:$0x1] }
  0x67   : > { %5149 = vperm.xlu1 %4952, %v5148_v0   ;;  %5144 = vperm.xlu0 %4941, %v5143_v6   ;;  %v1448_v0 = vunpack.c.l.bf16 %v4451_v56  ;;  %v6002_v6 = vsub.s32 0, %v425_v49  ;;  %v4490_v49 = vld [vmem:[%s5862_s19 + $0x44] sm:$0x1]  ;;  %v4494_v56 = vld [vmem:[%s5862_s19 + $0x54] sm:$0xff]  }
  0x68   : > { %v1765_v9 = vunpack.c.l.bf16 %v4490_v49  ;;  %v1769_v17 = vunpack.c.l.bf16 %v4494_v56  ;;  %v1770_v18 = vunpack.c.h.bf16 %v4494_v56  ;;  %v6086_v49 = vld [vmem:[%s5862_s19 + $0x90] sm:$0xff]   ;;  %v4508_v56 = vld [vmem:[%s5862_s19 + $0x8c] sm:$0x1] }
  0x69   : > { %8900 = vst [vmem:[#allocation3_spill] sm:$0xff] %v6002_v6  ;;  %v6022_v44 = vrot.slane %v263_v61, %v6002_v6  ;;  %v1758_v61 = vunpack.c.h.bf16 %v4482_v39 }
  0x6a   : > { %v6081_v14 = vpack.i.bf16 %v1770_v18, %v1769_v17  ;;  %v4528_v18 = vld [vmem:[%s5862_s19 + $0x30] sm:$0xe] }
  0x6b   : > { %5159 = vperm.xlu1 %4952, %v5158_v19   ;;  %5154 = vperm.xlu0 %4941, %v5153_v20   ;;  %v1464_v19 = vunpack.c.l.bf16 %v4467_v2  ;;  %v1465_v20 = vunpack.c.h.bf16 %v4467_v2  ;;  %v6053_v39 = vpack.i.bf16 %v1758_v61, %v1757_v60  ;;  %v6105_v60 = vld [vmem:[%s5862_s19 + $0xa8] sm:$0xff]  }
  0x6f   : > { %5169 = vperm.xlu1 %4952, %v5168_v34   ;;  %5164 = vperm.xlu0 %4941, %v5163_v16   ;;  %v5203_v34 = vpack.i.bf16 %v1449_v8, %v1448_v0  ;;  %v4481_v16 = vld [vmem:[%s5862_s19 + $0x20] sm:$0x1]  ;;  %v4496_v0 = vld [vmem:[%s5862_s19 + $0x5c] sm:$0x1]  ;;  %v1759_v8 = vunpack.c.l.bf16 %v4484_v48  ;;  %v4441_v48 = vld [vmem:[%s8799_s1 + $0x1] sm:$0x1] }
  0x70   : > { %v1756_v2 = vunpack.c.l.bf16 %v4481_v16  ;;  %v1771_v28 = vunpack.c.l.bf16 %v4496_v0  ;;  %v1777_v16 = vunpack.c.l.bf16 %v4502_v10  ;;  %v8805_v10 = vunpack.c.l.bf16 %v6086_v49 }
  0x72   : > { %v6109_v24 = vpack.i.bf16 %v4699_v45, %v1777_v16  ;;  %v4523_v45 = vld [vmem:[%s5862_s19 + $0xc8] sm:$0x1]  ;;  %v8802_v16 = vunpack.c.h.bf16 %v6105_v60 }
  0x73   : > { %5179 = vperm.xlu1 %4952, %v5178_v50   ;;  %5174 = vperm.xlu0 %4941, %v5173_v51   ;;  %v6027_v50 = vpack.i.bf16 %v1465_v20, %v1464_v19  ;;  %v1469_v51 = vunpack.c.h.bf16 %v4471_v23  ;;  %v1768_v20 = vunpack.c.l.bf16 %v4493_v62  ;;  %v1774_v23 = vunpack.c.l.bf16 %v4499_v63  ;;  %v4512_v62 = vld [vmem:[%s5862_s19 + $0x9c] sm:$0xff]  }
  0x75   : > { %v6042_v19 = vpack.i.bf16 %v1469_v51, %v1468_v47  ;;  %v6058_v47 = vpack.i.bf16 %v1756_v2, %v4684_v5  ;;  %v4506_v5 = vld [vmem:[%s5862_s19 + $0x84] sm:$0xff]   ;;  %v4511_v51 = vld [vmem:[%s5862_s19 + $0x98] sm:$0x1]  ;;  %v8804_v2 = vunpack.c.h.bf16 %v6086_v49 }
  0x76   : > { %v1781_v61 = vunpack.c.l.bf16 %v4506_v5  ;;  %v1782_v63 = vunpack.c.h.bf16 %v4506_v5 }
  0x77   : > { %5189 = vperm.xlu1 %4952, %v5880_v15   ;;  %5184 = vperm.xlu0 %4941, %v5183_v7   ;;  %v4487_v15 = vld [vmem:[%s5862_s19 + $0x38] sm:$0x1] }
  0x78   : > { %v1762_v7 = vunpack.c.l.bf16 %v4487_v15 }
  0x7a   : > { %v6062_v15 = vpack.i.bf16 %v1762_v7, %v4688_v22  ;;  %v6077_v22 = vpack.i.bf16 %v4691_v29, %v1765_v9  ;;  %v6095_v29 = vpack.i.bf16 %v1774_v23, %v4696_v38  ;;  %v1078_v38 = vunpack.c.l.bf16 %v4442_v1  ;;  %v4527_v9 = vld [vmem:[%s5862_s19 + $0x24] sm:$0xe]  ;;  %v4526_v23 = vld [vmem:[%s5862_s19 + $0x18] sm:$0xe] }
  0x7b   : > { %5199 = vperm.xlu1 %4952, %v5896_v27   ;;  %5194 = vperm.xlu0 %4941, %v5193_v33   ;;  %v6049_v27 = vpack.i.bf16 %v4683_v4, %v1753_v53  ;;  %v6051_v33 = vpack.i.bf16 %v1752_v58, %v1751_v54  ;;  %v6066_v4 = vpack.i.bf16 %v4687_v21, %v1759_v8  ;;  %v1775_v21 = vunpack.c.l.bf16 %v6045_v31  ;;  %v4514_v58 = vld [vmem:[%s5862_s19 + $0xa4] sm:$0x1]  ;;  %v4520_v8 = vld [vmem:[%s5862_s19 + $0xbc] sm:$0x1] }
  0x7c   : > { %v6091_v53 = vpack.i.bf16 %v1768_v20, %v4692_v30  ;;  %v6099_v54 = vpack.i.bf16 %v4695_v37, %v1771_v28  ;;  %v558_v30 = vunpack.c.l.bf16 %v4441_v48  ;;  %v4517_v37 = vld [vmem:[%s5862_s19 + $0xb0] sm:$0x1]  ;;  %v1786_v7 = vunpack.c.l.bf16 %v4511_v51  ;;  %v4525_v20 = vld [vmem:[%s5862_s19 + $0xc] sm:$0xe] }
  0x7d   : > { %v1789_v17 = vunpack.c.l.bf16 %v4514_v58  ;;  %v1788_v28 = vunpack.c.h.bf16 %v4512_v62  ;;  %v1794_v31 = vunpack.c.h.bf16 %v4518_v32  ;;  %v1792_v48 = vunpack.c.l.bf16 %v4517_v37 }
  0x7e   : > { %v1798_v1 = vunpack.c.l.bf16 %v4523_v45  ;;  %v1795_v5 = vunpack.c.l.bf16 %v4520_v8  ;;  %v2305_v51 = vunpack.c.l.bf16 %v4528_v18  ;;  %v2303_v58 = vunpack.c.l.bf16 %v4526_v23  ;;  %v4529_v8 = vld [vmem:[%s5862_s19 + $0x3c] sm:$0xe]  ;;  %v4539_v18 = vld [vmem:[%s5862_s19 + $0xb4] sm:$0xe] }
  0x7f   : > { %5209 = vperm.xlu1 %4952, %v5909_v36   ;;  %5204 = vperm.xlu0 %4941, %v5203_v34   ;;  %v6079_v36 = vpack.i.bf16 %v1764_v13, %v1763_v12  ;;  %v4505_v34 = vld [vmem:[%s5862_s19 + $0x80] sm:$0x1]  ;;  %v1783_v12 = vunpack.c.l.bf16 %v4508_v56  ;;  %v8803_v13 = vunpack.c.l.bf16 %v6105_v60  ;;  %v2302_v56 = vunpack.c.l.bf16 %v4525_v20 }
  0x80   : > { %v1780_v0 = vunpack.c.l.bf16 %v4505_v34  ;;  %v2304_v34 = vunpack.c.l.bf16 %v4527_v9  ;;  %v6134_v37 = vrot.slane %v1078_v38, %v6002_v6  ;;  %v6136_v45 = vpack.i.bf16 %v1782_v63, %v1781_v61  ;;  %v4530_v38 = vld [vmem:[%s5862_s19 + $0x48] sm:$0xe]  ;;  %v4535_v61 = vld [vmem:[%s5862_s19 + $0x84] sm:$0xe] }
  0x81   : > { %v6179_v20 = vpack.i.bf16 %v4771_v25, %v1795_v5  ;;  %v2312_v11 = vunpack.c.l.bf16 %v4535_v61  ;;  %v2313_v25 = vunpack.c.l.bf16 %v4536_v40  ;;  %v4556_v40 = vld [vmem:[%s5862_s19 + $0x6c] sm:$0xff]  }
  0x82   : > { %v6143_v9 = vpack.i.bf16 %v1780_v0, %v4700_v46  ;;  %v6166_v0 = vpack.i.bf16 %v1792_v48, %v8802_v16  ;;  %v6181_v23 = vpack.i.bf16 %v2305_v51, %v2304_v34  ;;  %v4899_v16 = vld [vmem:[%s5862_s19 + $0x18] sm:$0xff]  }
  0x83   : > { %5219 = vperm.xlu1 %4952, %v5922_v43   ;;  %5214 = vperm.xlu0 %4941, %v6013_v35   ;;  %v1787_v43 = vunpack.c.l.bf16 %v4512_v62  ;;  %v1793_v35 = vunpack.c.l.bf16 %v4518_v32  ;;  %v6128_v62 = vpack.i.bf16 %v1776_v55, %v1775_v21  ;;  %v6131_v32 = vrot.slane %v558_v30, %v6002_v6  ;;  %8903 = vst [vmem:[#allocation6_spill] sm:$0xff] %v6179_v20  ;;  %v4548_v51 = vld [vmem:[%s5862_s19 + $0x3c] sm:$0xff]  }
  0x84   : > { %v6147_v21 = vpack.i.bf16 %v1786_v7, %v8804_v2  ;;  %v6151_v55 = vpack.i.bf16 %v8805_v10, %v1783_v12  ;;  %v6155_v30 = vpack.i.bf16 %v8803_v13, %v1789_v17  ;;  %8901 = vst [vmem:[#allocation4_spill] sm:$0xff] %v6166_v0  ;;  %v6170_v7 = vpack.i.bf16 %v1798_v1, %v4772_v26  ;;  %v4533_v12 = vld [vmem:[%s5862_s19 + $0x6c] sm:$0xe]  ;;  %v4534_v17 = vld [vmem:[%s5862_s19 + $0x78] sm:$0xe]  ;;  %v4900_v13 = vld [vmem:[%s5862_s19 + $0x30] sm:$0xff]  }
  0x85   : > { %v6160_v46 = vpack.i.bf16 %v1788_v28, %v1787_v43  ;;  %v6162_v63 = vpack.i.bf16 %v1794_v31, %v1793_v35  ;;  %8904 = vst [vmem:[#allocation7_spill] sm:$0xff] %v6181_v23  ;;  %v6183_v43 = vpack.i.bf16 %v2303_v58, %v2302_v56  ;;  %v4540_v26 = vld [vmem:[%s5862_s19 + $0xc0] sm:$0xe]  ;;  %v4537_v28 = vld [vmem:[%s5862_s19 + $0x9c] sm:$0xe]  ;;  %v2307_v1 = vunpack.c.l.bf16 %v4530_v38 }
  0x86   : > { %8902 = vst [vmem:[#allocation5_spill] sm:$0xff] %v6170_v7  ;;  %v4538_v35 = vld [vmem:[%s5862_s19 + $0xa8] sm:$0xe]  ;;  %v2310_v5 = vunpack.c.l.bf16 %v4533_v12  ;;  %v2311_v34 = vunpack.c.l.bf16 %v4534_v17  ;;  %v2316_v56 = vunpack.c.l.bf16 %v4539_v18  ;;  %v2317_v58 = vunpack.c.l.bf16 %v4540_v26 }
  0x87   : > { %5229 = vperm.xlu1 %4952, %v5933_v52   ;;  %5224 = vperm.xlu0 %4941, %v6017_v41   ;;  %v4531_v52 = vld [vmem:[%s5862_s19 + $0x54] sm:$0xe]  ;;  %v4532_v41 = vld [vmem:[%s5862_s19 + $0x60] sm:$0xe]  ;;  %8905 = vst [vmem:[#allocation8_spill] sm:$0xff] %v6183_v43  ;;  %v2314_v2 = vunpack.c.l.bf16 %v4537_v28  ;;  %v2315_v10 = vunpack.c.l.bf16 %v4538_v35  ;;  %v4807_v38 = vunpack.c.l.bf16 %v4899_v16  ;;  %v4808_v61 = vunpack.c.h.bf16 %v4899_v16 }
  0x88   : > { %v2308_v31 = vunpack.c.l.bf16 %v4531_v52  ;;  %v2309_v48 = vunpack.c.l.bf16 %v4532_v41  ;;  %v4552_v43 = vld [vmem:[%s5862_s19 + $0x54] sm:$0xff]   ;;  %v4901_v52 = vld [vmem:[%s5862_s19 + $0x48] sm:$0xff]   ;;  %v2687_v12 = vunpack.c.l.bf16 %v4548_v51  ;;  %v2688_v17 = vunpack.c.h.bf16 %v4548_v51  ;;  %v4902_v51 = vld [vmem:[%s5862_s19 + $0x60] sm:$0xff]  }
  0x89   : > { %v4811_v23 = vunpack.c.l.bf16 %v4900_v13  ;;  %v4812_v20 = vunpack.c.h.bf16 %v4900_v13  ;;  %v2691_v18 = vunpack.c.l.bf16 %v4552_v43  ;;  %v2692_v26 = vunpack.c.h.bf16 %v4552_v43 }
  0x8a   : > { %v4815_v28 = vunpack.c.l.bf16 %v4901_v52  ;;  %v4816_v35 = vunpack.c.h.bf16 %v4901_v52  ;;  %v2696_v0 = vunpack.c.h.bf16 %v4556_v40  ;;  %v6208_v13 = vpack.i.bf16 %v2313_v25, %v2312_v11 }
  0x8b   : > { %5239 = vperm.xlu1 %4952, %v5938_v59   ;;  %5234 = vperm.xlu0 %4941, %v6019_v42   ;;  %v2306_v59 = vunpack.c.l.bf16 %v4529_v8  ;;  %v4544_v42 = vld [vmem:[%s5862_s19 + $0x24] sm:$0xff]   ;;  %v6210_v43 = vpack.i.bf16 %v2311_v34, %v2310_v5  ;;  %v6212_v52 = vpack.i.bf16 %v2317_v58, %v2316_v56  ;;  %v6225_v11 = vpack.i.bf16 %v4812_v20, %v4811_v23  ;;  %v4568_v56 = vld [vmem:[%s5862_s19 + $0xb4] sm:$0xff]  }
  0x8c   : > { %v2683_v41 = vunpack.c.l.bf16 %v4544_v42  ;;  %v2684_v8 = vunpack.c.h.bf16 %v4544_v42  ;;  %v2695_v42 = vunpack.c.l.bf16 %v4556_v40  ;;  %v6221_v40 = vpack.i.bf16 %v2688_v17, %v2687_v12  ;;  %v4577_v12 = vld [vmem:[%s5862_s19 + $0x20] sm:$0x1] }
  0x8d   : > { %v6203_v16 = vpack.i.bf16 %v2307_v1, %v2306_v59  ;;  %8906 = vst [vmem:[#allocation9_spill] sm:$0xff] %v6212_v52  ;;  %v6219_v1 = vpack.i.bf16 %v4808_v61, %v4807_v38  ;;  %8911 = vst [vmem:[#allocation14_spill] sm:$0xff] %v6225_v11  ;;  %v6227_v25 = vpack.i.bf16 %v2692_v26, %v2691_v18  ;;  %v4819_v34 = vunpack.c.l.bf16 %v4902_v51  ;;  %v4906_v61 = vld [vmem:[%s5862_s19 + $0xc0] sm:$0xff]  }
  0x8e   : > { %v6217_v59 = vpack.i.bf16 %v2684_v8, %v2683_v41  ;;  %8910 = vst [vmem:[#allocation13_spill] sm:$0xff] %v6221_v40  ;;  %v6229_v5 = vpack.i.bf16 %v4816_v35, %v4815_v28  ;;  %v6240_v8 = vpack.i.bf16 %v2696_v0, %v2695_v42  ;;  %v4820_v20 = vunpack.c.h.bf16 %v4902_v51  ;;  %v4578_v35 = vld [vmem:[%s5862_s19 + $0x24] sm:$0xff]  }
  0x8f   : > { %5249 = vperm.xlu1 %4952, %v5943_v3   ;;  %5244 = vperm.xlu0 %4941, %v6027_v50   ;;  %v6201_v50 = vpack.i.bf16 %v2309_v48, %v2308_v31  ;;  %v4560_v31 = vld [vmem:[%s5862_s19 + $0x84] sm:$0xff]   ;;  %v6215_v48 = vpack.i.bf16 %v2315_v10, %v2314_v2  ;;  %8909 = vst [vmem:[#allocation12_spill] sm:$0xff] %v6219_v1  ;;  %8912 = vst [vmem:[#allocation15_spill] sm:$0xff] %v6227_v25  ;;  %v4475_v2 = vld [vmem:[%s8799_s1 + $0x3] sm:$0x1]  ;;  %v2707_v25 = vunpack.c.l.bf16 %v4568_v56 }
  0x90   : > { %8908 = vst [vmem:[#allocation11_spill] sm:$0xff] %v6217_v59  ;;  %8913 = vst [vmem:[#allocation16_spill] sm:$0xff] %v6229_v5  ;;  %v4572_v10 = vld [vmem:[%s5862_s19 + $0xcc] sm:$0xff]   ;;  %v2699_v23 = vunpack.c.l.bf16 %v4560_v31  ;;  %v2700_v38 = vunpack.c.h.bf16 %v4560_v31  ;;  %v2708_v11 = vunpack.c.h.bf16 %v4568_v56  ;;  %v1474_v40 = vunpack.c.l.bf16 %v4475_v2 }
  0x91   : > { %8907 = vst [vmem:[#allocation10_spill] sm:$0xff] %v6215_v48  ;;  %8914 = vst [vmem:[#allocation17_spill] sm:$0xff] %v6240_v8  ;;  %v4580_v5 = vld [vmem:[%s5862_s19 + $0x2c] sm:$0x1]  ;;  %v2711_v0 = vunpack.c.l.bf16 %v4572_v10  ;;  %v2712_v42 = vunpack.c.h.bf16 %v4572_v10  ;;  %v4835_v51 = vunpack.c.l.bf16 %v4906_v61  ;;  %v4836_v8 = vunpack.c.h.bf16 %v4906_v61 }
  0x92   : > { %v6197_v7 = vpop.permute.xlu1 %4954  ;;  %v6199_v3 = vpop.permute.xlu0 %4943  ;;  %v2994_v31 = vunpack.c.l.bf16 %v4577_v12  ;;  %v6257_v2 = vpack.i.bf16 %v4820_v20, %v4819_v34  ;;  %v6259_v10 = vpack.i.bf16 %v2700_v38, %v2699_v23  ;;  %v6271_v52 = vpack.i.bf16 %v2708_v11, %v2707_v25 }
  0x93   : > { %5259 = vperm.xlu1 %4952, %v6035_v57   ;;  %5254 = vperm.xlu0 %4941, %v6042_v19   ;;  %v4903_v57 = vld [vmem:[%s5862_s19 + $0x78] sm:$0xff]   ;;  %v4957_v1 = vunpack.i.h.bf16 %v6197_v7  ;;  %v4956_v48 = vunpack.i.l.bf16 %v6197_v7  ;;  %v4946_v56 = vunpack.i.h.bf16 %v6199_v3  ;;  %v6280_v20 = vrot.slane %v1474_v40, %v6002_v6 }
  0x94   : > { %v4564_v19 = vld [vmem:[%s5862_s19 + $0x9c] sm:$0xff]   ;;  %v4823_v17 = vunpack.c.l.bf16 %v4903_v57  ;;  %v4824_v18 = vunpack.c.h.bf16 %v4903_v57  ;;  %v2996_v57 = vunpack.c.h.bf16 %v4578_v35  ;;  %v6282_v23 = vpack.i.bf16 %v2712_v42, %v2711_v0  ;;  %v4583_v40 = vld [vmem:[%s5862_s19 + $0x38] sm:$0x1] }
  0x95   : > { %v2703_v26 = vunpack.c.l.bf16 %v4564_v19  ;;  %v2704_v28 = vunpack.c.h.bf16 %v4564_v19  ;;  %v2997_v19 = vunpack.c.l.bf16 %v4580_v5  ;;  %v8915_v5 = vunpack.c.l.bf16 %v6086_v49 }
  0x96   : > { %v6236_v58 = vpop.permute.xlu1 %4959  ;;  %v6238_v41 = vpop.permute.xlu0 %4948  ;;  %v6261_v61 = vpack.i.bf16 %v4824_v18, %v4823_v17  ;;  %v6284_v38 = vpack.i.bf16 %v4836_v8, %v4835_v51  ;;  %v4585_v17 = vld [vmem:[%s5862_s19 + $0x3c] sm:$0xff]   ;;  %v6289_v11 = vmul.f32 %v4957_v1, %v6022_v44  ;;  %v4945_v25 = vunpack.i.l.bf16 %v6199_v3  ;;  %v4589_v3 = vld [vmem:[%s5862_s19 + $0x50] sm:$0x1]  ;;  %v6309_v51 = vld [vmem:[%s5862_s19 + $0x54] sm:$0xff]  }
  0x97   : > { %5269 = vperm.xlu1 %4952, %v6049_v27   ;;  %5264 = vperm.xlu0 %4941, %v6051_v33   ;;  %v2995_v33 = vunpack.c.l.bf16 %v4578_v35  ;;  %v6263_v12 = vpack.i.bf16 %v2704_v28, %v2703_v26  ;;  %v8916_v35 = vunpack.c.h.bf16 %v6086_v49  ;;  %v4586_v49 = vld [vmem:[%s5862_s19 + $0x44] sm:$0x1]  ;;  %v6294_v28 = vpack.i.bf16 %v2997_v19, %v2996_v57 }
  0x98   : > { %8919 = vst [vmem:[#allocation18_spill] sm:$0xff] %v6284_v38  ;;  %8920 = vst [vmem:[#allocation19_spill] sm:$0xff] %v6289_v11  ;;  %v6298_v0 = vmul.f32 %v4956_v48, %v6022_v44  ;;  %v6301_v8 = vmul.f32 %v4946_v56, %v6022_v44  ;;  %v4962_v42 = vunpack.i.h.bf16 %v6236_v58  ;;  %v4961_v1 = vunpack.i.l.bf16 %v6236_v58 }
  0x99   : > { %v6269_v7 = vpack.i.bf16 %v8916_v35, %v8915_v5  ;;  %v6292_v26 = vpack.i.bf16 %v2995_v33, %v2994_v31  ;;  %v4951_v31 = vunpack.i.h.bf16 %v6238_v41  ;;  %v4950_v33 = vunpack.i.l.bf16 %v6238_v41 }
  0x9a   : > { %v6249_v59 = vpop.permute.xlu1 %4969  ;;  %v6251_v27 = vpop.permute.xlu0 %4964  ;;  %8921 = vst [vmem:[#allocation20_spill] sm:$0xff] %v6298_v0  ;;  %8922 = vst [vmem:[#allocation21_spill] sm:$0xff] %v6301_v8  ;;  %v3002_v48 = vunpack.c.h.bf16 %v4585_v17  ;;  %v3003_v57 = vunpack.c.l.bf16 %v4586_v49  ;;  %v3000_v5 = vunpack.c.l.bf16 %v4583_v40  ;;  %v3001_v35 = vunpack.c.l.bf16 %v4585_v17 }
  0x9b   : > { %5279 = vperm.xlu1 %4952, %v6053_v39   ;;  %5274 = vperm.xlu0 %4941, %v6058_v47   ;;  %v8917_v39 = vunpack.c.l.bf16 %v6105_v60  ;;  %v8918_v47 = vunpack.c.h.bf16 %v6105_v60  ;;  %v4972_v19 = vunpack.i.h.bf16 %v6249_v59  ;;  %v4971_v56 = vunpack.i.l.bf16 %v6249_v59 }
  0x9c   : > { %v4967_v58 = vunpack.i.h.bf16 %v6251_v27  ;;  %v3007_v11 = vunpack.c.l.bf16 %v6309_v51  ;;  %v6319_v0 = vmul.f32 %v4945_v25, %v6022_v44  ;;  %v6322_v41 = vmul.f32 %v4962_v42, %v6022_v44 }
  0x9d   : > { %v6277_v34 = vpack.i.bf16 %v8918_v47, %v8917_v39  ;;  %v3006_v47 = vunpack.c.l.bf16 %v4589_v3  ;;  %v6327_v59 = vmul.f32 %v4961_v1, %v6022_v44  ;;  %v6333_v25 = vmul.f32 %v4950_v33, %v6022_v44 }
  0x9e   : > { %v4980_v18 = vpop.permute.xlu1 %4979  ;;  %v4975_v60 = vpop.permute.xlu0 %4974  ;;  %v6336_v42 = vmul.f32 %v4972_v19, %v6022_v44  ;;  %v6346_v1 = vmul.f32 %v4967_v58, %v6022_v44 }
  0x9f   : > { %5289 = vperm.xlu1 %4952, %v6062_v15   ;;  %5284 = vperm.xlu0 %4941, %v6066_v4   ;;  %v4966_v15 = vunpack.i.l.bf16 %v6251_v27  ;;  %v4982_v49 = vunpack.i.h.bf16 %v4980_v18  ;;  %v4981_v8 = vunpack.i.l.bf16 %v4980_v18  ;;  %v6330_v27 = vmul.f32 %v4951_v31, %v6022_v44 }
  0xa0   : > { %v4977_v17 = vunpack.i.h.bf16 %v4975_v60  ;;  %v4976_v40 = vunpack.i.l.bf16 %v4975_v60  ;;  %8923 = vst [vmem:[#allocation22_spill] sm:$0xff] %v6336_v42  ;;  %v6338_v18 = vpack.i.bf16 %v3003_v57, %v3002_v48  ;;  %8925 = vst [vmem:[#allocation24_spill] sm:$0xff] %v6346_v1  ;;  %v6351_v33 = vpack.i.bf16 %v3007_v11, %v3006_v47  ;;  %v4592_v48 = vld [vmem:[%s5862_s19 + $0x5c] sm:$0x1]  ;;  %v4597_v47 = vld [vmem:[%s5862_s19 + $0x6c] sm:$0xff]  }
  0xa1   : > { %v6349_v3 = vmul.f32 %v4966_v15, %v6022_v44  ;;  %v6355_v57 = vmul.f32 %v4982_v49, %v6022_v44  ;;  %v6358_v19 = vmul.f32 %v4981_v8, %v6022_v44  ;;  %v3008_v15 = vunpack.c.h.bf16 %v6309_v51  ;;  %v4598_v49 = vld [vmem:[%s5862_s19 + $0x74] sm:$0x1] }
  0xa2   : > { %v4990_v4 = vpop.permute.xlu1 %4989  ;;  %v4985_v39 = vpop.permute.xlu0 %4984  ;;  %8927 = vst [vmem:[#allocation26_spill] sm:$0xff] %v6351_v33  ;;  %v6366_v58 = vmul.f32 %v4976_v40, %v6022_v44 }
  0xa3   : > { %5299 = vperm.xlu1 %4952, %v6077_v22   ;;  %5294 = vperm.xlu0 %4941, %v6079_v36   ;;  %v6340_v22 = vpack.i.bf16 %v3001_v35, %v3000_v5  ;;  %v6343_v36 = vmul.f32 %v4971_v56, %v6022_v44  ;;  %8926 = vst [vmem:[#allocation25_spill] sm:$0xff] %v6349_v3  ;;  %8928 = vst [vmem:[#allocation27_spill] sm:$0xff] %v6355_v57  ;;  %v4992_v56 = vunpack.i.h.bf16 %v4990_v4  ;;  %v4595_v57 = vld [vmem:[%s5862_s19 + $0x68] sm:$0x1] }
  0xa4   : > { %8929 = vst [vmem:[#allocation28_spill] sm:$0xff] %v6358_v19  ;;  %v4991_v5 = vunpack.i.l.bf16 %v4990_v4  ;;  %v6363_v35 = vmul.f32 %v4977_v17, %v6022_v44  ;;  %8931 = vst [vmem:[#allocation30_spill] sm:$0xff] %v6366_v58  ;;  %v4987_v11 = vunpack.i.h.bf16 %v4985_v39  ;;  %v4986_v8 = vunpack.i.l.bf16 %v4985_v39  ;;  %v8962_v58 = vld [vmem:[#allocation5_spill] sm:$0xff] }
  0xa5   : > { %8924 = vst [vmem:[#allocation23_spill] sm:$0xff] %v6343_v36  ;;  %v3009_v4 = vunpack.c.l.bf16 %v4592_v48  ;;  %v3014_v36 = vunpack.c.h.bf16 %v4597_v47  ;;  %v3015_v17 = vunpack.c.l.bf16 %v4598_v49  ;;  %v3012_v51 = vunpack.c.l.bf16 %v4595_v57 }
  0xa6   : > { %v5000_v60 = vpop.permute.xlu1 %4999  ;;  %v4995_v31 = vpop.permute.xlu0 %4994  ;;  %8930 = vst [vmem:[#allocation29_spill] sm:$0xff] %v6363_v35  ;;  %v6373_v35 = vmul.f32 %v4992_v56, %v6022_v44  ;;  %v6376_v40 = vmul.f32 %v4991_v5, %v6022_v44  ;;  %v3013_v39 = vunpack.c.l.bf16 %v4597_v47  ;;  %v6384_v56 = vmul.f32 %v4986_v8, %v6022_v44  ;;  %v4601_v8 = vld [vmem:[%s5862_s19 + $0x80] sm:$0x1] }
  0xa7   : > { %5309 = vperm.xlu1 %4952, %v6081_v14   ;;  %5304 = vperm.xlu0 %4941, %v6091_v53   ;;  %v5002_v19 = vunpack.i.h.bf16 %v5000_v60  ;;  %v5001_v1 = vunpack.i.l.bf16 %v5000_v60  ;;  %v4997_v3 = vunpack.i.h.bf16 %v4995_v31  ;;  %v4996_v14 = vunpack.i.l.bf16 %v4995_v31 }
  0xa8   : > { %8932 = vst [vmem:[#allocation31_spill] sm:$0xff] %v6373_v35  ;;  %8933 = vst [vmem:[#allocation32_spill] sm:$0xff] %v6376_v40  ;;  %v6381_v60 = vmul.f32 %v4987_v11, %v6022_v44 }
  0xa9   : > { %8935 = vst [vmem:[#allocation34_spill] sm:$0xff] %v6384_v56  ;;  %v6387_v5 = vmul.f32 %v5002_v19, %v6022_v44  ;;  %v6395_v57 = vmul.f32 %v4997_v3, %v6022_v44  ;;  %v6398_v11 = vmul.f32 %v4996_v14, %v6022_v44  ;;  %v4602_v56 = vld [vmem:[%s5862_s19 + $0x84] sm:$0xff]   ;;  %v6409_v3 = vpack.i.bf16 %v3013_v39, %v3012_v51 }
  0xaa   : > { %v5010_v42 = vpop.permute.xlu1 %5009  ;;  %v5005_v53 = vpop.permute.xlu0 %5004  ;;  %8934 = vst [vmem:[#allocation33_spill] sm:$0xff] %v6381_v60  ;;  %v6400_v60 = vpack.i.bf16 %v3015_v17, %v3014_v36  ;;  %v4524_v19 = vld [vmem:[%s8799_s1 + $0x4] sm:$0x1]  ;;  %v4541_v36 = vld [vmem:[%s8799_s1 + $0x5] sm:$0x1]  ;;  %v3019_v51 = vunpack.c.l.bf16 %v4602_v56 }
  0xab   : > { %5319 = vperm.xlu1 %4952, %v6095_v29   ;;  %5314 = vperm.xlu0 %4941, %v6099_v54   ;;  %v5012_v31 = vunpack.i.h.bf16 %v5010_v42  ;;  %v5011_v48 = vunpack.i.l.bf16 %v5010_v42  ;;  %v5007_v49 = vunpack.i.h.bf16 %v5005_v53  ;;  %8936 = vst [vmem:[#allocation35_spill] sm:$0xff] %v6387_v5  ;;  %v5006_v35 = vunpack.i.l.bf16 %v5005_v53  ;;  %8939 = vst [vmem:[#allocation38_spill] sm:$0xff] %v6395_v57 }
  0xac   : > { %v6389_v29 = vpack.i.bf16 %v3009_v4, %v3008_v15  ;;  %v6392_v54 = vmul.f32 %v5001_v1, %v6022_v44  ;;  %8940 = vst [vmem:[#allocation39_spill] sm:$0xff] %v6398_v11  ;;  %8941 = vst [vmem:[#allocation40_spill] sm:$0xff] %v6400_v60  ;;  %v1801_v39 = vunpack.c.l.bf16 %v4524_v19  ;;  %v4604_v19 = vld [vmem:[%s5862_s19 + $0x8c] sm:$0x1] }
  0xad   : > { %8942 = vst [vmem:[#allocation41_spill] sm:$0xff] %v6409_v3  ;;  %v6415_v14 = vmul.f32 %v5012_v31, %v6022_v44  ;;  %v6418_v53 = vmul.f32 %v5011_v48, %v6022_v44  ;;  %v6421_v17 = vmul.f32 %v5007_v49, %v6022_v44 }
  0xae   : > { %8937 = vst [vmem:[#allocation36_spill] sm:$0xff] %v6389_v29  ;;  %8938 = vst [vmem:[#allocation37_spill] sm:$0xff] %v6392_v54  ;;  %v5020_v42 = vpop.permute.xlu1 %5019  ;;  %v5015_v47 = vpop.permute.xlu0 %5014 }
  0xaf   : > { %v5022_v15 = vunpack.i.h.bf16 %v5020_v42  ;;  %v5021_v4 = vunpack.i.l.bf16 %v5020_v42  ;;  %v5017_v1 = vunpack.i.h.bf16 %v5015_v47  ;;  %5329 = vperm.xlu1 %4952, %v6109_v24   ;;  %5324 = vperm.xlu0 %4941, %v6128_v62   ;;  %8943 = vst [vmem:[#allocation42_spill] sm:$0xff] %v6415_v14  ;;  %8944 = vst [vmem:[#allocation43_spill] sm:$0xff] %v6418_v53  ;;  %v5016_v42 = vunpack.i.l.bf16 %v5015_v47 }
  0xb0   : > { %8945 = vst [vmem:[#allocation44_spill] sm:$0xff] %v6421_v17  ;;  %v6424_v24 = vmul.f32 %v5006_v35, %v6022_v44  ;;  %v3018_v62 = vunpack.c.l.bf16 %v4601_v8  ;;  %v2320_v47 = vunpack.c.l.bf16 %v4541_v36  ;;  %v4912_v8 = vld [vmem:[%s5862_s19 + $0x90] sm:$0xff]  }
  0xb1   : > { %v6427_v57 = vmul.f32 %v5022_v15, %v6022_v44  ;;  %v6430_v31 = vmul.f32 %v5021_v4, %v6022_v44  ;;  %v6433_v48 = vmul.f32 %v5017_v1, %v6022_v44  ;;  %v6440_v15 = vmul.f32 %v5016_v42, %v6022_v44 }
  0xb2   : > { %8946 = vst [vmem:[#allocation45_spill] sm:$0xff] %v6424_v24  ;;  %v5030_v49 = vpop.permute.xlu1 %5029  ;;  %v5025_v17 = vpop.permute.xlu0 %5024  ;;  %v4859_v4 = vunpack.c.l.bf16 %v4912_v8  ;;  %v3020_v1 = vunpack.c.h.bf16 %v4602_v56  ;;  %v6449_v5 = vpack.i.bf16 %v3019_v51, %v3018_v62  ;;  %v6452_v44 = vrot.slane %v1801_v39, %v6002_v6 }
  0xb3   : > { %8947 = vst [vmem:[#allocation46_spill] sm:$0xff] %v6427_v57  ;;  %8948 = vst [vmem:[#allocation47_spill] sm:$0xff] %v6430_v31  ;;  %v5032_v14 = vunpack.i.h.bf16 %v5030_v49  ;;  %v5031_v35 = vunpack.i.l.bf16 %v5030_v49  ;;  %v5027_v24 = vunpack.i.h.bf16 %v5025_v17  ;;  %v5026_v53 = vunpack.i.l.bf16 %v5025_v17  ;;  %5339 = vperm.xlu1 %4952, %v6136_v45   ;;  %5334 = vperm.xlu0 %4941, %v6143_v9  }
  0xb4   : > { %8949 = vst [vmem:[#allocation48_spill] sm:$0xff] %v6433_v48  ;;  %8950 = vst [vmem:[#allocation49_spill] sm:$0xff] %v6440_v15  ;;  %v4860_v57 = vunpack.c.h.bf16 %v4912_v8  ;;  %v3021_v31 = vunpack.c.l.bf16 %v4604_v19 }
  0xb5   : > { %v806_v48 = vmul.f32 %v5032_v14, %v6131_v32  ;;  %v805_v36 = vmul.f32 %v5031_v35, %v6131_v32  ;;  %v804_v49 = vmul.f32 %v5027_v24, %v6131_v32  ;;  %v6446_v17 = vmul.f32 %v5031_v35, %v6134_v37  ;;  %8951 = vst [vmem:[#allocation50_spill] sm:$0xff] %v6449_v5 }
  0xb6   : > { %v803_v45 = vmul.f32 %v5026_v53, %v6131_v32  ;;  %v5040_v9 = vpop.permute.xlu1 %5039  ;;  %v5035_v11 = vpop.permute.xlu0 %5034  ;;  %8952 = vst [vmem:[#allocation51_spill] sm:$0xff] %v6452_v44  ;;  %v6455_v14 = vmul.f32 %v5027_v24, %v6134_v37  ;;  %v6460_v35 = vrot.slane %v2320_v47, %v6002_v6  ;;  %v6462_v51 = vpack.i.bf16 %v4860_v57, %v4859_v4 }
  0xb7   : > { %v903_v56 = vrot.slane %v805_v36, 1  ;;  %v901_v42 = vrot.slane %v804_v49, 1  ;;  %5349 = vperm.xlu1 %4952, %v6147_v21   ;;  %5344 = vperm.xlu0 %4941, %v6151_v55   ;;  %v5042_v8 = vunpack.i.h.bf16 %v5040_v9  ;;  %v5041_v62 = vunpack.i.l.bf16 %v5040_v9  ;;  %v6475_v9 = vld [vmem:[%s5862_s19 + $0x9c] sm:$0xff]  }
  0xb8   : > { %8953 = vst [vmem:[#allocation52_spill] sm:$0xff] %v6460_v35  ;;  %v900_v53 = vrot.slane %v803_v45, 1  ;;  %8954 = vst [vmem:[#allocation53_spill] sm:$0xff] %v6462_v51  ;;  %v905_v39 = vrot.slane %v806_v48, 1  ;;  %v5037_v19 = vunpack.i.h.bf16 %v5035_v11  ;;  %v5036_v36 = vunpack.i.l.bf16 %v5035_v11 }
  0xb9   : > { %v6464_v49 = vpack.i.bf16 %v3021_v31, %v3020_v1  ;;  %v6471_v55 = vmul.f32 %v5042_v8, %v6131_v32  ;;  %v809_v47 = vmul.f32 %v5041_v62, %v6131_v32  ;;  %8956 = vst [vmem:[#allocation55_spill] sm:$0xff] %v6475_v9  ;;  %v6478_v57 = vsel %vm899_vm0, %v901_v42, %v903_v56 }
  0xba   : > { %v6468_v21 = vsel %vm899_vm0, %v900_v53, %v901_v42  ;;  %v5050_v45 = vpop.permute.xlu1 %5049  ;;  %v5045_v6 = vpop.permute.xlu0 %5044  ;;  %v808_v31 = vmul.f32 %v5037_v19, %v6131_v32  ;;  %v807_v48 = vmul.f32 %v5036_v36, %v6131_v32  ;;  %v6486_v1 = vmul.f32 %v5042_v8, %v6134_v37 }
  0xbb   : > { %8955 = vst [vmem:[#allocation54_spill] sm:$0xff] %v6464_v49  ;;  %5359 = vperm.xlu1 %4952, %v6155_v30   ;;  %v911_v4 = vrot.slane %v6471_v55, 1  ;;  %v910_v53 = vrot.slane %v809_v47, 1  ;;  %v5052_v62 = vunpack.i.h.bf16 %v5050_v45  ;;  %5354 = vperm.xlu0 %4941, %v6160_v46   ;;  %v6490_v56 = vmul.f32 %v5037_v19, %v6134_v37 }
  0xbc   : > { %8957 = vst [vmem:[#allocation56_spill] sm:$0xff] %v6486_v1  ;;  %v906_v42 = vrot.slane %v807_v48, 1  ;;  %v6493_v24 = vmul.f32 %v5036_v36, %v6134_v37  ;;  %v908_v55 = vrot.slane %v808_v31, 1  ;;  %v5051_v35 = vunpack.i.l.bf16 %v5050_v45  ;;  %v8960_v45 = vld [vmem:[#allocation4_spill] sm:$0xff] }
  0xbd   : > { %v6497_v30 = vsel %vm899_vm0, %v910_v53, %v911_v4  ;;  %v814_v8 = vmul.f32 %v5052_v62, %v6131_v32  ;;  %v6504_v19 = vmul.f32 %v5052_v62, %v6134_v37  ;;  %v5047_v48 = vunpack.i.h.bf16 %v5045_v6 }
  0xbe   : > { %8958 = vst [vmem:[#allocation57_spill] sm:$0xff] %v6497_v30  ;;  %v5060_v47 = vpop.permute.xlu1 %5059  ;;  %v5055_v44 = vpop.permute.xlu0 %5054  ;;  %v6501_v46 = vsel %vm899_vm0, %v905_v39, %v906_v42  ;;  %v5046_v36 = vunpack.i.l.bf16 %v5045_v6  ;;  %v813_v31 = vmul.f32 %v5051_v35, %v6131_v32  ;;  %v6510_v9 = vmul.f32 %v5051_v35, %v6134_v37 }
  0xbf   : > { %8959 = vst [vmem:[#allocation58_spill] sm:$0xff] %v6504_v19  ;;  %5369 = vperm.xlu1 %4952, %v6162_v63   ;;  %v918_v53 = vrot.slane %v814_v8, 1  ;;  %5364 = vperm.xlu0 %4941, %v8960_v45   ;;  %v812_v39 = vmul.f32 %v5047_v48, %v6131_v32  ;;  %v5062_v6 = vunpack.i.h.bf16 %v5060_v47  ;;  %v5061_v11 = vunpack.i.l.bf16 %v5060_v47 }
  0xc0   : > { %v811_v15 = vmul.f32 %v5046_v36, %v6131_v32  ;;  %v6516_v62 = vmul.f32 %v5046_v36, %v6134_v37  ;;  %v916_v54 = vrot.slane %v813_v31, 1  ;;  %v5057_v8 = vunpack.i.h.bf16 %v5055_v44  ;;  %v8963_v31 = vld [vmem:[#allocation6_spill] sm:$0xff] }
  0xc1   : > { %v6520_v35 = vsel %vm899_vm0, %v906_v42, %v908_v55  ;;  %v915_v51 = vrot.slane %v812_v39, 1  ;;  %v818_v5 = vmul.f32 %v5062_v6, %v6131_v32  ;;  %v817_v63 = vmul.f32 %v5061_v11, %v6131_v32  ;;  %v8966_v42 = vld [vmem:[#allocation7_spill] sm:$0xff]  ;;  %v8968_v39 = vld [vmem:[#allocation8_spill] sm:$0xff] }
  0xc2   : > { %8961 = vst [vmem:[#allocation4_spill] sm:$0xff] %v6516_v62  ;;  %v5070_v49 = vpop.permute.xlu1 %5069  ;;  %v5065_v40 = vpop.permute.xlu0 %5064  ;;  %v913_v36 = vrot.slane %v811_v15, 1  ;;  %v816_v47 = vmul.f32 %v5057_v8, %v6131_v32  ;;  %v6530_v3 = vsel %vm899_vm0, %v916_v54, %v918_v53  ;;  %v6538_v15 = vmul.f32 %v5061_v11, %v6134_v37 }
  0xc3   : > { %5379 = vperm.xlu1 %4952, %v8962_v58   ;;  %5374 = vperm.xlu0 %4941, %v8963_v31   ;;  %v6534_v55 = vsel %vm899_vm0, %v915_v51, %v916_v54  ;;  %v923_v58 = vrot.slane %v817_v63, 1  ;;  %v6541_v6 = vmul.f32 %v5057_v8, %v6134_v37  ;;  %v5056_v48 = vunpack.i.l.bf16 %v5055_v44 }
  0xc4   : > { %8964 = vst [vmem:[#allocation5_spill] sm:$0xff] %v6538_v15  ;;  %v921_v60 = vrot.slane %v816_v47, 1  ;;  %v5072_v53 = vunpack.i.h.bf16 %v5070_v49  ;;  %v5071_v29 = vunpack.i.l.bf16 %v5070_v49  ;;  %v5067_v19 = vunpack.i.h.bf16 %v5065_v40 }
  0xc5   : > { %8965 = vst [vmem:[#allocation6_spill] sm:$0xff] %v6541_v6  ;;  %v6545_v54 = vsel %vm899_vm0, %v911_v4, %v913_v36  ;;  %v925_v51 = vrot.slane %v818_v5, 1  ;;  %v815_v63 = vmul.f32 %v5056_v48, %v6131_v32  ;;  %v5066_v11 = vunpack.i.l.bf16 %v5065_v40 }
  0xc6   : > { %v5080_v45 = vpop.permute.xlu1 %5079  ;;  %v5075_v31 = vpop.permute.xlu0 %5074  ;;  %8967 = vst [vmem:[#allocation7_spill] sm:$0xff] %v6545_v54  ;;  %v6550_v8 = vmul.f32 %v5072_v53, %v6131_v32  ;;  %v821_v44 = vmul.f32 %v5071_v29, %v6131_v32  ;;  %v820_v47 = vmul.f32 %v5067_v19, %v6131_v32  ;;  %v6560_v40 = vsel %vm899_vm0, %v921_v60, %v923_v58 }
  0xc7   : > { %5389 = vperm.xlu1 %4952, %v8966_v42   ;;  %5384 = vperm.xlu0 %4941, %v8968_v39   ;;  %v5082_v49 = vunpack.i.h.bf16 %v5080_v45  ;;  %v920_v4 = vrot.slane %v815_v63, 1  ;;  %v819_v5 = vmul.f32 %v5066_v11, %v6131_v32  ;;  %8969 = vst [vmem:[#allocation8_spill] sm:$0xff] %v6560_v40  ;;  %v6564_v29 = vmul.f32 %v5072_v53, %v6134_v37 }
  0xc8   : > { %v931_v39 = vrot.slane %v6550_v8, 1  ;;  %v930_v54 = vrot.slane %v821_v44, 1  ;;  %v6571_v63 = vmul.f32 %v5067_v19, %v6134_v37  ;;  %v6574_v15 = vmul.f32 %v5066_v11, %v6134_v37 }
  0xc9   : > { %8970 = vst [vmem:[#allocation59_spill] sm:$0xff] %v6564_v29  ;;  %v6568_v62 = vsel %vm899_vm0, %v920_v4, %v921_v60  ;;  %v926_v42 = vrot.slane %v819_v5, 1  ;;  %v928_v53 = vrot.slane %v820_v47, 1  ;;  %v826_v8 = vmul.f32 %v5082_v49, %v6131_v32 }
  0xca   : > { %v5090_v36 = vpop.permute.xlu1 %5089  ;;  %v6557_v48 = vpop.permute.xlu0 %5084  ;;  %8971 = vst [vmem:[#allocation60_spill] sm:$0xff] %v6568_v62  ;;  %8972 = vst [vmem:[#allocation61_spill] sm:$0xff] %v6571_v63  ;;  %v6578_v58 = vsel %vm899_vm0, %v930_v54, %v931_v39  ;;  %v5081_v44 = vunpack.i.l.bf16 %v5080_v45  ;;  %v6585_v60 = vmul.f32 %v5082_v49, %v6134_v37  ;;  %v5077_v19 = vunpack.i.h.bf16 %v5075_v31 }
  0xcb   : > { %5399 = vperm.xlu1 %4952, %v6201_v50   ;;  %8973 = vst [vmem:[#allocation62_spill] sm:$0xff] %v6574_v15  ;;  %5394 = vperm.xlu0 %4941, %v6203_v16   ;;  %8974 = vst [vmem:[#allocation63_spill] sm:$0xff] %v6578_v58  ;;  %v6582_v50 = vsel %vm899_vm0, %v925_v51, %v926_v42  ;;  %v5076_v4 = vunpack.i.l.bf16 %v5075_v31  ;;  %v938_v40 = vrot.slane %v826_v8, 1  ;;  %v5092_v31 = vunpack.i.h.bf16 %v5090_v36  ;;  %v9001_v15 = vld [vmem:[#allocation16_spill] sm:$0xff] }
  0xcc   : > { %8975 = vst [vmem:[#allocation64_spill] sm:$0xff] %v6582_v50  ;;  %8976 = vst [vmem:[#allocation65_spill] sm:$0xff] %v6585_v60  ;;  %v825_v54 = vmul.f32 %v5081_v44, %v6131_v32  ;;  %v6592_v47 = vmul.f32 %v5081_v44, %v6134_v37  ;;  %v824_v45 = vmul.f32 %v5077_v19, %v6131_v32  ;;  %v5091_v58 = vunpack.i.l.bf16 %v5090_v36 }
  0xcd   : > { %v823_v51 = vmul.f32 %v5076_v4, %v6131_v32  ;;  %v6598_v49 = vmul.f32 %v5076_v4, %v6134_v37  ;;  %v5087_v29 = vunpack.i.h.bf16 %v6557_v48  ;;  %v6604_v44 = vsel %vm899_vm0, %v926_v42, %v928_v53 }
  0xce   : > { %v5100_v5 = vpop.permute.xlu1 %5099  ;;  %v6587_v11 = vpop.permute.xlu0 %5094  ;;  %8977 = vst [vmem:[#allocation66_spill] sm:$0xff] %v6592_v47  ;;  %v936_v8 = vrot.slane %v825_v54, 1  ;;  %8979 = vst [vmem:[#allocation68_spill] sm:$0xff] %v6604_v44  ;;  %v935_v6 = vrot.slane %v824_v45, 1  ;;  %v829_v16 = vmul.f32 %v5091_v58, %v6131_v32  ;;  %v8980_v54 = vld [vmem:[#allocation9_spill] sm:$0xff]  ;;  %v8987_v45 = vld [vmem:[#allocation11_spill] sm:$0xff] }
  0xcf   : > { %5409 = vperm.xlu1 %4952, %v6208_v13   ;;  %8978 = vst [vmem:[#allocation67_spill] sm:$0xff] %v6598_v49  ;;  %5404 = vperm.xlu0 %4941, %v6210_v43   ;;  %v933_v50 = vrot.slane %v823_v51, 1  ;;  %v830_v43 = vmul.f32 %v5092_v31, %v6131_v32  ;;  %v828_v36 = vmul.f32 %v5087_v29, %v6131_v32  ;;  %v8983_v13 = vld [vmem:[#allocation10_spill] sm:$0xff]  ;;  %v5101_v63 = vunpack.i.l.bf16 %v5100_v5  ;;  %v8988_v47 = vld [vmem:[#allocation12_spill] sm:$0xff] }
  0xd0   : > { %v6615_v42 = vsel %vm899_vm0, %v936_v8, %v938_v40  ;;  %v6619_v19 = vsel %vm899_vm0, %v935_v6, %v936_v8  ;;  %v943_v51 = vrot.slane %v829_v16, 1  ;;  %v6624_v31 = vmul.f32 %v5091_v58, %v6134_v37 }
  0xd1   : > { %8981 = vst [vmem:[#allocation9_spill] sm:$0xff] %v6615_v42  ;;  %8982 = vst [vmem:[#allocation69_spill] sm:$0xff] %v6619_v19  ;;  %v6627_v60 = vmul.f32 %v5087_v29, %v6134_v37  ;;  %v941_v40 = vrot.slane %v828_v36, 1  ;;  %v5102_v42 = vunpack.i.h.bf16 %v5100_v5  ;;  %v5097_v53 = vunpack.i.h.bf16 %v6587_v11 }
  0xd2   : > { %v5110_v62 = vpop.permute.xlu1 %5109  ;;  %v6608_v4 = vpop.permute.xlu0 %5104  ;;  %8984 = vst [vmem:[#allocation10_spill] sm:$0xff] %v6624_v31  ;;  %v945_v16 = vrot.slane %v830_v43, 1  ;;  %v5096_v29 = vunpack.i.l.bf16 %v6587_v11  ;;  %v833_v5 = vmul.f32 %v5101_v63, %v6131_v32  ;;  %v8993_v31 = vld [vmem:[#allocation13_spill] sm:$0xff] }
  0xd3   : > { %5419 = vperm.xlu1 %4952, %v8980_v54   ;;  %5414 = vperm.xlu0 %4941, %v8983_v13   ;;  %8985 = vst [vmem:[#allocation70_spill] sm:$0xff] %v6627_v60  ;;  %v5086_v54 = vunpack.i.l.bf16 %v6557_v48  ;;  %v6636_v13 = vsel %vm899_vm0, %v931_v39, %v933_v50  ;;  %v6642_v48 = vmul.f32 %v5102_v42, %v6131_v32  ;;  %v5112_v49 = vunpack.i.h.bf16 %v5110_v62  ;;  %v8995_v60 = vld [vmem:[#allocation14_spill] sm:$0xff] }
  0xd4   : > { %8986 = vst [vmem:[#allocation71_spill] sm:$0xff] %v6636_v13  ;;  %v832_v36 = vmul.f32 %v5097_v53, %v6131_v32  ;;  %v6651_v11 = vsel %vm899_vm0, %v941_v40, %v943_v51  ;;  %v6655_v13 = vmul.f32 %v5102_v42, %v6134_v37  ;;  %v950_v63 = vrot.slane %v833_v5, 1 }
  0xd5   : > { %v827_v58 = vmul.f32 %v5086_v54, %v6131_v32  ;;  %v831_v54 = vmul.f32 %v5096_v29, %v6131_v32  ;;  %8989 = vst [vmem:[#allocation11_spill] sm:$0xff] %v6651_v11  ;;  %v6668_v51 = vmul.f32 %v5096_v29, %v6134_v37  ;;  %v838_v5 = vmul.f32 %v5112_v49, %v6131_v32 }
  0xd6   : > { %v6631_v6 = vpop.permute.xlu1 %5119  ;;  %v6633_v8 = vpop.permute.xlu0 %5114  ;;  %8990 = vst [vmem:[#allocation12_spill] sm:$0xff] %v6655_v13  ;;  %v5111_v11 = vunpack.i.l.bf16 %v5110_v62  ;;  %v5107_v29 = vunpack.i.h.bf16 %v6608_v4 }
  0xd7   : > { %5429 = vperm.xlu1 %4952, %v8987_v45   ;;  %5424 = vperm.xlu0 %4941, %v8988_v47   ;;  %v940_v43 = vrot.slane %v827_v58, 1  ;;  %v951_v45 = vrot.slane %v6642_v48, 1  ;;  %v6665_v58 = vmul.f32 %v5097_v53, %v6134_v37  ;;  %v946_v50 = vrot.slane %v831_v54, 1 }
  0xd8   : > { %v948_v48 = vrot.slane %v832_v36, 1  ;;  %v6680_v53 = vmul.f32 %v5112_v49, %v6134_v37  ;;  %v958_v54 = vrot.slane %v838_v5, 1  ;;  %v837_v36 = vmul.f32 %v5111_v11, %v6131_v32 }
  0xd9   : > { %v6662_v39 = vsel %vm899_vm0, %v940_v43, %v941_v40  ;;  %8992 = vst [vmem:[#allocation73_spill] sm:$0xff] %v6665_v58  ;;  %v6672_v42 = vsel %vm899_vm0, %v950_v63, %v951_v45  ;;  %v6677_v40 = vsel %vm899_vm0, %v945_v16, %v946_v50  ;;  %v5106_v43 = vunpack.i.l.bf16 %v6608_v4 }
  0xda   : > { %v6657_v19 = vpop.permute.xlu1 %5129  ;;  %v6659_v44 = vpop.permute.xlu0 %5124  ;;  %8991 = vst [vmem:[#allocation72_spill] sm:$0xff] %v6662_v39  ;;  %8994 = vst [vmem:[#allocation13_spill] sm:$0xff] %v6672_v42  ;;  %v6687_v63 = vmul.f32 %v5111_v11, %v6134_v37  ;;  %v836_v16 = vmul.f32 %v5107_v29, %v6131_v32  ;;  %v5122_v4 = vunpack.i.h.bf16 %v6631_v6  ;;  %v956_v13 = vrot.slane %v837_v36, 1 }
  0xdb   : > { %5439 = vperm.xlu1 %4952, %v8993_v31   ;;  %5434 = vperm.xlu0 %4941, %v8995_v60   ;;  %8996 = vst [vmem:[#allocation14_spill] sm:$0xff] %v6677_v40  ;;  %8997 = vst [vmem:[#allocation74_spill] sm:$0xff] %v6680_v53  ;;  %v835_v49 = vmul.f32 %v5106_v43, %v6131_v32  ;;  %v6696_v39 = vmul.f32 %v5106_v43, %v6134_v37  ;;  %v9000_v31 = vld [vmem:[#allocation15_spill] sm:$0xff]  ;;  %v5121_v11 = vunpack.i.l.bf16 %v6631_v6  ;;  %v9003_v43 = vld [vmem:[#allocation17_spill] sm:$0xff] }
  0xdc   : > { %8998 = vst [vmem:[#allocation75_spill] sm:$0xff] %v6687_v63  ;;  %v5117_v40 = vunpack.i.h.bf16 %v6633_v8  ;;  %v6705_v29 = vsel %vm899_vm0, %v946_v50, %v948_v48  ;;  %v955_v30 = vrot.slane %v836_v16, 1  ;;  %v842_v16 = vmul.f32 %v5122_v4, %v6131_v32 }
  0xdd   : > { %8999 = vst [vmem:[#allocation76_spill] sm:$0xff] %v6696_v39  ;;  %v841_v5 = vmul.f32 %v5121_v11, %v6131_v32  ;;  %v6726_v33 = vmul.f32 %v5121_v11, %v6134_v37  ;;  %v5116_v53 = vunpack.i.l.bf16 %v6633_v8  ;;  %v5127_v4 = vunpack.i.h.bf16 %v6659_v44 }
  0xde   : > { %v6689_v62 = vpop.permute.xlu1 %5139  ;;  %v6691_v42 = vpop.permute.xlu0 %5134  ;;  %v840_v36 = vmul.f32 %v5117_v40, %v6131_v32  ;;  %v6720_v50 = vsel %vm899_vm0, %v955_v30, %v956_v13  ;;  %v6729_v1 = vmul.f32 %v5117_v40, %v6134_v37  ;;  %v5132_v30 = vunpack.i.h.bf16 %v6657_v19 }
  0xdf   : > { %5449 = vperm.xlu1 %4952, %v9000_v31   ;;  %5444 = vperm.xlu0 %4941, %v9001_v15   ;;  %v953_v31 = vrot.slane %v835_v49, 1  ;;  %v6717_v15 = vsel %vm899_vm0, %v956_v13, %v958_v54  ;;  %v963_v49 = vrot.slane %v841_v5, 1  ;;  %9004 = vst [vmem:[#allocation17_spill] sm:$0xff] %v6726_v33  ;;  %v5131_v13 = vunpack.i.l.bf16 %v6657_v19 }
  0xe0   : > { %9002 = vst [vmem:[#allocation15_spill] sm:$0xff] %v6717_v15  ;;  %9005 = vst [vmem:[#allocation77_spill] sm:$0xff] %v6729_v1  ;;  %v961_v54 = vrot.slane %v840_v36, 1  ;;  %v839_v5 = vmul.f32 %v5116_v53, %v6131_v32  ;;  %v5126_v11 = vunpack.i.l.bf16 %v6659_v44  ;;  %v5142_v40 = vunpack.i.h.bf16 %v6689_v62 }
  0xe1   : > { %v6747_v36 = vmul.f32 %v5132_v30, %v6131_v32  ;;  %v6750_v19 = vmul.f32 %v5132_v30, %v6134_v37  ;;  %v845_v39 = vmul.f32 %v5131_v13, %v6131_v32  ;;  %v965_v53 = vrot.slane %v842_v16, 1 }
  0xe2   : > { %v6712_v6 = vpop.permute.xlu1 %5149  ;;  %v6714_v58 = vpop.permute.xlu0 %5144  ;;  %v6759_v63 = vsel %vm899_vm0, %v961_v54, %v963_v49  ;;  %v6763_v15 = vmul.f32 %v5127_v4, %v6134_v37  ;;  %v6766_v13 = vmul.f32 %v5126_v11, %v6134_v37  ;;  %v5141_v1 = vunpack.i.l.bf16 %v6689_v62 }
  0xe3   : > { %5459 = vperm.xlu1 %4952, %v9003_v43   ;;  %5454 = vperm.xlu0 %4941, %v6257_v2   ;;  %v6737_v43 = vsel %vm899_vm0, %v951_v45, %v953_v31  ;;  %9007 = vst [vmem:[#allocation79_spill] sm:$0xff] %v6750_v19  ;;  %v844_v45 = vmul.f32 %v5127_v4, %v6131_v32  ;;  %v960_v31 = vrot.slane %v839_v5, 1  ;;  %9008 = vst [vmem:[#allocation80_spill] sm:$0xff] %v6759_v63 }
  0xe4   : > { %9006 = vst [vmem:[#allocation78_spill] sm:$0xff] %v6737_v43  ;;  %v843_v43 = vmul.f32 %v5126_v11, %v6131_v32  ;;  %9009 = vst [vmem:[#allocation81_spill] sm:$0xff] %v6763_v15  ;;  %v971_v16 = vrot.slane %v6747_v36, 1  ;;  %v970_v63 = vrot.slane %v845_v39, 1  ;;  %v850_v4 = vmul.f32 %v5142_v40, %v6131_v32 }
  0xe5   : > { %v968_v30 = vrot.slane %v844_v45, 1  ;;  %v6784_v11 = vmul.f32 %v5142_v40, %v6134_v37  ;;  %v5136_v36 = vunpack.i.l.bf16 %v6691_v42  ;;  %v849_v62 = vmul.f32 %v5141_v1, %v6131_v32 }
  0xe6   : > { %v6742_v48 = vpop.permute.xlu1 %5159  ;;  %v6744_v8 = vpop.permute.xlu0 %5154  ;;  %v966_v44 = vrot.slane %v843_v43, 1  ;;  %v5137_v43 = vunpack.i.h.bf16 %v6691_v42  ;;  %v5152_v42 = vunpack.i.h.bf16 %v6712_v6  ;;  %v978_v39 = vrot.slane %v850_v4, 1 }
  0xe7   : > { %5469 = vperm.xlu1 %4952, %v6259_v10   ;;  %5464 = vperm.xlu0 %4941, %v6261_v61   ;;  %v6769_v10 = vsel %vm899_vm0, %v960_v31, %v961_v54  ;;  %9011 = vst [vmem:[#allocation83_spill] sm:$0xff] %v6784_v11  ;;  %v847_v40 = vmul.f32 %v5136_v36, %v6131_v32  ;;  %v976_v45 = vrot.slane %v849_v62, 1  ;;  %v5151_v19 = vunpack.i.l.bf16 %v6712_v6 }
  0xe8   : > { %9010 = vst [vmem:[#allocation82_spill] sm:$0xff] %v6769_v10  ;;  %v6781_v54 = vsel %vm899_vm0, %v965_v53, %v966_v44  ;;  %v848_v53 = vmul.f32 %v5137_v43, %v6131_v32  ;;  %v6798_v31 = vmul.f32 %v5136_v36, %v6134_v37  ;;  %v6809_v43 = vsel %vm899_vm0, %v970_v63, %v971_v16 }
  0xe9   : > { %9013 = vst [vmem:[#allocation85_spill] sm:$0xff] %v6809_v43  ;;  %v6812_v32 = vsel %vm899_vm0, %v966_v44, %v968_v30  ;;  %v973_v62 = vrot.slane %v847_v40, 1  ;;  %v5146_v15 = vunpack.i.l.bf16 %v6714_v58  ;;  %v6823_v63 = vmul.f32 %v5151_v19, %v6134_v37 }
  0xea   : > { %v6773_v33 = vpop.permute.xlu1 %5169  ;;  %v6775_v49 = vpop.permute.xlu0 %5164  ;;  %9012 = vst [vmem:[#allocation84_spill] sm:$0xff] %v6798_v31  ;;  %v975_v10 = vrot.slane %v848_v53, 1  ;;  %v5162_v30 = vunpack.i.h.bf16 %v6742_v48  ;;  %v5156_v6 = vunpack.i.l.bf16 %v6744_v8 }
  0xeb   : > { %5479 = vperm.xlu1 %4952, %v6263_v12   ;;  %5474 = vperm.xlu0 %4941, %v6269_v7   ;;  %v6793_v12 = vmul.f32 %v5141_v1, %v6134_v37  ;;  %v5147_v1 = vunpack.i.h.bf16 %v6714_v58  ;;  %v6836_v58 = vmul.f32 %v5146_v15, %v6134_v37 }
  0xec   : > { %v6833_v40 = vsel %vm899_vm0, %v975_v10, %v976_v45  ;;  %v6841_v19 = vmul.f32 %v5162_v30, %v6134_v37  ;;  %v6848_v10 = vsel %vm899_vm0, %v971_v16, %v973_v62 }
  0xed   : > { %v1166_v44 = vmul.f32 %v5147_v1, %v6134_v37  ;;  %v5157_v1 = vunpack.i.h.bf16 %v6744_v8  ;;  %9014 = vst [vmem:[#allocation86_spill] sm:$0xff] %v6848_v10  ;;  %v1260_v16 = vrot.slane %v6836_v58, 2 }
  0xee   : > { %v6801_v5 = vpop.permute.xlu1 %5179  ;;  %v6803_v7 = vpop.permute.xlu0 %5174 }
  0xef   : > { %5489 = vperm.xlu1 %4952, %v6271_v52   ;;  %5484 = vperm.xlu0 %4941, %v6277_v34   ;;  %v6820_v52 = vmul.f32 %v5152_v42, %v6134_v37  ;;  %v6830_v34 = vsel %vm899_vm0, %v976_v45, %v978_v39  ;;  %v5161_v42 = vunpack.i.l.bf16 %v6742_v48  ;;  %v5172_v39 = vunpack.i.h.bf16 %v6773_v33 }
  0xf0   : > { %v5167_v48 = vunpack.i.h.bf16 %v6775_v49  ;;  %v1265_v8 = vrot.slane %v1166_v44, 2  ;;  %v6858_v4 = vmul.f32 %v5157_v1, %v6134_v37  ;;  %v5182_v58 = vunpack.i.h.bf16 %v6801_v5 }
  0xf1   : > { %v6851_v15 = vmul.f32 %v5161_v42, %v6134_v37  ;;  %v5166_v42 = vunpack.i.l.bf16 %v6775_v49  ;;  %v6872_v44 = vmul.f32 %v5172_v39, %v6134_v37 }
  0xf2   : > { %v5190_v53 = vpop.permute.xlu1 %5189  ;;  %v6827_v36 = vpop.permute.xlu0 %5184  ;;  %v6878_v30 = vmul.f32 %v5167_v48, %v6134_v37  ;;  %v6889_v39 = vmul.f32 %v5182_v58, %v6134_v37  ;;  %v5176_v48 = vunpack.i.l.bf16 %v6803_v7 }
  0xf3   : > { %5499 = vperm.xlu1 %4952, %v6282_v23   ;;  %5494 = vperm.xlu0 %4941, %v6284_v38   ;;  %v5171_v23 = vunpack.i.l.bf16 %v6773_v33  ;;  %v6867_v33 = vmul.f32 %v5156_v6, %v6134_v37  ;;  %v6885_v49 = vmul.f32 %v5166_v42, %v6134_v37  ;;  %v5192_v45 = vunpack.i.h.bf16 %v5190_v53 }
  0xf4   : > { %v5191_v42 = vunpack.i.l.bf16 %v5190_v53  ;;  %v1305_v43 = vrot.slane %v6878_v30, 2  ;;  %v6914_v53 = vmul.f32 %v5176_v48, %v6134_v37  ;;  %v5186_v48 = vunpack.i.l.bf16 %v6827_v36  ;;  %v9095_v30 = vld [vmem:[#allocation72_spill] sm:$0xff] }
  0xf5   : > { %v6875_v1 = vmul.f32 %v5171_v23, %v6134_v37  ;;  %v5177_v23 = vunpack.i.h.bf16 %v6803_v7  ;;  %v1642_v7 = vmul.f32 %v5192_v45, %v6280_v20  ;;  %v9016_v45 = vrot.slane %v6490_v56, 2 }
  0xf6   : > { %v6860_v31 = vpop.permute.xlu1 %5199  ;;  %v6862_v38 = vpop.permute.xlu0 %5194  ;;  %v1641_v11 = vmul.f32 %v5191_v42, %v6280_v20  ;;  %v9020_v56 = vrot.slane %v6446_v17, 2  ;;  %v1019_v17 = vadd.f32 %v6530_v3, %v6322_v41  ;;  %v9026_v41 = vld [vmem:[#allocation20_spill] sm:$0xff]  ;;  %v9027_v3 = vld [vmem:[#allocation57_spill] sm:$0xff] }
  0xf7   : > { %5509 = vperm.xlu1 %4952, %v6292_v26   ;;  %5504 = vperm.xlu0 %4941, %v8988_v47   ;;  %v5181_v26 = vunpack.i.l.bf16 %v6801_v5  ;;  %v1014_v5 = vadd.f32 %v6501_v46, %v6333_v25  ;;  %v9015_v25 = vrot.slane %v6493_v24, 2  ;;  %v1639_v24 = vmul.f32 %v5186_v48, %v6280_v20 }
  0xf8   : > { %v9023_v48 = vrot.slane %v6820_v52, 2 }
  0xf9   : > { %v6899_v62 = vmul.f32 %v5181_v26, %v6134_v37  ;;  %v6911_v26 = vmul.f32 %v5177_v23, %v6134_v37  ;;  %v1267_v46 = vsel %vm1259_vm1, %v1265_v8, %v9015_v25  ;;  %v1015_v23 = vadd.f32 %v6520_v35, %v6330_v27 }
  0xfa   : > { %v6893_v10 = vpop.permute.xlu1 %5209  ;;  %v6895_v47 = vpop.permute.xlu0 %5204  ;;  %v1374_v58 = vadd.f32 %v1267_v46, %v1014_v5  ;;  %v5187_v37 = vunpack.i.h.bf16 %v6827_v36  ;;  %v1012_v8 = vadd.f32 %v6468_v21, %v6319_v0  ;;  %v9017_v42 = vmov %v9015_v25  ;;  %v9018_v46 = vld [vmem:[#allocation21_spill] sm:$0xff] }
  0xfb   : > { %5519 = vperm.xlu1 %4952, %v8995_v60   ;;  %5514 = vperm.xlu0 %4941, %v6294_v28   ;;  %v1269_v5 = vsel %vm1259_vm1, %v9017_v42, %v9016_v45  ;;  %v1013_v27 = vadd.f32 %v6478_v57, %v9018_v46  ;;  %v9019_v35 = vrot.slane %v6455_v14, 2  ;;  %v5202_v57 = vunpack.i.h.bf16 %v6860_v31 }
  0xfc   : > { %v6938_v25 = vadd.f32 %v1641_v11, %v1374_v58  ;;  %v5201_v45 = vunpack.i.l.bf16 %v6860_v31  ;;  %v1640_v42 = vmul.f32 %v5187_v37, %v6280_v20  ;;  %v9022_v14 = vrot.slane %v6510_v9, 2  ;;  %v9024_v31 = vld [vmem:[#allocation26_spill] sm:$0xff] }
  0xfd   : > { %v1262_v36 = vsel %vm1259_vm1, %v1260_v16, %v9019_v35  ;;  %v9021_v11 = vmov %v9019_v35 }
  0xfe   : > { %v6922_v28 = vpop.permute.xlu1 %5219  ;;  %v6924_v6 = vpop.permute.xlu0 %5214  ;;  %v1372_v21 = vadd.f32 %v1262_v36, %v1012_v8  ;;  %v1264_v58 = vsel %vm1259_vm1, %v9021_v11, %v9020_v56  ;;  %v1277_v46 = vsel %vm1259_vm1, %v9023_v48, %v9022_v14  ;;  %v1645_v37 = vmul.f32 %v5201_v45, %v6280_v20  ;;  %v9028_v11 = vld [vmem:[#allocation56_spill] sm:$0xff] }
  0xff   : > { %5529 = vperm.xlu1 %4952, %v6338_v18   ;;  %5524 = vperm.xlu0 %4941, %v6340_v22   ;;  %v1018_v22 = vadd.f32 %v6534_v55, %v6327_v59  ;;  %v1375_v59 = vadd.f32 %v1269_v5, %v1015_v23  ;;  %v1373_v55 = vadd.f32 %v1264_v58, %v1013_v27  ;;  %v9029_v52 = vrot.slane %v9028_v11, 2  ;;  %v9031_v5 = vld [vmem:[#allocation58_spill] sm:$0xff] }
 0x100   : > { %v6961_v8 = vadd.f32 %v1639_v24, %v1372_v21  ;;  %v9025_v21 = vld [vmem:[#allocation16_spill] sm:$0xff]  ;;  %v1646_v24 = vmul.f32 %v5202_v57, %v6280_v20  ;;  %v1016_v56 = vadd.f32 %v9027_v3, %v9026_v41  ;;  %v9030_v14 = vrot.slane %v6823_v63, 2  ;;  %v9034_v41 = vld [vmem:[#allocation19_spill] sm:$0xff] }
 0x101   : > { %v1378_v36 = vadd.f32 %v1277_v46, %v1018_v22  ;;  %v6984_v23 = vadd.f32 %v1642_v7, %v1375_v59  ;;  %v9032_v27 = vrot.slane %v9031_v5, 2  ;;  %v9033_v58 = vrot.slane %v6510_v9, 2  ;;  %v9035_v3 = vld [vmem:[#allocation7_spill] sm:$0xff] }
 0x102   : > { %v6958_v16 = vpop.permute.xlu1 %5229  ;;  %v6970_v35 = vpop.permute.xlu0 %5224  ;;  %v1272_v48 = vsel %vm1259_vm1, %v9030_v14, %v9029_v52  ;;  %v5196_v22 = vunpack.i.l.bf16 %v6862_v38  ;;  %v6994_v46 = vadd.f32 %v1640_v42, %v1373_v55  ;;  %v1017_v52 = vadd.f32 %v9035_v3, %v9034_v41  ;;  %v9038_v42 = vld [vmem:[#allocation36_spill] sm:$0xff] }
 0x103   : > { %5539 = vperm.xlu1 %4952, %v9024_v31   ;;  %5534 = vperm.xlu0 %4941, %v9025_v21   ;;  %v5197_v31 = vunpack.i.h.bf16 %v6862_v38  ;;  %v1279_v45 = vsel %vm1259_vm1, %v9033_v58, %v9032_v27  ;;  %v6991_v57 = vadd.f32 %v1645_v37, %v1378_v36  ;;  %v1376_v63 = vadd.f32 %v1272_v48, %v1016_v56  ;;  %v9036_v36 = vld [vmem:[#allocation23_spill] sm:$0xff]  ;;  %v9037_v37 = vld [vmem:[#allocation64_spill] sm:$0xff]  ;;  %v9042_v27 = vld [vmem:[#allocation62_spill] sm:$0xff] }
 0x104   : > { %v1379_v21 = vadd.f32 %v1279_v45, %v1019_v17  ;;  %v1643_v7 = vmul.f32 %v5196_v22, %v6280_v20  ;;  %v5212_v9 = vunpack.i.h.bf16 %v6893_v10  ;;  %v5211_v59 = vunpack.i.l.bf16 %v6893_v10  ;;  %v9039_v56 = vld [vmem:[#allocation4_spill] sm:$0xff] }
 0x105   : > { %v1022_v38 = vadd.f32 %v9037_v37, %v9036_v36  ;;  %v1644_v55 = vmul.f32 %v5197_v31, %v6280_v20  ;;  %v9040_v48 = vrot.slane %v9039_v56, 2  ;;  %v9041_v5 = vrot.slane %v9028_v11, 2  ;;  %v9047_v56 = vld [vmem:[#allocation25_spill] sm:$0xff] }
 0x106   : > { %v6998_v14 = vpop.permute.xlu1 %5239  ;;  %v7007_v17 = vadd.f32 %v1646_v24, %v1379_v21  ;;  %v9043_v58 = vrot.slane %v9042_v27, 2  ;;  %v9044_v45 = vrot.slane %v6858_v4, 2  ;;  %v7020_v22 = vpop.permute.xlu0 %5234  ;;  %v7022_v41 = vadd.f32 %v1643_v7, %v1376_v63  ;;  %v9045_v24 = vld [vmem:[#allocation22_spill] sm:$0xff]  ;;  %v9046_v21 = vld [vmem:[#allocation68_spill] sm:$0xff]  ;;  %v9050_v63 = vld [vmem:[#allocation61_spill] sm:$0xff] }
 0x107   : > { %5549 = vperm.xlu1 %4952, %v6257_v2   ;;  %5544 = vperm.xlu0 %4941, %v9038_v42   ;;  %v1274_v2 = vsel %vm1259_vm1, %v9041_v5, %v9040_v48  ;;  %v1023_v3 = vadd.f32 %v9046_v21, %v9045_v24  ;;  %v1649_v36 = vmul.f32 %v5211_v59, %v6280_v20  ;;  %v5207_v11 = vunpack.i.h.bf16 %v6895_v47  ;;  %v9048_v48 = vld [vmem:[#allocation60_spill] sm:$0xff]  ;;  %v9056_v24 = vld [vmem:[#allocation41_spill] sm:$0xff] }
 0x108   : > { %v1287_v10 = vsel %vm1259_vm1, %v9044_v45, %v9043_v58  ;;  %v1377_v37 = vadd.f32 %v1274_v2, %v1017_v52  ;;  %v5206_v42 = vunpack.i.l.bf16 %v6895_v47  ;;  %v1020_v4 = vadd.f32 %v9048_v48, %v9047_v56  ;;  %v9049_v5 = vld [vmem:[#allocation40_spill] sm:$0xff]  ;;  %v9053_v52 = vld [vmem:[#allocation6_spill] sm:$0xff] }
 0x109   : > { %v1382_v31 = vadd.f32 %v1287_v10, %v1022_v38  ;;  %v1650_v58 = vmul.f32 %v5212_v9, %v6280_v20  ;;  %v9051_v7 = vrot.slane %v9050_v63, 2  ;;  %v9052_v45 = vrot.slane %v9042_v27, 2  ;;  %v9057_v56 = vld [vmem:[#allocation24_spill] sm:$0xff] }
 0x10a   : > { %v9054_v59 = vrot.slane %v9053_v52, 2  ;;  %v9055_v2 = vrot.slane %v6867_v33, 2  ;;  %v7046_v21 = vadd.f32 %v1644_v55, %v1377_v37  ;;  %v9058_v9 = vld [vmem:[#allocation8_spill] sm:$0xff]  ;;  %v1647_v27 = vmul.f32 %v5206_v42, %v6280_v20  ;;  %v7051_v63 = vpop.permute.xlu1 %5249  ;;  %v9062_v37 = vld [vmem:[#allocation27_spill] sm:$0xff] }
 0x10b   : > { %5559 = vperm.xlu1 %4952, %v9049_v5   ;;  %v1289_v38 = vsel %vm1259_vm1, %v9052_v45, %v9051_v7  ;;  %v7038_v10 = vadd.f32 %v1649_v36, %v1382_v31  ;;  %5554 = vperm.xlu0 %4941, %v9056_v24   ;;  %v1021_v48 = vadd.f32 %v9058_v9, %v9057_v56  ;;  %v5222_v36 = vunpack.i.h.bf16 %v6922_v28  ;;  %v9059_v33 = vld [vmem:[#allocation28_spill] sm:$0xff]  ;;  %v9060_v45 = vld [vmem:[#allocation69_spill] sm:$0xff]  ;;  %v9067_v9 = vld [vmem:[#allocation50_spill] sm:$0xff] }
 0x10c   : > { %v1282_v47 = vsel %vm1259_vm1, %v9055_v2, %v9054_v59  ;;  %v1383_v31 = vadd.f32 %v1289_v38, %v1023_v3  ;;  %v5221_v7 = vunpack.i.l.bf16 %v6922_v28  ;;  %v1026_v59 = vadd.f32 %v9060_v45, %v9059_v33  ;;  %v9063_v24 = vld [vmem:[#allocation9_spill] sm:$0xff]  ;;  %v7067_v38 = vpop.permute.xlu0 %5244 }
 0x10d   : > { %v1380_v5 = vadd.f32 %v1282_v47, %v1020_v4  ;;  %v1648_v2 = vmul.f32 %v5207_v11, %v6280_v20  ;;  %v1027_v56 = vadd.f32 %v9063_v24, %v9062_v37  ;;  %v9064_v4 = vld [vmem:[#allocation66_spill] sm:$0xff]  ;;  %v9066_v42 = vrot.slane %v6841_v19, 2  ;;  %v9068_v33 = vld [vmem:[#allocation5_spill] sm:$0xff] }
 0x10e   : > { %v9065_v47 = vrot.slane %v9064_v4, 2  ;;  %v7070_v28 = vadd.f32 %v1650_v58, %v1383_v31  ;;  %v9069_v45 = vrot.slane %v9068_v33, 2  ;;  %v9070_v11 = vrot.slane %v9053_v52, 2  ;;  %v9074_v33 = vld [vmem:[#allocation65_spill] sm:$0xff] }
 0x10f   : > { %v7058_v55 = vadd.f32 %v1647_v27, %v1380_v5  ;;  %5569 = vperm.xlu1 %4952, %v9067_v9   ;;  %v1653_v37 = vmul.f32 %v5221_v7, %v6280_v20  ;;  %5564 = vperm.xlu0 %4941, %v6261_v61   ;;  %v1654_v24 = vmul.f32 %v5222_v36, %v6280_v20  ;;  %v9073_v9 = vrot.slane %v6851_v15, 2  ;;  %v9079_v36 = vld [vmem:[#allocation63_spill] sm:$0xff] }
 0x110   : > { %v1297_v3 = vsel %vm1259_vm1, %v9066_v42, %v9065_v47  ;;  %v1284_v5 = vsel %vm1259_vm1, %v9070_v11, %v9069_v45  ;;  %v9071_v47 = vld [vmem:[#allocation59_spill] sm:$0xff]  ;;  %v5216_v31 = vunpack.i.l.bf16 %v6924_v6  ;;  %v9075_v52 = vrot.slane %v9074_v33, 2  ;;  %v7101_v33 = vpop.permute.xlu1 %5259 }
 0x111   : > { %9061 = vst [vmem:[#allocation21_spill] sm:$0xff] %v7058_v55  ;;  %v1386_v27 = vadd.f32 %v1297_v3, %v1026_v59  ;;  %v1381_v19 = vadd.f32 %v1284_v5, %v1021_v48  ;;  %v9072_v42 = vrot.slane %v9071_v47, 2  ;;  %v9076_v45 = vrot.slane %v9064_v4, 2  ;;  %v9078_v48 = vld [vmem:[#allocation30_spill] sm:$0xff]  ;;  %v9081_v5 = vld [vmem:[#allocation29_spill] sm:$0xff] }
 0x112   : > { %v5217_v61 = vunpack.i.h.bf16 %v6924_v6  ;;  %v1024_v3 = vadd.f32 %v9079_v36, %v9078_v48  ;;  %v1651_v60 = vmul.f32 %v5216_v31, %v6280_v20  ;;  %v9083_v4 = vld [vmem:[#allocation53_spill] sm:$0xff]  ;;  %v5231_v6 = vunpack.i.l.bf16 %v6958_v16 }
 0x113   : > { %v1292_v58 = vsel %vm1259_vm1, %v9073_v9, %v9072_v42  ;;  %v1299_v59 = vsel %vm1259_vm1, %v9076_v45, %v9075_v52  ;;  %v7091_v7 = vadd.f32 %v1653_v37, %v1386_v27  ;;  %v7096_v11 = vadd.f32 %v1648_v2, %v1381_v19  ;;  %v9082_v42 = vld [vmem:[#allocation71_spill] sm:$0xff]  ;;  %5579 = vperm.xlu1 %4952, %v9083_v4   ;;  %v9084_v37 = vld [vmem:[#allocation32_spill] sm:$0xff]  ;;  %v9085_v45 = vld [vmem:[#allocation14_spill] sm:$0xff] }
 0x114   : > { %v1387_v15 = vadd.f32 %v1299_v59, %v1027_v56  ;;  %v1025_v9 = vadd.f32 %v9082_v42, %v9081_v5  ;;  %v1384_v52 = vadd.f32 %v1292_v58, %v1024_v3  ;;  %v5232_v27 = vunpack.i.h.bf16 %v6958_v16  ;;  %v9086_v2 = vld [vmem:[#allocation54_spill] sm:$0xff]  ;;  %v9088_v19 = vld [vmem:[#allocation67_spill] sm:$0xff]  ;;  %v7123_v42 = vpop.permute.xlu0 %5254 }
 0x115   : > { %9077 = vst [vmem:[#allocation26_spill] sm:$0xff] %v7091_v7  ;;  %9080 = vst [vmem:[#allocation16_spill] sm:$0xff] %v7096_v11  ;;  %v1030_v48 = vadd.f32 %v9085_v45, %v9084_v37  ;;  %5574 = vperm.xlu0 %4941, %v9086_v2   ;;  %v9089_v59 = vrot.slane %v9088_v19, 2  ;;  %v9090_v31 = vrot.slane %v9071_v47, 2  ;;  %v9091_v5 = vld [vmem:[#allocation31_spill] sm:$0xff]  ;;  %v9092_v3 = vrot.slane %v6668_v51, 2  ;;  %v7159_v51 = vpop.permute.xlu1 %5269 }
 0x116   : > { %v7109_v56 = vadd.f32 %v1654_v24, %v1387_v15  ;;  %v1031_v58 = vadd.f32 %v6705_v29, %v9091_v5  ;;  %v7126_v24 = vmul.f32 %v5217_v61, %v6280_v20  ;;  %v7128_v15 = vadd.f32 %v1651_v60, %v1384_v52  ;;  %v9094_v2 = vld [vmem:[#allocation34_spill] sm:$0xff]  ;;  %v9103_v5 = vld [vmem:[#allocation33_spill] sm:$0xff] }
 0x117   : > { %v1294_v36 = vsel %vm1259_vm1, %v9090_v31, %v9089_v59  ;;  %v1307_v16 = vsel %vm1259_vm1, %v1305_v43, %v9092_v3  ;;  %v1657_v47 = vmul.f32 %v5231_v6, %v6280_v20  ;;  %v5227_v29 = vunpack.i.h.bf16 %v6970_v35  ;;  %v9096_v59 = vld [vmem:[#allocation73_spill] sm:$0xff] }
 0x118   : > { %9087 = vst [vmem:[#allocation20_spill] sm:$0xff] %v7109_v56  ;;  %9093 = vst [vmem:[#allocation57_spill] sm:$0xff] %v7128_v15  ;;  %v1390_v4 = vadd.f32 %v1307_v16, %v1030_v48  ;;  %v7131_v37 = vadd.f32 %v1294_v36, %v1025_v9  ;;  %v5226_v45 = vunpack.i.l.bf16 %v6970_v35  ;;  %v1028_v19 = vadd.f32 %v9095_v30, %v9094_v2  ;;  %v9100_v9 = vld [vmem:[#allocation70_spill] sm:$0xff]  ;;  %v4626_v7 = vld [vmem:[%s5862_s19 + $0x30] sm:$0xe] }
 0x119   : > { %v7138_v43 = vmul.f32 %v5232_v27, %v6280_v20  ;;  %v9097_v61 = vrot.slane %v9096_v59, 2  ;;  %v9098_v60 = vmov %v9092_v3  ;;  %v9101_v6 = vrot.slane %v9100_v9, 2  ;;  %v9104_v3 = vld [vmem:[#allocation11_spill] sm:$0xff]  ;;  %v9105_v30 = vld [vmem:[#allocation10_spill] sm:$0xff] }
 0x11a   : > { %v7145_v48 = vadd.f32 %v1657_v47, %v1390_v4  ;;  %v9102_v31 = vrot.slane %v6885_v49, 2  ;;  %v7156_v27 = vadd.f32 %v9104_v3, %v9103_v5  ;;  %v1655_v2 = vmul.f32 %v5226_v45, %v6280_v20 }
 0x11b   : > { %v1309_v52 = vsel %vm1259_vm1, %v9098_v60, %v9097_v61  ;;  %v9106_v4 = vrot.slane %v9105_v30, 2  ;;  %v9107_v47 = vmov %v9101_v6  ;;  %v5242_v49 = vunpack.i.h.bf16 %v6998_v14  ;;  %v9108_v61 = vld [vmem:[#allocation37_spill] sm:$0xff]  ;;  %v7184_v30 = vpop.permute.xlu0 %5264 }
 0x11c   : > { %9099 = vst [vmem:[#allocation56_spill] sm:$0xff] %v7145_v48  ;;  %v1302_v35 = vsel %vm1259_vm1, %v9102_v31, %v9101_v6  ;;  %v7152_v36 = vadd.f32 %v1309_v52, %v1031_v58  ;;  %v5241_v58 = vunpack.i.l.bf16 %v6998_v14  ;;  %v1034_v60 = vadd.f32 %v6720_v50, %v9108_v61  ;;  %v9110_v52 = vld [vmem:[#allocation35_spill] sm:$0xff] }
 0x11d   : > { %v1388_v16 = vadd.f32 %v1302_v35, %v1028_v19  ;;  %v7166_v59 = vsel %vm1259_vm1, %v9107_v47, %v9106_v4  ;;  %v7173_v19 = vmul.f32 %v5227_v29, %v6280_v20  ;;  %v9111_v6 = vld [vmem:[#allocation15_spill] sm:$0xff]  ;;  %v9114_v5 = vrot.slane %v6872_v44, 2  ;;  %v9115_v4 = vld [vmem:[#allocation74_spill] sm:$0xff] }
 0x11e   : > { %v1035_v31 = vadd.f32 %v9111_v6, %v9110_v52  ;;  %v9112_v35 = vld [vmem:[#allocation75_spill] sm:$0xff]  ;;  %v1662_v14 = vmul.f32 %v5242_v49, %v6280_v20  ;;  %v9116_v50 = vrot.slane %v9115_v4, 2  ;;  %v1661_v47 = vmul.f32 %v5241_v58, %v6280_v20  ;;  %v9118_v52 = vld [vmem:[#allocation12_spill] sm:$0xff] }
 0x11f   : > { %v7175_v45 = vadd.f32 %v1655_v2, %v1388_v16  ;;  %v9113_v9 = vrot.slane %v9112_v35, 2  ;;  %v9119_v6 = vrot.slane %v9118_v52, 2  ;;  %v9120_v44 = vrot.slane %v6875_v1, 2  ;;  %v9122_v4 = vld [vmem:[#allocation39_spill] sm:$0xff]  ;;  %v9123_v35 = vld [vmem:[#allocation13_spill] sm:$0xff]  ;;  %v9126_v58 = vld [vmem:[#allocation76_spill] sm:$0xff] }
 0x120   : > { %v5236_v49 = vunpack.i.l.bf16 %v7020_v22  ;;  %v1032_v0 = vadd.f32 %v9123_v35, %v9122_v4  ;;  %v5251_v35 = vunpack.i.l.bf16 %v7051_v63 }
 0x121   : > { %9109 = vst [vmem:[#allocation58_spill] sm:$0xff] %v7175_v45  ;;  %v1317_v3 = vsel %vm1259_vm1, %v9114_v5, %v9113_v9  ;;  %v9117_v29 = vmov %v9113_v9  ;;  %v1312_v9 = vsel %vm1259_vm1, %v9120_v44, %v9119_v6  ;;  %v5237_v5 = vunpack.i.h.bf16 %v7020_v22 }
 0x122   : > { %v1319_v16 = vsel %vm1259_vm1, %v9117_v29, %v9116_v50  ;;  %v1394_v2 = vadd.f32 %v1317_v3, %v1034_v60  ;;  %v9124_v50 = vld [vmem:[#allocation38_spill] sm:$0xff]  ;;  %v9128_v29 = vmov %v9119_v6  ;;  %v1659_v22 = vmul.f32 %v5236_v49, %v6280_v20 }
 0x123   : > { %v1395_v61 = vadd.f32 %v1319_v16, %v1035_v31  ;;  %v9125_v60 = vld [vmem:[#allocation78_spill] sm:$0xff]  ;;  %v9127_v31 = vrot.slane %v9126_v58, 2  ;;  %v1660_v6 = vmul.f32 %v5237_v5, %v6280_v20  ;;  %v1392_v44 = vadd.f32 %v1312_v9, %v1032_v0  ;;  %v7234_v9 = vpop.permute.xlu0 %5274 }
 0x124   : > { %v7200_v18 = vadd.f32 %v1661_v47, %v1394_v2  ;;  %v1033_v3 = vadd.f32 %v9125_v60, %v9124_v50  ;;  %v5252_v2 = vunpack.i.h.bf16 %v7051_v63  ;;  %v7216_v47 = vpop.permute.xlu1 %5279  ;;  %v9130_v50 = vld [vmem:[#allocation43_spill] sm:$0xff]  ;;  %v9131_v58 = vld [vmem:[#allocation42_spill] sm:$0xff]  ;;  %v9133_v5 = vrot.slane %v6911_v26, 2 }
 0x125   : > { %v1314_v1 = vsel %vm1259_vm1, %v9128_v29, %v9127_v31  ;;  %v7211_v16 = vadd.f32 %v1662_v14, %v1395_v61  ;;  %v1038_v60 = vadd.f32 %v6781_v54, %v9130_v50  ;;  %v1039_v14 = vadd.f32 %v6812_v32, %v9131_v58  ;;  %v9134_v31 = vld [vmem:[#allocation81_spill] sm:$0xff] }
 0x126   : > { %9121 = vst [vmem:[#allocation19_spill] sm:$0xff] %v7200_v18  ;;  %v1393_v4 = vadd.f32 %v1314_v1, %v1033_v3  ;;  %v1666_v52 = vmul.f32 %v5252_v2, %v6280_v20  ;;  %v9132_v61 = vrot.slane %v6766_v13, 2  ;;  %v9135_v29 = vrot.slane %v9134_v31, 2  ;;  %v9139_v58 = vld [vmem:[#allocation45_spill] sm:$0xff]  ;;  %v9142_v31 = vld [vmem:[#allocation44_spill] sm:$0xff] }
 0x127   : > { %9129 = vst [vmem:[#allocation7_spill] sm:$0xff] %v7211_v16  ;;  %v7236_v54 = vadd.f32 %v1659_v22, %v1392_v44  ;;  %v1665_v32 = vmul.f32 %v5251_v35, %v6280_v20  ;;  %v5247_v26 = vunpack.i.h.bf16 %v7067_v38  ;;  %v5246_v50 = vunpack.i.l.bf16 %v7067_v38  ;;  %v9144_v22 = vld [vmem:[#allocation77_spill] sm:$0xff]  ;;  %v9182_v16 = vld [vmem:[#allocation18_spill] sm:$0xff] }
 0x128   : > { %v1327_v49 = vsel %vm1259_vm1, %v9133_v5, %v9132_v61  ;;  %v9136_v0 = vmov %v9132_v61  ;;  %v7238_v3 = vadd.f32 %v1660_v6, %v1393_v4  ;;  %v9140_v61 = vld [vmem:[#allocation82_spill] sm:$0xff]  ;;  %v9145_v44 = vrot.slane %v9144_v22, 2  ;;  %v9147_v35 = vld [vmem:[#allocation17_spill] sm:$0xff] }
 0x129   : > { %v1329_v63 = vsel %vm1259_vm1, %v9136_v0, %v9135_v29  ;;  %9137 = vst [vmem:[#allocation23_spill] sm:$0xff] %v7236_v54  ;;  %v1398_v1 = vadd.f32 %v1327_v49, %v1038_v60  ;;  %v1036_v5 = vadd.f32 %v9140_v61, %v9139_v58  ;;  %v9143_v29 = vld [vmem:[#allocation80_spill] sm:$0xff]  ;;  %v9146_v6 = vrot.slane %v6914_v53, 2  ;;  %v7263_v58 = vpop.permute.xlu1 %5289 }
 0x12a   : > { %9138 = vst [vmem:[#allocation64_spill] sm:$0xff] %v7238_v3  ;;  %v1399_v2 = vadd.f32 %v1329_v63, %v1039_v14  ;;  %v1037_v0 = vadd.f32 %v9143_v29, %v9142_v31  ;;  %v9148_v60 = vrot.slane %v9147_v35, 2  ;;  %v9149_v14 = vmov %v9145_v44  ;;  %v9151_v29 = vld [vmem:[#allocation47_spill] sm:$0xff]  ;;  %v7283_v35 = vpop.permute.xlu0 %5284 }
 0x12b   : > { %v7245_v13 = vadd.f32 %v1665_v32, %v1398_v1  ;;  %v1322_v4 = vsel %vm1259_vm1, %v9146_v6, %v9145_v44  ;;  %v1664_v63 = vmul.f32 %v5247_v26, %v6280_v20  ;;  %v1663_v32 = vmul.f32 %v5246_v50, %v6280_v20  ;;  %v9153_v6 = vld [vmem:[#allocation46_spill] sm:$0xff] }
 0x12c   : > { %v1324_v38 = vsel %vm1259_vm1, %v9149_v14, %v9148_v60  ;;  %v7259_v49 = vadd.f32 %v1666_v52, %v1399_v2  ;;  %v1396_v1 = vadd.f32 %v1322_v4, %v1036_v5  ;;  %v5262_v53 = vunpack.i.h.bf16 %v7101_v33  ;;  %v9156_v5 = vld [vmem:[#allocation83_spill] sm:$0xff] }
 0x12d   : > { %9141 = vst [vmem:[#allocation36_spill] sm:$0xff] %v7245_v13  ;;  %v1397_v61 = vadd.f32 %v1324_v38, %v1037_v0  ;;  %v5261_v31 = vunpack.i.l.bf16 %v7101_v33  ;;  %v1042_v44 = vadd.f32 %v6833_v40, %v9151_v29  ;;  %v1043_v52 = vadd.f32 %v6830_v34, %v9153_v6 }
 0x12e   : > { %9150 = vst [vmem:[#allocation4_spill] sm:$0xff] %v7259_v49  ;;  %v7269_v22 = vadd.f32 %v1663_v32, %v1396_v1  ;;  %v9154_v2 = vrot.slane %v6793_v12, 2  ;;  %v9155_v26 = vrot.slane %v6889_v39, 2  ;;  %v9157_v0 = vrot.slane %v9156_v5, 2  ;;  %v9160_v1 = vld [vmem:[#allocation79_spill] sm:$0xff] }
 0x12f   : > { %v7285_v40 = vadd.f32 %v1664_v63, %v1397_v61  ;;  %v1670_v60 = vmul.f32 %v5262_v53, %v6280_v20  ;;  %v1669_v34 = vmul.f32 %v5261_v31, %v6280_v20  ;;  %v9161_v39 = vrot.slane %v9160_v1, 2  ;;  %v9164_v63 = vld [vmem:[#allocation49_spill] sm:$0xff]  ;;  %v9166_v53 = vld [vmem:[#allocation48_spill] sm:$0xff] }
 0x130   : > { %9152 = vst [vmem:[#allocation62_spill] sm:$0xff] %v7269_v22  ;;  %v1337_v50 = vsel %vm1259_vm1, %v9155_v26, %v9154_v2  ;;  %v9158_v4 = vmov %v9154_v2  ;;  %v9162_v32 = vrot.slane %v6899_v62, 2  ;;  %v5257_v12 = vunpack.i.h.bf16 %v7123_v42  ;;  %v9165_v61 = vld [vmem:[#allocation85_spill] sm:$0xff]  ;;  %v9168_v31 = vld [vmem:[#allocation84_spill] sm:$0xff] }
 0x131   : > { %v1339_v33 = vsel %vm1259_vm1, %v9158_v4, %v9157_v0  ;;  %9159 = vst [vmem:[#allocation22_spill] sm:$0xff] %v7285_v40  ;;  %v1402_v14 = vadd.f32 %v1337_v50, %v1042_v44  ;;  %v5256_v6 = vunpack.i.l.bf16 %v7123_v42  ;;  %v1040_v26 = vadd.f32 %v9165_v61, %v9164_v63  ;;  %v9167_v44 = vld [vmem:[#allocation86_spill] sm:$0xff]  ;;  %v9172_v61 = vld [vmem:[#allocation51_spill] sm:$0xff] }
 0x132   : > { %v1403_v38 = vadd.f32 %v1339_v33, %v1043_v52  ;;  %v1332_v29 = vsel %vm1259_vm1, %v9162_v32, %v9161_v39  ;;  %v1041_v50 = vadd.f32 %v9167_v44, %v9166_v53  ;;  %v9169_v52 = vrot.slane %v9168_v31, 2 }
 0x133   : > { %v7296_v2 = vadd.f32 %v1669_v34, %v1402_v14  ;;  %v9170_v5 = vmov %v9161_v39  ;;  %v1668_v4 = vmul.f32 %v5257_v12, %v6280_v20  ;;  %v1667_v42 = vmul.f32 %v5256_v6, %v6280_v20  ;;  %v7312_v14 = vpop.permute.xlu1 %5299  ;;  %v7320_v20 = vpop.permute.xlu0 %5294 }
 0x134   : > { %v1334_v62 = vsel %vm1259_vm1, %v9170_v5, %v9169_v52  ;;  %v7307_v0 = vadd.f32 %v1670_v60, %v1403_v38  ;;  %v5272_v33 = vunpack.i.h.bf16 %v7159_v51  ;;  %v1400_v34 = vadd.f32 %v1332_v29, %v1040_v26 }
 0x135   : > { %9163 = vst [vmem:[#allocation68_spill] sm:$0xff] %v7296_v2  ;;  %v1401_v39 = vadd.f32 %v1334_v62, %v1041_v50  ;;  %v5271_v32 = vunpack.i.l.bf16 %v7159_v51  ;;  %v5267_v63 = vunpack.i.h.bf16 %v7184_v30  ;;  %v5266_v53 = vunpack.i.l.bf16 %v7184_v30  ;;  %v9178_v50 = vld [vmem:[#allocation52_spill] sm:$0xff] }
 0x136   : > { %9171 = vst [vmem:[#allocation25_spill] sm:$0xff] %v7307_v0  ;;  %v2049_v1 = vmul.f32 %v5272_v33, %v9172_v61  ;;  %v5282_v60 = vunpack.i.h.bf16 %v7216_v47  ;;  %v5281_v38 = vunpack.i.l.bf16 %v7216_v47  ;;  %v1389_v12 = vadd.f32 %v7166_v59, %v7156_v27 }
 0x137   : > { %v7324_v29 = vadd.f32 %v1667_v42, %v1400_v34  ;;  %v7326_v6 = vadd.f32 %v1668_v4, %v1401_v39  ;;  %v2048_v51 = vmul.f32 %v5271_v32, %v9172_v61  ;;  %v7331_v26 = vadd.f32 %v7126_v24, %v7131_v37  ;;  %v4610_v24 = vld [vmem:[%s5862_s19 + $0xa4] sm:$0x1]  ;;  %v7350_v62 = vpop.permute.xlu1 %5309  ;;  %v4607_v34 = vld [vmem:[%s5862_s19 + $0x98] sm:$0x1] }
 0x138   : > { %v7335_v30 = vadd.f32 %v7138_v43, %v7152_v36  ;;  %v2047_v47 = vmul.f32 %v5267_v63, %v9172_v61  ;;  %v2046_v44 = vmul.f32 %v5266_v53, %v9172_v61  ;;  %v7340_v27 = vadd.f32 %v7173_v19, %v1389_v12 }
 0x139   : > { %9173 = vst [vmem:[#allocation60_spill] sm:$0xff] %v7324_v29  ;;  %9174 = vst [vmem:[#allocation40_spill] sm:$0xff] %v7326_v6  ;;  %v2145_v59 = vrot.slane %v2048_v51, 1  ;;  %v7343_v31 = vmul.f32 %v5271_v32, %v9178_v50  ;;  %v7346_v52 = vmul.f32 %v5282_v60, %v9172_v61  ;;  %v2147_v37 = vrot.slane %v2049_v1, 1 }
 0x13a   : > { %9175 = vst [vmem:[#allocation61_spill] sm:$0xff] %v7331_v26  ;;  %9176 = vst [vmem:[#allocation6_spill] sm:$0xff] %v7335_v30  ;;  %v2143_v5 = vrot.slane %v2047_v47, 1  ;;  %v2142_v43 = vrot.slane %v2046_v44, 1  ;;  %v2052_v36 = vmul.f32 %v5281_v38, %v9172_v61  ;;  %v7353_v4 = vmul.f32 %v5267_v63, %v9178_v50  ;;  %v7365_v38 = vpop.permute.xlu0 %5304  ;;  %v9179_v44 = vld [vmem:[#allocation55_spill] sm:$0xff] }
 0x13b   : > { %9177 = vst [vmem:[#allocation41_spill] sm:$0xff] %v7340_v27  ;;  %v2153_v19 = vrot.slane %v7346_v52, 1  ;;  %v5277_v42 = vunpack.i.h.bf16 %v7234_v9  ;;  %v5276_v33 = vunpack.i.l.bf16 %v7234_v9  ;;  %v3027_v53 = vunpack.c.l.bf16 %v4610_v24 }
 0x13c   : > { %v7360_v39 = vsel %vm899_vm0, %v2143_v5, %v2145_v59  ;;  %v7363_v32 = vsel %vm899_vm0, %v2142_v43, %v2143_v5  ;;  %v2152_v1 = vrot.slane %v2052_v36, 1  ;;  %v7368_v63 = vmul.f32 %v5282_v60, %v9178_v50  ;;  %v5791_v5 = vld [vmem:[%s5862_s19 + $0x9c] sm:$0xff]   ;;  %v4613_v36 = vld [vmem:[%s5862_s19 + $0xb0] sm:$0x1] }
 0x13d   : > { %v2051_v12 = vmul.f32 %v5277_v42, %v9172_v61  ;;  %v7372_v51 = vmul.f32 %v5277_v42, %v9178_v50  ;;  %v2050_v9 = vmul.f32 %v5276_v33, %v9172_v61  ;;  %v9180_v59 = vunpack.c.h.bf16 %v9179_v44 }
 0x13e   : > { %v7376_v47 = vsel %vm899_vm0, %v2152_v1, %v2153_v19  ;;  %v3024_v24 = vunpack.c.l.bf16 %v4607_v34  ;;  %v3025_v43 = vunpack.c.l.bf16 %v5791_v5  ;;  %v7384_v42 = vmul.f32 %v5276_v33, %v9178_v50  ;;  %v7390_v34 = vpop.permute.xlu1 %5319 }
 0x13f   : > { %v5588_v52 = vpack.i.bf16 %v3027_v53, %v9180_v59  ;;  %v2150_v6 = vrot.slane %v2051_v12, 1  ;;  %v2148_v29 = vrot.slane %v2050_v9, 1  ;;  %v5292_v2 = vunpack.i.h.bf16 %v7263_v58  ;;  %v4614_v53 = vld [vmem:[%s5862_s19 + $0xb4] sm:$0xff]  }
 0x140   : > { %v5583_v0 = vpack.i.bf16 %v3025_v43, %v3024_v24  ;;  %v5291_v1 = vunpack.i.l.bf16 %v7263_v58  ;;  %v5287_v44 = vunpack.i.h.bf16 %v7283_v35  ;;  %v5286_v33 = vunpack.i.l.bf16 %v7283_v35  ;;  %v7401_v43 = vpop.permute.xlu0 %5314  ;;  %v4913_v35 = vld [vmem:[%s5862_s19 + $0xa8] sm:$0xff]  }
 0x141   : > { %5589 = vperm.xlu1 %4952, %v5588_v52   ;;  %v7394_v12 = vsel %vm899_vm0, %v2147_v37, %v2148_v29  ;;  %v3030_v9 = vunpack.c.l.bf16 %v4613_v36  ;;  %v2057_v58 = vmul.f32 %v5292_v2, %v9172_v61  ;;  %v3031_v40 = vunpack.c.l.bf16 %v4614_v53 }
 0x142   : > { %5584 = vperm.xlu0 %4941, %v5583_v0   ;;  %v2056_v5 = vmul.f32 %v5291_v1, %v9172_v61  ;;  %v2055_v59 = vmul.f32 %v5287_v44, %v9172_v61  ;;  %v2054_v37 = vmul.f32 %v5286_v33, %v9172_v61  ;;  %v7408_v36 = vsel %vm899_vm0, %v2148_v29, %v2150_v6  ;;  %v7420_v6 = vpop.permute.xlu1 %5329 }
 0x143   : > { %v7411_v52 = vmul.f32 %v5292_v2, %v9178_v50  ;;  %v7414_v24 = vmul.f32 %v5291_v1, %v9178_v50  ;;  %v7417_v60 = vmul.f32 %v5286_v33, %v9178_v50  ;;  %v5598_v44 = vpack.i.bf16 %v3031_v40, %v3030_v9  ;;  %v4616_v33 = vld [vmem:[%s5862_s19 + $0xbc] sm:$0x1] }
 0x144   : > { %v2158_v0 = vrot.slane %v2056_v5, 1  ;;  %v2157_v22 = vrot.slane %v2055_v59, 1  ;;  %v2155_v49 = vrot.slane %v2054_v37, 1  ;;  %v2160_v13 = vrot.slane %v2057_v58, 1 }
 0x145   : > { %v4863_v3 = vunpack.c.l.bf16 %v4913_v35  ;;  %v4864_v54 = vunpack.c.h.bf16 %v4913_v35  ;;  %v5302_v29 = vunpack.i.h.bf16 %v7312_v14  ;;  %5599 = vperm.xlu1 %4952, %v5598_v44   ;;  %v5301_v1 = vunpack.i.l.bf16 %v7312_v14  ;;  %v7433_v35 = vpop.permute.xlu0 %5324 }
 0x146   : > { %v7423_v2 = vsel %vm899_vm0, %v2157_v22, %v2158_v0  ;;  %v7426_v5 = vsel %vm899_vm0, %v2153_v19, %v2155_v49  ;;  %v5297_v59 = vunpack.i.h.bf16 %v7320_v20  ;;  %v5296_v58 = vunpack.i.l.bf16 %v7320_v20  ;;  %v7456_v27 = vpop.permute.xlu1 %5339 }
 0x147   : > { %v5593_v9 = vpack.i.bf16 %v4864_v54, %v4863_v3  ;;  %v3032_v37 = vunpack.c.h.bf16 %v4614_v53  ;;  %v2061_v49 = vmul.f32 %v5302_v29, %v9172_v61  ;;  %v2060_v19 = vmul.f32 %v5301_v1, %v9172_v61  ;;  %v4619_v29 = vld [vmem:[%s5862_s19 + $0xc8] sm:$0x1] }
 0x148   : > { %v2059_v14 = vmul.f32 %v5297_v59, %v9172_v61  ;;  %v7440_v44 = vmul.f32 %v5301_v1, %v9178_v50  ;;  %v2058_v54 = vmul.f32 %v5296_v58, %v9172_v61  ;;  %v3033_v3 = vunpack.c.l.bf16 %v4616_v33 }
 0x149   : > { %5594 = vperm.xlu0 %4941, %v5593_v9   ;;  %v5312_v20 = vunpack.i.h.bf16 %v7350_v62  ;;  %v7445_v53 = vsel %vm899_vm0, %v2158_v0, %v2160_v13  ;;  %v2165_v40 = vrot.slane %v2060_v19, 1  ;;  %5609 = vperm.xlu1 %4952, %v9182_v16   ;;  %v4621_v9 = vld [vmem:[%s5862_s19 + $0xcc] sm:$0xff]   ;;  %v7451_v1 = vmul.f32 %v5297_v59, %v9178_v50  ;;  %v7470_v45 = vpop.permute.xlu0 %5334 }
 0x14a   : > { %9181 = vst [vmem:[#allocation24_spill] sm:$0xff] %v7440_v44  ;;  %v2163_v22 = vrot.slane %v2059_v14, 1  ;;  %v2162_v18 = vrot.slane %v2058_v54, 1  ;;  %v5603_v58 = vpack.i.bf16 %v3033_v3, %v3032_v37  ;;  %v5311_v0 = vunpack.i.l.bf16 %v7350_v62  ;;  %v4622_v14 = vld [vmem:[%s5862_s19 + $0xd4] sm:$0x1] }
 0x14b   : > { %9183 = vst [vmem:[#allocation8_spill] sm:$0xff] %v7451_v1  ;;  %v7454_v33 = vmul.f32 %v5312_v20, %v9172_v61  ;;  %v5307_v19 = vunpack.i.h.bf16 %v7365_v38  ;;  %v5306_v16 = vunpack.i.l.bf16 %v7365_v38  ;;  %v2167_v59 = vrot.slane %v2061_v49, 1  ;;  %v4627_v44 = vld [vmem:[%s5862_s19 + $0x3c] sm:$0xe] }
 0x14c   : > { %v7459_v13 = vsel %vm899_vm0, %v2163_v22, %v2165_v40  ;;  %v7468_v37 = vsel %vm899_vm0, %v2162_v18, %v2163_v22  ;;  %v3038_v3 = vunpack.c.h.bf16 %v4621_v9  ;;  %v7474_v62 = vmul.f32 %v5312_v20, %v9178_v50 }
 0x14d   : > { %9184 = vst [vmem:[#allocation28_spill] sm:$0xff] %v7459_v13  ;;  %9185 = vst [vmem:[#allocation69_spill] sm:$0xff] %v7468_v37  ;;  %5604 = vperm.xlu0 %4941, %v5603_v58   ;;  %v2173_v40 = vrot.slane %v7454_v33, 1  ;;  %v2064_v38 = vmul.f32 %v5311_v0, %v9172_v61  ;;  %v2062_v49 = vmul.f32 %v5306_v16, %v9172_v61  ;;  %v3039_v30 = vunpack.c.l.bf16 %v4622_v14  ;;  %v7489_v13 = vpop.permute.xlu1 %5349 }
 0x14e   : > { %9186 = vst [vmem:[#allocation27_spill] sm:$0xff] %v7474_v62  ;;  %v2063_v54 = vmul.f32 %v5307_v19, %v9172_v61  ;;  %v3036_v18 = vunpack.c.l.bf16 %v4619_v29  ;;  %v3037_v22 = vunpack.c.l.bf16 %v4621_v9  ;;  %v7481_v26 = vmul.f32 %v5307_v19, %v9178_v50  ;;  %v4624_v29 = vld [vmem:[%s5862_s19 + $0x18] sm:$0xe] }
 0x14f   : > { %v2172_v48 = vrot.slane %v2064_v38, 1  ;;  %v2168_v33 = vrot.slane %v2062_v49, 1  ;;  %v7484_v20 = vmul.f32 %v5306_v16, %v9178_v50  ;;  %v5618_v15 = vpack.i.bf16 %v3039_v30, %v3038_v3  ;;  %v7502_v49 = vpop.permute.xlu0 %5344 }
 0x150   : > { %v5613_v56 = vpack.i.bf16 %v3037_v22, %v3036_v18  ;;  %v5322_v0 = vunpack.i.h.bf16 %v7390_v34  ;;  %v5321_v16 = vunpack.i.l.bf16 %v7390_v34  ;;  %v2170_v30 = vrot.slane %v2063_v54, 1  ;;  %v4625_v34 = vld [vmem:[%s5862_s19 + $0x24] sm:$0xe] }
 0x151   : > { %v7493_v9 = vsel %vm899_vm0, %v2172_v48, %v2173_v40  ;;  %v7496_v19 = vsel %vm899_vm0, %v2167_v59, %v2168_v33  ;;  %5619 = vperm.xlu1 %4952, %v5618_v15   ;;  %v5317_v3 = vunpack.i.h.bf16 %v7401_v43  ;;  %v5316_v38 = vunpack.i.l.bf16 %v7401_v43  ;;  %v7517_v37 = vpop.permute.xlu1 %5359 }
 0x152   : > { %9187 = vst [vmem:[#allocation9_spill] sm:$0xff] %v7493_v9  ;;  %5614 = vperm.xlu0 %4941, %v5613_v56   ;;  %v2069_v14 = vmul.f32 %v5322_v0, %v9172_v61  ;;  %v7505_v18 = vmul.f32 %v5322_v0, %v9178_v50  ;;  %v2068_v48 = vmul.f32 %v5321_v16, %v9172_v61  ;;  %v3545_v59 = vunpack.c.l.bf16 %v4626_v7  ;;  %v4631_v56 = vld [vmem:[%s5862_s19 + $0x6c] sm:$0xe] }
 0x153   : > { %v3546_v22 = vunpack.c.l.bf16 %v4627_v44  ;;  %v2067_v54 = vmul.f32 %v5317_v3, %v9172_v61  ;;  %v2066_v43 = vmul.f32 %v5316_v38, %v9172_v61  ;;  %v7515_v0 = vmul.f32 %v5321_v16, %v9178_v50  ;;  %v4630_v16 = vld [vmem:[%s5862_s19 + $0x60] sm:$0xe] }
 0x154   : > { %9188 = vst [vmem:[#allocation66_spill] sm:$0xff] %v7505_v18  ;;  %v2180_v58 = vrot.slane %v2069_v14, 1  ;;  %v2178_v9 = vrot.slane %v2068_v48, 1  ;;  %v3543_v1 = vunpack.c.l.bf16 %v4624_v29  ;;  %v3544_v11 = vunpack.c.l.bf16 %v4625_v34 }
 0x155   : > { %9189 = vst [vmem:[#allocation50_spill] sm:$0xff] %v7515_v0  ;;  %v5628_v62 = vpack.i.bf16 %v3546_v22, %v3545_v59  ;;  %v2177_v7 = vrot.slane %v2067_v54, 1  ;;  %v2175_v44 = vrot.slane %v2066_v43, 1  ;;  %v7520_v15 = vsel %vm899_vm0, %v2168_v33, %v2170_v30  ;;  %v7534_v30 = vpop.permute.xlu0 %5354  ;;  %v4628_v43 = vld [vmem:[%s5862_s19 + $0x48] sm:$0xe]  ;;  %v7557_v0 = vpop.permute.xlu1 %5369 }
 0x156   : > { %v5332_v14 = vunpack.i.h.bf16 %v7420_v6  ;;  %v5331_v48 = vunpack.i.l.bf16 %v7420_v6  ;;  %v5623_v22 = vpack.i.bf16 %v3544_v11, %v3543_v1  ;;  %v5327_v33 = vunpack.i.h.bf16 %v7433_v35 }
 0x157   : > { %5629 = vperm.xlu1 %4952, %v5628_v62   ;;  %v7528_v59 = vsel %vm899_vm0, %v2177_v7, %v2178_v9  ;;  %v7531_v29 = vsel %vm899_vm0, %v2173_v40, %v2175_v44  ;;  %v7538_v34 = vmul.f32 %v5316_v38, %v9178_v50  ;;  %v5326_v54 = vunpack.i.l.bf16 %v7433_v35  ;;  %v4629_v44 = vld [vmem:[%s5862_s19 + $0x54] sm:$0xe] }
 0x158   : > { %9190 = vst [vmem:[#allocation5_spill] sm:$0xff] %v7528_v59  ;;  %9191 = vst [vmem:[#allocation59_spill] sm:$0xff] %v7531_v29  ;;  %v2072_v6 = vmul.f32 %v5331_v48, %v9172_v61  ;;  %v7544_v7 = vsel %vm899_vm0, %v2178_v9, %v2180_v58  ;;  %5624 = vperm.xlu0 %4941, %v5623_v22   ;;  %v2071_v11 = vmul.f32 %v5327_v33, %v9172_v61  ;;  %v4634_v22 = vld [vmem:[%s5862_s19 + $0x90] sm:$0xe] }
 0x159   : > { %9192 = vst [vmem:[#allocation65_spill] sm:$0xff] %v7538_v34  ;;  %9193 = vst [vmem:[#allocation30_spill] sm:$0xff] %v7544_v7  ;;  %v3549_v1 = vunpack.c.l.bf16 %v4630_v16  ;;  %v3550_v40 = vunpack.c.l.bf16 %v4631_v56  ;;  %v2073_v3 = vmul.f32 %v5332_v14, %v9172_v61  ;;  %v7550_v38 = vmul.f32 %v5331_v48, %v9178_v50  ;;  %v4632_v34 = vld [vmem:[%s5862_s19 + $0x78] sm:$0xe] }
 0x15a   : > { %v2185_v62 = vrot.slane %v2072_v6, 1  ;;  %v2070_v29 = vmul.f32 %v5326_v54, %v9172_v61  ;;  %v2183_v35 = vrot.slane %v2071_v11, 1  ;;  %v7554_v18 = vmul.f32 %v5327_v33, %v9178_v50  ;;  %v4635_v11 = vld [vmem:[%s5862_s19 + $0x9c] sm:$0xe] }
 0x15b   : > { %9194 = vst [vmem:[#allocation63_spill] sm:$0xff] %v7550_v38  ;;  %v5638_v58 = vpack.i.bf16 %v3550_v40, %v3549_v1  ;;  %v3547_v9 = vunpack.c.l.bf16 %v4628_v43  ;;  %v3548_v16 = vunpack.c.l.bf16 %v4629_v44  ;;  %v5342_v14 = vunpack.i.h.bf16 %v7456_v27  ;;  %v7568_v1 = vpop.permute.xlu0 %5364 }
 0x15c   : > { %9195 = vst [vmem:[#allocation29_spill] sm:$0xff] %v7554_v18  ;;  %v2182_v56 = vrot.slane %v2070_v29, 1  ;;  %v5341_v6 = vunpack.i.l.bf16 %v7456_v27  ;;  %v7563_v54 = vsel %vm899_vm0, %v2183_v35, %v2185_v62  ;;  %v5337_v33 = vunpack.i.h.bf16 %v7470_v45  ;;  %v4639_v18 = vld [vmem:[%s5862_s19 + $0xcc] sm:$0xe] }
 0x15d   : > { %9196 = vst [vmem:[#allocation71_spill] sm:$0xff] %v7563_v54  ;;  %5639 = vperm.xlu1 %4952, %v5638_v58   ;;  %v5336_v43 = vunpack.i.l.bf16 %v7470_v45  ;;  %v5633_v40 = vpack.i.bf16 %v3548_v16, %v3547_v9  ;;  %v7574_v27 = vmul.f32 %v5342_v14, %v9172_v61  ;;  %v3553_v44 = vunpack.c.l.bf16 %v4634_v22  ;;  %v4633_v45 = vld [vmem:[%s5862_s19 + $0x84] sm:$0xe] }
 0x15e   : > { %v7571_v29 = vsel %vm899_vm0, %v2182_v56, %v2183_v35  ;;  %v2187_v48 = vrot.slane %v2073_v3, 1  ;;  %v2076_v62 = vmul.f32 %v5341_v6, %v9172_v61  ;;  %v2075_v58 = vmul.f32 %v5337_v33, %v9172_v61 }
 0x15f   : > { %9197 = vst [vmem:[#allocation53_spill] sm:$0xff] %v7571_v29  ;;  %v2074_v54 = vmul.f32 %v5336_v43, %v9172_v61  ;;  %5634 = vperm.xlu0 %4941, %v5633_v40   ;;  %v2193_v9 = vrot.slane %v7574_v27, 1  ;;  %v3554_v56 = vunpack.c.l.bf16 %v4635_v11  ;;  %v7585_v3 = vmul.f32 %v5342_v14, %v9178_v50  ;;  %v7590_v29 = vpop.permute.xlu1 %5379  ;;  %v4638_v40 = vld [vmem:[%s5862_s19 + $0xc0] sm:$0xe] }
 0x160   : > { %v2192_v22 = vrot.slane %v2076_v62, 1  ;;  %v7588_v16 = vmul.f32 %v5337_v33, %v9178_v50  ;;  %v7593_v59 = vmul.f32 %v5336_v43, %v9178_v50  ;;  %v3551_v38 = vunpack.c.l.bf16 %v4632_v34 }
 0x161   : > { %9198 = vst [vmem:[#allocation32_spill] sm:$0xff] %v7585_v3  ;;  %v2188_v6 = vrot.slane %v2074_v54, 1  ;;  %v5648_v7 = vpack.i.bf16 %v3554_v56, %v3553_v44  ;;  %v3552_v35 = vunpack.c.l.bf16 %v4633_v45  ;;  %v2190_v14 = vrot.slane %v2075_v58, 1  ;;  %v7604_v54 = vpop.permute.xlu0 %5374 }
 0x162   : > { %9199 = vst [vmem:[#allocation14_spill] sm:$0xff] %v7588_v16  ;;  %v7598_v11 = vsel %vm899_vm0, %v2192_v22, %v2193_v9  ;;  %v5352_v33 = vunpack.i.h.bf16 %v7489_v13  ;;  %v5351_v34 = vunpack.i.l.bf16 %v7489_v13  ;;  %v5347_v44 = vunpack.i.h.bf16 %v7502_v49  ;;  %v4636_v13 = vld [vmem:[%s5862_s19 + $0xa8] sm:$0xe] }
 0x163   : > { %9200 = vst [vmem:[#allocation54_spill] sm:$0xff] %v7598_v11  ;;  %v7601_v27 = vsel %vm899_vm0, %v2187_v48, %v2188_v6  ;;  %5649 = vperm.xlu1 %4952, %v5648_v7   ;;  %v5643_v43 = vpack.i.bf16 %v3552_v35, %v3551_v38  ;;  %v5346_v62 = vunpack.i.l.bf16 %v7502_v49  ;;  %v3557_v48 = vunpack.c.l.bf16 %v4638_v40  ;;  %v4637_v35 = vld [vmem:[%s5862_s19 + $0xb4] sm:$0xe]  ;;  %v7624_v40 = vpop.permute.xlu1 %5389  ;;  %s4676_s19 = sshll.u32 %s9386_s12, 5 }
 0x164   : > { %9201 = vst [vmem:[#allocation67_spill] sm:$0xff] %v7601_v27  ;;  %v2081_v58 = vmul.f32 %v5352_v33, %v9172_v61  ;;  %v3558_v56 = vunpack.c.l.bf16 %v4639_v18  ;;  %v2080_v11 = vmul.f32 %v5351_v34, %v9172_v61  ;;  %v2079_v7 = vmul.f32 %v5347_v44, %v9172_v61  ;;  %s8755_s12 = scalar_lea.vmem %s8801_s3, %s4676_s19 }
 0x165   : > { %5644 = vperm.xlu0 %4941, %v5643_v43   ;;  %v2078_v38 = vmul.f32 %v5346_v62, %v9172_v61  ;;  %v7618_v27 = vsel %vm899_vm0, %v2188_v6, %v2190_v14  ;;  %v7622_v45 = vmul.f32 %v5352_v33, %v9178_v50  ;;  %v7627_v22 = vmul.f32 %v5351_v34, %v9178_v50  ;;  %v7632_v49 = vpop.permute.xlu0 %5384 }
 0x166   : > { %v5658_v18 = vpack.i.bf16 %v3558_v56, %v3557_v48  ;;  %v2198_v43 = vrot.slane %v2080_v11, 1  ;;  %v2197_v44 = vrot.slane %v2079_v7, 1  ;;  %v2200_v16 = vrot.slane %v2081_v58, 1 }
 0x167   : > { %9202 = vst [vmem:[#allocation31_spill] sm:$0xff] %v7622_v45  ;;  %9203 = vst [vmem:[#allocation34_spill] sm:$0xff] %v7627_v22  ;;  %v2195_v3 = vrot.slane %v2078_v38, 1  ;;  %v7630_v55 = vmul.f32 %v5346_v62, %v9178_v50  ;;  %v3555_v6 = vunpack.c.l.bf16 %v4636_v13  ;;  %v3556_v14 = vunpack.c.l.bf16 %v4637_v35 }
 0x168   : > { %5659 = vperm.xlu1 %4952, %v5658_v18   ;;  %v7635_v33 = vsel %vm899_vm0, %v2197_v44, %v2198_v43  ;;  %v5362_v11 = vunpack.i.h.bf16 %v7517_v37  ;;  %v5361_v34 = vunpack.i.l.bf16 %v7517_v37  ;;  %v5357_v62 = vunpack.i.h.bf16 %v7534_v30 }
 0x169   : > { %9204 = vst [vmem:[#allocation72_spill] sm:$0xff] %v7630_v55  ;;  %v7638_v48 = vsel %vm899_vm0, %v2193_v9, %v2195_v3  ;;  %v5653_v56 = vpack.i.bf16 %v3556_v14, %v3555_v6  ;;  %v5356_v7 = vunpack.i.l.bf16 %v7534_v30  ;;  %v5372_v35 = vunpack.i.h.bf16 %v7557_v0  ;;  %v7655_v6 = vpop.permute.xlu1 %5399  ;;  %v7666_v37 = vpop.permute.xlu0 %5394 }
 0x16a   : > { %9205 = vst [vmem:[#allocation73_spill] sm:$0xff] %v7638_v48  ;;  %v2084_v13 = vmul.f32 %v5361_v34, %v9172_v61  ;;  %v5371_v9 = vunpack.i.l.bf16 %v7557_v0  ;;  %v7650_v3 = vsel %vm899_vm0, %v2198_v43, %v2200_v16  ;;  %v2083_v18 = vmul.f32 %v5357_v62, %v9172_v61 }
 0x16b   : > { %9206 = vst [vmem:[#allocation70_spill] sm:$0xff] %v7650_v3  ;;  %5654 = vperm.xlu0 %4941, %v5653_v56   ;;  %v2082_v44 = vmul.f32 %v5356_v7, %v9172_v61  ;;  %v2085_v30 = vmul.f32 %v5362_v11, %v9172_v61  ;;  %v7659_v58 = vmul.f32 %v5361_v34, %v9178_v50  ;;  %v5367_v11 = vunpack.i.h.bf16 %v7568_v1 }
 0x16c   : > { %v2205_v14 = vrot.slane %v2084_v13, 1  ;;  %v2089_v0 = vmul.f32 %v5372_v35, %v9172_v61  ;;  %v2203_v38 = vrot.slane %v2083_v18, 1  ;;  %v7663_v16 = vmul.f32 %v5357_v62, %v9178_v50 }
 0x16d   : > { %9207 = vst [vmem:[#allocation33_spill] sm:$0xff] %v7659_v58  ;;  %v2202_v43 = vrot.slane %v2082_v44, 1  ;;  %v2088_v56 = vmul.f32 %v5371_v9, %v9172_v61  ;;  %v7669_v55 = vmul.f32 %v5372_v35, %v9178_v50  ;;  %v5366_v34 = vunpack.i.l.bf16 %v7568_v1 }
 0x16e   : > { %9208 = vst [vmem:[#allocation11_spill] sm:$0xff] %v7663_v16  ;;  %v2213_v7 = vrot.slane %v2089_v0, 1  ;;  %v7674_v13 = vsel %vm899_vm0, %v2203_v38, %v2205_v14  ;;  %v5382_v44 = vunpack.i.h.bf16 %v7590_v29  ;;  %v2207_v9 = vrot.slane %v2085_v30, 1  ;;  %v5405_v16 = vpop.permute.xlu0 %5404 }
 0x16f   : > { %9209 = vst [vmem:[#allocation10_spill] sm:$0xff] %v7669_v55  ;;  %9210 = vst [vmem:[#allocation37_spill] sm:$0xff] %v7674_v13  ;;  %v7677_v18 = vsel %vm899_vm0, %v2202_v43, %v2203_v38  ;;  %v2212_v62 = vrot.slane %v2088_v56, 1  ;;  %v2087_v0 = vmul.f32 %v5367_v11, %v9172_v61  ;;  %v2086_v35 = vmul.f32 %v5366_v34, %v9172_v61  ;;  %v5410_v43 = vpop.permute.xlu1 %5409 }
 0x170   : > { %9211 = vst [vmem:[#allocation35_spill] sm:$0xff] %v7677_v18  ;;  %v7685_v1 = vmul.f32 %v5367_v11, %v9178_v50  ;;  %v2093_v14 = vmul.f32 %v5382_v44, %v9172_v61  ;;  %v5381_v38 = vunpack.i.l.bf16 %v7590_v29  ;;  %v7694_v58 = vmul.f32 %v5366_v34, %v9178_v50 }
 0x171   : > { %v7691_v30 = vsel %vm899_vm0, %v2212_v62, %v2213_v7  ;;  %v2208_v48 = vrot.slane %v2086_v35, 1  ;;  %v2210_v13 = vrot.slane %v2087_v0, 1  ;;  %v7697_v45 = vmul.f32 %v5382_v44, %v9178_v50 }
 0x172   : > { %9212 = vst [vmem:[#allocation15_spill] sm:$0xff] %v7685_v1  ;;  %9213 = vst [vmem:[#allocation75_spill] sm:$0xff] %v7691_v30  ;;  %v2220_v18 = vrot.slane %v2093_v14, 1  ;;  %v2092_v11 = vmul.f32 %v5381_v38, %v9172_v61  ;;  %v7704_v56 = vmul.f32 %v5381_v38, %v9178_v50  ;;  %v5377_v62 = vunpack.i.h.bf16 %v7604_v54 }
 0x173   : > { %9214 = vst [vmem:[#allocation74_spill] sm:$0xff] %v7694_v58  ;;  %9215 = vst [vmem:[#allocation12_spill] sm:$0xff] %v7697_v45  ;;  %v7701_v29 = vsel %vm899_vm0, %v2207_v9, %v2208_v48  ;;  %v5376_v35 = vunpack.i.l.bf16 %v7604_v54  ;;  %v5392_v14 = vunpack.i.h.bf16 %v7624_v40  ;;  %v5391_v44 = vunpack.i.l.bf16 %v7624_v40  ;;  %v5420_v1 = vpop.permute.xlu1 %5419  ;;  %v5415_v54 = vpop.permute.xlu0 %5414 }
 0x174   : > { %9216 = vst [vmem:[#allocation39_spill] sm:$0xff] %v7701_v29  ;;  %9217 = vst [vmem:[#allocation13_spill] sm:$0xff] %v7704_v56  ;;  %v2218_v0 = vrot.slane %v2092_v11, 1  ;;  %v2091_v55 = vmul.f32 %v5377_v62, %v9172_v61  ;;  %v5387_v38 = vunpack.i.h.bf16 %v7632_v49  ;;  %v7716_v29 = vsel %vm899_vm0, %v2208_v48, %v2210_v13 }
 0x175   : > { %v2090_v9 = vmul.f32 %v5376_v35, %v9172_v61  ;;  %9218 = vst [vmem:[#allocation38_spill] sm:$0xff] %v7716_v29  ;;  %v7720_v34 = vmul.f32 %v5376_v35, %v9178_v50  ;;  %v5386_v11 = vunpack.i.l.bf16 %v7632_v49  ;;  %v7728_v58 = vmul.f32 %v5392_v14, %v9178_v50 }
 0x176   : > { %v7724_v40 = vsel %vm899_vm0, %v2218_v0, %v2220_v18  ;;  %v2217_v30 = vrot.slane %v2091_v55, 1  ;;  %v7731_v48 = vmul.f32 %v5391_v44, %v9178_v50  ;;  %v2408_v13 = vmul.f32 %v5387_v38, %v9178_v50 }
 0x177   : > { %9219 = vst [vmem:[#allocation78_spill] sm:$0xff] %v7720_v34  ;;  %9220 = vst [vmem:[#allocation76_spill] sm:$0xff] %v7724_v40  ;;  %v2215_v61 = vrot.slane %v2090_v9, 1  ;;  %v5402_v35 = vunpack.i.h.bf16 %v7655_v6  ;;  %v2405_v55 = vmul.f32 %v5386_v11, %v9178_v50  ;;  %v5401_v9 = vunpack.i.l.bf16 %v7655_v6  ;;  %v5430_v14 = vpop.permute.xlu1 %5429 }
 0x178   : > { %v7736_v49 = vsel %vm899_vm0, %v2217_v30, %v2218_v0  ;;  %v5397_v38 = vunpack.i.h.bf16 %v7666_v37  ;;  %v5396_v62 = vunpack.i.l.bf16 %v7666_v37  ;;  %v5412_v30 = vunpack.i.h.bf16 %v5410_v43 }
 0x179   : > { %9221 = vst [vmem:[#allocation43_spill] sm:$0xff] %v7736_v49  ;;  %v7739_v18 = vsel %vm899_vm0, %v2213_v7, %v2215_v61  ;;  %v7745_v44 = vmul.f32 %v5402_v35, %v9178_v50  ;;  %v7750_v45 = vmul.f32 %v5401_v9, %v9178_v50  ;;  %v5411_v0 = vunpack.i.l.bf16 %v5410_v43 }
 0x17a   : > { %9222 = vst [vmem:[#allocation42_spill] sm:$0xff] %v7739_v18  ;;  %v5407_v7 = vunpack.i.h.bf16 %v5405_v16  ;;  %v2516_v61 = vrot.slane %v7728_v58, 2  ;;  %v7754_v11 = vmul.f32 %v5397_v38, %v9178_v50  ;;  %v7757_v6 = vmul.f32 %v5396_v62, %v9178_v50  ;;  %v5425_v62 = vpop.permute.xlu0 %5424 }
 0x17b   : > { %v5406_v35 = vunpack.i.l.bf16 %v5405_v16  ;;  %v2506_v18 = vrot.slane %v2408_v13, 2  ;;  %v2501_v37 = vrot.slane %v2405_v55, 2  ;;  %v7761_v9 = vmul.f32 %v5412_v30, %v9178_v50  ;;  %v4574_v16 = vld [vmem:[%s8799_s1 + $0x6] sm:$0x1] }
 0x17c   : > { %v7765_v56 = vmul.f32 %v5411_v0, %v9178_v50  ;;  %v7768_v58 = vmul.f32 %v5407_v7, %v9178_v50  ;;  %v5422_v38 = vunpack.i.h.bf16 %v5420_v1  ;;  %v5421_v34 = vunpack.i.l.bf16 %v5420_v1 }
 0x17d   : > { %9223 = vst [vmem:[#allocation81_spill] sm:$0xff] %v7761_v9  ;;  %v7778_v0 = vmul.f32 %v5406_v35, %v9178_v50  ;;  %v5417_v40 = vunpack.i.h.bf16 %v5415_v54  ;;  %v5416_v29 = vunpack.i.l.bf16 %v5415_v54  ;;  %v2715_v22 = vunpack.c.l.bf16 %v4574_v16  ;;  %v5440_v35 = vpop.permute.xlu1 %5439 }
 0x17e   : > { %v7781_v7 = vmul.f32 %v5422_v38, %v9178_v50  ;;  %v7784_v49 = vmul.f32 %v5421_v34, %v9178_v50  ;;  %v5431_v13 = vunpack.i.l.bf16 %v5430_v14  ;;  %v5432_v1 = vunpack.i.h.bf16 %v5430_v14  ;;  %v9224_v38 = vld [vmem:[#allocation3_spill] sm:$0xff] }
 0x17f   : > { %v2256_v43 = vadd.f32 %v7394_v12, %v6938_v25  ;;  %v7791_v9 = vmul.f32 %v5417_v40, %v9178_v50  ;;  %v7794_v3 = vrot.slane %v2715_v22, %v9224_v38  ;;  %v2257_v34 = vadd.f32 %v7408_v36, %v6984_v23  ;;  %v5435_v22 = vpop.permute.xlu0 %5434 }
 0x180   : > { %v9225_v54 = vrot.slane %v7384_v42, 2  ;;  %v2541_v55 = vrot.slane %v7778_v0, 2  ;;  %v9226_v25 = vrot.slane %v7372_v51, 2  ;;  %v2571_v38 = vrot.slane %v7784_v49, 2 }
 0x181   : > { %v7810_v23 = vmul.f32 %v5416_v29, %v9178_v50  ;;  %v2254_v14 = vadd.f32 %v7363_v32, %v6961_v8  ;;  %v2255_v51 = vadd.f32 %v7360_v39, %v6994_v46  ;;  %v9228_v42 = vrot.slane %v7353_v4, 2  ;;  %v5450_v39 = vpop.permute.xlu1 %5449 }
 0x182   : > { %v2508_v16 = vsel %vm1259_vm1, %v2506_v18, %v9225_v54  ;;  %v9227_v12 = vmov %v9225_v54  ;;  %v2882_v18 = vmul.f32 %v5431_v13, %v7794_v3  ;;  %v5426_v54 = vunpack.i.l.bf16 %v5425_v62 }
 0x183   : > { %v2510_v40 = vsel %vm1259_vm1, %v9227_v12, %v9226_v25  ;;  %v2615_v30 = vadd.f32 %v2508_v16, %v2256_v43  ;;  %v2503_v43 = vsel %vm1259_vm1, %v2501_v37, %v9228_v42  ;;  %v2566_v16 = vrot.slane %v7791_v9, 2  ;;  %v9321_v9 = vld [vmem:[#allocation37_spill] sm:$0xff] }
 0x184   : > { %v2616_v36 = vadd.f32 %v2510_v40, %v2257_v34  ;;  %v2883_v25 = vmul.f32 %v5432_v1, %v7794_v3  ;;  %v9229_v29 = vrot.slane %v7343_v31, 2  ;;  %v9230_v13 = vmov %v9228_v42  ;;  %v5445_v42 = vpop.permute.xlu0 %5444 }
 0x185   : > { %v7822_v50 = vadd.f32 %v2882_v18, %v2615_v30  ;;  %v5427_v8 = vunpack.i.h.bf16 %v5425_v62  ;;  %v2613_v32 = vadd.f32 %v2503_v43, %v2254_v14  ;;  %v2880_v46 = vmul.f32 %v5426_v54, %v7794_v3 }
 0x186   : > { %v2505_v34 = vsel %vm1259_vm1, %v9230_v13, %v9229_v29  ;;  %v5441_v40 = vunpack.i.l.bf16 %v5440_v35  ;;  %v2260_v37 = vadd.f32 %v7423_v2, %v6991_v57  ;;  %v2261_v30 = vadd.f32 %v7445_v53, %v7007_v17 }
 0x187   : > { %v2614_v12 = vadd.f32 %v2505_v34, %v2255_v51  ;;  %v9231_v1 = vrot.slane %v7414_v24, 2  ;;  %v2561_v4 = vrot.slane %v7810_v23, 2  ;;  %v7838_v18 = vadd.f32 %v2880_v46, %v2613_v32 }
 0x188   : > { %v5442_v62 = vunpack.i.h.bf16 %v5440_v35  ;;  %v9232_v14 = vrot.slane %v7411_v52, 2  ;;  %v2886_v17 = vmul.f32 %v5441_v40, %v7794_v3  ;;  %v9234_v53 = vrot.slane %v7368_v63, 2 }
 0x189   : > { %v2518_v31 = vsel %vm1259_vm1, %v2516_v61, %v9231_v1  ;;  %v9233_v54 = vmov %v9231_v1  ;;  %v9235_v61 = vrot.slane %v7731_v48, 2  ;;  %v2881_v29 = vmul.f32 %v5427_v8, %v7794_v3 }
 0x18a   : > { %v2520_v51 = vsel %vm1259_vm1, %v9233_v54, %v9232_v14  ;;  %v2619_v57 = vadd.f32 %v2518_v31, %v2260_v37  ;;  %v5436_v35 = vunpack.i.l.bf16 %v5435_v22  ;;  %v2258_v52 = vadd.f32 %v7376_v47, %v7022_v41  ;;  %v5460_v47 = vpop.permute.xlu1 %5459 }
 0x18b   : > { %v2620_v2 = vadd.f32 %v2520_v51, %v2261_v30  ;;  %v2513_v43 = vsel %vm1259_vm1, %v9235_v61, %v9234_v53  ;;  %v2259_v24 = vadd.f32 %v7426_v5, %v7046_v21  ;;  %v7856_v13 = vadd.f32 %v2883_v25, %v2616_v36  ;;  %v9242_v51 = vld [vmem:[#allocation21_spill] sm:$0xff] }
 0x18c   : > { %v7858_v34 = vadd.f32 %v2886_v17, %v2619_v57  ;;  %v5437_v32 = vunpack.i.h.bf16 %v5435_v22  ;;  %v9236_v46 = vrot.slane %v7417_v60, 2  ;;  %v9237_v48 = vmov %v9234_v53  ;;  %v9243_v57 = vld [vmem:[#allocation69_spill] sm:$0xff]  ;;  %v9244_v17 = vld [vmem:[#allocation16_spill] sm:$0xff] }
 0x18d   : > { %v2887_v8 = vmul.f32 %v5442_v62, %v7794_v3  ;;  %v2617_v37 = vadd.f32 %v2513_v43, %v2258_v52  ;;  %v2884_v41 = vmul.f32 %v5436_v35, %v7794_v3  ;;  %v5452_v1 = vunpack.i.h.bf16 %v5450_v39  ;;  %v9245_v53 = vld [vmem:[#allocation28_spill] sm:$0xff] }
 0x18e   : > { %v2515_v40 = vsel %vm1259_vm1, %v9237_v48, %v9236_v46  ;;  %v5451_v21 = vunpack.i.l.bf16 %v5450_v39  ;;  %v2264_v5 = vadd.f32 %v7496_v19, %v7038_v10  ;;  %v2265_v22 = vadd.f32 %v7520_v15, %v7070_v28  ;;  %v7885_v10 = vpop.permute.xlu0 %5454 }
 0x18f   : > { %v2618_v30 = vadd.f32 %v2515_v40, %v2259_v24  ;;  %v7871_v60 = vadd.f32 %v2881_v29, %v2614_v12  ;;  %v7873_v63 = vadd.f32 %v2884_v41, %v2617_v37  ;;  %v9238_v36 = vrot.slane %v7484_v20, 2 }
 0x190   : > { %v9239_v25 = vrot.slane %v7754_v11, 2  ;;  %v9240_v62 = vrot.slane %v7481_v26, 2  ;;  %v2885_v28 = vmul.f32 %v5437_v32, %v7794_v3  ;;  %v2890_v12 = vmul.f32 %v5451_v21, %v7794_v3  ;;  %v9246_v26 = vld [vmem:[#allocation8_spill] sm:$0xff] }
 0x191   : > { %v9241_v39 = vmov %v9238_v36  ;;  %v5446_v54 = vunpack.i.l.bf16 %v5445_v42  ;;  %v2262_v11 = vadd.f32 %v9243_v57, %v9242_v51  ;;  %v2263_v61 = vadd.f32 %v9245_v53, %v9244_v17  ;;  %v9249_v32 = vld [vmem:[#allocation24_spill] sm:$0xff] }
 0x192   : > { %v2528_v31 = vsel %vm1259_vm1, %v9239_v25, %v9238_v36  ;;  %v2530_v14 = vsel %vm1259_vm1, %v9241_v39, %v9240_v62  ;;  %v9247_v43 = vrot.slane %v9246_v26, 2  ;;  %v9248_v20 = vrot.slane %v7757_v6, 2  ;;  %v9255_v25 = vld [vmem:[#allocation30_spill] sm:$0xff]  ;;  %v5465_v53 = vpop.permute.xlu0 %5464 }
 0x193   : > { %v2623_v19 = vadd.f32 %v2528_v31, %v2264_v5  ;;  %v2624_v15 = vadd.f32 %v2530_v14, %v2265_v22  ;;  %v7898_v35 = vadd.f32 %v2887_v8, %v2620_v2  ;;  %v2891_v52 = vmul.f32 %v5452_v1, %v7794_v3  ;;  %v5470_v5 = vpop.permute.xlu1 %5469  ;;  %v9252_v2 = vld [vmem:[#allocation26_spill] sm:$0xff]  ;;  %v9253_v8 = vld [vmem:[#allocation5_spill] sm:$0xff]  ;;  %v9254_v1 = vld [vmem:[#allocation20_spill] sm:$0xff] }
 0x194   : > { %v2523_v29 = vsel %vm1259_vm1, %v9248_v20, %v9247_v43  ;;  %v9250_v46 = vrot.slane %v9249_v32, 2  ;;  %v9251_v48 = vmov %v9247_v43  ;;  %v5447_v37 = vunpack.i.h.bf16 %v5445_v42  ;;  %v9256_v62 = vld [vmem:[#allocation50_spill] sm:$0xff]  ;;  %v9265_v32 = vld [vmem:[#allocation57_spill] sm:$0xff] }
 0x195   : > { %v7901_v24 = vadd.f32 %v2890_v12, %v2623_v19  ;;  %v2621_v41 = vadd.f32 %v2523_v29, %v2262_v11  ;;  %v2888_v6 = vmul.f32 %v5446_v54, %v7794_v3  ;;  %v5461_v22 = vunpack.i.l.bf16 %v5460_v47  ;;  %v9259_v54 = vld [vmem:[#allocation66_spill] sm:$0xff] }
 0x196   : > { %v2525_v40 = vsel %vm1259_vm1, %v9251_v48, %v9250_v46  ;;  %v2268_v36 = vadd.f32 %v9253_v8, %v9252_v2  ;;  %v2269_v31 = vadd.f32 %v9255_v25, %v9254_v1  ;;  %v9257_v39 = vrot.slane %v9256_v62, 2  ;;  %v9266_v46 = vld [vmem:[#allocation9_spill] sm:$0xff] }
 0x197   : > { %v7908_v21 = vadd.f32 %v2525_v40, %v2263_v61  ;;  %v9258_v14 = vrot.slane %v7745_v44, 2  ;;  %v7920_v42 = vadd.f32 %v2885_v28, %v2618_v30  ;;  %v7922_v12 = vadd.f32 %v2888_v6, %v2621_v41  ;;  %v9262_v44 = vld [vmem:[#allocation27_spill] sm:$0xff]  ;;  %v9267_v40 = vld [vmem:[#allocation61_spill] sm:$0xff] }
 0x198   : > { %v5462_v51 = vunpack.i.h.bf16 %v5460_v47  ;;  %v9260_v57 = vrot.slane %v9259_v54, 2  ;;  %v9261_v11 = vmov %v9257_v39  ;;  %v2894_v43 = vmul.f32 %v5461_v22, %v7794_v3  ;;  %v9268_v41 = vld [vmem:[#allocation59_spill] sm:$0xff]  ;;  %v9269_v8 = vld [vmem:[#allocation65_spill] sm:$0xff] }
 0x199   : > { %v2538_v19 = vsel %vm1259_vm1, %v9258_v14, %v9257_v39  ;;  %v9263_v20 = vrot.slane %v9262_v44, 2  ;;  %v9264_v30 = vrot.slane %v7750_v45, 2  ;;  %v7937_v29 = vadd.f32 %v2891_v52, %v2624_v15  ;;  %v5480_v39 = vpop.permute.xlu1 %5479  ;;  %v9273_v54 = vld [vmem:[#allocation67_spill] sm:$0xff] }
 0x19a   : > { %v2540_v17 = vsel %vm1259_vm1, %v9261_v11, %v9260_v57  ;;  %v2627_v61 = vadd.f32 %v2538_v19, %v2268_v36  ;;  %v5456_v47 = vunpack.i.l.bf16 %v7885_v10  ;;  %v2266_v48 = vadd.f32 %v9266_v46, %v9265_v32  ;;  %v9272_v19 = vld [vmem:[#allocation56_spill] sm:$0xff]  ;;  %v9274_v11 = vld [vmem:[#allocation6_spill] sm:$0xff]  ;;  %v5475_v32 = vpop.permute.xlu0 %5474 }
 0x19b   : > { %v7929_v26 = vadd.f32 %v2540_v17, %v2269_v31  ;;  %v2533_v28 = vsel %vm1259_vm1, %v9264_v30, %v9263_v20  ;;  %v2267_v6 = vadd.f32 %v9268_v41, %v9267_v40  ;;  %v7945_v2 = vmul.f32 %v5447_v37, %v7794_v3  ;;  %v9277_v30 = vld [vmem:[#allocation14_spill] sm:$0xff] }
 0x19c   : > { %v7947_v22 = vadd.f32 %v2894_v43, %v2627_v61  ;;  %v9270_v36 = vrot.slane %v9269_v8, 2  ;;  %v9271_v45 = vmov %v9263_v20  ;;  %v5472_v52 = vunpack.i.h.bf16 %v5470_v5  ;;  %v9281_v8 = vld [vmem:[#allocation53_spill] sm:$0xff] }
 0x19d   : > { %v7955_v1 = vmul.f32 %v5462_v51, %v7794_v3  ;;  %v2625_v25 = vadd.f32 %v2533_v28, %v2266_v48  ;;  %v2892_v62 = vmul.f32 %v5456_v47, %v7794_v3  ;;  %v5471_v14 = vunpack.i.l.bf16 %v5470_v5  ;;  %v5490_v0 = vpop.permute.xlu1 %5489 }
 0x19e   : > { %v2535_v15 = vsel %vm1259_vm1, %v9271_v45, %v9270_v36  ;;  %v2899_v37 = vmul.f32 %v5472_v52, %v7794_v3  ;;  %v2272_v57 = vadd.f32 %v9273_v54, %v9272_v19  ;;  %v2273_v17 = vadd.f32 %v7618_v27, %v9274_v11  ;;  %v9282_v45 = vld [vmem:[#allocation41_spill] sm:$0xff]  ;;  %v9286_v54 = vld [vmem:[#allocation63_spill] sm:$0xff] }
 0x19f   : > { %v7957_v31 = vadd.f32 %v2535_v15, %v2267_v6  ;;  %v5457_v61 = vunpack.i.h.bf16 %v7885_v10  ;;  %v7966_v43 = vadd.f32 %v2892_v62, %v2625_v25  ;;  %v9275_v51 = vrot.slane %v7593_v59, 2  ;;  %v9280_v6 = vld [vmem:[#allocation58_spill] sm:$0xff]  ;;  %v9284_v52 = vld [vmem:[#allocation29_spill] sm:$0xff] }
 0x1a0   : > { %v9276_v44 = vrot.slane %v7768_v58, 2  ;;  %v9278_v28 = vrot.slane %v9277_v30, 2  ;;  %v2898_v27 = vmul.f32 %v5471_v14, %v7794_v3  ;;  %v5467_v40 = vunpack.i.h.bf16 %v5465_v53  ;;  %v9283_v58 = vld [vmem:[#allocation71_spill] sm:$0xff] }
 0x1a1   : > { %v9279_v5 = vmov %v9275_v51  ;;  %v5466_v41 = vunpack.i.l.bf16 %v5465_v53  ;;  %v2270_v36 = vadd.f32 %v9281_v8, %v9280_v6  ;;  %v2271_v15 = vadd.f32 %v9283_v58, %v9282_v45  ;;  %v9296_v45 = vld [vmem:[#allocation31_spill] sm:$0xff] }
 0x1a2   : > { %v2548_v20 = vsel %vm1259_vm1, %v9276_v44, %v9275_v51  ;;  %v2550_v47 = vsel %vm1259_vm1, %v9279_v5, %v9278_v28  ;;  %v9285_v25 = vrot.slane %v9284_v52, 2  ;;  %v2897_v14 = vmul.f32 %v5467_v40, %v7794_v3  ;;  %v9291_v5 = vld [vmem:[#allocation70_spill] sm:$0xff] }
 0x1a3   : > { %v2631_v46 = vadd.f32 %v2548_v20, %v2272_v57  ;;  %v2632_v48 = vadd.f32 %v2550_v47, %v2273_v17  ;;  %v9287_v53 = vrot.slane %v9286_v54, 2  ;;  %v2896_v44 = vmul.f32 %v5466_v41, %v7794_v3  ;;  %v9299_v54 = vld [vmem:[#allocation32_spill] sm:$0xff] }
 0x1a4   : > { %v2543_v59 = vsel %vm1259_vm1, %v2541_v55, %v9285_v25  ;;  %v9288_v57 = vmov %v9285_v25  ;;  %v5482_v20 = vunpack.i.h.bf16 %v5480_v39  ;;  %v5481_v30 = vunpack.i.l.bf16 %v5480_v39  ;;  %v9289_v55 = vld [vmem:[#allocation19_spill] sm:$0xff] }
 0x1a5   : > { %v7988_v62 = vadd.f32 %v2898_v27, %v2631_v46  ;;  %v7990_v19 = vadd.f32 %v2899_v37, %v2632_v48  ;;  %v2545_v11 = vsel %vm1259_vm1, %v9288_v57, %v9287_v53  ;;  %v2629_v17 = vadd.f32 %v2543_v59, %v2270_v36  ;;  %v9290_v37 = vld [vmem:[#allocation7_spill] sm:$0xff]  ;;  %v9292_v46 = vld [vmem:[#allocation34_spill] sm:$0xff]  ;;  %v9294_v27 = vld [vmem:[#allocation81_spill] sm:$0xff] }
 0x1a6   : > { %v2630_v51 = vadd.f32 %v2545_v11, %v2271_v15  ;;  %v2276_v28 = vadd.f32 %v7635_v33, %v9289_v55  ;;  %v2277_v47 = vadd.f32 %v9291_v5, %v9290_v37  ;;  %v9293_v48 = vrot.slane %v9292_v46, 2  ;;  %v5485_v15 = vpop.permute.xlu0 %5484  ;;  %v9304_v55 = vld [vmem:[#allocation64_spill] sm:$0xff]  ;;  %v9305_v37 = vld [vmem:[#allocation73_spill] sm:$0xff] }
 0x1a7   : > { %v9295_v40 = vrot.slane %v9294_v27, 2  ;;  %v8008_v8 = vadd.f32 %v2896_v44, %v2629_v17  ;;  %v2903_v41 = vmul.f32 %v5482_v20, %v7794_v3  ;;  %v9297_v39 = vrot.slane %v9296_v45, 2  ;;  %v9303_v44 = vld [vmem:[#allocation54_spill] sm:$0xff] }
 0x1a8   : > { %v8010_v36 = vadd.f32 %v2897_v14, %v2630_v51  ;;  %v9298_v58 = vmov %v9293_v48  ;;  %v2902_v59 = vmul.f32 %v5481_v30, %v7794_v3  ;;  %v9300_v53 = vrot.slane %v9299_v54, 2  ;;  %v9302_v51 = vld [vmem:[#allocation23_spill] sm:$0xff] }
 0x1a9   : > { %v2558_v6 = vsel %vm1259_vm1, %v9295_v40, %v9293_v48  ;;  %v2560_v33 = vsel %vm1259_vm1, %v9298_v58, %v9297_v39  ;;  %v9301_v57 = vrot.slane %v7765_v56, 2  ;;  %v5477_v11 = vunpack.i.h.bf16 %v5475_v32  ;;  %v5500_v39 = vpop.permute.xlu1 %5499 }
 0x1aa   : > { %v2635_v52 = vadd.f32 %v2558_v6, %v2276_v28  ;;  %v2636_v25 = vadd.f32 %v2560_v33, %v2277_v47  ;;  %v5476_v17 = vunpack.i.l.bf16 %v5475_v32  ;;  %v2274_v20 = vadd.f32 %v9303_v44, %v9302_v51  ;;  %v9306_v47 = vld [vmem:[#allocation72_spill] sm:$0xff]  ;;  %v9313_v44 = vld [vmem:[#allocation74_spill] sm:$0xff] }
 0x1ab   : > { %v2553_v14 = vsel %vm1259_vm1, %v9301_v57, %v9300_v53  ;;  %v2275_v5 = vadd.f32 %v9305_v37, %v9304_v55  ;;  %v9307_v30 = vrot.slane %v9306_v47, 2  ;;  %v9308_v48 = vmov %v9300_v53  ;;  %v9312_v53 = vld [vmem:[#allocation38_spill] sm:$0xff]  ;;  %v5495_v37 = vpop.permute.xlu0 %5494 }
 0x1ac   : > { %v8028_v46 = vadd.f32 %v2902_v59, %v2635_v52  ;;  %v8030_v28 = vadd.f32 %v2903_v41, %v2636_v25  ;;  %v5492_v27 = vunpack.i.h.bf16 %v5490_v0  ;;  %v2901_v40 = vmul.f32 %v5477_v11, %v7794_v3  ;;  %v9309_v52 = vld [vmem:[#allocation36_spill] sm:$0xff]  ;;  %v9310_v41 = vld [vmem:[#allocation39_spill] sm:$0xff] }
 0x1ad   : > { %v2555_v56 = vsel %vm1259_vm1, %v9308_v48, %v9307_v30  ;;  %v2633_v32 = vadd.f32 %v2553_v14, %v2274_v20  ;;  %v2900_v45 = vmul.f32 %v5476_v17, %v7794_v3  ;;  %v5491_v33 = vunpack.i.l.bf16 %v5490_v0  ;;  %v9311_v59 = vld [vmem:[#allocation4_spill] sm:$0xff]  ;;  %v9315_v17 = vld [vmem:[#allocation15_spill] sm:$0xff]  ;;  %v5510_v23 = vpop.permute.xlu1 %5509 }
 0x1ae   : > { %v2634_v6 = vadd.f32 %v2555_v56, %v2275_v5  ;;  %v2907_v58 = vmul.f32 %v5492_v27, %v7794_v3  ;;  %v2280_v25 = vadd.f32 %v9310_v41, %v9309_v52  ;;  %v2281_v57 = vadd.f32 %v9312_v53, %v9311_v59  ;;  %v9318_v27 = vld [vmem:[#allocation62_spill] sm:$0xff]  ;;  %v9324_v53 = vld [vmem:[#allocation33_spill] sm:$0xff] }
 0x1af   : > { %v8044_v54 = vadd.f32 %v2900_v45, %v2633_v32  ;;  %v9314_v11 = vrot.slane %v9313_v44, 2  ;;  %v9316_v20 = vrot.slane %v9315_v17, 2  ;;  %v2906_v30 = vmul.f32 %v5491_v33, %v7794_v3 }
 0x1b0   : > { %v8046_v51 = vadd.f32 %v2901_v40, %v2634_v6  ;;  %v5487_v48 = vunpack.i.h.bf16 %v5485_v15  ;;  %v5486_v56 = vunpack.i.l.bf16 %v5485_v15  ;;  %v9319_v40 = vld [vmem:[#allocation35_spill] sm:$0xff]  ;;  %v9320_v6 = vld [vmem:[#allocation22_spill] sm:$0xff]  ;;  %v9325_v15 = vrot.slane %v9324_v53, 2  ;;  %v5505_v53 = vpop.permute.xlu0 %5504 }
 0x1b1   : > { %v2568_v14 = vsel %vm1259_vm1, %v2566_v16, %v9314_v11  ;;  %v9317_v0 = vmov %v9314_v11  ;;  %v2278_v32 = vadd.f32 %v9319_v40, %v9318_v27  ;;  %v2279_v45 = vadd.f32 %v9321_v9, %v9320_v6  ;;  %v9322_v16 = vld [vmem:[#allocation11_spill] sm:$0xff] }
 0x1b2   : > { %v2570_v55 = vsel %vm1259_vm1, %v9317_v0, %v9316_v20  ;;  %v2639_v5 = vadd.f32 %v2568_v14, %v2280_v25  ;;  %v9323_v52 = vrot.slane %v9322_v16, 2  ;;  %v2905_v33 = vmul.f32 %v5487_v48, %v7794_v3  ;;  %v9331_v48 = vld [vmem:[#allocation13_spill] sm:$0xff] }
 0x1b3   : > { %v2640_v47 = vadd.f32 %v2570_v55, %v2281_v57  ;;  %v2904_v17 = vmul.f32 %v5486_v56, %v7794_v3  ;;  %v5502_v20 = vunpack.i.h.bf16 %v5500_v39  ;;  %v5501_v0 = vunpack.i.l.bf16 %v5500_v39  ;;  %v9328_v55 = vld [vmem:[#allocation43_spill] sm:$0xff] }
 0x1b4   : > { %v2563_v41 = vsel %vm1259_vm1, %v2561_v4, %v9323_v52  ;;  %v8068_v59 = vadd.f32 %v2906_v30, %v2639_v5  ;;  %v9326_v57 = vmov %v9323_v52  ;;  %v9327_v4 = vld [vmem:[#allocation68_spill] sm:$0xff]  ;;  %v9332_v27 = vrot.slane %v9331_v48, 2 }
 0x1b5   : > { %v8070_v25 = vadd.f32 %v2907_v58, %v2640_v47  ;;  %v2565_v44 = vsel %vm1259_vm1, %v9326_v57, %v9325_v15  ;;  %v2637_v11 = vadd.f32 %v2563_v41, %v2278_v32  ;;  %v2284_v5 = vadd.f32 %v9328_v55, %v9327_v4  ;;  %v9329_v58 = vld [vmem:[#allocation25_spill] sm:$0xff]  ;;  %v9330_v47 = vld [vmem:[#allocation76_spill] sm:$0xff]  ;;  %v4623_v41 = vld [vmem:[%s8799_s1 + $0x7] sm:$0x1] }
 0x1b6   : > { %v2638_v14 = vadd.f32 %v2565_v44, %v2279_v45  ;;  %v2285_v30 = vadd.f32 %v9330_v47, %v9329_v58  ;;  %v9333_v40 = vrot.slane %v7781_v7, 2  ;;  %v2911_v56 = vmul.f32 %v5502_v20, %v7794_v3  ;;  %v9334_v45 = vld [vmem:[#allocation12_spill] sm:$0xff]  ;;  %v9337_v44 = vld [vmem:[#allocation10_spill] sm:$0xff]  ;;  %v9340_v4 = vld [vmem:[#allocation75_spill] sm:$0xff] }
 0x1b7   : > { %v8088_v9 = vadd.f32 %v2904_v17, %v2637_v11  ;;  %v9335_v39 = vrot.slane %v9334_v45, 2  ;;  %v9336_v16 = vmov %v9332_v27  ;;  %v2910_v57 = vmul.f32 %v5501_v0, %v7794_v3  ;;  %v9339_v20 = vld [vmem:[#allocation60_spill] sm:$0xff]  ;;  %v9342_v47 = vld [vmem:[#allocation42_spill] sm:$0xff] }
 0x1b8   : > { %v2578_v6 = vsel %vm1259_vm1, %v9333_v40, %v9332_v27  ;;  %v8090_v32 = vadd.f32 %v2905_v33, %v2638_v14  ;;  %v9338_v33 = vrot.slane %v9337_v44, 2  ;;  %v5497_v14 = vunpack.i.h.bf16 %v5495_v37  ;;  %v9341_v58 = vld [vmem:[#allocation40_spill] sm:$0xff]  ;;  %v9344_v27 = vld [vmem:[#allocation78_spill] sm:$0xff] }
 0x1b9   : > { %v2580_v52 = vsel %vm1259_vm1, %v9336_v16, %v9335_v39  ;;  %v2643_v7 = vadd.f32 %v2578_v6, %v2284_v5  ;;  %v5496_v17 = vunpack.i.l.bf16 %v5495_v37  ;;  %v2282_v55 = vadd.f32 %v9340_v4, %v9339_v20  ;;  %v4640_v5 = vld [vmem:[%s8799_s1 + $0x8] sm:$0x1] }
 0x1ba   : > { %v2644_v15 = vadd.f32 %v2580_v52, %v2285_v30  ;;  %v2573_v11 = vsel %vm1259_vm1, %v2571_v38, %v9338_v33  ;;  %v2283_v48 = vadd.f32 %v9342_v47, %v9341_v58  ;;  %v9345_v49 = vrot.slane %v9344_v27, 2  ;;  %v8125_v52 = vpop.permute.xlu1 %5519  ;;  %v5515_v58 = vpop.permute.xlu0 %5514 }
 0x1bb   : > { %v8114_v30 = vadd.f32 %v2910_v57, %v2643_v7  ;;  %v9346_v38 = vmov %v9338_v33  ;;  %v3042_v40 = vunpack.c.l.bf16 %v4623_v41  ;;  %v2909_v6 = vmul.f32 %v5497_v14, %v7794_v3  ;;  %v9347_v33 = vld [vmem:[#allocation3_spill] sm:$0xff] }
 0x1bc   : > { %v8116_v0 = vadd.f32 %v2911_v56, %v2644_v15  ;;  %v2575_v37 = vsel %vm1259_vm1, %v9346_v38, %v9345_v49  ;;  %v2641_v45 = vadd.f32 %v2573_v11, %v2282_v55  ;;  %v2908_v16 = vmul.f32 %v5496_v17, %v7794_v3 }
 0x1bd   : > { %9343 = vst [vmem:[#allocation45_spill] sm:$0xff] %v8114_v30  ;;  %v2642_v39 = vadd.f32 %v2575_v37, %v2283_v48  ;;  %v8128_v7 = vrot.slane %v3042_v40, %v9347_v33  ;;  %v3561_v56 = vunpack.c.l.bf16 %v4640_v5  ;;  %v5512_v15 = vunpack.i.h.bf16 %v5510_v23 }
 0x1be   : > { %v5511_v57 = vunpack.i.l.bf16 %v5510_v23  ;;  %v8130_v20 = vadd.f32 %v2908_v16, %v2641_v45  ;;  %v5507_v4 = vunpack.i.h.bf16 %v5505_v53  ;;  %v5506_v41 = vunpack.i.l.bf16 %v5505_v53  ;;  %v5525_v10 = vpop.permute.xlu0 %5524 }
 0x1bf   : > { %v8132_v44 = vadd.f32 %v2909_v6, %v2642_v39  ;;  %v8136_v11 = vadd.f32 %v7945_v2, %v7908_v21  ;;  %v8139_v14 = vrot.slane %v3561_v56, %v9347_v33  ;;  %v5522_v55 = vunpack.i.h.bf16 %v8125_v52  ;;  %v5530_v39 = vpop.permute.xlu1 %5529 }
 0x1c0   : > { %v3289_v17 = vmul.f32 %v5511_v57, %v8128_v7  ;;  %v3290_v23 = vmul.f32 %v5512_v15, %v8128_v7  ;;  %v3288_v47 = vmul.f32 %v5507_v4, %v8128_v7  ;;  %v3287_v48 = vmul.f32 %v5506_v41, %v8128_v7 }
 0x1c1   : > { %v5521_v53 = vunpack.i.l.bf16 %v8125_v52  ;;  %v8149_v5 = vadd.f32 %v7955_v1, %v7929_v26  ;;  %v3648_v2 = vmul.f32 %v5511_v57, %v8139_v14  ;;  %v8153_v27 = vmul.f32 %v5507_v4, %v8139_v14  ;;  %v8178_v4 = vld [vmem:[%s8800_s2] ss:$0 sm:$0xff] }
 0x1c2   : > { %v3386_v21 = vrot.slane %v3289_v17, 1  ;;  %v8158_v49 = vmul.f32 %v5457_v61, %v7794_v3  ;;  %v3384_v38 = vrot.slane %v3288_v47, 1  ;;  %v3383_v37 = vrot.slane %v3287_v48, 1 }
 0x1c3   : > { %v8161_v40 = vmul.f32 %v5522_v55, %v8128_v7  ;;  %v3745_v6 = vrot.slane %v3648_v2, 2  ;;  %v8881_v26 = vrot.slane %v8153_v27, 2  ;;  %v3293_v1 = vmul.f32 %v5521_v53, %v8128_v7 }
 0x1c4   : > { %v5517_v45 = vunpack.i.h.bf16 %v5515_v58  ;;  %v3388_v16 = vrot.slane %v3290_v23, 1  ;;  %v3387_v52 = vsel %vm899_vm0, %v3384_v38, %v3386_v21  ;;  %v3385_v33 = vsel %vm899_vm0, %v3383_v37, %v3384_v38 }
 0x1c5   : > { %v3394_v3 = vrot.slane %v8161_v40, 1  ;;  %v3746_v61 = vsel %vm1259_vm1, %v8881_v26, %v3745_v6  ;;  %v8172_v56 = vadd.f32 %v3385_v33, %v7838_v18  ;;  %v3496_v15 = vadd.f32 %v3387_v52, %v7871_v60  ;;  %v5540_v26 = vpop.permute.xlu1 %5539 }
 0x1c6   : > { %v3393_v57 = vrot.slane %v3293_v1, 1  ;;  %v3292_v41 = vmul.f32 %v5517_v45, %v8128_v7  ;;  %v3651_v17 = vmul.f32 %v5517_v45, %v8139_v14  ;;  %v5516_v23 = vunpack.i.l.bf16 %v5515_v58 }
 0x1c7   : > { %v5532_v47 = vunpack.i.h.bf16 %v5530_v39  ;;  %v3855_v48 = vadd.f32 %v3746_v61, %v3496_v15  ;;  %v5531_v53 = vunpack.i.l.bf16 %v5530_v39  ;;  %v5527_v21 = vunpack.i.h.bf16 %v5525_v10 }
 0x1c8   : > { %v3395_v18 = vsel %vm899_vm0, %v3393_v57, %v3394_v3  ;;  %v3391_v2 = vrot.slane %v3292_v41, 1  ;;  %v3750_v38 = vrot.slane %v3651_v17, 2  ;;  %v3291_v37 = vmul.f32 %v5516_v23, %v8128_v7 }
 0x1c9   : > { %v8186_v60 = vadd.f32 %v3395_v18, %v7873_v63  ;;  %v8190_v6 = vadd.f32 %v8178_v4, %v3855_v48  ;;  %v8193_v58 = vmul.f32 %v5516_v23, %v8139_v14  ;;  %v3298_v1 = vmul.f32 %v5532_v47, %v8128_v7 }
 0x1ca   : > { %v3657_v45 = vmul.f32 %v5532_v47, %v8139_v14  ;;  %v3389_v52 = vrot.slane %v3291_v37, 1  ;;  %v3297_v39 = vmul.f32 %v5531_v53, %v8128_v7  ;;  %v8199_v63 = vmul.f32 %v5531_v53, %v8139_v14 }
 0x1cb   : > { %v3296_v33 = vmul.f32 %v5527_v21, %v8128_v7  ;;  %v3926_v61 = vmin.f32 %v8190_v6, 20.0  ;;  %v8882_v15 = vrot.slane %v8193_v58, 2  ;;  %v3401_v57 = vrot.slane %v3298_v1, 1 }
 0x1cc   : > { %v3760_v41 = vrot.slane %v3657_v45, 2  ;;  %v3390_v17 = vsel %vm899_vm0, %v3388_v16, %v3389_v52  ;;  %v3392_v23 = vsel %vm899_vm0, %v3389_v52, %v3391_v2  ;;  %v3399_v48 = vrot.slane %v3297_v39, 1 }
 0x1cd   : > { %v8883_v47 = vrot.slane %v8199_v63, 2  ;;  %v3959_v18 = vmul.f32 1.442695, %v3926_v61  ;;  %v8208_v37 = vmul.f32 %v5522_v55, %v8139_v14  ;;  %v8211_v53 = vadd.f32 %v3390_v17, %v7822_v50 }
 0x1ce   : > { %v3498_v21 = vadd.f32 %v3392_v23, %v7856_v13  ;;  %v3751_v1 = vsel %vm1259_vm1, %v8882_v15, %v3750_v38  ;;  %v3402_v16 = vsel %vm899_vm0, %v3399_v48, %v3401_v57  ;;  %v3398_v2 = vrot.slane %v3296_v33, 1  ;;  %v5535_v38 = vpop.permute.xlu0 %5534 }
 0x1cf   : > { %v5526_v45 = vunpack.i.l.bf16 %v5525_v10  ;;  %5663 = vpow2.f32 %v3959_v18  ;;  %v3502_v39 = vadd.f32 %v3402_v16, %v7898_v35  ;;  %v3761_v50 = vsel %vm1259_vm1, %v8883_v47, %v3760_v41 }
 0x1d0   : > { %v3857_v52 = vadd.f32 %v3751_v1, %v3498_v21  ;;  %v3400_v55 = vsel %vm899_vm0, %v3398_v2, %v3399_v48  ;;  %v5541_v17 = vunpack.i.l.bf16 %v5540_v26  ;;  %v8884_v57 = vrot.slane %v8208_v37, 2 }
 0x1d1   : > { %v3295_v13 = vmul.f32 %v5526_v45, %v8128_v7  ;;  %v3654_v61 = vmul.f32 %v5526_v45, %v8139_v14  ;;  %v3861_v33 = vadd.f32 %v3761_v50, %v3502_v39  ;;  %v8230_v35 = vadd.f32 %v3400_v55, %v7858_v34  ;;  %v5550_v45 = vpop.permute.xlu1 %5549 }
 0x1d2   : > { %v8227_v10 = vadd.f32 %v8178_v4, %v3857_v52  ;;  %v3301_v41 = vmul.f32 %v5541_v17, %v8128_v7  ;;  %v3660_v48 = vmul.f32 %v5541_v17, %v8139_v14  ;;  %v5542_v16 = vunpack.i.h.bf16 %v5540_v26 }
 0x1d3   : > { %v3396_v23 = vrot.slane %v3295_v13, 1  ;;  %v3755_v18 = vrot.slane %v3654_v61, 2  ;;  %v8236_v1 = vadd.f32 %v8178_v4, %v3861_v33  ;;  %v5537_v2 = vunpack.i.h.bf16 %v5535_v38 }
 0x1d4   : > { %v3928_v21 = vmin.f32 %v8227_v10, 20.0  ;;  %v3406_v39 = vrot.slane %v3301_v41, 1  ;;  %v3765_v50 = vrot.slane %v3660_v48, 2  ;;  %v5536_v33 = vunpack.i.l.bf16 %v5535_v38 }
 0x1d5   : > { %v3397_v52 = vsel %vm899_vm0, %v3394_v3, %v3396_v23  ;;  %v3756_v34 = vsel %vm1259_vm1, %v8884_v57, %v3755_v18  ;;  %v3932_v13 = vmin.f32 %v8236_v1, 20.0  ;;  %v3300_v17 = vmul.f32 %v5537_v2, %v8128_v7 }
 0x1d6   : > { %v3963_v55 = vmul.f32 1.442695, %v3928_v21  ;;  %v3500_v61 = vadd.f32 %v3397_v52, %v7920_v42  ;;  %v8248_v26 = vmul.f32 %v5537_v2, %v8139_v14  ;;  %v5552_v40 = vunpack.i.h.bf16 %v5550_v45  ;;  %v5545_v21 = vpop.permute.xlu0 %5544  ;;  %v5560_v52 = vpop.permute.xlu1 %5559 }
 0x1d7   : > { %v5551_v15 = vunpack.i.l.bf16 %v5550_v45  ;;  %v3971_v3 = vmul.f32 1.442695, %v3932_v13  ;;  %v3404_v47 = vrot.slane %v3300_v17, 1  ;;  %v8252_v18 = vadd.f32 %v8158_v49, %v7957_v31 }
 0x1d8   : > { %9348 = vst [vmem:[#allocation82_spill] sm:$0xff] %v8248_v26  ;;  %5665 = vpow2.f32 %v3963_v55  ;;  %v3859_v23 = vadd.f32 %v3756_v34, %v3500_v61  ;;  %v8885_v41 = vrot.slane %v8248_v26, 2  ;;  %v3299_v42 = vmul.f32 %v5536_v33, %v8128_v7 }
 0x1d9   : > { %v8257_v48 = vmul.f32 %v5552_v40, %v8128_v7  ;;  %5667 = vpow2.f32 %v3971_v3  ;;  %v3407_v2 = vsel %vm899_vm0, %v3404_v47, %v3406_v39  ;;  %v3305_v45 = vmul.f32 %v5551_v15, %v8128_v7 }
 0x1da   : > { %v8260_v38 = vadd.f32 %v8178_v4, %v3859_v23  ;;  %v3302_v31 = vmul.f32 %v5542_v16, %v8128_v7  ;;  %v3403_v49 = vrot.slane %v3299_v42, 1  ;;  %v3504_v34 = vadd.f32 %v3407_v2, %v8136_v11 }
 0x1db   : > { %v8886_v55 = vrot.slane %v8257_v48, 1  ;;  %v3766_v61 = vsel %vm1259_vm1, %v8885_v41, %v3765_v50  ;;  %v3413_v17 = vrot.slane %v3305_v45, 1  ;;  %v5547_v33 = vunpack.i.h.bf16 %v5545_v21  ;;  %v5555_v41 = vpop.permute.xlu0 %5554 }
 0x1dc   : > { %v3930_v13 = vmin.f32 %v8260_v38, 20.0  ;;  %v5664_v3 = vpop.eup %5663  ;;  %v3405_v39 = vsel %vm899_vm0, %v3403_v49, %v3404_v47  ;;  %v3863_v15 = vadd.f32 %v3766_v61, %v3504_v34  ;;  %v5546_v23 = vunpack.i.l.bf16 %v5545_v21 }
 0x1dd   : > { %v5562_v57 = vunpack.i.h.bf16 %v5560_v52  ;;  %v4022_v16 = vadd.f32 1.0, %v5664_v3  ;;  %v8273_v11 = vadd.f32 %v3405_v39, %v7922_v12  ;;  %v3415_v2 = vsel %vm899_vm0, %v3413_v17, %v8886_v55 }
 0x1de   : > { %v3967_v42 = vmul.f32 1.442695, %v3930_v13  ;;  %v8279_v30 = vadd.f32 %v8178_v4, %v3863_v15  ;;  %v8282_v50 = vadd.f32 %v3415_v2, %v7966_v43  ;;  %v3304_v47 = vmul.f32 %v5547_v33, %v8128_v7 }
 0x1df   : > { %9349 = vst [vmem:[#allocation44_spill] sm:$0xff] %v8273_v11  ;;  %v3663_v21 = vmul.f32 %v5547_v33, %v8139_v14  ;;  %v4054_v45 = vmul.f32 %v4022_v16, %v4022_v16  ;;  %v3303_v49 = vmul.f32 %v5546_v23, %v8128_v7  ;;  %v8288_v12 = vmul.f32 %v5546_v23, %v8139_v14 }
 0x1e0   : > { %5669 = vpow2.f32 %v3967_v42  ;;  %v3408_v34 = vrot.slane %v3302_v31, 1  ;;  %v3934_v13 = vmin.f32 %v8279_v30, 20.0  ;;  %v3411_v61 = vrot.slane %v3304_v47, 1 }
 0x1e1   : > { %9350 = vst [vmem:[#allocation80_spill] sm:$0xff] %v8288_v12  ;;  %v3310_v17 = vmul.f32 %v5562_v57, %v8128_v7  ;;  %v4150_v3 = vadd.f32 1.0, %v4054_v45  ;;  %v3770_v43 = vrot.slane %v3663_v21, 2  ;;  %v3409_v39 = vrot.slane %v3303_v49, 1 }
 0x1e2   : > { %v8887_v15 = vrot.slane %v8288_v12, 2  ;;  %v3975_v2 = vmul.f32 1.442695, %v3934_v13  ;;  %v8294_v33 = vmul.f32 %v5552_v40, %v8139_v14  ;;  %v3669_v16 = vmul.f32 %v5562_v57, %v8139_v14 }
 0x1e3   : > { %v5561_v42 = vunpack.i.l.bf16 %v5560_v52  ;;  %v4643_v23 = vadd.f32 -1.0, %v4054_v45  ;;  %5671 = vrcp.f32 %v4150_v3  ;;  %v3410_v31 = vsel %vm899_vm0, %v3408_v34, %v3409_v39 }
 0x1e4   : > { %v3412_v47 = vsel %vm899_vm0, %v3409_v39, %v3411_v61  ;;  %5673 = vpow2.f32 %v3975_v2  ;;  %v8300_v21 = vadd.f32 %v3410_v31, %v7901_v24  ;;  %v3421_v13 = vrot.slane %v3310_v17, 1 }
 0x1e5   : > { %v5666_v55 = vpop.eup %5665  ;;  %v3506_v49 = vadd.f32 %v3412_v47, %v7937_v29  ;;  %v3771_v57 = vsel %vm1259_vm1, %v8887_v15, %v3770_v43  ;;  %v3309_v52 = vmul.f32 %v5561_v42, %v8128_v7  ;;  %v8308_v45 = vmul.f32 %v5561_v42, %v8139_v14  ;;  %v5570_v15 = vpop.permute.xlu1 %5569 }
 0x1e6   : > { %9351 = vst [vmem:[#allocation77_spill] sm:$0xff] %v8300_v21  ;;  %v4024_v40 = vadd.f32 1.0, %v5666_v55  ;;  %v5668_v34 = vpop.eup %5667  ;;  %v3780_v3 = vrot.slane %v3669_v16, 2  ;;  %v5557_v39 = vunpack.i.h.bf16 %v5555_v41  ;;  %v5556_v2 = vunpack.i.l.bf16 %v5555_v41 }
 0x1e7   : > { %v3865_v61 = vadd.f32 %v3771_v57, %v3506_v49  ;;  %v4028_v31 = vadd.f32 1.0, %v5668_v34  ;;  %v3419_v11 = vrot.slane %v3309_v52, 1  ;;  %v8891_v29 = vrot.slane %v8308_v45, 2 }
 0x1e8   : > { %v4056_v24 = vmul.f32 %v4024_v40, %v4024_v40  ;;  %v3308_v43 = vmul.f32 %v5557_v39, %v8128_v7  ;;  %v3307_v42 = vmul.f32 %v5556_v2, %v8128_v7  ;;  %v4118_v47 = vmul.f32 %v4643_v23, %v8190_v6 }
 0x1e9   : > { %v8313_v17 = vadd.f32 %v8178_v4, %v3865_v61  ;;  %v4060_v16 = vmul.f32 %v4028_v31, %v4028_v31  ;;  %v3422_v41 = vsel %vm899_vm0, %v3419_v11, %v3421_v13  ;;  %v3666_v34 = vmul.f32 %v5556_v2, %v8139_v14 }
 0x1ea   : > { %v4152_v49 = vadd.f32 1.0, %v4056_v24  ;;  %v3510_v57 = vadd.f32 %v3422_v41, %v8149_v5  ;;  %v3418_v52 = vrot.slane %v3308_v43, 1  ;;  %v4645_v61 = vadd.f32 -1.0, %v4056_v24  ;;  %v5565_v43 = vpop.permute.xlu0 %5564 }
 0x1eb   : > { %v3936_v40 = vmin.f32 %v8313_v17, 20.0  ;;  %v4156_v55 = vadd.f32 1.0, %v4060_v16  ;;  %v3781_v39 = vsel %vm1259_vm1, %v8891_v29, %v3780_v3  ;;  %v3416_v26 = vrot.slane %v3307_v42, 1 }
 0x1ec   : > { %5675 = vrcp.f32 %v4152_v49  ;;  %v3869_v31 = vadd.f32 %v3781_v39, %v3510_v57  ;;  %v3420_v13 = vsel %vm899_vm0, %v3418_v52, %v3419_v11  ;;  %v4649_v21 = vadd.f32 -1.0, %v4060_v16 }
 0x1ed   : > { %v5670_v6 = vpop.eup %5669  ;;  %v3979_v23 = vmul.f32 1.442695, %v3936_v40  ;;  %v8327_v5 = vadd.f32 %v3420_v13, %v7947_v22  ;;  %v5572_v2 = vunpack.i.h.bf16 %v5570_v15  ;;  %v9352_v49 = vrot.slane %v8257_v48, 1 }
 0x1ee   : > { %v4026_v12 = vadd.f32 1.0, %v5670_v6  ;;  %v8330_v24 = vadd.f32 %v8178_v4, %v3869_v31  ;;  %v3775_v41 = vrot.slane %v3666_v34, 2  ;;  %v5571_v42 = vunpack.i.l.bf16 %v5570_v15 }
 0x1ef   : > { %5677 = vpow2.f32 %v3979_v23  ;;  %v3417_v3 = vsel %vm899_vm0, %v9352_v49, %v3416_v26  ;;  %v4120_v22 = vmul.f32 %v4645_v61, %v8227_v10  ;;  %v9353_v52 = vrot.slane %v8294_v33, 2 }
 0x1f0   : > { %5679 = vrcp.f32 %v4156_v55  ;;  %v4058_v40 = vmul.f32 %v4026_v12, %v4026_v12  ;;  %v3508_v11 = vadd.f32 %v3417_v3, %v8252_v18  ;;  %v5672_v16 = vpop.eup %5671  ;;  %v3940_v57 = vmin.f32 %v8330_v24, 20.0 }
 0x1f1   : > { %v3776_v39 = vsel %vm1259_vm1, %v9353_v52, %v3775_v41  ;;  %v5567_v6 = vunpack.i.h.bf16 %v5565_v43  ;;  %v5674_v23 = vpop.eup %5673  ;;  %v8342_v48 = vmul.f32 %v4649_v21, %v8236_v1  ;;  %v5566_v12 = vunpack.i.l.bf16 %v5565_v43  ;;  %v5580_v1 = vpop.permute.xlu1 %5579 }
 0x1f2   : > { %v4154_v26 = vadd.f32 1.0, %v4058_v40  ;;  %v3867_v55 = vadd.f32 %v3776_v39, %v3508_v11  ;;  %v4030_v18 = vadd.f32 1.0, %v5674_v23  ;;  %v3987_v15 = vmul.f32 1.442695, %v3940_v57 }
 0x1f3   : > { %v8345_v34 = vmul.f32 %v5572_v2, %v8128_v7  ;;  %v3313_v10 = vmul.f32 %v5571_v42, %v8128_v7  ;;  %v4214_v61 = vmul.f32 %v5672_v16, %v4118_v47  ;;  %v3672_v13 = vmul.f32 %v5571_v42, %v8139_v14 }
 0x1f4   : > { %5681 = vrcp.f32 %v4154_v26  ;;  %v8349_v31 = vadd.f32 %v8178_v4, %v3867_v55  ;;  %v4062_v21 = vmul.f32 %v4030_v18, %v4030_v18  ;;  %v3312_v43 = vmul.f32 %v5567_v6, %v8128_v7 }
 0x1f5   : > { %5683 = vpow2.f32 %v3987_v15  ;;  %v3426_v49 = vrot.slane %v3313_v10, 1  ;;  %v4647_v3 = vadd.f32 -1.0, %v4058_v40  ;;  %v8355_v2 = vmul.f32 %v5567_v6, %v8139_v14  ;;  %v5575_v10 = vpop.permute.xlu0 %5574 }
 0x1f6   : > { %v3938_v41 = vmin.f32 %v8349_v31, 20.0  ;;  %v3311_v47 = vmul.f32 %v5566_v12, %v8128_v7  ;;  %v4158_v11 = vadd.f32 1.0, %v4062_v21  ;;  %v3785_v16 = vrot.slane %v3672_v13, 2 }
 0x1f7   : > { %v3424_v57 = vrot.slane %v3312_v43, 1  ;;  %v5582_v52 = vunpack.i.h.bf16 %v5580_v1  ;;  %v8890_v42 = vrot.slane %v8355_v2, 2  ;;  %v5581_v26 = vunpack.i.l.bf16 %v5580_v1 }
 0x1f8   : > { %v3983_v39 = vmul.f32 1.442695, %v3938_v41  ;;  %v3423_v23 = vrot.slane %v3311_v47, 1  ;;  %v4651_v18 = vadd.f32 -1.0, %v4062_v21  ;;  %v3428_v40 = vrot.slane %v8345_v34, 1 }
 0x1f9   : > { %v5676_v55 = vpop.eup %5675  ;;  %v3427_v15 = vsel %vm899_vm0, %v3424_v57, %v3426_v49  ;;  %v8362_v6 = vmul.f32 %v5582_v52, %v8128_v7  ;;  %v4122_v13 = vmul.f32 %v4647_v3, %v8260_v38  ;;  %v3786_v1 = vsel %vm1259_vm1, %v8890_v42, %v3785_v16  ;;  %v5590_v49 = vpop.permute.xlu1 %5589 }
 0x1fa   : > { %v4216_v12 = vmul.f32 %v5676_v55, %v4120_v22  ;;  %5685 = vpow2.f32 %v3983_v39  ;;  %v3425_v43 = vsel %vm899_vm0, %v3423_v23, %v3424_v57  ;;  %v3512_v34 = vadd.f32 %v3427_v15, %v8010_v36  ;;  %v5585_v42 = vpop.permute.xlu0 %5584 }
 0x1fb   : > { %5687 = vrcp.f32 %v4158_v11  ;;  %v8370_v21 = vadd.f32 %v3425_v43, %v8008_v8  ;;  %v8892_v22 = vrot.slane %v8362_v6, 1  ;;  %v3317_v38 = vmul.f32 %v5581_v26, %v8128_v7 }
 0x1fc   : > { %v5678_v41 = vpop.eup %5677  ;;  %v4246_v47 = vadd.f32 %v4216_v12, %v4214_v61  ;;  %v5577_v3 = vunpack.i.h.bf16 %v5575_v10  ;;  %v8376_v11 = vmul.f32 %v4651_v18, %v8279_v30  ;;  %v3871_v23 = vadd.f32 %v3786_v1, %v3512_v34 }
 0x1fd   : > { %v5680_v39 = vpop.eup %5679  ;;  %v4032_v57 = vadd.f32 1.0, %v5678_v41  ;;  %v5576_v16 = vunpack.i.l.bf16 %v5575_v10  ;;  %v3433_v8 = vrot.slane %v3317_v38, 1  ;;  %v5592_v61 = vunpack.i.h.bf16 %v5590_v49 }
 0x1fe   : > { %4263 = vst.msk [vmem:[#allocation2 + $0x8] sm:$0xff] %vm4261_vm2, %v4246_v47  ;;  %v3316_v36 = vmul.f32 %v5577_v3, %v8128_v7  ;;  %v3675_v55 = vmul.f32 %v5577_v3, %v8139_v14  ;;  %v8382_v12 = vadd.f32 %v8178_v4, %v3871_v23  ;;  %v4220_v18 = vmul.f32 %v5680_v39, %v8342_v48 }
 0x1ff   : > { %v4064_v15 = vmul.f32 %v4032_v57, %v4032_v57  ;;  %v3315_v26 = vmul.f32 %v5576_v16, %v8128_v7  ;;  %v8386_v30 = vmul.f32 %v5576_v16, %v8139_v14  ;;  %v3435_v10 = vsel %vm899_vm0, %v3433_v8, %v8892_v22 }
 0x200   : > { %v3431_v43 = vrot.slane %v3316_v36, 1  ;;  %v3790_v1 = vrot.slane %v3675_v55, 2  ;;  %v3942_v47 = vmin.f32 %v8382_v12, 20.0  ;;  %v8394_v38 = vmul.f32 %v5582_v52, %v8139_v14 }
 0x201   : > { %v5682_v34 = vpop.eup %5681  ;;  %v4160_v41 = vadd.f32 1.0, %v4064_v15  ;;  %v8397_v3 = vadd.f32 %v3435_v10, %v8044_v54  ;;  %v3429_v16 = vrot.slane %v3315_v26, 1  ;;  %v8893_v48 = vrot.slane %v8386_v30, 2 }
 0x202   : > { %v5684_v57 = vpop.eup %5683  ;;  %v4218_v23 = vmul.f32 %v5682_v34, %v4122_v13  ;;  %v3322_v39 = vmul.f32 %v5592_v61, %v8128_v7  ;;  %v4653_v8 = vadd.f32 -1.0, %v4064_v15  ;;  %v3991_v55 = vmul.f32 1.442695, %v3942_v47 }
 0x203   : > { %5689 = vrcp.f32 %v4160_v41  ;;  %v4036_v36 = vadd.f32 1.0, %v5684_v57  ;;  %v3430_v22 = vsel %vm899_vm0, %v3428_v40, %v3429_v16  ;;  %v3432_v52 = vsel %vm899_vm0, %v3429_v16, %v3431_v43 }
 0x204   : > { %v4248_v29 = vadd.f32 %v4220_v18, %v4218_v23  ;;  %v3791_v54 = vsel %vm1259_vm1, %v8893_v48, %v3790_v1  ;;  %5691 = vpow2.f32 %v3991_v55  ;;  %v8407_v26 = vadd.f32 %v3430_v22, %v7988_v62  ;;  %v5595_v48 = vpop.permute.xlu0 %5594 }
 0x205   : > { %v4068_v13 = vmul.f32 %v4036_v36, %v4036_v36  ;;  %v3514_v15 = vadd.f32 %v3432_v52, %v7990_v19  ;;  %v3681_v10 = vmul.f32 %v5592_v61, %v8139_v14  ;;  %v5591_v18 = vunpack.i.l.bf16 %v5590_v49  ;;  %v5600_v61 = vpop.permute.xlu1 %5599 }
 0x206   : > { %4265 = vst.msk [vmem:[#allocation2 + $0x18] sm:$0xff] %vm4261_vm2, %v4248_v29  ;;  %v5587_v34 = vunpack.i.h.bf16 %v5585_v42  ;;  %v5586_v40 = vunpack.i.l.bf16 %v5585_v42  ;;  %v8897_v47 = vrot.slane %v8394_v38, 2  ;;  %v3441_v1 = vrot.slane %v3322_v39, 1 }
 0x207   : > { %v5686_v41 = vpop.eup %5685  ;;  %v4164_v43 = vadd.f32 1.0, %v4068_v13  ;;  %v3873_v57 = vadd.f32 %v3791_v54, %v3514_v15  ;;  %v4128_v16 = vmul.f32 %v4653_v8, %v8313_v17  ;;  %v3321_v22 = vmul.f32 %v5591_v18, %v8128_v7 }
 0x208   : > { %v5688_v23 = vpop.eup %5687  ;;  %v4034_v62 = vadd.f32 1.0, %v5686_v41  ;;  %v8416_v19 = vmul.f32 %v5591_v18, %v8139_v14  ;;  %v3800_v42 = vrot.slane %v3681_v10, 2  ;;  %v3320_v49 = vmul.f32 %v5587_v34, %v8128_v7 }
 0x209   : > { %5693 = vrcp.f32 %v4164_v43  ;;  %v8419_v29 = vadd.f32 %v8178_v4, %v3873_v57  ;;  %v3439_v55 = vrot.slane %v3321_v22, 1  ;;  %v3319_v17 = vmul.f32 %v5586_v40, %v8128_v7 }
 0x20a   : > { %v4066_v36 = vmul.f32 %v4034_v62, %v4034_v62  ;;  %v8896_v39 = vrot.slane %v8416_v19, 2  ;;  %v4222_v8 = vmul.f32 %v5688_v23, %v8376_v11  ;;  %v3438_v54 = vrot.slane %v3320_v49, 1 }
 0x20b   : > { %v3944_v52 = vmin.f32 %v8419_v29, 20.0  ;;  %v3678_v15 = vmul.f32 %v5586_v40, %v8139_v14  ;;  %v4657_v18 = vadd.f32 -1.0, %v4068_v13  ;;  %v3442_v10 = vsel %vm899_vm0, %v3439_v55, %v3441_v1 }
 0x20c   : > { %v4162_v41 = vadd.f32 1.0, %v4066_v36  ;;  %v5602_v43 = vunpack.i.h.bf16 %v5600_v61  ;;  %v3518_v57 = vadd.f32 %v3442_v10, %v8030_v28  ;;  %v3440_v62 = vsel %vm899_vm0, %v3438_v54, %v3439_v55 }
 0x20d   : > { %v3995_v34 = vmul.f32 1.442695, %v3944_v52  ;;  %v3436_v22 = vrot.slane %v3319_v17, 1  ;;  %v3801_v11 = vsel %vm1259_vm1, %v8896_v39, %v3800_v42  ;;  %v8434_v23 = vadd.f32 %v3440_v62, %v8028_v46 }
 0x20e   : > { %5695 = vrcp.f32 %v4162_v41  ;;  %v3795_v13 = vrot.slane %v3678_v15, 2  ;;  %v4655_v40 = vadd.f32 -1.0, %v4066_v36  ;;  %v3877_v1 = vadd.f32 %v3801_v11, %v3518_v57 }
 0x20f   : > { %5697 = vpow2.f32 %v3995_v34  ;;  %v9354_v49 = vrot.slane %v8362_v6, 1  ;;  %v8441_v17 = vmul.f32 %v5602_v43, %v8128_v7  ;;  %v5601_v54 = vunpack.i.l.bf16 %v5600_v61 }
 0x210   : > { %v5690_v52 = vpop.eup %5689  ;;  %v5597_v41 = vunpack.i.h.bf16 %v5595_v48  ;;  %v8444_v46 = vadd.f32 %v8178_v4, %v3877_v1  ;;  %v3796_v36 = vsel %vm1259_vm1, %v8897_v47, %v3795_v13  ;;  %v5596_v15 = vunpack.i.l.bf16 %v5595_v48  ;;  %v5610_v1 = vpop.permute.xlu1 %5609 }
 0x211   : > { %v3437_v28 = vsel %vm899_vm0, %v9354_v49, %v3436_v22  ;;  %v4224_v42 = vmul.f32 %v5690_v52, %v4128_v16  ;;  %v5692_v6 = vpop.eup %5691  ;;  %v3325_v34 = vmul.f32 %v5601_v54, %v8128_v7 }
 0x212   : > { %v3516_v55 = vadd.f32 %v3437_v28, %v8046_v51  ;;  %v3684_v51 = vmul.f32 %v5601_v54, %v8139_v14  ;;  %v3324_v43 = vmul.f32 %v5597_v41, %v8128_v7  ;;  %v4038_v61 = vadd.f32 1.0, %v5692_v6 }
 0x213   : > { %v4250_v57 = vadd.f32 %v4224_v42, %v4222_v8  ;;  %v3948_v16 = vmin.f32 %v8444_v46, 20.0  ;;  %v8454_v62 = vmul.f32 %v5597_v41, %v8139_v14  ;;  %v3446_v11 = vrot.slane %v3325_v34, 1 }
 0x214   : > { %v3875_v10 = vadd.f32 %v3796_v36, %v3516_v55  ;;  %v3805_v48 = vrot.slane %v3684_v51, 2  ;;  %v3444_v13 = vrot.slane %v3324_v43, 1  ;;  %v4070_v49 = vmul.f32 %v4038_v61, %v4038_v61  ;;  %v5605_v43 = vpop.permute.xlu0 %5604 }
 0x215   : > { %9355 = vst [vmem:[#allocation17_spill] sm:$0xff] %v8454_v62  ;;  %4267 = vst.msk [vmem:[#allocation2 + $0x28] sm:$0xff] %vm4261_vm2, %v4250_v57  ;;  %v4003_v28 = vmul.f32 1.442695, %v3948_v16  ;;  %v8894_v52 = vrot.slane %v8454_v62, 2  ;;  %v3323_v8 = vmul.f32 %v5596_v15, %v8128_v7  ;;  %v4132_v42 = vmul.f32 %v4657_v18, %v8330_v24 }
 0x216   : > { %v8457_v22 = vadd.f32 %v8178_v4, %v3875_v10  ;;  %v5694_v55 = vpop.eup %5693  ;;  %v3447_v41 = vsel %vm899_vm0, %v3444_v13, %v3446_v11  ;;  %v4659_v36 = vadd.f32 -1.0, %v4070_v49  ;;  %v4166_v6 = vadd.f32 1.0, %v4070_v49  ;;  %v5620_v49 = vpop.permute.xlu1 %5619 }
 0x217   : > { %5699 = vpow2.f32 %v4003_v28  ;;  %v3443_v34 = vrot.slane %v3323_v8, 1  ;;  %v3520_v51 = vadd.f32 %v3447_v41, %v8090_v32  ;;  %v4130_v57 = vmul.f32 %v4655_v40, %v8349_v31 }
 0x218   : > { %v3946_v54 = vmin.f32 %v8457_v22, 20.0  ;;  %v3448_v61 = vrot.slane %v8441_v17, 1  ;;  %v3806_v15 = vsel %vm1259_vm1, %v8894_v52, %v3805_v48  ;;  %v5612_v16 = vunpack.i.h.bf16 %v5610_v1 }
 0x219   : > { %v4228_v11 = vmul.f32 %v5694_v55, %v4132_v42  ;;  %v3445_v24 = vsel %vm899_vm0, %v3443_v34, %v3444_v13  ;;  %v3879_v18 = vadd.f32 %v3806_v15, %v3520_v51  ;;  %v8473_v8 = vmul.f32 %v4659_v36, %v8382_v12 }
 0x21a   : > { %v3999_v10 = vmul.f32 1.442695, %v3946_v54  ;;  %v8476_v32 = vadd.f32 %v3445_v24, %v8088_v9  ;;  %v5611_v31 = vunpack.i.l.bf16 %v5610_v1  ;;  %v5607_v40 = vunpack.i.h.bf16 %v5605_v43 }
 0x21b   : > { %v5696_v28 = vpop.eup %5695  ;;  %v8479_v48 = vadd.f32 %v8178_v4, %v3879_v18  ;;  %v5606_v55 = vunpack.i.l.bf16 %v5605_v43  ;;  %v8485_v9 = vmul.f32 %v5612_v16, %v8128_v7 }
 0x21c   : > { %5701 = vpow2.f32 %v3999_v10  ;;  %9356 = vst [vmem:[#allocation47_spill] sm:$0xff] %v8476_v32  ;;  %v5698_v17 = vpop.eup %5697  ;;  %v4226_v54 = vmul.f32 %v5696_v28, %v4130_v57  ;;  %v3328_v13 = vmul.f32 %v5607_v40, %v8128_v7  ;;  %v3687_v42 = vmul.f32 %v5607_v40, %v8139_v14 }
 0x21d   : > { %5703 = vrcp.f32 %v4166_v6  ;;  %v4040_v41 = vadd.f32 1.0, %v5698_v17  ;;  %v5622_v10 = vunpack.i.h.bf16 %v5620_v49  ;;  %v3950_v36 = vmin.f32 %v8479_v48, 20.0 }
 0x21e   : > { %v4252_v12 = vadd.f32 %v4228_v11, %v4226_v54  ;;  %v3327_v1 = vmul.f32 %v5606_v55, %v8128_v7  ;;  %v3329_v6 = vmul.f32 %v5611_v31, %v8128_v7  ;;  %v3451_v51 = vrot.slane %v3328_v13, 1  ;;  %v5615_v13 = vpop.permute.xlu0 %5614 }
 0x21f   : > { %v4072_v34 = vmul.f32 %v4040_v41, %v4040_v41  ;;  %v3810_v57 = vrot.slane %v3687_v42, 2  ;;  %v4007_v43 = vmul.f32 1.442695, %v3950_v36  ;;  %v8491_v24 = vmul.f32 %v5606_v55, %v8139_v14 }
 0x220   : > { %4269 = vst.msk [vmem:[#allocation2 + $0x38] sm:$0xff] %vm4261_vm2, %v4252_v12  ;;  %v3449_v15 = vrot.slane %v3327_v1, 1  ;;  %v3334_v11 = vmul.f32 %v5622_v10, %v8128_v7  ;;  %v8495_v28 = vmul.f32 %v5612_v16, %v8139_v14  ;;  %v3693_v40 = vmul.f32 %v5622_v10, %v8139_v14 }
 0x221   : > { %v4168_v18 = vadd.f32 1.0, %v4072_v34  ;;  %v5621_v17 = vunpack.i.l.bf16 %v5620_v49  ;;  %5705 = vpow2.f32 %v4007_v43  ;;  %v8895_v41 = vrot.slane %v8491_v24, 2 }
 0x222   : > { %v3450_v31 = vsel %vm899_vm0, %v3448_v61, %v3449_v15  ;;  %v3452_v54 = vsel %vm899_vm0, %v3449_v15, %v3451_v51  ;;  %v3454_v55 = vrot.slane %v8485_v9, 1  ;;  %v3453_v36 = vrot.slane %v3329_v6, 1 }
 0x223   : > { %5707 = vrcp.f32 %v4168_v18  ;;  %v8503_v42 = vadd.f32 %v3450_v31, %v8068_v59  ;;  %v3522_v16 = vadd.f32 %v3452_v54, %v8070_v25  ;;  %v3811_v49 = vsel %vm1259_vm1, %v8895_v41, %v3810_v57 }
 0x224   : > { %v5700_v12 = vpop.eup %5699  ;;  %v3461_v61 = vrot.slane %v3334_v11, 1  ;;  %v8510_v10 = vmul.f32 %v5621_v17, %v8128_v7  ;;  %v8513_v43 = vmul.f32 %v5621_v17, %v8139_v14  ;;  %v5617_v9 = vunpack.i.h.bf16 %v5615_v13 }
 0x225   : > { %v4044_v1 = vadd.f32 1.0, %v5700_v12  ;;  %v3881_v51 = vadd.f32 %v3811_v49, %v3522_v16  ;;  %v3820_v15 = vrot.slane %v3693_v40, 2  ;;  %v5616_v6 = vunpack.i.l.bf16 %v5615_v13  ;;  %v5630_v12 = vpop.permute.xlu1 %5629 }
 0x226   : > { %v8898_v25 = vrot.slane %v8510_v10, 1  ;;  %v4661_v31 = vadd.f32 -1.0, %v4072_v34  ;;  %v3818_v11 = vrot.slane %v8513_v43, 2  ;;  %v8522_v17 = vsel %vm899_vm0, %v3453_v36, %v3454_v55 }
 0x227   : > { %v4076_v54 = vmul.f32 %v4044_v1, %v4044_v1  ;;  %v8518_v57 = vadd.f32 %v8178_v4, %v3881_v51  ;;  %v3331_v49 = vmul.f32 %v5616_v6, %v8128_v7  ;;  %v8531_v51 = vmul.f32 %v5617_v9, %v8128_v7  ;;  %v5625_v7 = vpop.permute.xlu0 %5624 }
 0x228   : > { %v3462_v40 = vsel %vm899_vm0, %v8898_v25, %v3461_v61  ;;  %v3821_v36 = vsel %vm1259_vm1, %v3818_v11, %v3820_v15  ;;  %v5632_v39 = vunpack.i.h.bf16 %v5630_v12  ;;  %v4136_v61 = vmul.f32 %v4661_v31, %v8419_v29 }
 0x229   : > { %v5702_v18 = vpop.eup %5701  ;;  %v4172_v52 = vadd.f32 1.0, %v4076_v54  ;;  %v3952_v34 = vmin.f32 %v8518_v57, 20.0  ;;  %v3526_v1 = vadd.f32 %v3462_v40, %v8116_v0  ;;  %v4665_v32 = vadd.f32 -1.0, %v4076_v54  ;;  %v8543_v40 = vpop.permute.xlu1 %5639 }
 0x22a   : > { %v4042_v16 = vadd.f32 1.0, %v5702_v18  ;;  %v5704_v13 = vpop.eup %5703  ;;  %v3456_v18 = vrot.slane %v3331_v49, 1  ;;  %v3458_v15 = vrot.slane %v8531_v51, 1  ;;  %v5631_v54 = vunpack.i.l.bf16 %v5630_v12 }
 0x22b   : > { %5709 = vrcp.f32 %v4172_v52  ;;  %v4011_v47 = vmul.f32 1.442695, %v3952_v34  ;;  %v3885_v25 = vadd.f32 %v3821_v36, %v3526_v1  ;;  %v4230_v59 = vmul.f32 %v5704_v13, %v8473_v8 }
 0x22c   : > { %v4074_v41 = vmul.f32 %v4042_v16, %v4042_v16  ;;  %v3457_v0 = vsel %vm899_vm0, %v3454_v55, %v3456_v18  ;;  %v3690_v52 = vmul.f32 %v5616_v6, %v8139_v14  ;;  %v3655_v8 = vmul.f32 %v5632_v39, %v8139_v14 }
 0x22d   : > { %5711 = vpow2.f32 %v4011_v47  ;;  %v8540_v16 = vadd.f32 %v8178_v4, %v3885_v25  ;;  %v3524_v29 = vadd.f32 %v3457_v0, %v8132_v44  ;;  %v5626_v47 = vunpack.i.l.bf16 %v5625_v7 }
 0x22e   : > { %v4170_v62 = vadd.f32 1.0, %v4074_v41  ;;  %v4663_v9 = vadd.f32 -1.0, %v4074_v41  ;;  %v5706_v31 = vpop.eup %5705  ;;  %v5627_v41 = vunpack.i.h.bf16 %v5625_v7  ;;  %v3815_v13 = vrot.slane %v3690_v52, 2 }
 0x22f   : > { %v3956_v55 = vmin.f32 %v8540_v16, 20.0  ;;  %v4046_v25 = vadd.f32 1.0, %v5706_v31  ;;  %v3757_v34 = vrot.slane %v3655_v8, 2  ;;  %v5642_v1 = vunpack.i.h.bf16 %v8543_v40 }
 0x230   : > { %5713 = vrcp.f32 %v4170_v62  ;;  %v5708_v49 = vpop.eup %5707  ;;  %v3652_v44 = vmul.f32 %v5631_v54, %v8139_v14  ;;  %v3649_v6 = vmul.f32 %v5627_v41, %v8139_v14  ;;  %v9357_v39 = vrot.slane %v8495_v28, 2 }
 0x231   : > { %v4232_v36 = vmul.f32 %v5708_v49, %v4136_v61  ;;  %v4019_v62 = vmul.f32 1.442695, %v3956_v55  ;;  %v4078_v18 = vmul.f32 %v4046_v25, %v4046_v25  ;;  %v9358_v12 = vrot.slane %v8199_v63, 2 }
 0x232   : > { %v3816_v0 = vsel %vm1259_vm1, %v9357_v39, %v3815_v13  ;;  %v3646_v52 = vmul.f32 %v5626_v47, %v8139_v14  ;;  %v3752_v61 = vrot.slane %v3652_v44, 2  ;;  %v4140_v55 = vmul.f32 %v4665_v32, %v8444_v46 }
 0x233   : > { %v3759_v7 = vsel %vm1259_vm1, %v3757_v34, %v9358_v12  ;;  %v4254_v8 = vadd.f32 %v4232_v36, %v4230_v59  ;;  %5715 = vpow2.f32 %v4019_v62  ;;  %v3883_v31 = vadd.f32 %v3816_v0, %v3524_v29 }
 0x234   : > { %v4174_v54 = vadd.f32 1.0, %v4078_v18  ;;  %v3860_v41 = vadd.f32 %v3759_v7, %v8230_v35  ;;  %v3747_v49 = vrot.slane %v3649_v6, 2  ;;  %v9359_v63 = vrot.slane %v8208_v37, 2 }
 0x235   : > { %4271 = vst.msk [vmem:[#allocation2 + $0x48] sm:$0xff] %vm4261_vm2, %v4254_v8  ;;  %v8563_v25 = vadd.f32 %v8178_v4, %v3883_v31  ;;  %v3742_v47 = vrot.slane %v3646_v52, 2  ;;  %v3667_v59 = vmul.f32 %v5642_v1, %v8139_v14  ;;  %v4138_v29 = vmul.f32 %v4663_v9, %v8457_v22 }
 0x236   : > { %v3754_v13 = vsel %vm1259_vm1, %v3752_v61, %v9359_v63  ;;  %5717 = vrcp.f32 %v4174_v54  ;;  %v8572_v35 = vadd.f32 %v8178_v4, %v3860_v41  ;;  %v9360_v34 = vrot.slane %v8153_v27, 2 }
 0x237   : > { %v3858_v46 = vadd.f32 %v3754_v13, %v8186_v60  ;;  %v3954_v32 = vmin.f32 %v8563_v25, 20.0  ;;  %v9361_v37 = vrot.slane %v8193_v58, 2  ;;  %v3777_v44 = vrot.slane %v3667_v59, 2 }
 0x238   : > { %v3744_v36 = vsel %vm1259_vm1, %v3742_v47, %v9360_v34  ;;  %v5710_v1 = vpop.eup %5709  ;;  %v3931_v60 = vmin.f32 %v8572_v35, 20.0  ;;  %v5641_v27 = vunpack.i.l.bf16 %v8543_v40  ;;  %v9362_v12 = vrot.slane %v8308_v45, 2 }
 0x239   : > { %v3749_v62 = vsel %vm1259_vm1, %v3747_v49, %v9361_v37  ;;  %v8582_v22 = vadd.f32 %v8178_v4, %v3858_v46  ;;  %v3854_v9 = vadd.f32 %v3744_v36, %v8172_v56  ;;  %v4236_v39 = vmul.f32 %v5710_v1, %v4140_v55  ;;  %v8595_v4 = vld [vmem:[%s8800_s2] ss:$0 sm:$0xff]  ;;  %v5635_v55 = vpop.permute.xlu0 %5634 }
 0x23a   : > { %v3856_v6 = vadd.f32 %v3749_v62, %v8211_v53  ;;  %v4015_v0 = vmul.f32 1.442695, %v3954_v32  ;;  %v3779_v58 = vsel %vm1259_vm1, %v3777_v44, %v9362_v12  ;;  %v5712_v7 = vpop.eup %5711  ;;  %v3969_v8 = vmul.f32 1.442695, %v3931_v60 }
 0x23b   : > { %v3929_v52 = vmin.f32 %v8582_v22, 20.0  ;;  %v8598_v56 = vadd.f32 %v8595_v4, %v3854_v9  ;;  %v4048_v31 = vadd.f32 1.0, %v5712_v7  ;;  %v3664_v45 = vmul.f32 %v5641_v27, %v8139_v14 }
 0x23c   : > { %v8601_v53 = vadd.f32 %v8595_v4, %v3856_v6  ;;  %5719 = vpow2.f32 %v4015_v0  ;;  %v3868_v61 = vadd.f32 %v3779_v58, %v8327_v5  ;;  %v5637_v34 = vunpack.i.h.bf16 %v5635_v55  ;;  %v5650_v6 = vpop.permute.xlu1 %5649 }
 0x23d   : > { %v5714_v40 = vpop.eup %5713  ;;  %v3965_v41 = vmul.f32 1.442695, %v3929_v52  ;;  %5721 = vpow2.f32 %v3969_v8  ;;  %v3925_v49 = vmin.f32 %v8598_v56, 20.0  ;;  %v4080_v63 = vmul.f32 %v4048_v31, %v4048_v31 }
 0x23e   : > { %v4234_v54 = vmul.f32 %v5714_v40, %v4138_v29  ;;  %v3927_v13 = vmin.f32 %v8601_v53, 20.0  ;;  %v3772_v47 = vrot.slane %v3664_v45, 2  ;;  %v8608_v59 = vadd.f32 %v8595_v4, %v3868_v61  ;;  %v9364_v45 = vld [vmem:[#allocation80_spill] sm:$0xff] }
 0x23f   : > { %5723 = vpow2.f32 %v3965_v41  ;;  %v3957_v32 = vmul.f32 1.442695, %v3925_v49  ;;  %v4667_v36 = vadd.f32 -1.0, %v4078_v18  ;;  %v4176_v37 = vadd.f32 1.0, %v4080_v63 }
 0x240   : > { %v4256_v46 = vadd.f32 %v4236_v39, %v4234_v54  ;;  %v3961_v5 = vmul.f32 1.442695, %v3927_v13  ;;  %v9363_v29 = vrot.slane %v8294_v33, 2  ;;  %v5716_v44 = vpop.eup %5715  ;;  %v3939_v60 = vmin.f32 %v8608_v59, 20.0  ;;  %v9367_v13 = vld [vmem:[#allocation77_spill] sm:$0xff] }
 0x241   : > { %5725 = vpow2.f32 %v3957_v32  ;;  %v3661_v9 = vmul.f32 %v5637_v34, %v8139_v14  ;;  %v4669_v39 = vadd.f32 -1.0, %v4080_v63  ;;  %v4052_v18 = vadd.f32 1.0, %v5716_v44  ;;  %v8640_v34 = vpop.permute.xlu0 %5644 }
 0x242   : > { %v3774_v62 = vsel %vm1259_vm1, %v3772_v47, %v9363_v29  ;;  %4273 = vst.msk [vmem:[#allocation2 + $0x58] sm:$0xff] %vm4261_vm2, %v4256_v46  ;;  %5727 = vrcp.f32 %v4176_v37  ;;  %v5636_v0 = vunpack.i.l.bf16 %v5635_v55  ;;  %v3985_v27 = vmul.f32 1.442695, %v3939_v60 }
 0x243   : > { %v3866_v1 = vadd.f32 %v3774_v62, %v8282_v50  ;;  %5729 = vpow2.f32 %v3961_v5  ;;  %v3767_v12 = vrot.slane %v3661_v9, 2  ;;  %v5718_v58 = vpop.eup %5717  ;;  %v4084_v7 = vmul.f32 %v4052_v18, %v4052_v18 }
 0x244   : > { %v3658_v52 = vmul.f32 %v5636_v0, %v8139_v14  ;;  %v5652_v50 = vunpack.i.h.bf16 %v5650_v6  ;;  %v5651_v8 = vunpack.i.l.bf16 %v5650_v6  ;;  %v8623_v40 = vadd.f32 %v8522_v17, %v8130_v20 }
 0x245   : > { %v8618_v33 = vadd.f32 %v8595_v4, %v3866_v1  ;;  %5731 = vpow2.f32 %v3985_v27  ;;  %v9365_v61 = vrot.slane %v9364_v45, 2  ;;  %v4180_v54 = vadd.f32 1.0, %v4084_v7 }
 0x246   : > { %v9366_v41 = vrot.slane %v8510_v10, 1  ;;  %v3762_v63 = vrot.slane %v3658_v52, 2  ;;  %v4142_v20 = vmul.f32 %v4667_v36, %v8479_v48  ;;  %v3679_v46 = vmul.f32 %v5652_v50, %v8139_v14  ;;  %v9368_v10 = vld [vmem:[#allocation82_spill] sm:$0xff]  ;;  %v9370_v48 = vld [vmem:[#allocation44_spill] sm:$0xff] }
 0x247   : > { %v3937_v31 = vmin.f32 %v8618_v33, 20.0  ;;  %v3769_v55 = vsel %vm1259_vm1, %v3767_v12, %v9365_v61  ;;  %v3676_v32 = vmul.f32 %v5651_v8, %v8139_v14  ;;  %v4144_v37 = vmul.f32 %v4669_v39, %v8518_v57 }
 0x248   : > { %v8634_v49 = vsel %vm899_vm0, %v3458_v15, %v9366_v41  ;;  %v3864_v47 = vadd.f32 %v3769_v55, %v9367_v13  ;;  %5733 = vrcp.f32 %v4180_v54  ;;  %v9369_v51 = vrot.slane %v9368_v10, 2 }
 0x249   : > { %v3981_v17 = vmul.f32 1.442695, %v3937_v31  ;;  %v5720_v29 = vpop.eup %5719  ;;  %v3797_v62 = vrot.slane %v3679_v46, 2  ;;  %v3792_v44 = vrot.slane %v3676_v32, 2  ;;  %v4238_v60 = vmul.f32 %v5718_v58, %v4142_v20 }
 0x24a   : > { %v3764_v15 = vsel %vm1259_vm1, %v3762_v63, %v9369_v51  ;;  %v8647_v5 = vadd.f32 %v8595_v4, %v3864_v47  ;;  %v5722_v1 = vpop.eup %5721  ;;  %v4050_v9 = vadd.f32 1.0, %v5720_v29  ;;  %v5647_v57 = vunpack.i.h.bf16 %v8640_v34 }
 0x24b   : > { %5735 = vpow2.f32 %v3981_v17  ;;  %v3862_v36 = vadd.f32 %v3764_v15, %v9370_v48  ;;  %v4027_v39 = vadd.f32 1.0, %v5722_v1  ;;  %v9371_v0 = vrot.slane %v8394_v38, 2 }
 0x24c   : > { %v3935_v6 = vmin.f32 %v8647_v5, 20.0  ;;  %v9372_v12 = vrot.slane %v8416_v19, 2  ;;  %v5724_v50 = vpop.eup %5723  ;;  %v4082_v8 = vmul.f32 %v4050_v9, %v4050_v9  ;;  %v4673_v61 = vadd.f32 -1.0, %v4084_v7  ;;  %v9373_v9 = vld [vmem:[#allocation45_spill] sm:$0xff] }
 0x24d   : > { %v8653_v18 = vadd.f32 %v8595_v4, %v3862_v36  ;;  %v3794_v27 = vsel %vm1259_vm1, %v3792_v44, %v9371_v0  ;;  %v4025_v55 = vadd.f32 1.0, %v5724_v50  ;;  %v4059_v54 = vmul.f32 %v4027_v39, %v4027_v39 }
 0x24e   : > { %v3799_v52 = vsel %vm1259_vm1, %v3797_v62, %v9372_v12  ;;  %v3977_v58 = vmul.f32 1.442695, %v3935_v6  ;;  %v3874_v31 = vadd.f32 %v3794_v27, %v8397_v3  ;;  %v5726_v63 = vpop.eup %5725  ;;  %v4178_v38 = vadd.f32 1.0, %v4082_v8 }
 0x24f   : > { %v3876_v45 = vadd.f32 %v3799_v52, %v8434_v23  ;;  %v3933_v41 = vmin.f32 %v8653_v18, 20.0  ;;  %v3673_v13 = vmul.f32 %v5647_v57, %v8139_v14  ;;  %v5646_v19 = vunpack.i.l.bf16 %v8640_v34  ;;  %v5728_v47 = vpop.eup %5727 }
 0x250   : > { %5737 = vpow2.f32 %v3977_v58  ;;  %v4671_v20 = vadd.f32 -1.0, %v4082_v8  ;;  %v4057_v17 = vmul.f32 %v4025_v55, %v4025_v55  ;;  %v4155_v46 = vadd.f32 1.0, %v4059_v54  ;;  %v5730_v3 = vpop.eup %5729 }
 0x251   : > { %v4021_v32 = vadd.f32 1.0, %v5726_v63  ;;  %v4240_v10 = vmul.f32 %v5728_v47, %v4144_v37  ;;  %5739 = vrcp.f32 %v4178_v38  ;;  %v3973_v23 = vmul.f32 1.442695, %v3933_v41 }
 0x252   : > { %v8667_v7 = vadd.f32 %v8595_v4, %v3874_v31  ;;  %v4646_v51 = vadd.f32 -1.0, %v4057_v17  ;;  %v4648_v15 = vadd.f32 -1.0, %v4059_v54  ;;  %v4153_v29 = vadd.f32 1.0, %v4057_v17  ;;  %v5732_v48 = vpop.eup %5731  ;;  %v8688_v17 = vpop.permute.xlu0 %5654 }
 0x253   : > { %5741 = vrcp.f32 %v4155_v46  ;;  %v4258_v36 = vadd.f32 %v4240_v10, %v4238_v60  ;;  %v4023_v62 = vadd.f32 1.0, %v5730_v3  ;;  %v4053_v34 = vmul.f32 %v4021_v32, %v4021_v32 }
 0x254   : > { %5743 = vpow2.f32 %v3973_v23  ;;  %v4035_v44 = vadd.f32 1.0, %v5732_v48  ;;  %v8670_v1 = vadd.f32 %v8595_v4, %v3876_v45  ;;  %v3787_v37 = vrot.slane %v3673_v13, 2 }
 0x255   : > { %5745 = vrcp.f32 %v4153_v29  ;;  %4275 = vst.msk [vmem:[#allocation2 + $0x68] sm:$0xff] %vm4261_vm2, %v4258_v36  ;;  %v8675_v6 = vadd.f32 %v8634_v49, %v9373_v9  ;;  %v4055_v57 = vmul.f32 %v4023_v62, %v4023_v62  ;;  %v4149_v39 = vadd.f32 1.0, %v4053_v34  ;;  %v5734_v60 = vpop.eup %5733 }
 0x256   : > { %v3945_v0 = vmin.f32 %v8667_v7, 20.0  ;;  %v4148_v27 = vmul.f32 %v4673_v61, %v8540_v16  ;;  %v4067_v12 = vmul.f32 %v4035_v44, %v4035_v44  ;;  %v3947_v52 = vmin.f32 %v8670_v1, 20.0  ;;  %v5660_v61 = vpop.permute.xlu1 %5659 }
 0x257   : > { %v3670_v50 = vmul.f32 %v5646_v19, %v8139_v14  ;;  %v4146_v58 = vmul.f32 %v4671_v20, %v8563_v25  ;;  %v4121_v31 = vmul.f32 %v4646_v51, %v8582_v22  ;;  %v4123_v49 = vmul.f32 %v4648_v15, %v8572_v35 }
 0x258   : > { %v5736_v8 = vpop.eup %5735  ;;  %v4151_v45 = vadd.f32 1.0, %v4055_v57  ;;  %5747 = vrcp.f32 %v4149_v39  ;;  %v4163_v54 = vadd.f32 1.0, %v4067_v12  ;;  %v9374_v41 = vrot.slane %v8386_v30, 2 }
 0x259   : > { %v4033_v55 = vadd.f32 1.0, %v5736_v8  ;;  %v4642_v63 = vadd.f32 -1.0, %v4053_v34  ;;  %v3997_v38 = vmul.f32 1.442695, %v3945_v0  ;;  %v4001_v13 = vmul.f32 1.442695, %v3947_v52 }
 0x25a   : > { %v3789_v16 = vsel %vm1259_vm1, %v3787_v37, %v9374_v41  ;;  %5749 = vrcp.f32 %v4151_v45  ;;  %v4244_v19 = vmul.f32 %v5734_v60, %v4148_v27  ;;  %v3782_v25 = vrot.slane %v3670_v50, 2 }
 0x25b   : > { %v4065_v47 = vmul.f32 %v4033_v55, %v4033_v55  ;;  %5751 = vrcp.f32 %v4163_v54  ;;  %v3872_v35 = vadd.f32 %v3789_v16, %v8407_v26  ;;  %v5662_v22 = vunpack.i.h.bf16 %v5660_v61 }
 0x25c   : > { %5753 = vpow2.f32 %v3997_v38  ;;  %v5661_v20 = vunpack.i.l.bf16 %v5660_v61  ;;  %v4644_v30 = vadd.f32 -1.0, %v4055_v57  ;;  %v9375_v3 = vrot.slane %v8355_v2, 2 }
 0x25d   : > { %v5738_v46 = vpop.eup %5737  ;;  %v4161_v32 = vadd.f32 1.0, %v4065_v47  ;;  %5755 = vpow2.f32 %v4001_v13  ;;  %v8695_v15 = vadd.f32 %v8595_v4, %v3872_v35  ;;  %v3691_v26 = vmul.f32 %v5662_v22, %v8139_v14 }
 0x25e   : > { %v3784_v10 = vsel %vm1259_vm1, %v3782_v25, %v9375_v3  ;;  %v4031_v23 = vadd.f32 1.0, %v5738_v46  ;;  %v5740_v29 = vpop.eup %5739  ;;  %v4117_v48 = vmul.f32 %v4642_v63, %v8598_v56  ;;  %v3688_v36 = vmul.f32 %v5661_v20, %v8139_v14 }
 0x25f   : > { %v3870_v51 = vadd.f32 %v3784_v10, %v8370_v21  ;;  %5757 = vrcp.f32 %v4161_v32  ;;  %v5657_v62 = vunpack.i.h.bf16 %v8688_v17  ;;  %v4242_v2 = vmul.f32 %v5740_v29, %v4146_v58 }
 0x260   : > { %v5742_v34 = vpop.eup %5741  ;;  %v8701_v44 = vmul.f32 %v4031_v23, %v4031_v23  ;;  %v3943_v21 = vmin.f32 %v8695_v15, 20.0  ;;  %v4656_v39 = vadd.f32 -1.0, %v4067_v12  ;;  %v3817_v0 = vrot.slane %v3691_v26, 2 }
 0x261   : > { %v8704_v37 = vadd.f32 %v8595_v4, %v3870_v51  ;;  %v5744_v9 = vpop.eup %5743  ;;  %v4219_v57 = vmul.f32 %v5742_v34, %v4123_v49  ;;  %v3812_v60 = vrot.slane %v3688_v36, 2  ;;  %v4260_v27 = vadd.f32 %v4244_v19, %v4242_v2 }
 0x262   : > { %v5746_v56 = vpop.eup %5745  ;;  %v4029_v52 = vadd.f32 1.0, %v5744_v9  ;;  %v4159_v50 = vadd.f32 1.0, %v8701_v44  ;;  %v3685_v8 = vmul.f32 %v5657_v62, %v8139_v14  ;;  %v3993_v55 = vmul.f32 1.442695, %v3943_v21  ;;  %v9378_v9 = vld [vmem:[#allocation17_spill] sm:$0xff] }
 0x263   : > { %v4217_v58 = vmul.f32 %v5746_v56, %v4121_v31  ;;  %v3941_v45 = vmin.f32 %v8704_v37, 20.0  ;;  %v9376_v54 = vrot.slane %v8495_v28, 2  ;;  %4277 = vst.msk [vmem:[#allocation2 + $0x78] sm:$0xff] %vm4261_vm2, %v4260_v27  ;;  %v4654_v12 = vadd.f32 -1.0, %v4065_v47  ;;  %v9380_v27 = vld [vmem:[#allocation47_spill] sm:$0xff] }
 0x264   : > { %v4061_v49 = vmul.f32 %v4029_v52, %v4029_v52  ;;  %5759 = vrcp.f32 %v4159_v50  ;;  %v3819_v16 = vsel %vm1259_vm1, %v3817_v0, %v3818_v11  ;;  %v4119_v13 = vmul.f32 %v4644_v30, %v8601_v53 }
 0x265   : > { %v3814_v41 = vsel %vm1259_vm1, %v3812_v60, %v9376_v54  ;;  %v4247_v61 = vadd.f32 %v4219_v57, %v4217_v58  ;;  %v3989_v63 = vmul.f32 1.442695, %v3941_v45  ;;  %5761 = vpow2.f32 %v3993_v55  ;;  %v5748_v38 = vpop.eup %5747 }
 0x266   : > { %v3882_v31 = vadd.f32 %v3814_v41, %v8623_v40  ;;  %v4157_v28 = vadd.f32 1.0, %v4061_v49  ;;  %v3884_v19 = vadd.f32 %v3819_v16, %v8675_v6  ;;  %v3807_v25 = vrot.slane %v3685_v8, 2 }
 0x267   : > { %v5750_v35 = vpop.eup %5749  ;;  %4264 = vst.msk [vmem:[#allocation2 + $0x10] sm:$0xff] %vm4261_vm2, %v4247_v61  ;;  %v4213_v47 = vmul.f32 %v5748_v38, %v4117_v48  ;;  %5763 = vpow2.f32 %v3989_v63  ;;  %v5656_v11 = vunpack.i.l.bf16 %v8688_v17  ;;  %v4131_v40 = vmul.f32 %v4656_v39, %v8608_v59 }
 0x268   : > { %v8722_v43 = vadd.f32 %v8595_v4, %v3882_v31  ;;  %v5752_v22 = vpop.eup %5751  ;;  %v4215_v20 = vmul.f32 %v5750_v35, %v4119_v13  ;;  %5765 = vrcp.f32 %v4157_v28  ;;  %v8727_v53 = vadd.f32 %v8595_v4, %v3884_v19 }
 0x269   : > { %v5754_v6 = vpop.eup %5753  ;;  %v4129_v46 = vmul.f32 %v4654_v12, %v8618_v33  ;;  %v3682_v32 = vmul.f32 %v5656_v11, %v8139_v14  ;;  %v9377_v3 = vrot.slane %v8491_v24, 2  ;;  %v4227_v29 = vmul.f32 %v5752_v22, %v4131_v40 }
 0x26a   : > { %v3953_v30 = vmin.f32 %v8722_v43, 20.0  ;;  %v5756_v17 = vpop.eup %5755  ;;  %v4245_v23 = vadd.f32 %v4215_v20, %v4213_v47  ;;  %v4041_v51 = vadd.f32 1.0, %v5754_v6  ;;  %v3955_v59 = vmin.f32 %v8727_v53, 20.0 }
 0x26b   : > { %v3809_v10 = vsel %vm1259_vm1, %v3807_v25, %v9377_v3  ;;  %v4043_v48 = vadd.f32 1.0, %v5756_v17  ;;  %v3802_v62 = vrot.slane %v3682_v32, 2  ;;  %v9379_v57 = vrot.slane %v9378_v9, 2 }
 0x26c   : > { %v3880_v26 = vadd.f32 %v3809_v10, %v8503_v42  ;;  %v4013_v36 = vmul.f32 1.442695, %v3953_v30  ;;  %v5758_v33 = vpop.eup %5757  ;;  %4262 = vst.msk [vmem:[#allocation2] sm:$0xff] %vm4261_vm2, %v4245_v23  ;;  %v4073_v14 = vmul.f32 %v4041_v51, %v4041_v51  ;;  %v4017_v34 = vmul.f32 1.442695, %v3955_v59 }
 0x26d   : > { %v4225_v2 = vmul.f32 %v5758_v33, %v4129_v46  ;;  %v4075_v21 = vmul.f32 %v4043_v48, %v4043_v48  ;;  %v3804_v42 = vsel %vm1259_vm1, %v3802_v62, %v9379_v57  ;;  %v4652_v60 = vadd.f32 -1.0, %v8701_v44 }
 0x26e   : > { %v8739_v24 = vadd.f32 %v8595_v4, %v3880_v26  ;;  %5767 = vpow2.f32 %v4013_v36  ;;  %v4280_v39 = vld [vmem:[#allocation2 + $0x10] ss:$2 sm:$0xff]  ;;  %v4296_v0 = vld [vmem:[#allocation2 + $0x11] ss:$2 sm:$0xff]  ;;  %v4169_v56 = vadd.f32 1.0, %v4073_v14  ;;  %v3878_v52 = vadd.f32 %v3804_v42, %v9380_v27 }
 0x26f   : > { %5769 = vpow2.f32 %v4017_v34  ;;  %v4310_v50 = vadd.f32 %v4296_v0, %v4280_v39  ;;  %v4251_v8 = vadd.f32 %v4227_v29, %v4225_v2  ;;  %v4650_v58 = vadd.f32 -1.0, %v4061_v49 }
 0x270   : > { %v4171_v45 = vadd.f32 1.0, %v4075_v21  ;;  %5771 = vrcp.f32 %v4169_v56  ;;  %v8748_v55 = vadd.f32 %v8595_v4, %v3878_v52  ;;  %v3951_v54 = vmin.f32 %v8739_v24, 20.0 }
 0x271   : > { %v5760_v41 = vpop.eup %5759  ;;  %v4318_v12 = vmul.f32 0.25, %v4310_v50  ;;  %4268 = vst.msk [vmem:[#allocation2 + $0x30] sm:$0xff] %vm4261_vm2, %v4251_v8  ;;  %v4127_v49 = vmul.f32 %v4652_v60, %v8647_v5  ;;  %v4125_v38 = vmul.f32 %v4650_v58, %v8653_v18  ;;  %v4662_v3 = vadd.f32 -1.0, %v4073_v14 }
 0x272   : > { %5773 = vrcp.f32 %v4171_v45  ;;  %v5762_v44 = vpop.eup %5761  ;;  %v3949_v4 = vmin.f32 %v8748_v55, 20.0  ;;  %v4009_v16 = vmul.f32 1.442695, %v3951_v54  ;;  %v4664_v17 = vadd.f32 -1.0, %v4075_v21 }
 0x273   : > { %v4326_v61 = vpack.c.bf16 %v4318_v12, %v4318_v12  ;;  %v4278_v63 = vld [vmem:[#allocation2] ss:$2 sm:$0xff]  ;;  %v4294_v31 = vld [vmem:[#allocation2 + $0x1] ss:$2 sm:$0xff]  ;;  %v4039_v13 = vadd.f32 1.0, %v5762_v44  ;;  %v4223_v25 = vmul.f32 %v5760_v41, %v4127_v49  ;;  %v4137_v48 = vmul.f32 %v4662_v3, %v8667_v7 }
 0x274   : > { %v5764_v28 = vpop.eup %5763  ;;  %v4309_v19 = vadd.f32 %v4294_v31, %v4278_v63  ;;  %v4005_v35 = vmul.f32 1.442695, %v3949_v4  ;;  %5775 = vpow2.f32 %v4009_v16  ;;  %v4139_v14 = vmul.f32 %v4664_v17, %v8670_v1 }
 0x275   : > { %v5766_v47 = vpop.eup %5765  ;;  %4335 = vst.msk [vmem:[%s8755_s12 + $0x4] sm:$0xf] %vm4333_vm3, %v4326_v61  ;;  %v4037_v11 = vadd.f32 1.0, %v5764_v28  ;;  %v4071_v5 = vmul.f32 %v4039_v13, %v4039_v13 }
 0x276   : > { %v4317_v22 = vmul.f32 0.25, %v4309_v19  ;;  %v4221_v20 = vmul.f32 %v5766_v47, %v4125_v38  ;;  %5777 = vpow2.f32 %v4005_v35 }
 0x277   : > { %v4069_v40 = vmul.f32 %v4037_v11, %v4037_v11  ;;  %v4167_v6 = vadd.f32 1.0, %v4071_v5  ;;  %v4660_v52 = vadd.f32 -1.0, %v4071_v5 }
 0x278   : > { %v4325_v46 = vpack.c.bf16 %v4317_v22, %v4317_v22  ;;  %v4284_v30 = vld [vmem:[#allocation2 + $0x30] ss:$2 sm:$0xff]  ;;  %v4300_v18 = vld [vmem:[#allocation2 + $0x31] ss:$2 sm:$0xff]  ;;  %v4249_v32 = vadd.f32 %v4223_v25, %v4221_v20 }
 0x279   : > { %v4312_v10 = vadd.f32 %v4300_v18, %v4284_v30  ;;  %v4165_v23 = vadd.f32 1.0, %v4069_v40  ;;  %5779 = vrcp.f32 %v4167_v6  ;;  %v4658_v8 = vadd.f32 -1.0, %v4069_v40 }
 0x27a   : > { %4334 = vst.msk [vmem:[%s8755_s12] sm:$0xf] %vm4333_vm3, %v4325_v46  ;;  %v4135_v12 = vmul.f32 %v4660_v52, %v8695_v15 }
 0x27b   : > { %v5768_v51 = vpop.eup %5767  ;;  %4266 = vst.msk [vmem:[#allocation2 + $0x20] sm:$0xff] %vm4261_vm2, %v4249_v32  ;;  %v4320_v26 = vmul.f32 0.25, %v4312_v10  ;;  %5781 = vrcp.f32 %v4165_v23  ;;  %v4133_v16 = vmul.f32 %v4658_v8, %v8704_v37 }
 0x27c   : > { %v5770_v59 = vpop.eup %5769  ;;  %v4049_v29 = vadd.f32 1.0, %v5768_v51 }
 0x27d   : > { %v4051_v36 = vadd.f32 1.0, %v5770_v59  ;;  %v5772_v62 = vpop.eup %5771  ;;  %v4328_v33 = vpack.c.bf16 %v4320_v26, %v4320_v26 }
 0x27e   : > { %v4081_v34 = vmul.f32 %v4049_v29, %v4049_v29  ;;  %v4233_v21 = vmul.f32 %v5772_v62, %v4137_v48 }
 0x27f   : > { %v5774_v2 = vpop.eup %5773  ;;  %v4083_v9 = vmul.f32 %v4051_v36, %v4051_v36  ;;  %4337 = vst.msk [vmem:[%s8755_s12 + $0xc] sm:$0xf] %vm4333_vm3, %v4328_v33 }
 0x280   : > { %v4235_v57 = vmul.f32 %v5774_v2, %v4139_v14  ;;  %v4177_v42 = vadd.f32 1.0, %v4081_v34  ;;  %v4670_v13 = vadd.f32 -1.0, %v4081_v34 }
 0x281   : > { %v4179_v39 = vadd.f32 1.0, %v4083_v9  ;;  %v5776_v0 = vpop.eup %5775  ;;  %v4672_v25 = vadd.f32 -1.0, %v4083_v9 }
 0x282   : > { %v4282_v60 = vld [vmem:[#allocation2 + $0x20] ss:$2 sm:$0xff]  ;;  %v4298_v56 = vld [vmem:[#allocation2 + $0x21] ss:$2 sm:$0xff]  ;;  %v4255_v27 = vadd.f32 %v4235_v57, %v4233_v21  ;;  %5783 = vrcp.f32 %v4177_v42  ;;  %v4047_v50 = vadd.f32 1.0, %v5776_v0  ;;  %v4145_v37 = vmul.f32 %v4670_v13, %v8722_v43 }
 0x283   : > { %v4311_v7 = vadd.f32 %v4298_v56, %v4282_v60  ;;  %5785 = vrcp.f32 %v4179_v39  ;;  %v5778_v1 = vpop.eup %5777  ;;  %v4147_v5 = vmul.f32 %v4672_v25, %v8727_v53 }
 0x284   : > { %4272 = vst.msk [vmem:[#allocation2 + $0x50] sm:$0xff] %vm4261_vm2, %v4255_v27  ;;  %v4045_v45 = vadd.f32 1.0, %v5778_v1  ;;  %v4079_v54 = vmul.f32 %v4047_v50, %v4047_v50 }
 0x285   : > { %v4319_v58 = vmul.f32 0.25, %v4311_v7 }
 0x286   : > { %v4077_v44 = vmul.f32 %v4045_v45, %v4045_v45  ;;  %v4175_v49 = vadd.f32 1.0, %v4079_v54  ;;  %v5780_v4 = vpop.eup %5779  ;;  %v4668_v46 = vadd.f32 -1.0, %v4079_v54 }
 0x287   : > { %v4327_v41 = vpack.c.bf16 %v4319_v58, %v4319_v58  ;;  %v4231_v63 = vmul.f32 %v5780_v4, %v4135_v12 }
 0x288   : > { %v5782_v61 = vpop.eup %5781  ;;  %v4173_v31 = vadd.f32 1.0, %v4077_v44  ;;  %5787 = vrcp.f32 %v4175_v49  ;;  %v4666_v18 = vadd.f32 -1.0, %v4077_v44  ;;  %v4143_v43 = vmul.f32 %v4668_v46, %v8739_v24 }
 0x289   : > { %4336 = vst.msk [vmem:[%s8755_s12 + $0x8] sm:$0xf] %vm4333_vm3, %v4327_v41  ;;  %v4229_v38 = vmul.f32 %v5782_v61, %v4133_v16 }
 0x28a   : > { %5789 = vrcp.f32 %v4173_v31  ;;  %v4141_v53 = vmul.f32 %v4666_v18, %v8748_v55 }
 0x28b   : > { %v4288_v28 = vld [vmem:[#allocation2 + $0x50] ss:$2 sm:$0xff]  ;;  %v4304_v19 = vld [vmem:[#allocation2 + $0x51] ss:$2 sm:$0xff]  ;;  %v4253_v15 = vadd.f32 %v4231_v63, %v4229_v38 }
 0x28c   : > { %v4314_v35 = vadd.f32 %v4304_v19, %v4288_v28 }
 0x28d   : > { %4270 = vst.msk [vmem:[#allocation2 + $0x40] sm:$0xff] %vm4261_vm2, %v4253_v15 }
 0x28e   : > { %v4322_v47 = vmul.f32 0.25, %v4314_v35 }
 0x28f   : > { %v5784_v11 = vpop.eup %5783 }
 0x290   : > { %v5786_v22 = vpop.eup %5785  ;;  %v4330_v20 = vpack.c.bf16 %v4322_v47, %v4322_v47  ;;  %v4241_v40 = vmul.f32 %v5784_v11, %v4145_v37 }
 0x291   : > { %v4243_v6 = vmul.f32 %v5786_v22, %v4147_v5 }
 0x292   : > { %4339 = vst.msk [vmem:[%s8755_s12 + $0x14] sm:$0xf] %vm4333_vm3, %v4330_v20 }
 0x293   : > { %v4259_v30 = vadd.f32 %v4243_v6, %v4241_v40 }
 0x294   : > { %v4286_v32 = vld [vmem:[#allocation2 + $0x40] ss:$2 sm:$0xff]  ;;  %v4302_v3 = vld [vmem:[#allocation2 + $0x41] ss:$2 sm:$0xff] }
 0x295   : > { %4276 = vst.msk [vmem:[#allocation2 + $0x70] sm:$0xff] %vm4261_vm2, %v4259_v30  ;;  %v4313_v10 = vadd.f32 %v4302_v3, %v4286_v32  ;;  %v5788_v17 = vpop.eup %5787 }
 0x296   : > { %v4239_v59 = vmul.f32 %v5788_v17, %v4143_v43 }
 0x297   : > { %v5790_v23 = vpop.eup %5789  ;;  %v4321_v51 = vmul.f32 0.25, %v4313_v10 }
 0x298   : > { %v4237_v26 = vmul.f32 %v5790_v23, %v4141_v53 }
 0x299   : > { %v4329_v29 = vpack.c.bf16 %v4321_v51, %v4321_v51 }
 0x29a   : > { %v4257_v48 = vadd.f32 %v4239_v59, %v4237_v26 }
 0x29b   : > { %4338 = vst.msk [vmem:[%s8755_s12 + $0x10] sm:$0xf] %vm4333_vm3, %v4329_v29 }
 0x29c   : > { %v4292_v36 = vld [vmem:[#allocation2 + $0x70] ss:$2 sm:$0xff]  ;;  %v4308_v62 = vld [vmem:[#allocation2 + $0x71] ss:$2 sm:$0xff]  ;;  %4274 = vst.msk [vmem:[#allocation2 + $0x60] sm:$0xff] %vm4261_vm2, %v4257_v48 }
 0x29d   : > { %v4316_v33 = vadd.f32 %v4308_v62, %v4292_v36 }
 0x29f   : > { %v4324_v14 = vmul.f32 0.25, %v4316_v33 }
 0x2a1   : > { %v4332_v24 = vpack.c.bf16 %v4324_v14, %v4324_v14 }
 0x2a3   : > { %4341 = vst.msk [vmem:[%s8755_s12 + $0x1c] sm:$0xf] %vm4333_vm3, %v4332_v24  ;;  %v4290_v34 = vld [vmem:[#allocation2 + $0x60] ss:$2 sm:$0xff]  ;;  %v4306_v55 = vld [vmem:[#allocation2 + $0x61] ss:$2 sm:$0xff] }
 0x2a4   : > { %v4315_v2 = vadd.f32 %v4306_v55, %v4290_v34 }
 0x2a6   : > { %v4323_v21 = vmul.f32 0.25, %v4315_v2 }
 0x2a8   : > { %v4331_v9 = vpack.c.bf16 %v4323_v21, %v4323_v21 }
 0x2aa   : > { %4340 = vst.msk [vmem:[%s8755_s12 + $0x18] sm:$0xf] %vm4333_vm3, %v4331_v9 }
 0x2ab PF: > { %s13_s14 = sadd.s32 1, %s5815_s14   ;;  %s9381_s12 = smov %s5811_s13 }
 0x2ac   : > { %p10_p5 = scmp.ge.s32.totalorder %s13_s14, 4   ;;  %s9382_s13 = smov %s9384_s15 }
 0x2ae   :  { %12 = sbr.rel (!%p10_p5) target bundleno = 2 (0x2), region = 88 }

</bundles_post_ra>
